<compile_context>
chip_gen: v6e
topology: v6e:2x2x1
jax: 0.10.0
libtpu: 0.0.40
codegen_flags: <defaults>
</compile_context>

<pallas_src>
import numpy as np
import jax
import jax.numpy as jnp
from jax.experimental import pallas as pl
from jax.experimental.pallas import tpu as pltpu


# ----------------------------------------------------------------------------
# Pallas kernel: entire decoder forward (all T timesteps) in one invocation
# ----------------------------------------------------------------------------
def hier_decoder_kernel(
    # inputs (all fully VMEM-resident, single program)
    gi0e_ref,      # [T, B, 3H] f32  hoisted emb-side layer-0 input proj (+ b_ih0)
    pwbank_ref,    # [H, BN]    bf16 projected word bank, transposed (BN = B*S*W)
    psbank_ref,    # [H, BS]    bf16 projected sent bank, transposed (BS = B*S)
    wbank_ref,     # [BN, H]    bf16 raw word bank (for context)
    wmask_ref,     # [B, BN]    f32  additive mask (off-diag batch blocks = -1e30)
    smask_ref,     # [B, BS]    f32  additive mask (off-diag batch blocks = -1e30)
    static_ref,    # [B, BS]    f32  static attention (off-diag batch blocks = 0)
    h0_ref,        # [L, B, H]  f32  initial hidden state
    w_ih0f_ref,    # [H, 3H]    bf16 layer-0 input weights, input-feed part
    w_hh0_ref,     # [H, 3H]    bf16
    b_hh0_ref,     # [1, 3H]    f32
    w_ih1_ref,     # [H, 3H]    bf16
    w_hh1_ref,     # [H, 3H]    bf16
    b_ih1_ref,     # [1, 3H]    f32
    b_hh1_ref,     # [1, 3H]    f32
    w_out_c_ref,   # [H, H]     bf16 linear_out, context part
    w_out_s_ref,   # [H, H]     bf16 linear_out, source part
    g_ref,         # [BN, BS]   bf16 0/1 group indicator (segment sum over W)
    gt_ref,        # [BS, BN]   bf16 indicator transpose (broadcast S -> N)
    # outputs
    dec_out_ref,   # [T, B, H]  f32
    attn_out_ref,  # [T, B, BN] f32 (batch-blocked; diagonal extracted outside)
    hfinal_ref,    # [L, B, H]  f32
):
  T, B, H = dec_out_ref.shape
  bf16 = jnp.bfloat16
  f32 = jnp.float32

  # load loop-invariant operands once
  pwbank = pwbank_ref[...]
  psbank = psbank_ref[...]
  wbank = wbank_ref[...]
  wmask = wmask_ref[...]
  smask = smask_ref[...]
  static = static_ref[...]
  g_mat = g_ref[...]
  gt_mat = gt_ref[...]
  w_ih0f = w_ih0f_ref[...]
  w_hh0 = w_hh0_ref[...]
  b_hh0 = b_hh0_ref[...]
  w_ih1 = w_ih1_ref[...]
  w_hh1 = w_hh1_ref[...]
  b_ih1 = b_ih1_ref[...]
  b_hh1 = b_hh1_ref[...]
  w_out_c = w_out_c_ref[...]
  w_out_s = w_out_s_ref[...]

  h_l0 = h0_ref[0]
  h_l1 = h0_ref[1]
  feed = jnp.zeros((B, H), f32)              # RNNDecoderState.input_feed init

  def gru_gates(gi, gh, h_prev):             # torch nn.GRUCell, gates [r, z, n]
    r = jax.nn.sigmoid(gi[:, 0:H] + gh[:, 0:H])
    z = jax.nn.sigmoid(gi[:, H:2 * H] + gh[:, H:2 * H])
    n = jnp.tanh(gi[:, 2 * H:3 * H] + r * gh[:, 2 * H:3 * H])
    return (1.0 - z) * n + z * h_prev

  # TODO(synk): dropout p>0 between layers / on decoder_output not implemented.
  for t in range(T):                         # static unrolled input-feed loop
    # ---- StackedGRU layer 0 (emb-side input projection hoisted out) ----
    gi0 = gi0e_ref[t] + jnp.dot(feed.astype(bf16), w_ih0f,
                                preferred_element_type=f32)
    gh0 = jnp.dot(h_l0.astype(bf16), w_hh0, preferred_element_type=f32) + b_hh0
    h_l0 = gru_gates(gi0, gh0, h_l0)

    # ---- layer 1 (inter-layer dropout p=0 is identity) ----
    gi1 = jnp.dot(h_l0.astype(bf16), w_ih1, preferred_element_type=f32) + b_ih1
    gh1 = jnp.dot(h_l1.astype(bf16), w_hh1, preferred_element_type=f32) + b_hh1
    h_l1 = gru_gates(gi1, gh1, h_l1)
    src_bf = h_l1.astype(bf16)

    # ---- HierarchicalAttention ("general"); projections folded into banks,
    #      all contractions are flat MXU matmuls in a batch-blocked layout ----
    word_scores = jnp.dot(src_bf, pwbank, preferred_element_type=f32) + wmask  # [B, BN]
    sent_scores = jnp.dot(src_bf, psbank, preferred_element_type=f32) + smask  # [B, BS]

    # sentence-level softmax (off-diagonal batch blocks exp to exactly 0)
    sm = jnp.max(sent_scores, axis=-1, keepdims=True)
    se = jnp.exp(sent_scores - sm)
    sent_align = se * pl.reciprocal(jnp.sum(se, axis=-1, keepdims=True),
                                    approx=True)                               # [B, BS]

    # word-level softmax over W per (b, s) in flat layout; per-group sums via
    # the 0/1 indicator matmul (segment sum on the MXU).
    wm = jnp.max(word_scores, axis=-1, keepdims=True)
    we = jnp.exp(word_scores - wm)                                             # [B, BN]
    gsum = jnp.dot(we.astype(bf16), g_mat, preferred_element_type=f32)         # [B, BS]
    gsum = jnp.maximum(gsum, 1e-30)       # guard underflowed / off-diag groups
    factor = sent_align * static * pl.reciprocal(gsum, approx=True)            # [B, BS]
    comb_u = we * jnp.dot(factor.astype(bf16), gt_mat,
                          preferred_element_type=f32)                          # [B, BN]
    comb = comb_u * pl.reciprocal(jnp.sum(comb_u, axis=-1, keepdims=True),
                                  approx=True)                                 # [B, BN]

    # context + linear_out(concat([context, source])) + tanh
    ctx = jnp.dot(comb.astype(bf16), wbank, preferred_element_type=f32)        # [B, H]
    attn_h = jnp.tanh(
        jnp.dot(ctx.astype(bf16), w_out_c, preferred_element_type=f32)
        + jnp.dot(src_bf, w_out_s, preferred_element_type=f32))

    feed = attn_h                           # input feeding
    dec_out_ref[t] = attn_h
    attn_out_ref[t] = comb

  hfinal_ref[0] = h_l0
  hfinal_ref[1] = h_l1


# ----------------------------------------------------------------------------
# Glue: parameter init, mask building, wrapper, pure-JAX reference
# ----------------------------------------------------------------------------
def init_params(key, vocab, E, H, L):
  keys = jax.random.split(key, 4 + 4 * L)
  s = 1.0 / float(np.sqrt(H))

  def u(k, shape, scale):
    return jax.random.uniform(k, shape, jnp.float32, -scale, scale)

  params = {
      'embedding': u(keys[0], (vocab, E), 0.1),
      'w_word': u(keys[1], (H, H), s),        # word_linear_in (torch [out,in])
      'w_sent': u(keys[2], (H, H), s),        # sent_linear_in
      'w_out': u(keys[3], (H, 2 * H), s),     # linear_out (no bias, general)
  }
  in_size = E + H
  for l in range(L):
    base = 4 + 4 * l
    params[f'w_ih{l}'] = u(keys[base + 0], (3 * H, in_size), s)   # torch GRUCell layout
    params[f'w_hh{l}'] = u(keys[base + 1], (3 * H, H), s)
    params[f'b_ih{l}'] = u(keys[base + 2], (3 * H,), s)
    params[f'b_hh{l}'] = u(keys[base + 3], (3 * H,), s)
    in_size = H
  return params


def make_masks(word_lengths, sent_lengths, W, S):
  wmask = jnp.where(jnp.arange(W)[None, None, :] < word_lengths[:, :, None],
                    0.0, -1e30).astype(jnp.float32)                  # [B, S, W]
  smask = jnp.where(jnp.arange(S)[None, :] < sent_lengths[:, None],
                    0.0, -1e30).astype(jnp.float32)                  # [B, S]
  return wmask, smask


def hier_decoder_pallas(params, tgt, word_bank, sent_bank,
                        word_lengths, sent_lengths, static_attn, h0):
  """Mirrors HierDecoder.forward; returns (decoder_outputs, (hidden, input_feed), attns)."""
  T, B = tgt.shape
  Wl, _, S, H = word_bank.shape
  E = params['embedding'].shape[1]
  L = h0.shape[0]
  N = S * Wl
  BN, BS = B * N, B * S
  assert L == 2
  bf = jnp.bfloat16
  f32 = jnp.float32

  # --- loop-invariant precompute (one-time XLA work, hoisted per the review) ---
  emb = params['embedding'][tgt]                                      # [T, B, E] (gather)
  gi0_emb = (jnp.einsum('tbe,ge->tbg', emb, params['w_ih0'][:, :E])
             + params['b_ih0']).astype(f32)                           # [T, B, 3H]

  wbank = jnp.transpose(word_bank, (1, 2, 0, 3)).reshape(B, N, H)     # [B, N, H]
  sbank = jnp.transpose(sent_bank, (1, 0, 2))                         # [B, S, H]
  # fold the "general" attention linear_in projections into the banks
  pwbank_t = jnp.matmul(wbank, params['w_word']).reshape(BN, H).T.astype(bf)   # [H, BN]
  psbank_t = jnp.matmul(sbank, params['w_sent']).reshape(BS, H).T.astype(bf)   # [H, BS]
  wbank_flat = wbank.reshape(BN, H).astype(bf)                        # [BN, H]

  # masks / static attention in batch-blocked flat layout (column j = b'*N+n or
  # b'*S+s); off-diagonal batch blocks fully masked so they contribute nothing.
  wmask, smask = make_masks(word_lengths, sent_lengths, Wl, S)
  eye_b = jnp.eye(B, dtype=bool)
  wmask_full = jnp.where(eye_b[:, :, None], wmask.reshape(B, N)[:, None, :],
                         -1e30).reshape(B, BN).astype(f32)
  smask_full = jnp.where(eye_b[:, :, None], smask[:, None, :],
                         -1e30).reshape(B, BS).astype(f32)
  static_full = jnp.where(eye_b[:, :, None], static_attn[:, None, :],
                          0.0).reshape(B, BS).astype(f32)

  # 0/1 group-indicator matrices in the same batch-blocked layout
  seg = jnp.repeat(jnp.arange(S), Wl)                                 # group of each n
  g_small = (seg[:, None] == jnp.arange(S)[None, :])                  # [N, S]
  g_full = (eye_b[:, None, :, None] & g_small[None, :, None, :]
            ).reshape(BN, BS).astype(bf)                              # [BN, BS]
  gt_full = jnp.transpose(g_full)                                     # [BS, BN]

  # GRU / output weights (pre-transposed; concat realised via split matrices)
  w_ih0f = params['w_ih0'][:, E:].T.astype(bf)
  w_hh0 = params['w_hh0'].T.astype(bf)
  w_ih1 = params['w_ih1'].T.astype(bf)
  w_hh1 = params['w_hh1'].T.astype(bf)
  w_out_c = params['w_out'][:, :H].T.astype(bf)
  w_out_s = params['w_out'][:, H:].T.astype(bf)
  b_hh0 = params['b_hh0'][None, :].astype(f32)
  b_ih1 = params['b_ih1'][None, :].astype(f32)
  b_hh1 = params['b_hh1'][None, :].astype(f32)

  kernel_args = (
      gi0_emb, pwbank_t, psbank_t, wbank_flat,
      wmask_full, smask_full, static_full, h0.astype(f32),
      w_ih0f, w_hh0, b_hh0,
      w_ih1, w_hh1, b_ih1, b_hh1,
      w_out_c, w_out_s,
      g_full, gt_full,
  )

  out_shape = (
      jax.ShapeDtypeStruct((T, B, H), f32),        # decoder_outputs
      jax.ShapeDtypeStruct((T, B, BN), f32),       # attns (batch-blocked flat)
      jax.ShapeDtypeStruct((L, B, H), f32),        # final hidden
  )

  # Single program (no grid): everything fully VMEM-resident, outputs written
  # back to HBM once. Working set < 1 MiB, so no vmem_limit override (v7x-safe).
  dec_outs, attn_full, h_final = pl.pallas_call(
      hier_decoder_kernel,
      out_shape=out_shape,
  )(*kernel_args)

  # extract the per-batch diagonal blocks of the batch-blocked attention output
  attns = jnp.einsum('tbcn,bc->tbn', attn_full.reshape(T, B, B, N),
                     jnp.eye(B, dtype=attn_full.dtype)).reshape(T, B, S, Wl)
  input_feed = dec_outs[-1][None]                  # state.update_state(...)
  return dec_outs, (h_final, input_feed), {'std': attns}


def reference_forward(params, tgt, word_bank, sent_bank,
                      word_lengths, sent_lengths, static_attn, h0):
  """Pure-JAX replica of HierDecoder._run_forward_pass (GRU, dropout=0)."""
  T, B = tgt.shape
  Wl, _, S, H = word_bank.shape
  L = h0.shape[0]
  emb = params['embedding'][tgt]
  wbank = jnp.transpose(word_bank, (1, 2, 0, 3))
  sbank = jnp.transpose(sent_bank, (1, 0, 2))
  wmask, smask = make_masks(word_lengths, sent_lengths, Wl, S)

  feed = jnp.zeros((B, H), jnp.float32)
  hid = [h0[i] for i in range(L)]
  dec_outs, attns = [], []
  for t in range(T):
    inp = jnp.concatenate([emb[t], feed], axis=1)
    new_hid = []
    for l in range(L):
      gi = inp @ params[f'w_ih{l}'].T + params[f'b_ih{l}']
      gh = hid[l] @ params[f'w_hh{l}'].T + params[f'b_hh{l}']
      r = jax.nn.sigmoid(gi[:, :H] + gh[:, :H])
      z = jax.nn.sigmoid(gi[:, H:2 * H] + gh[:, H:2 * H])
      n = jnp.tanh(gi[:, 2 * H:] + r * gh[:, 2 * H:])
      h_new = (1.0 - z) * n + z * hid[l]
      new_hid.append(h_new)
      inp = h_new
    hid = new_hid
    source = inp
    q_sent = source @ params['w_sent'].T
    q_word = source @ params['w_word'].T
    sent_scores = jnp.einsum('bd,bsd->bs', q_sent, sbank) + smask
    word_scores = jnp.einsum('bd,bswd->bsw', q_word, wbank) + wmask
    sent_align = jax.nn.softmax(sent_scores, axis=-1)
    word_align = jax.nn.softmax(word_scores, axis=-1)
    comb = word_align * sent_align[:, :, None] * static_attn[:, :, None]
    comb = comb / jnp.sum(comb, axis=(1, 2), keepdims=True)
    ctx = jnp.einsum('bsw,bswd->bd', comb, wbank)
    attn_h = jnp.tanh(jnp.concatenate([ctx, source], axis=1) @ params['w_out'].T)
    feed = attn_h
    dec_outs.append(attn_h)
    attns.append(comb)
  return jnp.stack(dec_outs), jnp.stack(attns), jnp.stack(hid)


# ----------------------------------------------------------------------------
if __name__ == "__main__":
  T, B, S, W, E, H, L, V = 5, 2, 4, 8, 64, 128, 2, 50

  key = jax.random.PRNGKey(0)
  kp, k1, k2, k3, k4, k5, k6, k7 = jax.random.split(key, 8)
  params = init_params(kp, V, E, H, L)

  tgt = jax.random.randint(k1, (T, B), 0, V, dtype=jnp.int32)
  word_memory_bank = 0.5 * jax.random.normal(k2, (W, B, S, H), jnp.float32)
  sent_memory_bank = 0.5 * jax.random.normal(k3, (S, B, H), jnp.float32)
  word_memory_lengths = jax.random.randint(k4, (B, S), 1, W + 1, dtype=jnp.int32)
  sent_memory_lengths = jax.random.randint(k5, (B,), 1, S + 1, dtype=jnp.int32)
  static_attn = jax.nn.softmax(jax.random.normal(k6, (B, S), jnp.float32), axis=-1)
  enc_hidden = 0.1 * jax.random.normal(k7, (L, B, H), jnp.float32)   # init_decoder_state

  # The kernel's matmul path runs in bf16 (f32 accumulation). Round params and
  # memory banks to bf16-representable values so the f32 reference sees the same
  # base numbers (the check then isolates kernel correctness).
  rb = lambda x: x.astype(jnp.bfloat16).astype(jnp.float32)
  params = jax.tree_util.tree_map(rb, params)
  word_memory_bank = rb(word_memory_bank)
  sent_memory_bank = rb(sent_memory_bank)

  dec_outs, state, attns = hier_decoder_pallas(
      params, tgt, word_memory_bank, sent_memory_bank,
      word_memory_lengths, sent_memory_lengths, static_attn, enc_hidden)
  jax.block_until_ready((dec_outs, state, attns['std']))

  ref_dec, ref_attn, ref_h = reference_forward(
      params, tgt, word_memory_bank, sent_memory_bank,
      word_memory_lengths, sent_memory_lengths, static_attn, enc_hidden)

  np.testing.assert_allclose(np.asarray(dec_outs), np.asarray(ref_dec),
                             rtol=5e-2, atol=3e-2)
  np.testing.assert_allclose(np.asarray(attns['std']), np.asarray(ref_attn),
                             rtol=1e-1, atol=1e-2)
  np.testing.assert_allclose(np.asarray(state[0]), np.asarray(ref_h),
                             rtol=5e-2, atol=3e-2)
  print("KERNEL_OK")
</pallas_src>

<mosaic_0001>
module attributes {stable_mosaic.version = 11 : i64} {
  func.func @hier_decoder_kernel(%arg0: memref<5x2x384xf32, #tpu.memory_space<vmem>>, %arg1: memref<128x64xbf16, #tpu.memory_space<vmem>>, %arg2: memref<128x8xbf16, #tpu.memory_space<vmem>>, %arg3: memref<64x128xbf16, #tpu.memory_space<vmem>>, %arg4: memref<2x64xf32, #tpu.memory_space<vmem>>, %arg5: memref<2x8xf32, #tpu.memory_space<vmem>>, %arg6: memref<2x8xf32, #tpu.memory_space<vmem>>, %arg7: memref<2x2x128xf32, #tpu.memory_space<vmem>>, %arg8: memref<128x384xbf16, #tpu.memory_space<vmem>>, %arg9: memref<128x384xbf16, #tpu.memory_space<vmem>>, %arg10: memref<1x384xf32, #tpu.memory_space<vmem>>, %arg11: memref<128x384xbf16, #tpu.memory_space<vmem>>, %arg12: memref<128x384xbf16, #tpu.memory_space<vmem>>, %arg13: memref<1x384xf32, #tpu.memory_space<vmem>>, %arg14: memref<1x384xf32, #tpu.memory_space<vmem>>, %arg15: memref<128x128xbf16, #tpu.memory_space<vmem>>, %arg16: memref<128x128xbf16, #tpu.memory_space<vmem>>, %arg17: memref<64x8xbf16, #tpu.memory_space<vmem>>, %arg18: memref<8x64xbf16, #tpu.memory_space<vmem>>, %arg19: memref<5x2x128xf32, #tpu.memory_space<vmem>>, %arg20: memref<5x2x64xf32, #tpu.memory_space<vmem>>, %arg21: memref<2x2x128xf32, #tpu.memory_space<vmem>>) attributes {dimension_semantics = [], scalar_prefetch = 0 : i64, scratch_operands = 0 : i64, tpu.core_type = #tpu.core_type<tc>} {
    %c0 = arith.constant 0 : index
    %c0_0 = arith.constant 0 : index
    %0 = vector.load %arg1[%c0, %c0_0] : memref<128x64xbf16, #tpu.memory_space<vmem>>, vector<128x64xbf16>
    %c0_1 = arith.constant 0 : index
    %c0_2 = arith.constant 0 : index
    %1 = vector.load %arg2[%c0_1, %c0_2] : memref<128x8xbf16, #tpu.memory_space<vmem>>, vector<128x8xbf16>
    %c0_3 = arith.constant 0 : index
    %c0_4 = arith.constant 0 : index
    %2 = vector.load %arg3[%c0_3, %c0_4] : memref<64x128xbf16, #tpu.memory_space<vmem>>, vector<64x128xbf16>
    %c0_5 = arith.constant 0 : index
    %c0_6 = arith.constant 0 : index
    %3 = vector.load %arg4[%c0_5, %c0_6] : memref<2x64xf32, #tpu.memory_space<vmem>>, vector<2x64xf32>
    %c0_7 = arith.constant 0 : index
    %c0_8 = arith.constant 0 : index
    %4 = vector.load %arg5[%c0_7, %c0_8] : memref<2x8xf32, #tpu.memory_space<vmem>>, vector<2x8xf32>
    %c0_9 = arith.constant 0 : index
    %c0_10 = arith.constant 0 : index
    %5 = vector.load %arg6[%c0_9, %c0_10] : memref<2x8xf32, #tpu.memory_space<vmem>>, vector<2x8xf32>
    %c0_11 = arith.constant 0 : index
    %c0_12 = arith.constant 0 : index
    %6 = vector.load %arg17[%c0_11, %c0_12] : memref<64x8xbf16, #tpu.memory_space<vmem>>, vector<64x8xbf16>
    %c0_13 = arith.constant 0 : index
    %c0_14 = arith.constant 0 : index
    %7 = vector.load %arg18[%c0_13, %c0_14] : memref<8x64xbf16, #tpu.memory_space<vmem>>, vector<8x64xbf16>
    %c0_15 = arith.constant 0 : index
    %c0_16 = arith.constant 0 : index
    %8 = vector.load %arg8[%c0_15, %c0_16] : memref<128x384xbf16, #tpu.memory_space<vmem>>, vector<128x384xbf16>
    %c0_17 = arith.constant 0 : index
    %c0_18 = arith.constant 0 : index
    %9 = vector.load %arg9[%c0_17, %c0_18] : memref<128x384xbf16, #tpu.memory_space<vmem>>, vector<128x384xbf16>
    %c0_19 = arith.constant 0 : index
    %c0_20 = arith.constant 0 : index
    %10 = vector.load %arg10[%c0_19, %c0_20] : memref<1x384xf32, #tpu.memory_space<vmem>>, vector<1x384xf32>
    %c0_21 = arith.constant 0 : index
    %c0_22 = arith.constant 0 : index
    %11 = vector.load %arg11[%c0_21, %c0_22] : memref<128x384xbf16, #tpu.memory_space<vmem>>, vector<128x384xbf16>
    %c0_23 = arith.constant 0 : index
    %c0_24 = arith.constant 0 : index
    %12 = vector.load %arg12[%c0_23, %c0_24] : memref<128x384xbf16, #tpu.memory_space<vmem>>, vector<128x384xbf16>
    %c0_25 = arith.constant 0 : index
    %c0_26 = arith.constant 0 : index
    %13 = vector.load %arg13[%c0_25, %c0_26] : memref<1x384xf32, #tpu.memory_space<vmem>>, vector<1x384xf32>
    %c0_27 = arith.constant 0 : index
    %c0_28 = arith.constant 0 : index
    %14 = vector.load %arg14[%c0_27, %c0_28] : memref<1x384xf32, #tpu.memory_space<vmem>>, vector<1x384xf32>
    %c0_29 = arith.constant 0 : index
    %c0_30 = arith.constant 0 : index
    %15 = vector.load %arg15[%c0_29, %c0_30] : memref<128x128xbf16, #tpu.memory_space<vmem>>, vector<128x128xbf16>
    %c0_31 = arith.constant 0 : index
    %c0_32 = arith.constant 0 : index
    %16 = vector.load %arg16[%c0_31, %c0_32] : memref<128x128xbf16, #tpu.memory_space<vmem>>, vector<128x128xbf16>
    %c0_33 = arith.constant 0 : index
    %c0_34 = arith.constant 0 : index
    %c0_35 = arith.constant 0 : index
    %17 = vector.load %arg7[%c0_33, %c0_34, %c0_35] : memref<2x2x128xf32, #tpu.memory_space<vmem>>, vector<1x2x128xf32>
    %18 = vector.shape_cast %17 : vector<1x2x128xf32> to vector<2x128xf32>
    %c1 = arith.constant 1 : index
    %c0_36 = arith.constant 0 : index
    %c0_37 = arith.constant 0 : index
    %19 = vector.load %arg7[%c1, %c0_36, %c0_37] : memref<2x2x128xf32, #tpu.memory_space<vmem>>, vector<1x2x128xf32>
    %20 = vector.shape_cast %19 : vector<1x2x128xf32> to vector<2x128xf32>
    %cst = arith.constant 0.000000e+00 : f32
    %21 = vector.broadcast %cst : f32 to vector<2x128xf32>
    %c0_38 = arith.constant 0 : index
    %c0_39 = arith.constant 0 : index
    %c0_40 = arith.constant 0 : index
    %22 = vector.load %arg0[%c0_38, %c0_39, %c0_40] : memref<5x2x384xf32, #tpu.memory_space<vmem>>, vector<1x2x384xf32>
    %23 = vector.shape_cast %22 : vector<1x2x384xf32> to vector<2x384xf32>
    %24 = arith.truncf %21 : vector<2x128xf32> to vector<2x128xbf16>
    %cst_41 = arith.constant dense<0.000000e+00> : vector<2x384xf32>
    %25 = tpu.matmul %24, %8, %cst_41 {dimension_numbers = #tpu.dot_dimension_numbers<[1], [0], [0], [1], [0, 0, 1, 1], [], []>} : vector<2x128xbf16>, vector<128x384xbf16>, vector<2x384xf32> -> vector<2x384xf32>
    %26 = arith.addf %23, %25 : vector<2x384xf32>
    %27 = arith.truncf %18 : vector<2x128xf32> to vector<2x128xbf16>
    %cst_42 = arith.constant dense<0.000000e+00> : vector<2x384xf32>
    %28 = tpu.matmul %27, %9, %cst_42 {dimension_numbers = #tpu.dot_dimension_numbers<[1], [0], [0], [1], [0, 0, 1, 1], [], []>} : vector<2x128xbf16>, vector<128x384xbf16>, vector<2x384xf32> -> vector<2x384xf32>
    %29 = vector.broadcast %10 : vector<1x384xf32> to vector<2x384xf32>
    %30 = arith.addf %28, %29 : vector<2x384xf32>
    %31 = vector.extract_strided_slice %26 {offsets = [0, 0], sizes = [2, 128], strides = [1, 1]} : vector<2x384xf32> to vector<2x128xf32>
    %32 = vector.extract_strided_slice %30 {offsets = [0, 0], sizes = [2, 128], strides = [1, 1]} : vector<2x384xf32> to vector<2x128xf32>
    %33 = arith.addf %31, %32 : vector<2x128xf32>
    %34 = arith.negf %33 : vector<2x128xf32>
    %35 = math.exp %34 : vector<2x128xf32>
    %cst_43 = arith.constant 1.000000e+00 : f32
    %36 = vector.broadcast %cst_43 : f32 to vector<2x128xf32>
    %37 = arith.addf %36, %35 : vector<2x128xf32>
    %38 = arith.divf %36, %37 : vector<2x128xf32>
    %39 = vector.extract_strided_slice %26 {offsets = [0, 128], sizes = [2, 128], strides = [1, 1]} : vector<2x384xf32> to vector<2x128xf32>
    %40 = vector.extract_strided_slice %30 {offsets = [0, 128], sizes = [2, 128], strides = [1, 1]} : vector<2x384xf32> to vector<2x128xf32>
    %41 = arith.addf %39, %40 : vector<2x128xf32>
    %42 = arith.negf %41 : vector<2x128xf32>
    %43 = math.exp %42 : vector<2x128xf32>
    %cst_44 = arith.constant 1.000000e+00 : f32
    %44 = vector.broadcast %cst_44 : f32 to vector<2x128xf32>
    %45 = arith.addf %44, %43 : vector<2x128xf32>
    %46 = arith.divf %44, %45 : vector<2x128xf32>
    %47 = vector.extract_strided_slice %26 {offsets = [0, 256], sizes = [2, 128], strides = [1, 1]} : vector<2x384xf32> to vector<2x128xf32>
    %48 = vector.extract_strided_slice %30 {offsets = [0, 256], sizes = [2, 128], strides = [1, 1]} : vector<2x384xf32> to vector<2x128xf32>
    %49 = arith.mulf %38, %48 : vector<2x128xf32>
    %50 = arith.addf %47, %49 : vector<2x128xf32>
    %51 = math.tanh %50 : vector<2x128xf32>
    %cst_45 = arith.constant 1.000000e+00 : f32
    %52 = vector.broadcast %cst_45 : f32 to vector<2x128xf32>
    %53 = arith.subf %52, %46 : vector<2x128xf32>
    %54 = arith.mulf %53, %51 : vector<2x128xf32>
    %55 = arith.mulf %46, %18 : vector<2x128xf32>
    %56 = arith.addf %54, %55 : vector<2x128xf32>
    %57 = arith.truncf %56 : vector<2x128xf32> to vector<2x128xbf16>
    %cst_46 = arith.constant dense<0.000000e+00> : vector<2x384xf32>
    %58 = tpu.matmul %57, %11, %cst_46 {dimension_numbers = #tpu.dot_dimension_numbers<[1], [0], [0], [1], [0, 0, 1, 1], [], []>} : vector<2x128xbf16>, vector<128x384xbf16>, vector<2x384xf32> -> vector<2x384xf32>
    %59 = vector.broadcast %13 : vector<1x384xf32> to vector<2x384xf32>
    %60 = arith.addf %58, %59 : vector<2x384xf32>
    %61 = arith.truncf %20 : vector<2x128xf32> to vector<2x128xbf16>
    %cst_47 = arith.constant dense<0.000000e+00> : vector<2x384xf32>
    %62 = tpu.matmul %61, %12, %cst_47 {dimension_numbers = #tpu.dot_dimension_numbers<[1], [0], [0], [1], [0, 0, 1, 1], [], []>} : vector<2x128xbf16>, vector<128x384xbf16>, vector<2x384xf32> -> vector<2x384xf32>
    %63 = vector.broadcast %14 : vector<1x384xf32> to vector<2x384xf32>
    %64 = arith.addf %62, %63 : vector<2x384xf32>
    %65 = vector.extract_strided_slice %60 {offsets = [0, 0], sizes = [2, 128], strides = [1, 1]} : vector<2x384xf32> to vector<2x128xf32>
    %66 = vector.extract_strided_slice %64 {offsets = [0, 0], sizes = [2, 128], strides = [1, 1]} : vector<2x384xf32> to vector<2x128xf32>
    %67 = arith.addf %65, %66 : vector<2x128xf32>
    %68 = arith.negf %67 : vector<2x128xf32>
    %69 = math.exp %68 : vector<2x128xf32>
    %cst_48 = arith.constant 1.000000e+00 : f32
    %70 = vector.broadcast %cst_48 : f32 to vector<2x128xf32>
    %71 = arith.addf %70, %69 : vector<2x128xf32>
    %72 = arith.divf %70, %71 : vector<2x128xf32>
    %73 = vector.extract_strided_slice %60 {offsets = [0, 128], sizes = [2, 128], strides = [1, 1]} : vector<2x384xf32> to vector<2x128xf32>
    %74 = vector.extract_strided_slice %64 {offsets = [0, 128], sizes = [2, 128], strides = [1, 1]} : vector<2x384xf32> to vector<2x128xf32>
    %75 = arith.addf %73, %74 : vector<2x128xf32>
    %76 = arith.negf %75 : vector<2x128xf32>
    %77 = math.exp %76 : vector<2x128xf32>
    %cst_49 = arith.constant 1.000000e+00 : f32
    %78 = vector.broadcast %cst_49 : f32 to vector<2x128xf32>
    %79 = arith.addf %78, %77 : vector<2x128xf32>
    %80 = arith.divf %78, %79 : vector<2x128xf32>
    %81 = vector.extract_strided_slice %60 {offsets = [0, 256], sizes = [2, 128], strides = [1, 1]} : vector<2x384xf32> to vector<2x128xf32>
    %82 = vector.extract_strided_slice %64 {offsets = [0, 256], sizes = [2, 128], strides = [1, 1]} : vector<2x384xf32> to vector<2x128xf32>
    %83 = arith.mulf %72, %82 : vector<2x128xf32>
    %84 = arith.addf %81, %83 : vector<2x128xf32>
    %85 = math.tanh %84 : vector<2x128xf32>
    %cst_50 = arith.constant 1.000000e+00 : f32
    %86 = vector.broadcast %cst_50 : f32 to vector<2x128xf32>
    %87 = arith.subf %86, %80 : vector<2x128xf32>
    %88 = arith.mulf %87, %85 : vector<2x128xf32>
    %89 = arith.mulf %80, %20 : vector<2x128xf32>
    %90 = arith.addf %88, %89 : vector<2x128xf32>
    %91 = arith.truncf %90 : vector<2x128xf32> to vector<2x128xbf16>
    %cst_51 = arith.constant dense<0.000000e+00> : vector<2x64xf32>
    %92 = tpu.matmul %91, %0, %cst_51 {dimension_numbers = #tpu.dot_dimension_numbers<[1], [0], [0], [1], [0, 0, 1, 1], [], []>} : vector<2x128xbf16>, vector<128x64xbf16>, vector<2x64xf32> -> vector<2x64xf32>
    %93 = arith.addf %92, %3 : vector<2x64xf32>
    %cst_52 = arith.constant dense<0.000000e+00> : vector<2x8xf32>
    %94 = tpu.matmul %91, %1, %cst_52 {dimension_numbers = #tpu.dot_dimension_numbers<[1], [0], [0], [1], [0, 0, 1, 1], [], []>} : vector<2x128xbf16>, vector<128x8xbf16>, vector<2x8xf32> -> vector<2x8xf32>
    %95 = arith.addf %94, %4 : vector<2x8xf32>
    %cst_53 = arith.constant dense<0xFF800000> : vector<2xf32>
    %96 = vector.multi_reduction <maximumf>, %95, %cst_53 [1] : vector<2x8xf32> to vector<2xf32>
    %97 = vector.shape_cast %96 : vector<2xf32> to vector<2x1xf32>
    %98 = vector.broadcast %97 : vector<2x1xf32> to vector<2x8xf32>
    %99 = arith.subf %95, %98 : vector<2x8xf32>
    %100 = math.exp %99 : vector<2x8xf32>
    %cst_54 = arith.constant dense<0.000000e+00> : vector<2xf32>
    %101 = vector.multi_reduction <add>, %100, %cst_54 [1] : vector<2x8xf32> to vector<2xf32>
    %102 = vector.shape_cast %101 : vector<2xf32> to vector<2x1xf32>
    %103 = tpu.reciprocal %102 {approx = true} : vector<2x1xf32> -> vector<2x1xf32>
    %104 = vector.broadcast %103 : vector<2x1xf32> to vector<2x8xf32>
    %105 = arith.mulf %100, %104 : vector<2x8xf32>
    %cst_55 = arith.constant dense<0xFF800000> : vector<2xf32>
    %106 = vector.multi_reduction <maximumf>, %93, %cst_55 [1] : vector<2x64xf32> to vector<2xf32>
    %107 = vector.shape_cast %106 : vector<2xf32> to vector<2x1xf32>
    %108 = vector.broadcast %107 : vector<2x1xf32> to vector<2x64xf32>
    %109 = arith.subf %93, %108 : vector<2x64xf32>
    %110 = math.exp %109 : vector<2x64xf32>
    %111 = arith.truncf %110 : vector<2x64xf32> to vector<2x64xbf16>
    %cst_56 = arith.constant dense<0.000000e+00> : vector<2x8xf32>
    %112 = tpu.matmul %111, %6, %cst_56 {dimension_numbers = #tpu.dot_dimension_numbers<[1], [0], [0], [1], [0, 0, 1, 1], [], []>} : vector<2x64xbf16>, vector<64x8xbf16>, vector<2x8xf32> -> vector<2x8xf32>
    %cst_57 = arith.constant 1.000000e-30 : f32
    %113 = vector.broadcast %cst_57 : f32 to vector<2x8xf32>
    %114 = arith.maximumf %112, %113 : vector<2x8xf32>
    %115 = arith.mulf %105, %5 : vector<2x8xf32>
    %116 = tpu.reciprocal %114 {approx = true} : vector<2x8xf32> -> vector<2x8xf32>
    %117 = arith.mulf %115, %116 : vector<2x8xf32>
    %118 = arith.truncf %117 : vector<2x8xf32> to vector<2x8xbf16>
    %cst_58 = arith.constant dense<0.000000e+00> : vector<2x64xf32>
    %119 = tpu.matmul %118, %7, %cst_58 {dimension_numbers = #tpu.dot_dimension_numbers<[1], [0], [0], [1], [0, 0, 1, 1], [], []>} : vector<2x8xbf16>, vector<8x64xbf16>, vector<2x64xf32> -> vector<2x64xf32>
    %120 = arith.mulf %110, %119 : vector<2x64xf32>
    %cst_59 = arith.constant dense<0.000000e+00> : vector<2xf32>
    %121 = vector.multi_reduction <add>, %120, %cst_59 [1] : vector<2x64xf32> to vector<2xf32>
    %122 = vector.shape_cast %121 : vector<2xf32> to vector<2x1xf32>
    %123 = tpu.reciprocal %122 {approx = true} : vector<2x1xf32> -> vector<2x1xf32>
    %124 = vector.broadcast %123 : vector<2x1xf32> to vector<2x64xf32>
    %125 = arith.mulf %120, %124 : vector<2x64xf32>
    %126 = arith.truncf %125 : vector<2x64xf32> to vector<2x64xbf16>
    %cst_60 = arith.constant dense<0.000000e+00> : vector<2x128xf32>
    %127 = tpu.matmul %126, %2, %cst_60 {dimension_numbers = #tpu.dot_dimension_numbers<[1], [0], [0], [1], [0, 0, 1, 1], [], []>} : vector<2x64xbf16>, vector<64x128xbf16>, vector<2x128xf32> -> vector<2x128xf32>
    %128 = arith.truncf %127 : vector<2x128xf32> to vector<2x128xbf16>
    %cst_61 = arith.constant dense<0.000000e+00> : vector<2x128xf32>
    %129 = tpu.matmul %128, %15, %cst_61 {dimension_numbers = #tpu.dot_dimension_numbers<[1], [0], [0], [1], [0, 0, 1, 1], [], []>} : vector<2x128xbf16>, vector<128x128xbf16>, vector<2x128xf32> -> vector<2x128xf32>
    %cst_62 = arith.constant dense<0.000000e+00> : vector<2x128xf32>
    %130 = tpu.matmul %91, %16, %cst_62 {dimension_numbers = #tpu.dot_dimension_numbers<[1], [0], [0], [1], [0, 0, 1, 1], [], []>} : vector<2x128xbf16>, vector<128x128xbf16>, vector<2x128xf32> -> vector<2x128xf32>
    %131 = arith.addf %129, %130 : vector<2x128xf32>
    %132 = math.tanh %131 : vector<2x128xf32>
    %c0_63 = arith.constant 0 : index
    %c0_64 = arith.constant 0 : index
    %c0_65 = arith.constant 0 : index
    %133 = vector.load %arg19[%c0_63, %c0_64, %c0_65] : memref<5x2x128xf32, #tpu.memory_space<vmem>>, vector<1x2x128xf32>
    %134 = vector.shape_cast %133 : vector<1x2x128xf32> to vector<2x128xf32>
    %135 = vector.shape_cast %132 : vector<2x128xf32> to vector<1x2x128xf32>
    tpu.vector_store %arg19[%c0_63, %c0_64, %c0_65], %135 {strides = array<i32>} : memref<5x2x128xf32, #tpu.memory_space<vmem>>, vector<1x2x128xf32>,
    %c0_66 = arith.constant 0 : index
    %c0_67 = arith.constant 0 : index
    %c0_68 = arith.constant 0 : index
    %136 = vector.load %arg20[%c0_66, %c0_67, %c0_68] : memref<5x2x64xf32, #tpu.memory_space<vmem>>, vector<1x2x64xf32>
    %137 = vector.shape_cast %136 : vector<1x2x64xf32> to vector<2x64xf32>
    %138 = vector.shape_cast %125 : vector<2x64xf32> to vector<1x2x64xf32>
    tpu.vector_store %arg20[%c0_66, %c0_67, %c0_68], %138 {strides = array<i32>} : memref<5x2x64xf32, #tpu.memory_space<vmem>>, vector<1x2x64xf32>,
    %c1_69 = arith.constant 1 : index
    %c0_70 = arith.constant 0 : index
    %c0_71 = arith.constant 0 : index
    %139 = vector.load %arg0[%c1_69, %c0_70, %c0_71] : memref<5x2x384xf32, #tpu.memory_space<vmem>>, vector<1x2x384xf32>
    %140 = vector.shape_cast %139 : vector<1x2x384xf32> to vector<2x384xf32>
    %141 = arith.truncf %132 : vector<2x128xf32> to vector<2x128xbf16>
    %cst_72 = arith.constant dense<0.000000e+00> : vector<2x384xf32>
    %142 = tpu.matmul %141, %8, %cst_72 {dimension_numbers = #tpu.dot_dimension_numbers<[1], [0], [0], [1], [0, 0, 1, 1], [], []>} : vector<2x128xbf16>, vector<128x384xbf16>, vector<2x384xf32> -> vector<2x384xf32>
    %143 = arith.addf %140, %142 : vector<2x384xf32>
    %144 = arith.truncf %56 : vector<2x128xf32> to vector<2x128xbf16>
    %cst_73 = arith.constant dense<0.000000e+00> : vector<2x384xf32>
    %145 = tpu.matmul %144, %9, %cst_73 {dimension_numbers = #tpu.dot_dimension_numbers<[1], [0], [0], [1], [0, 0, 1, 1], [], []>} : vector<2x128xbf16>, vector<128x384xbf16>, vector<2x384xf32> -> vector<2x384xf32>
    %146 = vector.broadcast %10 : vector<1x384xf32> to vector<2x384xf32>
    %147 = arith.addf %145, %146 : vector<2x384xf32>
    %148 = vector.extract_strided_slice %143 {offsets = [0, 0], sizes = [2, 128], strides = [1, 1]} : vector<2x384xf32> to vector<2x128xf32>
    %149 = vector.extract_strided_slice %147 {offsets = [0, 0], sizes = [2, 128], strides = [1, 1]} : vector<2x384xf32> to vector<2x128xf32>
    %150 = arith.addf %148, %149 : vector<2x128xf32>
    %151 = arith.negf %150 : vector<2x128xf32>
    %152 = math.exp %151 : vector<2x128xf32>
    %cst_74 = arith.constant 1.000000e+00 : f32
    %153 = vector.broadcast %cst_74 : f32 to vector<2x128xf32>
    %154 = arith.addf %153, %152 : vector<2x128xf32>
    %155 = arith.divf %153, %154 : vector<2x128xf32>
    %156 = vector.extract_strided_slice %143 {offsets = [0, 128], sizes = [2, 128], strides = [1, 1]} : vector<2x384xf32> to vector<2x128xf32>
    %157 = vector.extract_strided_slice %147 {offsets = [0, 128], sizes = [2, 128], strides = [1, 1]} : vector<2x384xf32> to vector<2x128xf32>
    %158 = arith.addf %156, %157 : vector<2x128xf32>
    %159 = arith.negf %158 : vector<2x128xf32>
    %160 = math.exp %159 : vector<2x128xf32>
    %cst_75 = arith.constant 1.000000e+00 : f32
    %161 = vector.broadcast %cst_75 : f32 to vector<2x128xf32>
    %162 = arith.addf %161, %160 : vector<2x128xf32>
    %163 = arith.divf %161, %162 : vector<2x128xf32>
    %164 = vector.extract_strided_slice %143 {offsets = [0, 256], sizes = [2, 128], strides = [1, 1]} : vector<2x384xf32> to vector<2x128xf32>
    %165 = vector.extract_strided_slice %147 {offsets = [0, 256], sizes = [2, 128], strides = [1, 1]} : vector<2x384xf32> to vector<2x128xf32>
    %166 = arith.mulf %155, %165 : vector<2x128xf32>
    %167 = arith.addf %164, %166 : vector<2x128xf32>
    %168 = math.tanh %167 : vector<2x128xf32>
    %cst_76 = arith.constant 1.000000e+00 : f32
    %169 = vector.broadcast %cst_76 : f32 to vector<2x128xf32>
    %170 = arith.subf %169, %163 : vector<2x128xf32>
    %171 = arith.mulf %170, %168 : vector<2x128xf32>
    %172 = arith.mulf %163, %56 : vector<2x128xf32>
    %173 = arith.addf %171, %172 : vector<2x128xf32>
    %174 = arith.truncf %173 : vector<2x128xf32> to vector<2x128xbf16>
    %cst_77 = arith.constant dense<0.000000e+00> : vector<2x384xf32>
    %175 = tpu.matmul %174, %11, %cst_77 {dimension_numbers = #tpu.dot_dimension_numbers<[1], [0], [0], [1], [0, 0, 1, 1], [], []>} : vector<2x128xbf16>, vector<128x384xbf16>, vector<2x384xf32> -> vector<2x384xf32>
    %176 = vector.broadcast %13 : vector<1x384xf32> to vector<2x384xf32>
    %177 = arith.addf %175, %176 : vector<2x384xf32>
    %178 = arith.truncf %90 : vector<2x128xf32> to vector<2x128xbf16>
    %cst_78 = arith.constant dense<0.000000e+00> : vector<2x384xf32>
    %179 = tpu.matmul %178, %12, %cst_78 {dimension_numbers = #tpu.dot_dimension_numbers<[1], [0], [0], [1], [0, 0, 1, 1], [], []>} : vector<2x128xbf16>, vector<128x384xbf16>, vector<2x384xf32> -> vector<2x384xf32>
    %180 = vector.broadcast %14 : vector<1x384xf32> to vector<2x384xf32>
    %181 = arith.addf %179, %180 : vector<2x384xf32>
    %182 = vector.extract_strided_slice %177 {offsets = [0, 0], sizes = [2, 128], strides = [1, 1]} : vector<2x384xf32> to vector<2x128xf32>
    %183 = vector.extract_strided_slice %181 {offsets = [0, 0], sizes = [2, 128], strides = [1, 1]} : vector<2x384xf32> to vector<2x128xf32>
    %184 = arith.addf %182, %183 : vector<2x128xf32>
    %185 = arith.negf %184 : vector<2x128xf32>
    %186 = math.exp %185 : vector<2x128xf32>
    %cst_79 = arith.constant 1.000000e+00 : f32
    %187 = vector.broadcast %cst_79 : f32 to vector<2x128xf32>
    %188 = arith.addf %187, %186 : vector<2x128xf32>
    %189 = arith.divf %187, %188 : vector<2x128xf32>
    %190 = vector.extract_strided_slice %177 {offsets = [0, 128], sizes = [2, 128], strides = [1, 1]} : vector<2x384xf32> to vector<2x128xf32>
    %191 = vector.extract_strided_slice %181 {offsets = [0, 128], sizes = [2, 128], strides = [1, 1]} : vector<2x384xf32> to vector<2x128xf32>
    %192 = arith.addf %190, %191 : vector<2x128xf32>
    %193 = arith.negf %192 : vector<2x128xf32>
    %194 = math.exp %193 : vector<2x128xf32>
    %cst_80 = arith.constant 1.000000e+00 : f32
    %195 = vector.broadcast %cst_80 : f32 to vector<2x128xf32>
    %196 = arith.addf %195, %194 : vector<2x128xf32>
    %197 = arith.divf %195, %196 : vector<2x128xf32>
    %198 = vector.extract_strided_slice %177 {offsets = [0, 256], sizes = [2, 128], strides = [1, 1]} : vector<2x384xf32> to vector<2x128xf32>
    %199 = vector.extract_strided_slice %181 {offsets = [0, 256], sizes = [2, 128], strides = [1, 1]} : vector<2x384xf32> to vector<2x128xf32>
    %200 = arith.mulf %189, %199 : vector<2x128xf32>
    %201 = arith.addf %198, %200 : vector<2x128xf32>
    %202 = math.tanh %201 : vector<2x128xf32>
    %cst_81 = arith.constant 1.000000e+00 : f32
    %203 = vector.broadcast %cst_81 : f32 to vector<2x128xf32>
    %204 = arith.subf %203, %197 : vector<2x128xf32>
    %205 = arith.mulf %204, %202 : vector<2x128xf32>
    %206 = arith.mulf %197, %90 : vector<2x128xf32>
    %207 = arith.addf %205, %206 : vector<2x128xf32>
    %208 = arith.truncf %207 : vector<2x128xf32> to vector<2x128xbf16>
    %cst_82 = arith.constant dense<0.000000e+00> : vector<2x64xf32>
    %209 = tpu.matmul %208, %0, %cst_82 {dimension_numbers = #tpu.dot_dimension_numbers<[1], [0], [0], [1], [0, 0, 1, 1], [], []>} : vector<2x128xbf16>, vector<128x64xbf16>, vector<2x64xf32> -> vector<2x64xf32>
    %210 = arith.addf %209, %3 : vector<2x64xf32>
    %cst_83 = arith.constant dense<0.000000e+00> : vector<2x8xf32>
    %211 = tpu.matmul %208, %1, %cst_83 {dimension_numbers = #tpu.dot_dimension_numbers<[1], [0], [0], [1], [0, 0, 1, 1], [], []>} : vector<2x128xbf16>, vector<128x8xbf16>, vector<2x8xf32> -> vector<2x8xf32>
    %212 = arith.addf %211, %4 : vector<2x8xf32>
    %cst_84 = arith.constant dense<0xFF800000> : vector<2xf32>
    %213 = vector.multi_reduction <maximumf>, %212, %cst_84 [1] : vector<2x8xf32> to vector<2xf32>
    %214 = vector.shape_cast %213 : vector<2xf32> to vector<2x1xf32>
    %215 = vector.broadcast %214 : vector<2x1xf32> to vector<2x8xf32>
    %216 = arith.subf %212, %215 : vector<2x8xf32>
    %217 = math.exp %216 : vector<2x8xf32>
    %cst_85 = arith.constant dense<0.000000e+00> : vector<2xf32>
    %218 = vector.multi_reduction <add>, %217, %cst_85 [1] : vector<2x8xf32> to vector<2xf32>
    %219 = vector.shape_cast %218 : vector<2xf32> to vector<2x1xf32>
    %220 = tpu.reciprocal %219 {approx = true} : vector<2x1xf32> -> vector<2x1xf32>
    %221 = vector.broadcast %220 : vector<2x1xf32> to vector<2x8xf32>
    %222 = arith.mulf %217, %221 : vector<2x8xf32>
    %cst_86 = arith.constant dense<0xFF800000> : vector<2xf32>
    %223 = vector.multi_reduction <maximumf>, %210, %cst_86 [1] : vector<2x64xf32> to vector<2xf32>
    %224 = vector.shape_cast %223 : vector<2xf32> to vector<2x1xf32>
    %225 = vector.broadcast %224 : vector<2x1xf32> to vector<2x64xf32>
    %226 = arith.subf %210, %225 : vector<2x64xf32>
    %227 = math.exp %226 : vector<2x64xf32>
    %228 = arith.truncf %227 : vector<2x64xf32> to vector<2x64xbf16>
    %cst_87 = arith.constant dense<0.000000e+00> : vector<2x8xf32>
    %229 = tpu.matmul %228, %6, %cst_87 {dimension_numbers = #tpu.dot_dimension_numbers<[1], [0], [0], [1], [0, 0, 1, 1], [], []>} : vector<2x64xbf16>, vector<64x8xbf16>, vector<2x8xf32> -> vector<2x8xf32>
    %cst_88 = arith.constant 1.000000e-30 : f32
    %230 = vector.broadcast %cst_88 : f32 to vector<2x8xf32>
    %231 = arith.maximumf %229, %230 : vector<2x8xf32>
    %232 = arith.mulf %222, %5 : vector<2x8xf32>
    %233 = tpu.reciprocal %231 {approx = true} : vector<2x8xf32> -> vector<2x8xf32>
    %234 = arith.mulf %232, %233 : vector<2x8xf32>
    %235 = arith.truncf %234 : vector<2x8xf32> to vector<2x8xbf16>
    %cst_89 = arith.constant dense<0.000000e+00> : vector<2x64xf32>
    %236 = tpu.matmul %235, %7, %cst_89 {dimension_numbers = #tpu.dot_dimension_numbers<[1], [0], [0], [1], [0, 0, 1, 1], [], []>} : vector<2x8xbf16>, vector<8x64xbf16>, vector<2x64xf32> -> vector<2x64xf32>
    %237 = arith.mulf %227, %236 : vector<2x64xf32>
    %cst_90 = arith.constant dense<0.000000e+00> : vector<2xf32>
    %238 = vector.multi_reduction <add>, %237, %cst_90 [1] : vector<2x64xf32> to vector<2xf32>
    %239 = vector.shape_cast %238 : vector<2xf32> to vector<2x1xf32>
    %240 = tpu.reciprocal %239 {approx = true} : vector<2x1xf32> -> vector<2x1xf32>
    %241 = vector.broadcast %240 : vector<2x1xf32> to vector<2x64xf32>
    %242 = arith.mulf %237, %241 : vector<2x64xf32>
    %243 = arith.truncf %242 : vector<2x64xf32> to vector<2x64xbf16>
    %cst_91 = arith.constant dense<0.000000e+00> : vector<2x128xf32>
    %244 = tpu.matmul %243, %2, %cst_91 {dimension_numbers = #tpu.dot_dimension_numbers<[1], [0], [0], [1], [0, 0, 1, 1], [], []>} : vector<2x64xbf16>, vector<64x128xbf16>, vector<2x128xf32> -> vector<2x128xf32>
    %245 = arith.truncf %244 : vector<2x128xf32> to vector<2x128xbf16>
    %cst_92 = arith.constant dense<0.000000e+00> : vector<2x128xf32>
    %246 = tpu.matmul %245, %15, %cst_92 {dimension_numbers = #tpu.dot_dimension_numbers<[1], [0], [0], [1], [0, 0, 1, 1], [], []>} : vector<2x128xbf16>, vector<128x128xbf16>, vector<2x128xf32> -> vector<2x128xf32>
    %cst_93 = arith.constant dense<0.000000e+00> : vector<2x128xf32>
    %247 = tpu.matmul %208, %16, %cst_93 {dimension_numbers = #tpu.dot_dimension_numbers<[1], [0], [0], [1], [0, 0, 1, 1], [], []>} : vector<2x128xbf16>, vector<128x128xbf16>, vector<2x128xf32> -> vector<2x128xf32>
    %248 = arith.addf %246, %247 : vector<2x128xf32>
    %249 = math.tanh %248 : vector<2x128xf32>
    %c1_94 = arith.constant 1 : index
    %c0_95 = arith.constant 0 : index
    %c0_96 = arith.constant 0 : index
    %250 = vector.load %arg19[%c1_94, %c0_95, %c0_96] : memref<5x2x128xf32, #tpu.memory_space<vmem>>, vector<1x2x128xf32>
    %251 = vector.shape_cast %250 : vector<1x2x128xf32> to vector<2x128xf32>
    %252 = vector.shape_cast %249 : vector<2x128xf32> to vector<1x2x128xf32>
    tpu.vector_store %arg19[%c1_94, %c0_95, %c0_96], %252 {strides = array<i32>} : memref<5x2x128xf32, #tpu.memory_space<vmem>>, vector<1x2x128xf32>,
    %c1_97 = arith.constant 1 : index
    %c0_98 = arith.constant 0 : index
    %c0_99 = arith.constant 0 : index
    %253 = vector.load %arg20[%c1_97, %c0_98, %c0_99] : memref<5x2x64xf32, #tpu.memory_space<vmem>>, vector<1x2x64xf32>
    %254 = vector.shape_cast %253 : vector<1x2x64xf32> to vector<2x64xf32>
    %255 = vector.shape_cast %242 : vector<2x64xf32> to vector<1x2x64xf32>
    tpu.vector_store %arg20[%c1_97, %c0_98, %c0_99], %255 {strides = array<i32>} : memref<5x2x64xf32, #tpu.memory_space<vmem>>, vector<1x2x64xf32>,
    %c2 = arith.constant 2 : index
    %c0_100 = arith.constant 0 : index
    %c0_101 = arith.constant 0 : index
    %256 = vector.load %arg0[%c2, %c0_100, %c0_101] : memref<5x2x384xf32, #tpu.memory_space<vmem>>, vector<1x2x384xf32>
    %257 = vector.shape_cast %256 : vector<1x2x384xf32> to vector<2x384xf32>
    %258 = arith.truncf %249 : vector<2x128xf32> to vector<2x128xbf16>
    %cst_102 = arith.constant dense<0.000000e+00> : vector<2x384xf32>
    %259 = tpu.matmul %258, %8, %cst_102 {dimension_numbers = #tpu.dot_dimension_numbers<[1], [0], [0], [1], [0, 0, 1, 1], [], []>} : vector<2x128xbf16>, vector<128x384xbf16>, vector<2x384xf32> -> vector<2x384xf32>
    %260 = arith.addf %257, %259 : vector<2x384xf32>
    %261 = arith.truncf %173 : vector<2x128xf32> to vector<2x128xbf16>
    %cst_103 = arith.constant dense<0.000000e+00> : vector<2x384xf32>
    %262 = tpu.matmul %261, %9, %cst_103 {dimension_numbers = #tpu.dot_dimension_numbers<[1], [0], [0], [1], [0, 0, 1, 1], [], []>} : vector<2x128xbf16>, vector<128x384xbf16>, vector<2x384xf32> -> vector<2x384xf32>
    %263 = vector.broadcast %10 : vector<1x384xf32> to vector<2x384xf32>
    %264 = arith.addf %262, %263 : vector<2x384xf32>
    %265 = vector.extract_strided_slice %260 {offsets = [0, 0], sizes = [2, 128], strides = [1, 1]} : vector<2x384xf32> to vector<2x128xf32>
    %266 = vector.extract_strided_slice %264 {offsets = [0, 0], sizes = [2, 128], strides = [1, 1]} : vector<2x384xf32> to vector<2x128xf32>
    %267 = arith.addf %265, %266 : vector<2x128xf32>
    %268 = arith.negf %267 : vector<2x128xf32>
    %269 = math.exp %268 : vector<2x128xf32>
    %cst_104 = arith.constant 1.000000e+00 : f32
    %270 = vector.broadcast %cst_104 : f32 to vector<2x128xf32>
    %271 = arith.addf %270, %269 : vector<2x128xf32>
    %272 = arith.divf %270, %271 : vector<2x128xf32>
    %273 = vector.extract_strided_slice %260 {offsets = [0, 128], sizes = [2, 128], strides = [1, 1]} : vector<2x384xf32> to vector<2x128xf32>
    %274 = vector.extract_strided_slice %264 {offsets = [0, 128], sizes = [2, 128], strides = [1, 1]} : vector<2x384xf32> to vector<2x128xf32>
    %275 = arith.addf %273, %274 : vector<2x128xf32>
    %276 = arith.negf %275 : vector<2x128xf32>
    %277 = math.exp %276 : vector<2x128xf32>
    %cst_105 = arith.constant 1.000000e+00 : f32
    %278 = vector.broadcast %cst_105 : f32 to vector<2x128xf32>
    %279 = arith.addf %278, %277 : vector<2x128xf32>
    %280 = arith.divf %278, %279 : vector<2x128xf32>
    %281 = vector.extract_strided_slice %260 {offsets = [0, 256], sizes = [2, 128], strides = [1, 1]} : vector<2x384xf32> to vector<2x128xf32>
    %282 = vector.extract_strided_slice %264 {offsets = [0, 256], sizes = [2, 128], strides = [1, 1]} : vector<2x384xf32> to vector<2x128xf32>
    %283 = arith.mulf %272, %282 : vector<2x128xf32>
    %284 = arith.addf %281, %283 : vector<2x128xf32>
    %285 = math.tanh %284 : vector<2x128xf32>
    %cst_106 = arith.constant 1.000000e+00 : f32
    %286 = vector.broadcast %cst_106 : f32 to vector<2x128xf32>
    %287 = arith.subf %286, %280 : vector<2x128xf32>
    %288 = arith.mulf %287, %285 : vector<2x128xf32>
    %289 = arith.mulf %280, %173 : vector<2x128xf32>
    %290 = arith.addf %288, %289 : vector<2x128xf32>
    %291 = arith.truncf %290 : vector<2x128xf32> to vector<2x128xbf16>
    %cst_107 = arith.constant dense<0.000000e+00> : vector<2x384xf32>
    %292 = tpu.matmul %291, %11, %cst_107 {dimension_numbers = #tpu.dot_dimension_numbers<[1], [0], [0], [1], [0, 0, 1, 1], [], []>} : vector<2x128xbf16>, vector<128x384xbf16>, vector<2x384xf32> -> vector<2x384xf32>
    %293 = vector.broadcast %13 : vector<1x384xf32> to vector<2x384xf32>
    %294 = arith.addf %292, %293 : vector<2x384xf32>
    %295 = arith.truncf %207 : vector<2x128xf32> to vector<2x128xbf16>
    %cst_108 = arith.constant dense<0.000000e+00> : vector<2x384xf32>
    %296 = tpu.matmul %295, %12, %cst_108 {dimension_numbers = #tpu.dot_dimension_numbers<[1], [0], [0], [1], [0, 0, 1, 1], [], []>} : vector<2x128xbf16>, vector<128x384xbf16>, vector<2x384xf32> -> vector<2x384xf32>
    %297 = vector.broadcast %14 : vector<1x384xf32> to vector<2x384xf32>
    %298 = arith.addf %296, %297 : vector<2x384xf32>
    %299 = vector.extract_strided_slice %294 {offsets = [0, 0], sizes = [2, 128], strides = [1, 1]} : vector<2x384xf32> to vector<2x128xf32>
    %300 = vector.extract_strided_slice %298 {offsets = [0, 0], sizes = [2, 128], strides = [1, 1]} : vector<2x384xf32> to vector<2x128xf32>
    %301 = arith.addf %299, %300 : vector<2x128xf32>
    %302 = arith.negf %301 : vector<2x128xf32>
    %303 = math.exp %302 : vector<2x128xf32>
    %cst_109 = arith.constant 1.000000e+00 : f32
    %304 = vector.broadcast %cst_109 : f32 to vector<2x128xf32>
    %305 = arith.addf %304, %303 : vector<2x128xf32>
    %306 = arith.divf %304, %305 : vector<2x128xf32>
    %307 = vector.extract_strided_slice %294 {offsets = [0, 128], sizes = [2, 128], strides = [1, 1]} : vector<2x384xf32> to vector<2x128xf32>
    %308 = vector.extract_strided_slice %298 {offsets = [0, 128], sizes = [2, 128], strides = [1, 1]} : vector<2x384xf32> to vector<2x128xf32>
    %309 = arith.addf %307, %308 : vector<2x128xf32>
    %310 = arith.negf %309 : vector<2x128xf32>
    %311 = math.exp %310 : vector<2x128xf32>
    %cst_110 = arith.constant 1.000000e+00 : f32
    %312 = vector.broadcast %cst_110 : f32 to vector<2x128xf32>
    %313 = arith.addf %312, %311 : vector<2x128xf32>
    %314 = arith.divf %312, %313 : vector<2x128xf32>
    %315 = vector.extract_strided_slice %294 {offsets = [0, 256], sizes = [2, 128], strides = [1, 1]} : vector<2x384xf32> to vector<2x128xf32>
    %316 = vector.extract_strided_slice %298 {offsets = [0, 256], sizes = [2, 128], strides = [1, 1]} : vector<2x384xf32> to vector<2x128xf32>
    %317 = arith.mulf %306, %316 : vector<2x128xf32>
    %318 = arith.addf %315, %317 : vector<2x128xf32>
    %319 = math.tanh %318 : vector<2x128xf32>
    %cst_111 = arith.constant 1.000000e+00 : f32
    %320 = vector.broadcast %cst_111 : f32 to vector<2x128xf32>
    %321 = arith.subf %320, %314 : vector<2x128xf32>
    %322 = arith.mulf %321, %319 : vector<2x128xf32>
    %323 = arith.mulf %314, %207 : vector<2x128xf32>
    %324 = arith.addf %322, %323 : vector<2x128xf32>
    %325 = arith.truncf %324 : vector<2x128xf32> to vector<2x128xbf16>
    %cst_112 = arith.constant dense<0.000000e+00> : vector<2x64xf32>
    %326 = tpu.matmul %325, %0, %cst_112 {dimension_numbers = #tpu.dot_dimension_numbers<[1], [0], [0], [1], [0, 0, 1, 1], [], []>} : vector<2x128xbf16>, vector<128x64xbf16>, vector<2x64xf32> -> vector<2x64xf32>
    %327 = arith.addf %326, %3 : vector<2x64xf32>
    %cst_113 = arith.constant dense<0.000000e+00> : vector<2x8xf32>
    %328 = tpu.matmul %325, %1, %cst_113 {dimension_numbers = #tpu.dot_dimension_numbers<[1], [0], [0], [1], [0, 0, 1, 1], [], []>} : vector<2x128xbf16>, vector<128x8xbf16>, vector<2x8xf32> -> vector<2x8xf32>
    %329 = arith.addf %328, %4 : vector<2x8xf32>
    %cst_114 = arith.constant dense<0xFF800000> : vector<2xf32>
    %330 = vector.multi_reduction <maximumf>, %329, %cst_114 [1] : vector<2x8xf32> to vector<2xf32>
    %331 = vector.shape_cast %330 : vector<2xf32> to vector<2x1xf32>
    %332 = vector.broadcast %331 : vector<2x1xf32> to vector<2x8xf32>
    %333 = arith.subf %329, %332 : vector<2x8xf32>
    %334 = math.exp %333 : vector<2x8xf32>
    %cst_115 = arith.constant dense<0.000000e+00> : vector<2xf32>
    %335 = vector.multi_reduction <add>, %334, %cst_115 [1] : vector<2x8xf32> to vector<2xf32>
    %336 = vector.shape_cast %335 : vector<2xf32> to vector<2x1xf32>
    %337 = tpu.reciprocal %336 {approx = true} : vector<2x1xf32> -> vector<2x1xf32>
    %338 = vector.broadcast %337 : vector<2x1xf32> to vector<2x8xf32>
    %339 = arith.mulf %334, %338 : vector<2x8xf32>
    %cst_116 = arith.constant dense<0xFF800000> : vector<2xf32>
    %340 = vector.multi_reduction <maximumf>, %327, %cst_116 [1] : vector<2x64xf32> to vector<2xf32>
    %341 = vector.shape_cast %340 : vector<2xf32> to vector<2x1xf32>
    %342 = vector.broadcast %341 : vector<2x1xf32> to vector<2x64xf32>
    %343 = arith.subf %327, %342 : vector<2x64xf32>
    %344 = math.exp %343 : vector<2x64xf32>
    %345 = arith.truncf %344 : vector<2x64xf32> to vector<2x64xbf16>
    %cst_117 = arith.constant dense<0.000000e+00> : vector<2x8xf32>
    %346 = tpu.matmul %345, %6, %cst_117 {dimension_numbers = #tpu.dot_dimension_numbers<[1], [0], [0], [1], [0, 0, 1, 1], [], []>} : vector<2x64xbf16>, vector<64x8xbf16>, vector<2x8xf32> -> vector<2x8xf32>
    %cst_118 = arith.constant 1.000000e-30 : f32
    %347 = vector.broadcast %cst_118 : f32 to vector<2x8xf32>
    %348 = arith.maximumf %346, %347 : vector<2x8xf32>
    %349 = arith.mulf %339, %5 : vector<2x8xf32>
    %350 = tpu.reciprocal %348 {approx = true} : vector<2x8xf32> -> vector<2x8xf32>
    %351 = arith.mulf %349, %350 : vector<2x8xf32>
    %352 = arith.truncf %351 : vector<2x8xf32> to vector<2x8xbf16>
    %cst_119 = arith.constant dense<0.000000e+00> : vector<2x64xf32>
    %353 = tpu.matmul %352, %7, %cst_119 {dimension_numbers = #tpu.dot_dimension_numbers<[1], [0], [0], [1], [0, 0, 1, 1], [], []>} : vector<2x8xbf16>, vector<8x64xbf16>, vector<2x64xf32> -> vector<2x64xf32>
    %354 = arith.mulf %344, %353 : vector<2x64xf32>
    %cst_120 = arith.constant dense<0.000000e+00> : vector<2xf32>
    %355 = vector.multi_reduction <add>, %354, %cst_120 [1] : vector<2x64xf32> to vector<2xf32>
    %356 = vector.shape_cast %355 : vector<2xf32> to vector<2x1xf32>
    %357 = tpu.reciprocal %356 {approx = true} : vector<2x1xf32> -> vector<2x1xf32>
    %358 = vector.broadcast %357 : vector<2x1xf32> to vector<2x64xf32>
    %359 = arith.mulf %354, %358 : vector<2x64xf32>
    %360 = arith.truncf %359 : vector<2x64xf32> to vector<2x64xbf16>
    %cst_121 = arith.constant dense<0.000000e+00> : vector<2x128xf32>
    %361 = tpu.matmul %360, %2, %cst_121 {dimension_numbers = #tpu.dot_dimension_numbers<[1], [0], [0], [1], [0, 0, 1, 1], [], []>} : vector<2x64xbf16>, vector<64x128xbf16>, vector<2x128xf32> -> vector<2x128xf32>
    %362 = arith.truncf %361 : vector<2x128xf32> to vector<2x128xbf16>
    %cst_122 = arith.constant dense<0.000000e+00> : vector<2x128xf32>
    %363 = tpu.matmul %362, %15, %cst_122 {dimension_numbers = #tpu.dot_dimension_numbers<[1], [0], [0], [1], [0, 0, 1, 1], [], []>} : vector<2x128xbf16>, vector<128x128xbf16>, vector<2x128xf32> -> vector<2x128xf32>
    %cst_123 = arith.constant dense<0.000000e+00> : vector<2x128xf32>
    %364 = tpu.matmul %325, %16, %cst_123 {dimension_numbers = #tpu.dot_dimension_numbers<[1], [0], [0], [1], [0, 0, 1, 1], [], []>} : vector<2x128xbf16>, vector<128x128xbf16>, vector<2x128xf32> -> vector<2x128xf32>
    %365 = arith.addf %363, %364 : vector<2x128xf32>
    %366 = math.tanh %365 : vector<2x128xf32>
    %c2_124 = arith.constant 2 : index
    %c0_125 = arith.constant 0 : index
    %c0_126 = arith.constant 0 : index
    %367 = vector.load %arg19[%c2_124, %c0_125, %c0_126] : memref<5x2x128xf32, #tpu.memory_space<vmem>>, vector<1x2x128xf32>
    %368 = vector.shape_cast %367 : vector<1x2x128xf32> to vector<2x128xf32>
    %369 = vector.shape_cast %366 : vector<2x128xf32> to vector<1x2x128xf32>
    tpu.vector_store %arg19[%c2_124, %c0_125, %c0_126], %369 {strides = array<i32>} : memref<5x2x128xf32, #tpu.memory_space<vmem>>, vector<1x2x128xf32>,
    %c2_127 = arith.constant 2 : index
    %c0_128 = arith.constant 0 : index
    %c0_129 = arith.constant 0 : index
    %370 = vector.load %arg20[%c2_127, %c0_128, %c0_129] : memref<5x2x64xf32, #tpu.memory_space<vmem>>, vector<1x2x64xf32>
    %371 = vector.shape_cast %370 : vector<1x2x64xf32> to vector<2x64xf32>
    %372 = vector.shape_cast %359 : vector<2x64xf32> to vector<1x2x64xf32>
    tpu.vector_store %arg20[%c2_127, %c0_128, %c0_129], %372 {strides = array<i32>} : memref<5x2x64xf32, #tpu.memory_space<vmem>>, vector<1x2x64xf32>,
    %c3 = arith.constant 3 : index
    %c0_130 = arith.constant 0 : index
    %c0_131 = arith.constant 0 : index
    %373 = vector.load %arg0[%c3, %c0_130, %c0_131] : memref<5x2x384xf32, #tpu.memory_space<vmem>>, vector<1x2x384xf32>
    %374 = vector.shape_cast %373 : vector<1x2x384xf32> to vector<2x384xf32>
    %375 = arith.truncf %366 : vector<2x128xf32> to vector<2x128xbf16>
    %cst_132 = arith.constant dense<0.000000e+00> : vector<2x384xf32>
    %376 = tpu.matmul %375, %8, %cst_132 {dimension_numbers = #tpu.dot_dimension_numbers<[1], [0], [0], [1], [0, 0, 1, 1], [], []>} : vector<2x128xbf16>, vector<128x384xbf16>, vector<2x384xf32> -> vector<2x384xf32>
    %377 = arith.addf %374, %376 : vector<2x384xf32>
    %378 = arith.truncf %290 : vector<2x128xf32> to vector<2x128xbf16>
    %cst_133 = arith.constant dense<0.000000e+00> : vector<2x384xf32>
    %379 = tpu.matmul %378, %9, %cst_133 {dimension_numbers = #tpu.dot_dimension_numbers<[1], [0], [0], [1], [0, 0, 1, 1], [], []>} : vector<2x128xbf16>, vector<128x384xbf16>, vector<2x384xf32> -> vector<2x384xf32>
    %380 = vector.broadcast %10 : vector<1x384xf32> to vector<2x384xf32>
    %381 = arith.addf %379, %380 : vector<2x384xf32>
    %382 = vector.extract_strided_slice %377 {offsets = [0, 0], sizes = [2, 128], strides = [1, 1]} : vector<2x384xf32> to vector<2x128xf32>
    %383 = vector.extract_strided_slice %381 {offsets = [0, 0], sizes = [2, 128], strides = [1, 1]} : vector<2x384xf32> to vector<2x128xf32>
    %384 = arith.addf %382, %383 : vector<2x128xf32>
    %385 = arith.negf %384 : vector<2x128xf32>
    %386 = math.exp %385 : vector<2x128xf32>
    %cst_134 = arith.constant 1.000000e+00 : f32
    %387 = vector.broadcast %cst_134 : f32 to vector<2x128xf32>
    %388 = arith.addf %387, %386 : vector<2x128xf32>
    %389 = arith.divf %387, %388 : vector<2x128xf32>
    %390 = vector.extract_strided_slice %377 {offsets = [0, 128], sizes = [2, 128], strides = [1, 1]} : vector<2x384xf32> to vector<2x128xf32>
    %391 = vector.extract_strided_slice %381 {offsets = [0, 128], sizes = [2, 128], strides = [1, 1]} : vector<2x384xf32> to vector<2x128xf32>
    %392 = arith.addf %390, %391 : vector<2x128xf32>
    %393 = arith.negf %392 : vector<2x128xf32>
    %394 = math.exp %393 : vector<2x128xf32>
    %cst_135 = arith.constant 1.000000e+00 : f32
    %395 = vector.broadcast %cst_135 : f32 to vector<2x128xf32>
    %396 = arith.addf %395, %394 : vector<2x128xf32>
    %397 = arith.divf %395, %396 : vector<2x128xf32>
    %398 = vector.extract_strided_slice %377 {offsets = [0, 256], sizes = [2, 128], strides = [1, 1]} : vector<2x384xf32> to vector<2x128xf32>
    %399 = vector.extract_strided_slice %381 {offsets = [0, 256], sizes = [2, 128], strides = [1, 1]} : vector<2x384xf32> to vector<2x128xf32>
    %400 = arith.mulf %389, %399 : vector<2x128xf32>
    %401 = arith.addf %398, %400 : vector<2x128xf32>
    %402 = math.tanh %401 : vector<2x128xf32>
    %cst_136 = arith.constant 1.000000e+00 : f32
    %403 = vector.broadcast %cst_136 : f32 to vector<2x128xf32>
    %404 = arith.subf %403, %397 : vector<2x128xf32>
    %405 = arith.mulf %404, %402 : vector<2x128xf32>
    %406 = arith.mulf %397, %290 : vector<2x128xf32>
    %407 = arith.addf %405, %406 : vector<2x128xf32>
    %408 = arith.truncf %407 : vector<2x128xf32> to vector<2x128xbf16>
    %cst_137 = arith.constant dense<0.000000e+00> : vector<2x384xf32>
    %409 = tpu.matmul %408, %11, %cst_137 {dimension_numbers = #tpu.dot_dimension_numbers<[1], [0], [0], [1], [0, 0, 1, 1], [], []>} : vector<2x128xbf16>, vector<128x384xbf16>, vector<2x384xf32> -> vector<2x384xf32>
    %410 = vector.broadcast %13 : vector<1x384xf32> to vector<2x384xf32>
    %411 = arith.addf %409, %410 : vector<2x384xf32>
    %412 = arith.truncf %324 : vector<2x128xf32> to vector<2x128xbf16>
    %cst_138 = arith.constant dense<0.000000e+00> : vector<2x384xf32>
    %413 = tpu.matmul %412, %12, %cst_138 {dimension_numbers = #tpu.dot_dimension_numbers<[1], [0], [0], [1], [0, 0, 1, 1], [], []>} : vector<2x128xbf16>, vector<128x384xbf16>, vector<2x384xf32> -> vector<2x384xf32>
    %414 = vector.broadcast %14 : vector<1x384xf32> to vector<2x384xf32>
    %415 = arith.addf %413, %414 : vector<2x384xf32>
    %416 = vector.extract_strided_slice %411 {offsets = [0, 0], sizes = [2, 128], strides = [1, 1]} : vector<2x384xf32> to vector<2x128xf32>
    %417 = vector.extract_strided_slice %415 {offsets = [0, 0], sizes = [2, 128], strides = [1, 1]} : vector<2x384xf32> to vector<2x128xf32>
    %418 = arith.addf %416, %417 : vector<2x128xf32>
    %419 = arith.negf %418 : vector<2x128xf32>
    %420 = math.exp %419 : vector<2x128xf32>
    %cst_139 = arith.constant 1.000000e+00 : f32
    %421 = vector.broadcast %cst_139 : f32 to vector<2x128xf32>
    %422 = arith.addf %421, %420 : vector<2x128xf32>
    %423 = arith.divf %421, %422 : vector<2x128xf32>
    %424 = vector.extract_strided_slice %411 {offsets = [0, 128], sizes = [2, 128], strides = [1, 1]} : vector<2x384xf32> to vector<2x128xf32>
    %425 = vector.extract_strided_slice %415 {offsets = [0, 128], sizes = [2, 128], strides = [1, 1]} : vector<2x384xf32> to vector<2x128xf32>
    %426 = arith.addf %424, %425 : vector<2x128xf32>
    %427 = arith.negf %426 : vector<2x128xf32>
    %428 = math.exp %427 : vector<2x128xf32>
    %cst_140 = arith.constant 1.000000e+00 : f32
    %429 = vector.broadcast %cst_140 : f32 to vector<2x128xf32>
    %430 = arith.addf %429, %428 : vector<2x128xf32>
    %431 = arith.divf %429, %430 : vector<2x128xf32>
    %432 = vector.extract_strided_slice %411 {offsets = [0, 256], sizes = [2, 128], strides = [1, 1]} : vector<2x384xf32> to vector<2x128xf32>
    %433 = vector.extract_strided_slice %415 {offsets = [0, 256], sizes = [2, 128], strides = [1, 1]} : vector<2x384xf32> to vector<2x128xf32>
    %434 = arith.mulf %423, %433 : vector<2x128xf32>
    %435 = arith.addf %432, %434 : vector<2x128xf32>
    %436 = math.tanh %435 : vector<2x128xf32>
    %cst_141 = arith.constant 1.000000e+00 : f32
    %437 = vector.broadcast %cst_141 : f32 to vector<2x128xf32>
    %438 = arith.subf %437, %431 : vector<2x128xf32>
    %439 = arith.mulf %438, %436 : vector<2x128xf32>
    %440 = arith.mulf %431, %324 : vector<2x128xf32>
    %441 = arith.addf %439, %440 : vector<2x128xf32>
    %442 = arith.truncf %441 : vector<2x128xf32> to vector<2x128xbf16>
    %cst_142 = arith.constant dense<0.000000e+00> : vector<2x64xf32>
    %443 = tpu.matmul %442, %0, %cst_142 {dimension_numbers = #tpu.dot_dimension_numbers<[1], [0], [0], [1], [0, 0, 1, 1], [], []>} : vector<2x128xbf16>, vector<128x64xbf16>, vector<2x64xf32> -> vector<2x64xf32>
    %444 = arith.addf %443, %3 : vector<2x64xf32>
    %cst_143 = arith.constant dense<0.000000e+00> : vector<2x8xf32>
    %445 = tpu.matmul %442, %1, %cst_143 {dimension_numbers = #tpu.dot_dimension_numbers<[1], [0], [0], [1], [0, 0, 1, 1], [], []>} : vector<2x128xbf16>, vector<128x8xbf16>, vector<2x8xf32> -> vector<2x8xf32>
    %446 = arith.addf %445, %4 : vector<2x8xf32>
    %cst_144 = arith.constant dense<0xFF800000> : vector<2xf32>
    %447 = vector.multi_reduction <maximumf>, %446, %cst_144 [1] : vector<2x8xf32> to vector<2xf32>
    %448 = vector.shape_cast %447 : vector<2xf32> to vector<2x1xf32>
    %449 = vector.broadcast %448 : vector<2x1xf32> to vector<2x8xf32>
    %450 = arith.subf %446, %449 : vector<2x8xf32>
    %451 = math.exp %450 : vector<2x8xf32>
    %cst_145 = arith.constant dense<0.000000e+00> : vector<2xf32>
    %452 = vector.multi_reduction <add>, %451, %cst_145 [1] : vector<2x8xf32> to vector<2xf32>
    %453 = vector.shape_cast %452 : vector<2xf32> to vector<2x1xf32>
    %454 = tpu.reciprocal %453 {approx = true} : vector<2x1xf32> -> vector<2x1xf32>
    %455 = vector.broadcast %454 : vector<2x1xf32> to vector<2x8xf32>
    %456 = arith.mulf %451, %455 : vector<2x8xf32>
    %cst_146 = arith.constant dense<0xFF800000> : vector<2xf32>
    %457 = vector.multi_reduction <maximumf>, %444, %cst_146 [1] : vector<2x64xf32> to vector<2xf32>
    %458 = vector.shape_cast %457 : vector<2xf32> to vector<2x1xf32>
    %459 = vector.broadcast %458 : vector<2x1xf32> to vector<2x64xf32>
    %460 = arith.subf %444, %459 : vector<2x64xf32>
    %461 = math.exp %460 : vector<2x64xf32>
    %462 = arith.truncf %461 : vector<2x64xf32> to vector<2x64xbf16>
    %cst_147 = arith.constant dense<0.000000e+00> : vector<2x8xf32>
    %463 = tpu.matmul %462, %6, %cst_147 {dimension_numbers = #tpu.dot_dimension_numbers<[1], [0], [0], [1], [0, 0, 1, 1], [], []>} : vector<2x64xbf16>, vector<64x8xbf16>, vector<2x8xf32> -> vector<2x8xf32>
    %cst_148 = arith.constant 1.000000e-30 : f32
    %464 = vector.broadcast %cst_148 : f32 to vector<2x8xf32>
    %465 = arith.maximumf %463, %464 : vector<2x8xf32>
    %466 = arith.mulf %456, %5 : vector<2x8xf32>
    %467 = tpu.reciprocal %465 {approx = true} : vector<2x8xf32> -> vector<2x8xf32>
    %468 = arith.mulf %466, %467 : vector<2x8xf32>
    %469 = arith.truncf %468 : vector<2x8xf32> to vector<2x8xbf16>
    %cst_149 = arith.constant dense<0.000000e+00> : vector<2x64xf32>
    %470 = tpu.matmul %469, %7, %cst_149 {dimension_numbers = #tpu.dot_dimension_numbers<[1], [0], [0], [1], [0, 0, 1, 1], [], []>} : vector<2x8xbf16>, vector<8x64xbf16>, vector<2x64xf32> -> vector<2x64xf32>
    %471 = arith.mulf %461, %470 : vector<2x64xf32>
    %cst_150 = arith.constant dense<0.000000e+00> : vector<2xf32>
    %472 = vector.multi_reduction <add>, %471, %cst_150 [1] : vector<2x64xf32> to vector<2xf32>
    %473 = vector.shape_cast %472 : vector<2xf32> to vector<2x1xf32>
    %474 = tpu.reciprocal %473 {approx = true} : vector<2x1xf32> -> vector<2x1xf32>
    %475 = vector.broadcast %474 : vector<2x1xf32> to vector<2x64xf32>
    %476 = arith.mulf %471, %475 : vector<2x64xf32>
    %477 = arith.truncf %476 : vector<2x64xf32> to vector<2x64xbf16>
    %cst_151 = arith.constant dense<0.000000e+00> : vector<2x128xf32>
    %478 = tpu.matmul %477, %2, %cst_151 {dimension_numbers = #tpu.dot_dimension_numbers<[1], [0], [0], [1], [0, 0, 1, 1], [], []>} : vector<2x64xbf16>, vector<64x128xbf16>, vector<2x128xf32> -> vector<2x128xf32>
    %479 = arith.truncf %478 : vector<2x128xf32> to vector<2x128xbf16>
    %cst_152 = arith.constant dense<0.000000e+00> : vector<2x128xf32>
    %480 = tpu.matmul %479, %15, %cst_152 {dimension_numbers = #tpu.dot_dimension_numbers<[1], [0], [0], [1], [0, 0, 1, 1], [], []>} : vector<2x128xbf16>, vector<128x128xbf16>, vector<2x128xf32> -> vector<2x128xf32>
    %cst_153 = arith.constant dense<0.000000e+00> : vector<2x128xf32>
    %481 = tpu.matmul %442, %16, %cst_153 {dimension_numbers = #tpu.dot_dimension_numbers<[1], [0], [0], [1], [0, 0, 1, 1], [], []>} : vector<2x128xbf16>, vector<128x128xbf16>, vector<2x128xf32> -> vector<2x128xf32>
    %482 = arith.addf %480, %481 : vector<2x128xf32>
    %483 = math.tanh %482 : vector<2x128xf32>
    %c3_154 = arith.constant 3 : index
    %c0_155 = arith.constant 0 : index
    %c0_156 = arith.constant 0 : index
    %484 = vector.load %arg19[%c3_154, %c0_155, %c0_156] : memref<5x2x128xf32, #tpu.memory_space<vmem>>, vector<1x2x128xf32>
    %485 = vector.shape_cast %484 : vector<1x2x128xf32> to vector<2x128xf32>
    %486 = vector.shape_cast %483 : vector<2x128xf32> to vector<1x2x128xf32>
    tpu.vector_store %arg19[%c3_154, %c0_155, %c0_156], %486 {strides = array<i32>} : memref<5x2x128xf32, #tpu.memory_space<vmem>>, vector<1x2x128xf32>,
    %c3_157 = arith.constant 3 : index
    %c0_158 = arith.constant 0 : index
    %c0_159 = arith.constant 0 : index
    %487 = vector.load %arg20[%c3_157, %c0_158, %c0_159] : memref<5x2x64xf32, #tpu.memory_space<vmem>>, vector<1x2x64xf32>
    %488 = vector.shape_cast %487 : vector<1x2x64xf32> to vector<2x64xf32>
    %489 = vector.shape_cast %476 : vector<2x64xf32> to vector<1x2x64xf32>
    tpu.vector_store %arg20[%c3_157, %c0_158, %c0_159], %489 {strides = array<i32>} : memref<5x2x64xf32, #tpu.memory_space<vmem>>, vector<1x2x64xf32>,
    %c4 = arith.constant 4 : index
    %c0_160 = arith.constant 0 : index
    %c0_161 = arith.constant 0 : index
    %490 = vector.load %arg0[%c4, %c0_160, %c0_161] : memref<5x2x384xf32, #tpu.memory_space<vmem>>, vector<1x2x384xf32>
    %491 = vector.shape_cast %490 : vector<1x2x384xf32> to vector<2x384xf32>
    %492 = arith.truncf %483 : vector<2x128xf32> to vector<2x128xbf16>
    %cst_162 = arith.constant dense<0.000000e+00> : vector<2x384xf32>
    %493 = tpu.matmul %492, %8, %cst_162 {dimension_numbers = #tpu.dot_dimension_numbers<[1], [0], [0], [1], [0, 0, 1, 1], [], []>} : vector<2x128xbf16>, vector<128x384xbf16>, vector<2x384xf32> -> vector<2x384xf32>
    %494 = arith.addf %491, %493 : vector<2x384xf32>
    %495 = arith.truncf %407 : vector<2x128xf32> to vector<2x128xbf16>
    %cst_163 = arith.constant dense<0.000000e+00> : vector<2x384xf32>
    %496 = tpu.matmul %495, %9, %cst_163 {dimension_numbers = #tpu.dot_dimension_numbers<[1], [0], [0], [1], [0, 0, 1, 1], [], []>} : vector<2x128xbf16>, vector<128x384xbf16>, vector<2x384xf32> -> vector<2x384xf32>
    %497 = vector.broadcast %10 : vector<1x384xf32> to vector<2x384xf32>
    %498 = arith.addf %496, %497 : vector<2x384xf32>
    %499 = vector.extract_strided_slice %494 {offsets = [0, 0], sizes = [2, 128], strides = [1, 1]} : vector<2x384xf32> to vector<2x128xf32>
    %500 = vector.extract_strided_slice %498 {offsets = [0, 0], sizes = [2, 128], strides = [1, 1]} : vector<2x384xf32> to vector<2x128xf32>
    %501 = arith.addf %499, %500 : vector<2x128xf32>
    %502 = arith.negf %501 : vector<2x128xf32>
    %503 = math.exp %502 : vector<2x128xf32>
    %cst_164 = arith.constant 1.000000e+00 : f32
    %504 = vector.broadcast %cst_164 : f32 to vector<2x128xf32>
    %505 = arith.addf %504, %503 : vector<2x128xf32>
    %506 = arith.divf %504, %505 : vector<2x128xf32>
    %507 = vector.extract_strided_slice %494 {offsets = [0, 128], sizes = [2, 128], strides = [1, 1]} : vector<2x384xf32> to vector<2x128xf32>
    %508 = vector.extract_strided_slice %498 {offsets = [0, 128], sizes = [2, 128], strides = [1, 1]} : vector<2x384xf32> to vector<2x128xf32>
    %509 = arith.addf %507, %508 : vector<2x128xf32>
    %510 = arith.negf %509 : vector<2x128xf32>
    %511 = math.exp %510 : vector<2x128xf32>
    %cst_165 = arith.constant 1.000000e+00 : f32
    %512 = vector.broadcast %cst_165 : f32 to vector<2x128xf32>
    %513 = arith.addf %512, %511 : vector<2x128xf32>
    %514 = arith.divf %512, %513 : vector<2x128xf32>
    %515 = vector.extract_strided_slice %494 {offsets = [0, 256], sizes = [2, 128], strides = [1, 1]} : vector<2x384xf32> to vector<2x128xf32>
    %516 = vector.extract_strided_slice %498 {offsets = [0, 256], sizes = [2, 128], strides = [1, 1]} : vector<2x384xf32> to vector<2x128xf32>
    %517 = arith.mulf %506, %516 : vector<2x128xf32>
    %518 = arith.addf %515, %517 : vector<2x128xf32>
    %519 = math.tanh %518 : vector<2x128xf32>
    %cst_166 = arith.constant 1.000000e+00 : f32
    %520 = vector.broadcast %cst_166 : f32 to vector<2x128xf32>
    %521 = arith.subf %520, %514 : vector<2x128xf32>
    %522 = arith.mulf %521, %519 : vector<2x128xf32>
    %523 = arith.mulf %514, %407 : vector<2x128xf32>
    %524 = arith.addf %522, %523 : vector<2x128xf32>
    %525 = arith.truncf %524 : vector<2x128xf32> to vector<2x128xbf16>
    %cst_167 = arith.constant dense<0.000000e+00> : vector<2x384xf32>
    %526 = tpu.matmul %525, %11, %cst_167 {dimension_numbers = #tpu.dot_dimension_numbers<[1], [0], [0], [1], [0, 0, 1, 1], [], []>} : vector<2x128xbf16>, vector<128x384xbf16>, vector<2x384xf32> -> vector<2x384xf32>
    %527 = vector.broadcast %13 : vector<1x384xf32> to vector<2x384xf32>
    %528 = arith.addf %526, %527 : vector<2x384xf32>
    %529 = arith.truncf %441 : vector<2x128xf32> to vector<2x128xbf16>
    %cst_168 = arith.constant dense<0.000000e+00> : vector<2x384xf32>
    %530 = tpu.matmul %529, %12, %cst_168 {dimension_numbers = #tpu.dot_dimension_numbers<[1], [0], [0], [1], [0, 0, 1, 1], [], []>} : vector<2x128xbf16>, vector<128x384xbf16>, vector<2x384xf32> -> vector<2x384xf32>
    %531 = vector.broadcast %14 : vector<1x384xf32> to vector<2x384xf32>
    %532 = arith.addf %530, %531 : vector<2x384xf32>
    %533 = vector.extract_strided_slice %528 {offsets = [0, 0], sizes = [2, 128], strides = [1, 1]} : vector<2x384xf32> to vector<2x128xf32>
    %534 = vector.extract_strided_slice %532 {offsets = [0, 0], sizes = [2, 128], strides = [1, 1]} : vector<2x384xf32> to vector<2x128xf32>
    %535 = arith.addf %533, %534 : vector<2x128xf32>
    %536 = arith.negf %535 : vector<2x128xf32>
    %537 = math.exp %536 : vector<2x128xf32>
    %cst_169 = arith.constant 1.000000e+00 : f32
    %538 = vector.broadcast %cst_169 : f32 to vector<2x128xf32>
    %539 = arith.addf %538, %537 : vector<2x128xf32>
    %540 = arith.divf %538, %539 : vector<2x128xf32>
    %541 = vector.extract_strided_slice %528 {offsets = [0, 128], sizes = [2, 128], strides = [1, 1]} : vector<2x384xf32> to vector<2x128xf32>
    %542 = vector.extract_strided_slice %532 {offsets = [0, 128], sizes = [2, 128], strides = [1, 1]} : vector<2x384xf32> to vector<2x128xf32>
    %543 = arith.addf %541, %542 : vector<2x128xf32>
    %544 = arith.negf %543 : vector<2x128xf32>
    %545 = math.exp %544 : vector<2x128xf32>
    %cst_170 = arith.constant 1.000000e+00 : f32
    %546 = vector.broadcast %cst_170 : f32 to vector<2x128xf32>
    %547 = arith.addf %546, %545 : vector<2x128xf32>
    %548 = arith.divf %546, %547 : vector<2x128xf32>
    %549 = vector.extract_strided_slice %528 {offsets = [0, 256], sizes = [2, 128], strides = [1, 1]} : vector<2x384xf32> to vector<2x128xf32>
    %550 = vector.extract_strided_slice %532 {offsets = [0, 256], sizes = [2, 128], strides = [1, 1]} : vector<2x384xf32> to vector<2x128xf32>
    %551 = arith.mulf %540, %550 : vector<2x128xf32>
    %552 = arith.addf %549, %551 : vector<2x128xf32>
    %553 = math.tanh %552 : vector<2x128xf32>
    %cst_171 = arith.constant 1.000000e+00 : f32
    %554 = vector.broadcast %cst_171 : f32 to vector<2x128xf32>
    %555 = arith.subf %554, %548 : vector<2x128xf32>
    %556 = arith.mulf %555, %553 : vector<2x128xf32>
    %557 = arith.mulf %548, %441 : vector<2x128xf32>
    %558 = arith.addf %556, %557 : vector<2x128xf32>
    %559 = arith.truncf %558 : vector<2x128xf32> to vector<2x128xbf16>
    %cst_172 = arith.constant dense<0.000000e+00> : vector<2x64xf32>
    %560 = tpu.matmul %559, %0, %cst_172 {dimension_numbers = #tpu.dot_dimension_numbers<[1], [0], [0], [1], [0, 0, 1, 1], [], []>} : vector<2x128xbf16>, vector<128x64xbf16>, vector<2x64xf32> -> vector<2x64xf32>
    %561 = arith.addf %560, %3 : vector<2x64xf32>
    %cst_173 = arith.constant dense<0.000000e+00> : vector<2x8xf32>
    %562 = tpu.matmul %559, %1, %cst_173 {dimension_numbers = #tpu.dot_dimension_numbers<[1], [0], [0], [1], [0, 0, 1, 1], [], []>} : vector<2x128xbf16>, vector<128x8xbf16>, vector<2x8xf32> -> vector<2x8xf32>
    %563 = arith.addf %562, %4 : vector<2x8xf32>
    %cst_174 = arith.constant dense<0xFF800000> : vector<2xf32>
    %564 = vector.multi_reduction <maximumf>, %563, %cst_174 [1] : vector<2x8xf32> to vector<2xf32>
    %565 = vector.shape_cast %564 : vector<2xf32> to vector<2x1xf32>
    %566 = vector.broadcast %565 : vector<2x1xf32> to vector<2x8xf32>
    %567 = arith.subf %563, %566 : vector<2x8xf32>
    %568 = math.exp %567 : vector<2x8xf32>
    %cst_175 = arith.constant dense<0.000000e+00> : vector<2xf32>
    %569 = vector.multi_reduction <add>, %568, %cst_175 [1] : vector<2x8xf32> to vector<2xf32>
    %570 = vector.shape_cast %569 : vector<2xf32> to vector<2x1xf32>
    %571 = tpu.reciprocal %570 {approx = true} : vector<2x1xf32> -> vector<2x1xf32>
    %572 = vector.broadcast %571 : vector<2x1xf32> to vector<2x8xf32>
    %573 = arith.mulf %568, %572 : vector<2x8xf32>
    %cst_176 = arith.constant dense<0xFF800000> : vector<2xf32>
    %574 = vector.multi_reduction <maximumf>, %561, %cst_176 [1] : vector<2x64xf32> to vector<2xf32>
    %575 = vector.shape_cast %574 : vector<2xf32> to vector<2x1xf32>
    %576 = vector.broadcast %575 : vector<2x1xf32> to vector<2x64xf32>
    %577 = arith.subf %561, %576 : vector<2x64xf32>
    %578 = math.exp %577 : vector<2x64xf32>
    %579 = arith.truncf %578 : vector<2x64xf32> to vector<2x64xbf16>
    %cst_177 = arith.constant dense<0.000000e+00> : vector<2x8xf32>
    %580 = tpu.matmul %579, %6, %cst_177 {dimension_numbers = #tpu.dot_dimension_numbers<[1], [0], [0], [1], [0, 0, 1, 1], [], []>} : vector<2x64xbf16>, vector<64x8xbf16>, vector<2x8xf32> -> vector<2x8xf32>
    %cst_178 = arith.constant 1.000000e-30 : f32
    %581 = vector.broadcast %cst_178 : f32 to vector<2x8xf32>
    %582 = arith.maximumf %580, %581 : vector<2x8xf32>
    %583 = arith.mulf %573, %5 : vector<2x8xf32>
    %584 = tpu.reciprocal %582 {approx = true} : vector<2x8xf32> -> vector<2x8xf32>
    %585 = arith.mulf %583, %584 : vector<2x8xf32>
    %586 = arith.truncf %585 : vector<2x8xf32> to vector<2x8xbf16>
    %cst_179 = arith.constant dense<0.000000e+00> : vector<2x64xf32>
    %587 = tpu.matmul %586, %7, %cst_179 {dimension_numbers = #tpu.dot_dimension_numbers<[1], [0], [0], [1], [0, 0, 1, 1], [], []>} : vector<2x8xbf16>, vector<8x64xbf16>, vector<2x64xf32> -> vector<2x64xf32>
    %588 = arith.mulf %578, %587 : vector<2x64xf32>
    %cst_180 = arith.constant dense<0.000000e+00> : vector<2xf32>
    %589 = vector.multi_reduction <add>, %588, %cst_180 [1] : vector<2x64xf32> to vector<2xf32>
    %590 = vector.shape_cast %589 : vector<2xf32> to vector<2x1xf32>
    %591 = tpu.reciprocal %590 {approx = true} : vector<2x1xf32> -> vector<2x1xf32>
    %592 = vector.broadcast %591 : vector<2x1xf32> to vector<2x64xf32>
    %593 = arith.mulf %588, %592 : vector<2x64xf32>
    %594 = arith.truncf %593 : vector<2x64xf32> to vector<2x64xbf16>
    %cst_181 = arith.constant dense<0.000000e+00> : vector<2x128xf32>
    %595 = tpu.matmul %594, %2, %cst_181 {dimension_numbers = #tpu.dot_dimension_numbers<[1], [0], [0], [1], [0, 0, 1, 1], [], []>} : vector<2x64xbf16>, vector<64x128xbf16>, vector<2x128xf32> -> vector<2x128xf32>
    %596 = arith.truncf %595 : vector<2x128xf32> to vector<2x128xbf16>
    %cst_182 = arith.constant dense<0.000000e+00> : vector<2x128xf32>
    %597 = tpu.matmul %596, %15, %cst_182 {dimension_numbers = #tpu.dot_dimension_numbers<[1], [0], [0], [1], [0, 0, 1, 1], [], []>} : vector<2x128xbf16>, vector<128x128xbf16>, vector<2x128xf32> -> vector<2x128xf32>
    %cst_183 = arith.constant dense<0.000000e+00> : vector<2x128xf32>
    %598 = tpu.matmul %559, %16, %cst_183 {dimension_numbers = #tpu.dot_dimension_numbers<[1], [0], [0], [1], [0, 0, 1, 1], [], []>} : vector<2x128xbf16>, vector<128x128xbf16>, vector<2x128xf32> -> vector<2x128xf32>
    %599 = arith.addf %597, %598 : vector<2x128xf32>
    %600 = math.tanh %599 : vector<2x128xf32>
    %c4_184 = arith.constant 4 : index
    %c0_185 = arith.constant 0 : index
    %c0_186 = arith.constant 0 : index
    %601 = vector.load %arg19[%c4_184, %c0_185, %c0_186] : memref<5x2x128xf32, #tpu.memory_space<vmem>>, vector<1x2x128xf32>
    %602 = vector.shape_cast %601 : vector<1x2x128xf32> to vector<2x128xf32>
    %603 = vector.shape_cast %600 : vector<2x128xf32> to vector<1x2x128xf32>
    tpu.vector_store %arg19[%c4_184, %c0_185, %c0_186], %603 {strides = array<i32>} : memref<5x2x128xf32, #tpu.memory_space<vmem>>, vector<1x2x128xf32>,
    %c4_187 = arith.constant 4 : index
    %c0_188 = arith.constant 0 : index
    %c0_189 = arith.constant 0 : index
    %604 = vector.load %arg20[%c4_187, %c0_188, %c0_189] : memref<5x2x64xf32, #tpu.memory_space<vmem>>, vector<1x2x64xf32>
    %605 = vector.shape_cast %604 : vector<1x2x64xf32> to vector<2x64xf32>
    %606 = vector.shape_cast %593 : vector<2x64xf32> to vector<1x2x64xf32>
    tpu.vector_store %arg20[%c4_187, %c0_188, %c0_189], %606 {strides = array<i32>} : memref<5x2x64xf32, #tpu.memory_space<vmem>>, vector<1x2x64xf32>,
    %c0_190 = arith.constant 0 : index
    %c0_191 = arith.constant 0 : index
    %c0_192 = arith.constant 0 : index
    %607 = vector.load %arg21[%c0_190, %c0_191, %c0_192] : memref<2x2x128xf32, #tpu.memory_space<vmem>>, vector<1x2x128xf32>
    %608 = vector.shape_cast %607 : vector<1x2x128xf32> to vector<2x128xf32>
    %609 = vector.shape_cast %524 : vector<2x128xf32> to vector<1x2x128xf32>
    tpu.vector_store %arg21[%c0_190, %c0_191, %c0_192], %609 {strides = array<i32>} : memref<2x2x128xf32, #tpu.memory_space<vmem>>, vector<1x2x128xf32>,
    %c1_193 = arith.constant 1 : index
    %c0_194 = arith.constant 0 : index
    %c0_195 = arith.constant 0 : index
    %610 = vector.load %arg21[%c1_193, %c0_194, %c0_195] : memref<2x2x128xf32, #tpu.memory_space<vmem>>, vector<1x2x128xf32>
    %611 = vector.shape_cast %610 : vector<1x2x128xf32> to vector<2x128xf32>
    %612 = vector.shape_cast %558 : vector<2x128xf32> to vector<1x2x128xf32>
    tpu.vector_store %arg21[%c1_193, %c0_194, %c0_195], %612 {strides = array<i32>} : memref<2x2x128xf32, #tpu.memory_space<vmem>>, vector<1x2x128xf32>,
    return
  }
}

</mosaic_0001>

<bundles_post_ra>
// kernel: tpu_custom_call.1
= control target key start
LH: loop header
LB: loop body
LE: loop exit
PB: predicated region body
PF: predicated region fallthrough
CT: control target
= control target key end

     0   :  { %s9807_s0 = inlined_call_operand.hbm [shape: f32[5,2,384], index: 0, kind: input, shape index: {}]   ;;  %s9808_s1 = inlined_call_operand.vmem [shape: bf16[128,64], index: 1, kind: input, shape index: {}]   ;;  %s9809_s2 = inlined_call_operand.vmem [shape: bf16[128,8], index: 2, kind: input, shape index: {}]   ;;  %s9810_s3 = inlined_call_operand.hbm [shape: bf16[64,128], index: 3, kind: input, shape index: {}]   ;;  %s9811_s4 = inlined_call_operand.vmem [shape: f32[2,64], index: 4, kind: input, shape index: {}]   ;;  %s9812_s5 = inlined_call_operand.hbm [shape: f32[2,8], index: 5, kind: input, shape index: {}]   ;;  %s9813_s6 = inlined_call_operand.hbm [shape: f32[2,8], index: 6, kind: input, shape index: {}]   ;;  %s9814_s7 = inlined_call_operand.vmem [shape: f32[2,2,128], index: 7, kind: input, shape index: {}]   ;;  %s9815_s8 = inlined_call_operand.vmem [shape: bf16[128,384], index: 8, kind: input, shape index: {}]   ;;  %s9816_s9 = inlined_call_operand.hbm [shape: bf16[128,384], index: 9, kind: input, shape index: {}]   ;;  %s9817_s10 = inlined_call_operand.vmem [shape: f32[1,384], index: 10, kind: input, shape index: {}]   ;;  %s9818_s11 = inlined_call_operand.hbm [shape: bf16[128,384], index: 11, kind: input, shape index: {}]   ;;  %s9819_s12 = inlined_call_operand.hbm [shape: bf16[128,384], index: 12, kind: input, shape index: {}]   ;;  %s9820_s13 = inlined_call_operand.vmem [shape: f32[1,384], index: 13, kind: input, shape index: {}]   ;;  %s9821_s14 = inlined_call_operand.vmem [shape: f32[1,384], index: 14, kind: input, shape index: {}]   ;;  %s9822_s15 = inlined_call_operand.hbm [shape: bf16[128,128], index: 15, kind: input, shape index: {}]   ;;  %s9823_s16 = inlined_call_operand.hbm [shape: bf16[128,128], index: 16, kind: input, shape index: {}]   ;;  %s9824_s17 = inlined_call_operand.vmem [shape: bf16[64,8], index: 17, kind: input, shape index: {}]   ;;  %s9825_s18 = inlined_call_operand.vmem [shape: bf16[8,64], index: 18, kind: input, shape index: {}]   ;;  %s9826_s19 = inlined_call_operand.hbm [shape: f32[5,2,128], index: 19, kind: output, shape index: {0}]   ;;  %s9827_s20 = inlined_call_operand.hbm [shape: f32[5,2,64], index: 20, kind: output, shape index: {1}]   ;;  %s9828_s21 = inlined_call_operand.hbm [shape: f32[2,2,128], index: 21, kind: output, shape index: {2}]  }
   0x1   :  { %10051 = sst [smem:[#allocation134_spill]] %s9807_s0 }
   0x2   :  { %10052 = sst [smem:[#allocation135_spill]] %s9808_s1 }
   0x3   :  { %10053 = sst [smem:[#allocation136_spill]] %s9809_s2 }
   0x4   :  { %10054 = sst [smem:[#allocation137_spill]] %s9810_s3 }
   0x5   :  { %10055 = sst [smem:[#allocation138_spill]] %s9811_s4 }
   0x6   :  { %10056 = sst [smem:[#allocation139_spill]] %s9812_s5 }
   0x7   :  { %27 = vsyncpa [#allocation3], 0 }
   0x8   :  { %28 = vsyncpa [#allocation6], 0 }
   0x9   :  { %29 = vsyncpa [#allocation9], 0 }
   0xa   :  { %30 = vsyncpa [#allocation12], 0 }
   0xb   :  { %31 = vsyncpa [#allocation15], 0 }
   0xc   :  { %32 = vsyncpa [#allocation4], 0 }
   0xd   :  { %33 = vsyncpa [#allocation19], 0  ;;  %s7301_s2 = smov [#allocation5]  }
   0xe   :  { %s55_s25 = sshll.u32 %s7301_s2, 4  ;;  %s56_s25 = int_to_ptr.vmem [resolvable:$true] %s55_s25 }
   0xf   :  { %s7055_s26 = scalar_lea.vmem %s56_s25, 512  ;;  %p7060_p1 = scmp.lt.s32.totalorder %s56_s25, %s56_s25 }
  0x10   :  { %p7056_p0 = scmp.ne.s32.totalorder %s56_s25, %s7055_s26  ;;  %p7061_p2 = scmp.lt.s32.totalorder %s7055_s26, %s7055_s26 }
  0x12   :  { %p7062_p3 = por %p7061_p2, %p7060_p1 }
  0x14   :  { %p7063_p4 = pnand %p7062_p3, %p7056_p0 }
  0x16   :  { %7066 = shalt.err (!%p7063_p4)
}
  0x17   :  { %s9832_s27 = smov 64   ;;  %s7303_s3 = smov 4  }
  0x18   :  { %s10057_s0 = sld [smem:[#allocation137_spill]]  ;;  %s7304_s4 = smov [#allocation8]  }
  0x19   :  { %s80_s30 = sshll.u32 %s7304_s4, 4  ;;  %s81_s30 = int_to_ptr.vmem [resolvable:$true] %s80_s30 }
  0x1a   :  { %s7075_s5 = scalar_lea.vmem %s81_s30, 32  ;;  %p7080_p6 = scmp.lt.s32.totalorder %s81_s30, %s81_s30 }
  0x1b   :  { %p7076_p5 = scmp.ne.s32.totalorder %s81_s30, %s7075_s5  ;;  %p7081_p7 = scmp.lt.s32.totalorder %s7075_s5, %s7075_s5 }
  0x1d   :  { %p7082_p8 = por %p7081_p7, %p7080_p6 }
  0x1e   :  { %61 = dma.hbm_to_vmem [thread:$0]  %s10057_s0, 512, %s56_s25, [#allocation6], %s9832_s27, %s9832_s27, %s7303_s3  }
  0x1f   :  { %p7083_p9 = pnand %p7082_p8, %p7076_p5 }
  0x21   :  { %7086 = shalt.err (!%p7083_p9)
}
  0x22   :  { %83 = dma.hbm_to_vmem [thread:$0]  %s9813_s6, 32, %s81_s30, [#allocation9]  }
  0x23   :  { %s7305_s1 = smov [#allocation11]   ;;  %s7306_s2 = smov [#allocation14]  }
  0x24   :  { %s107_s24 = sshll.u32 %s7305_s1, 4  ;;  %s135_s26 = sshll.u32 %s7306_s2, 4  ;;  %s108_s24 = int_to_ptr.vmem [resolvable:$true] %s107_s24  ;;  %s136_s26 = int_to_ptr.vmem [resolvable:$true] %s135_s26 }
  0x25   :  { %s7095_s25 = scalar_lea.vmem %s108_s24, 3072  ;;  %p7100_p11 = scmp.lt.s32.totalorder %s108_s24, %s108_s24 }
  0x26   :  { %p7096_p10 = scmp.ne.s32.totalorder %s108_s24, %s7095_s25  ;;  %p7101_p12 = scmp.lt.s32.totalorder %s7095_s25, %s7095_s25 }
  0x28   :  { %p7102_p13 = por %p7101_p12, %p7100_p11 }
  0x2a   :  { %p7103_p0 = pnand %p7102_p13, %p7096_p10 }
  0x2c   :  { %7106 = shalt.err (!%p7103_p0)
}
  0x2d   :  { %s7307_s28 = smov 192   ;;  %s7308_s29 = smov 12  }
  0x2e   :  { %113 = dma.hbm_to_vmem [thread:$0]  %s9818_s11, 3072, %s108_s24, [#allocation12], %s7307_s28, %s7307_s28, %s7308_s29  }
  0x2f   :  { %s7115_s4 = scalar_lea.vmem %s136_s26, 1024  ;;  %p7120_p2 = scmp.lt.s32.totalorder %s136_s26, %s136_s26 }
  0x30   :  { %p7116_p1 = scmp.ne.s32.totalorder %s136_s26, %s7115_s4  ;;  %p7121_p3 = scmp.lt.s32.totalorder %s7115_s4, %s7115_s4 }
  0x32   :  { %p7122_p4 = por %p7121_p3, %p7120_p2 }
  0x34   :  { %p7123_p5 = pnand %p7122_p4, %p7116_p1 }
  0x36   :  { %7126 = shalt.err (!%p7123_p5)
}
  0x37   :  { %141 = dma.hbm_to_vmem [thread:$0]  %s9822_s15, 1024, %s136_s26, [#allocation15], %s9832_s27, %s9832_s27, %s7303_s3  }
  0x38   :  { %s7309_s22 = smov [#allocation2]  }
  0x39   :  { %s39_s23 = sshll.u32 %s7309_s22, 4  ;;  %s40_s23 = int_to_ptr.vmem [resolvable:$true] %s39_s23 }
  0x3a   :  { %s7135_s1 = scalar_lea.vmem %s40_s23, 480  ;;  %p7140_p7 = scmp.lt.s32.totalorder %s40_s23, %s40_s23 }
  0x3b   :  { %p7136_p6 = scmp.ne.s32.totalorder %s40_s23, %s7135_s1  ;;  %p7141_p8 = scmp.lt.s32.totalorder %s7135_s1, %s7135_s1 }
  0x3d   :  { %p7142_p9 = por %p7141_p8, %p7140_p7 }
  0x3f   :  { %p7143_p10 = pnand %p7142_p9, %p7136_p6 }
  0x41   :  { %7146 = shalt.err (!%p7143_p10)
}
  0x42   :  { %s7310_s11 = smov 96   ;;  %s7311_s24 = smov 6  }
  0x43   :  { %s10058_s0 = sld [smem:[#allocation134_spill]]  ;;  %s7312_s6 = smov [#allocation7]  }
  0x44   :  { %s70_s4 = sshll.u32 %s7312_s6, 4  ;;  %s7313_s15 = smov [#allocation10]   ;;  %s71_s4 = int_to_ptr.vmem [resolvable:$true] %s70_s4 }
  0x45   :  { %s93_s26 = sshll.u32 %s7313_s15, 4  ;;  %s7155_s30 = scalar_lea.vmem %s71_s4, 32  ;;  %s94_s26 = int_to_ptr.vmem [resolvable:$true] %s93_s26 }
  0x46   :  { %p7156_p11 = scmp.ne.s32.totalorder %s71_s4, %s7155_s30  ;;  %p7160_p12 = scmp.lt.s32.totalorder %s71_s4, %s71_s4 }
  0x47   :  { %p7161_p13 = scmp.lt.s32.totalorder %s7155_s30, %s7155_s30 }
  0x49   :  { %45 = dma.hbm_to_vmem [thread:$0]  %s10058_s0, 480, %s40_s23, [#allocation3], %s7310_s11, %s7310_s11, %s7311_s24  }
  0x4a   :  { %p7162_p0 = por %p7161_p13, %p7160_p12 }
  0x4c   :  { %p7163_p1 = pnand %p7162_p0, %p7156_p11 }
  0x4e   :  { %7166 = shalt.err (!%p7163_p1)
}
  0x4f   :  { %s10059_s1 = sld [smem:[#allocation139_spill]]  ;;  %s7175_s27 = scalar_lea.vmem %s94_s26, 3072 }
  0x50   :  { %p7176_p2 = scmp.ne.s32.totalorder %s94_s26, %s7175_s27  ;;  %p7180_p3 = scmp.lt.s32.totalorder %s94_s26, %s94_s26 }
  0x51   :  { %p7181_p4 = scmp.lt.s32.totalorder %s7175_s27, %s7175_s27 }
  0x53   :  { %p7182_p5 = por %p7181_p4, %p7180_p3 }
  0x55   :  { %73 = dma.hbm_to_vmem [thread:$0]  %s10059_s1, 32, %s71_s4, [#allocation6]  }
  0x56   :  { %p7183_p6 = pnand %p7182_p5, %p7176_p2 }
  0x58   :  { %7186 = shalt.err (!%p7183_p6)
}
  0x59   :  { %99 = dma.hbm_to_vmem [thread:$0]  %s9816_s9, 3072, %s94_s26, [#allocation9], %s7307_s28, %s7307_s28, %s7308_s29  }
  0x5a   :  { %s7314_s24 = smov [#allocation13]   ;;  %s7315_s25 = smov [#allocation16]  }
  0x5b   :  { %s119_s2 = sshll.u32 %s7314_s24, 4  ;;  %s147_s0 = sshll.u32 %s7315_s25, 4  ;;  %s120_s2 = int_to_ptr.vmem [resolvable:$true] %s119_s2  ;;  %s148_s0 = int_to_ptr.vmem [resolvable:$true] %s147_s0 }
  0x5c   :  { %s7195_s6 = scalar_lea.vmem %s120_s2, 3072  ;;  %p7200_p8 = scmp.lt.s32.totalorder %s120_s2, %s120_s2 }
  0x5d   :  { %p7196_p7 = scmp.ne.s32.totalorder %s120_s2, %s7195_s6  ;;  %p7201_p9 = scmp.lt.s32.totalorder %s7195_s6, %s7195_s6 }
  0x5f   :  { %p7202_p10 = por %p7201_p9, %p7200_p8 }
  0x61   :  { %p7203_p11 = pnand %p7202_p10, %p7196_p7 }
  0x63   :  { %7206 = shalt.err (!%p7203_p11)
}
  0x64   :  { %125 = dma.hbm_to_vmem [thread:$0]  %s9819_s12, 3072, %s120_s2, [#allocation12], %s7307_s28, %s7307_s28, %s7308_s29  }
  0x65   :  { %s7215_s9 = scalar_lea.vmem %s148_s0, 1024  ;;  %p7220_p13 = scmp.lt.s32.totalorder %s148_s0, %s148_s0 }
  0x66   :  { %p7216_p12 = scmp.ne.s32.totalorder %s148_s0, %s7215_s9  ;;  %p7221_p0 = scmp.lt.s32.totalorder %s7215_s9, %s7215_s9 }
  0x68   :  { %p7222_p1 = por %p7221_p0, %p7220_p13 }
  0x6a   :  { %p7223_p2 = pnand %p7222_p1, %p7216_p12 }
  0x6c   :  { %7226 = shalt.err (!%p7223_p2)
}
  0x6d   :  { %s10060_s15 = smov 64  }
  0x6e   :  { %153 = dma.hbm_to_vmem [thread:$0]  %s9823_s16, 1024, %s148_s0, [#allocation15], %s10060_s15, %s10060_s15, %s7303_s3  }
  0x6f   :  { %7287 = dma.done.wait [#allocation3], 480  }
  0x70   :  { %7288 = vsyncadd [#allocation3], 4294966816 }
  0x71   :  { %7289 = dma.done.wait [#allocation6], 544  }
  0x72   :  { %7290 = vsyncadd [#allocation6], 4294966752 }
  0x73   :  { %7291 = dma.done.wait [#allocation9], 3104  }
  0x74   :  { %7292 = vsyncadd [#allocation9], 4294964192 }
  0x75   :  { %7293 = dma.done.wait [#allocation12], 6144  }
  0x76   :  { %7294 = vsyncadd [#allocation12], 4294961152 }
  0x77   :  { %7295 = dma.done.wait [#allocation15], 2048  }
  0x78   :  { %7296 = vsyncadd [#allocation15], 4294965248  ;;  %v9837_v0 = vmov 0.0   ;;  %v9833_v1 = vmov 0   ;;  %vm7318_vm0 = vmmov 0   ;;  %s10061_s25 = sld [smem:[#allocation135_spill]] }
  0x79   :  { %5467 = vmatprep.subr.bf16.mxu1 %v9837_v0  ;;  %565 = vmatprep.mubr.bf16.mxu0 %v9833_v1  ;;  %v6441_v2 = vld [vmem:[%s9815_s8 + $0xac] ss:$12 sps:$4 sm:$0xff]   ;;  %v6443_v3 = vld [vmem:[%s9815_s8 + $0xa8] ss:$12 sps:$4 sm:$0xff]   ;;  %v6446_v5 = vld [vmem:[%s9815_s8 + $0x90] ss:$12 sps:$4 sm:$0xff]  }
  0x7a   :  { %5483 = vmatprep.mubr.msk.bf16.mxu1 %vm7318_vm0, %v9837_v0  ;;  %533 = vmatprep.subr.bf16.mxu0 %v6441_v2  ;;  %v6444_v4 = vld [vmem:[%s9815_s8 + $0x94] ss:$12 sps:$4 sm:$0xff]   ;;  %v6447_v6 = vld [vmem:[%s9815_s8 + $0xb0] ss:$12 sps:$4 sm:$0xff]   ;;  %v6451_v8 = vld [vmem:[%s9815_s8 + $0x98] ss:$12 sps:$4 sm:$0xff]  }
  0x7b   :  { %534 = vmatpush1.bf16.msra.mxu0 %v6443_v3  ;;  %v6448_v7 = vld [vmem:[%s9815_s8 + $0x7c] ss:$12 sps:$4 sm:$0xff]   ;;  %5468 = vmatpush3.bf16.msra.mxu1 %v6447_v6  ;;  %v6450_v9 = vld [vmem:[%s9815_s8 + $0x78] ss:$12 sps:$4 sm:$0xff]   ;;  %v6455_v11 = vld [vmem:[%s9815_s8 + $0x80] ss:$12 sps:$4 sm:$0xff]  }
  0x7c   :  { %535 = vmatprep.subr.bf16.mxu0 %v6444_v4  ;;  %5469 = vmatprep.subr.bf16.mxu1 %v9837_v0  ;;  %v6452_v10 = vld [vmem:[%s9815_s8 + $0x64] ss:$12 sps:$4 sm:$0xff]   ;;  %v6454_v12 = vld [vmem:[%s9815_s8 + $0x60] ss:$12 sps:$4 sm:$0xff]   ;;  %v6459_v14 = vld [vmem:[%s9815_s8 + $0x68] ss:$12 sps:$4 sm:$0xff]  }
  0x7d   :  { %v6456_v13 = vld [vmem:[%s9815_s8 + $0x4c] ss:$12 sps:$4 sm:$0xff]   ;;  %v6458_v15 = vld [vmem:[%s9815_s8 + $0x48] ss:$12 sps:$4 sm:$0xff]   ;;  %v6463_v17 = vld [vmem:[%s9815_s8 + $0x50] ss:$12 sps:$4 sm:$0xff]  }
  0x7e   :  { %v6460_v16 = vld [vmem:[%s9815_s8 + $0x34] ss:$12 sps:$4 sm:$0xff]   ;;  %v6462_v18 = vld [vmem:[%s9815_s8 + $0x30] ss:$12 sps:$4 sm:$0xff]   ;;  %v6467_v20 = vld [vmem:[%s9815_s8 + $0x38] ss:$12 sps:$4 sm:$0xff]  }
  0x7f   :  { %536 = vmatpush1.bf16.msra.mxu0 %v6446_v5  ;;  %5470 = vmatpush3.bf16.msra.mxu1 %v6451_v8  ;;  %v6464_v19 = vld [vmem:[%s9815_s8 + $0x1c] ss:$12 sps:$4 sm:$0xff]   ;;  %v6466_v21 = vld [vmem:[%s9815_s8 + $0x18] ss:$12 sps:$4 sm:$0xff]   ;;  %v6471_v23 = vld [vmem:[%s9815_s8 + $0x20] ss:$12 sps:$4 sm:$0xff]  }
  0x80   :  { %537 = vmatprep.subr.bf16.mxu0 %v6448_v7  ;;  %5471 = vmatprep.subr.bf16.mxu1 %v9837_v0  ;;  %v6468_v22 = vld [vmem:[%s9815_s8 + $0x4] ss:$12 sps:$4 sm:$0xff]   ;;  %v6470_v24 = vld [vmem:[%s9815_s8] ss:$12 sps:$4 sm:$0xff]   ;;  %v6474_v26 = vld [vmem:[%s9815_s8 + $0x8] ss:$12 sps:$4 sm:$0xff]  }
  0x81   :  { %v6472_v25 = vld [vmem:[#allocation10 + $0xac] ss:$12 sps:$4 sm:$0xff]   ;;  %v6475_v27 = vld [vmem:[#allocation10 + $0xa8] ss:$12 sps:$4 sm:$0xff]   ;;  %v6497_v29 = vld [vmem:[#allocation10 + $0xb0] ss:$12 sps:$4 sm:$0xff]  }
  0x82   :  { %v6476_v28 = vld [vmem:[#allocation10 + $0x94] ss:$12 sps:$4 sm:$0xff]   ;;  %v6478_v30 = vld [vmem:[#allocation10 + $0x90] ss:$12 sps:$4 sm:$0xff]   ;;  %v6481_v32 = vld [vmem:[#allocation10 + $0x78] ss:$12 sps:$4 sm:$0xff]  }
  0x83   :  { %538 = vmatpush1.bf16.msra.mxu0 %v6450_v9  ;;  %5472 = vmatpush3.bf16.msra.mxu1 %v6455_v11  ;;  %v6479_v31 = vld [vmem:[#allocation10 + $0x7c] ss:$12 sps:$4 sm:$0xff]   ;;  %v6498_v33 = vld [vmem:[#allocation10 + $0x98] ss:$12 sps:$4 sm:$0xff]   ;;  %v6499_v35 = vld [vmem:[#allocation10 + $0x80] ss:$12 sps:$4 sm:$0xff]  }
  0x84   :  { %539 = vmatprep.subr.bf16.mxu0 %v6452_v10  ;;  %5473 = vmatprep.subr.bf16.mxu1 %v9837_v0  ;;  %v6482_v34 = vld [vmem:[#allocation10 + $0x64] ss:$12 sps:$4 sm:$0xff]   ;;  %v6484_v36 = vld [vmem:[#allocation10 + $0x60] ss:$12 sps:$4 sm:$0xff]   ;;  %v6500_v38 = vld [vmem:[#allocation10 + $0x68] ss:$12 sps:$4 sm:$0xff]  }
  0x85   :  { %v6485_v37 = vld [vmem:[#allocation10 + $0x4c] ss:$12 sps:$4 sm:$0xff]   ;;  %v6487_v39 = vld [vmem:[#allocation10 + $0x48] ss:$12 sps:$4 sm:$0xff]   ;;  %v6501_v41 = vld [vmem:[#allocation10 + $0x50] ss:$12 sps:$4 sm:$0xff]  }
  0x86   :  { %v6488_v40 = vld [vmem:[#allocation10 + $0x34] ss:$12 sps:$4 sm:$0xff]   ;;  %v6490_v42 = vld [vmem:[#allocation10 + $0x30] ss:$12 sps:$4 sm:$0xff]   ;;  %v6502_v44 = vld [vmem:[#allocation10 + $0x38] ss:$12 sps:$4 sm:$0xff]  }
  0x87   :  { %540 = vmatpush1.bf16.msra.mxu0 %v6454_v12  ;;  %5474 = vmatpush3.bf16.msra.mxu1 %v6459_v14  ;;  %v6491_v43 = vld [vmem:[#allocation10 + $0x1c] ss:$12 sps:$4 sm:$0xff]   ;;  %v6493_v45 = vld [vmem:[#allocation10 + $0x18] ss:$12 sps:$4 sm:$0xff]   ;;  %v6503_v47 = vld [vmem:[#allocation10 + $0x20] ss:$12 sps:$4 sm:$0xff]  }
  0x88   :  { %541 = vmatprep.subr.bf16.mxu0 %v6456_v13  ;;  %5475 = vmatprep.subr.bf16.mxu1 %v9837_v0  ;;  %v6494_v46 = vld [vmem:[#allocation10 + $0x4] ss:$12 sps:$4 sm:$0xff]   ;;  %v6496_v48 = vld [vmem:[#allocation10] ss:$12 sps:$4 sm:$0xff]   ;;  %v7577_v49 = vld [vmem:[%s9814_s7] sm:$0x3] }
  0x89   :  { %v6504_v50 = vld [vmem:[#allocation10 + $0x8] ss:$12 sps:$4 sm:$0xff]   ;;  %v635_v51 = vpack.c.bf16 %v7577_v49, %v7577_v49  ;;  %v6505_v52 = vld [vmem:[#allocation11 + $0xac] ss:$12 sps:$4 sm:$0xff]   ;;  %v6508_v54 = vld [vmem:[#allocation11 + $0xb0] ss:$12 sps:$4 sm:$0xff]  }
  0x8a   :  { %v6507_v53 = vld [vmem:[#allocation11 + $0xa8] ss:$12 sps:$4 sm:$0xff]   ;;  %v6511_v56 = vld [vmem:[#allocation11 + $0x90] ss:$12 sps:$4 sm:$0xff]   ;;  %v6512_v57 = vld [vmem:[#allocation11 + $0x98] ss:$12 sps:$4 sm:$0xff]  }
  0x8b   :  { %542 = vmatpush1.bf16.msra.mxu0 %v6458_v15  ;;  %5476 = vmatpush3.bf16.msra.mxu1 %v6463_v17  ;;  %v6509_v55 = vld [vmem:[#allocation11 + $0x94] ss:$12 sps:$4 sm:$0xff]   ;;  %v6513_v58 = vld [vmem:[#allocation11 + $0x7c] ss:$12 sps:$4 sm:$0xff]   ;;  %v6515_v59 = vld [vmem:[#allocation11 + $0x78] ss:$12 sps:$4 sm:$0xff]  }
  0x8c   :  { %543 = vmatprep.subr.bf16.mxu0 %v6460_v16  ;;  %5477 = vmatprep.subr.bf16.mxu1 %v9837_v0  ;;  %v6516_v60 = vld [vmem:[#allocation11 + $0x80] ss:$12 sps:$4 sm:$0xff]   ;;  %v6517_v61 = vld [vmem:[#allocation11 + $0x64] ss:$12 sps:$4 sm:$0xff]   ;;  %v6520_v63 = vld [vmem:[#allocation11 + $0x68] ss:$12 sps:$4 sm:$0xff]  }
  0x8d   :  { %v6519_v62 = vld [vmem:[#allocation11 + $0x60] ss:$12 sps:$4 sm:$0xff]   ;;  %v6523_v3 = vld [vmem:[#allocation11 + $0x48] ss:$12 sps:$4 sm:$0xff]   ;;  %v6524_v4 = vld [vmem:[#allocation11 + $0x50] ss:$12 sps:$4 sm:$0xff]  }
  0x8e   :  { %v6521_v2 = vld [vmem:[#allocation11 + $0x4c] ss:$12 sps:$4 sm:$0xff]   ;;  %v6525_v5 = vld [vmem:[#allocation11 + $0x34] ss:$12 sps:$4 sm:$0xff]   ;;  %v6527_v6 = vld [vmem:[#allocation11 + $0x30] ss:$12 sps:$4 sm:$0xff]  }
  0x8f   :  { %544 = vmatpush1.bf16.msra.mxu0 %v6462_v18  ;;  %5478 = vmatpush3.bf16.msra.mxu1 %v6467_v20  ;;  %v6528_v7 = vld [vmem:[#allocation11 + $0x38] ss:$12 sps:$4 sm:$0xff]   ;;  %v6529_v8 = vld [vmem:[#allocation11 + $0x1c] ss:$12 sps:$4 sm:$0xff]   ;;  %v7592_v10 = vld [vmem:[#allocation11 + $0x20] ss:$12 sps:$4 sm:$0xff]  }
  0x90   :  { %545 = vmatprep.subr.bf16.mxu0 %v6464_v19  ;;  %5479 = vmatprep.subr.bf16.mxu1 %v9837_v0  ;;  %v6531_v9 = vld [vmem:[#allocation11 + $0x18] ss:$12 sps:$4 sm:$0xff]   ;;  %v7597_v12 = vld [vmem:[#allocation11] ss:$12 sps:$4 sm:$0xff]   ;;  %v7601_v13 = vld [vmem:[#allocation11 + $0x8] ss:$12 sps:$4 sm:$0xff]  }
  0x91   :  { %v7594_v11 = vld [vmem:[#allocation11 + $0x4] ss:$12 sps:$4 sm:$0xff]   ;;  %v7603_v14 = vld [vmem:[#allocation13 + $0xac] ss:$12 sps:$4 sm:$0xff]   ;;  %s10062_s27 = sld [smem:[#allocation136_spill]]  ;;  %vm1549_vm1 = vcmask 517120  }
  0x92   :  { %s10078_s22 = sld [smem:[#allocation138_spill]]  ;;  %vm1537_vm2 = vcmask 58368   ;;  %vm1581_vm3 = vcmask 523264   ;;  %vm1634_vm4 = vcmask 1043456   ;;  %vm1630_vm5 = vcmask 64512  }
  0x93   :  { %546 = vmatpush1.bf16.msra.mxu0 %v6466_v21  ;;  %5480 = vmatpush3.bf16.msra.mxu1 %v6471_v23  ;;  %v7319_v23 = vmov 1983009808  }
  0x94   :  { %547 = vmatprep.subr.bf16.mxu0 %v6468_v22  ;;  %5481 = vmatprep.subr.bf16.mxu1 %v9837_v0 }
  0x97   :  { %548 = vmatpush1.bf16.msra.mxu0 %v6470_v24  ;;  %5482 = vmatpush3.bf16.msra.mxu1 %v6474_v26  ;;  %v619_v24 = vunpack.c.l.s4 %v7319_v23  ;;  %v7667_v23 = vld [vmem:[#allocation13 + $0x80] ss:$12 sps:$4 sm:$0xff]  }
  0x98   :  { %780 = vmatprep.subr.bf16.mxu0 %v6472_v25  ;;  %5487 = vmatprep.subr.bf16.mxu1 %v9837_v0  ;;  %v621_v25 = vlaneseq }
  0x99   :  { %v620_v26 = vunpack.c.0.s8 %v619_v24  ;;  %v7670_v24 = vld [vmem:[#allocation13 + $0x64] ss:$12 sps:$4 sm:$0xff]  }
  0x9a   :  { %566 = vmatmul.mubr.bf16.vlgmr.msra.gmra.mxu0 %v9833_v1  ;;  %5484 = vmatmul.mubr.bf16.vlgmr.msra.gmra.mxu1 %v9833_v1 }
  0x9b   :  { %781 = vmatpush1.bf16.msra.mxu0 %v6475_v27  ;;  %812 = vmatprep.mubr.bf16.mxu0 %v9833_v1  ;;  %v622_v27 = vshrl.u32 %v621_v25, 7  ;;  %v7674_v25 = vld [vmem:[#allocation13 + $0x60] ss:$12 sps:$4 sm:$0xff]  }
  0x9c   :  { %782 = vmatprep.subr.bf16.mxu0 %v6476_v28  ;;  %5488 = vmatpush3.bf16.msra.mxu1 %v6497_v29 }
  0x9d   :  { %5503 = vmatprep.mubr.msk.bf16.mxu1 %vm7318_vm0, %v9837_v0  ;;  %5489 = vmatprep.subr.bf16.mxu1 %v9837_v0  ;;  %v7610_v29 = vsub.s32 %v620_v26, %v622_v27  ;;  %v7677_v26 = vld [vmem:[#allocation13 + $0x68] ss:$12 sps:$4 sm:$0xff]  }
  0x9f   :  { %783 = vmatpush1.bf16.msra.mxu0 %v6478_v30 }
  0xa0   :  { %784 = vmatprep.subr.bf16.mxu0 %v6479_v31  ;;  %5490 = vmatpush3.bf16.msra.mxu1 %v6498_v33  ;;  %v302_v33 = vld [vmem:[%s9817_s10] sm:$0x7] }
  0xa1   :  { %5491 = vmatprep.subr.bf16.mxu1 %v9837_v0 }
  0xa3   :  { %785 = vmatpush1.bf16.msra.mxu0 %v6481_v32  ;;  %v7614_v32 = vsub.s32 0, %v622_v27 }
  0xa4   :  { %786 = vmatprep.subr.bf16.mxu0 %v6482_v34  ;;  %5492 = vmatpush3.bf16.msra.mxu1 %v6499_v35 }
  0xa5   :  { %5493 = vmatprep.subr.bf16.mxu1 %v9837_v0  ;;  %v7620_v35 = vrot.slane %v302_v33, %v7614_v32 }
  0xa7   :  { %787 = vmatpush1.bf16.msra.mxu0 %v6484_v36  ;;  %v7622_v36 = vsub.s32 1, %v622_v27 }
  0xa8   :  { %788 = vmatprep.subr.bf16.mxu0 %v6485_v37  ;;  %5494 = vmatpush3.bf16.msra.mxu1 %v6500_v38  ;;  %v404_v37 = vld [vmem:[#allocation2] sm:$0x3f] }
  0xa9   :  { %5495 = vmatprep.subr.bf16.mxu1 %v9837_v0 }
  0xab   :  { %789 = vmatpush1.bf16.msra.mxu0 %v6487_v39 }
  0xac   :  { %790 = vmatprep.subr.bf16.mxu0 %v6488_v40  ;;  %5496 = vmatpush3.bf16.msra.mxu1 %v6501_v41  ;;  %v7626_v41 = vrot.slane %v302_v33, %v7622_v36 }
  0xad   :  { %5497 = vmatprep.subr.bf16.mxu1 %v9837_v0 }
  0xaf   :  { %791 = vmatpush1.bf16.msra.mxu0 %v6490_v42 }
  0xb0   :  { %792 = vmatprep.subr.bf16.mxu0 %v6491_v43  ;;  %5498 = vmatpush3.bf16.msra.mxu1 %v6502_v44 }
  0xb1   :  { %5499 = vmatprep.subr.bf16.mxu1 %v9837_v0 }
  0xb3   :  { %793 = vmatpush1.bf16.msra.mxu0 %v6493_v45 }
  0xb4   :  { %794 = vmatprep.subr.bf16.mxu0 %v6494_v46  ;;  %5500 = vmatpush3.bf16.msra.mxu1 %v6503_v47 }
  0xb5   :  { %5501 = vmatprep.subr.bf16.mxu1 %v9837_v0 }
  0xb7   :  { %795 = vmatpush1.bf16.msra.mxu0 %v6496_v48 }
  0xb8   :  { %5502 = vmatpush3.bf16.msra.mxu1 %v6504_v50  ;;  %1032 = vmatprep.subr.bf16.mxu0 %v6505_v52 }
  0xb9   :  { %5507 = vmatprep.subr.bf16.mxu1 %v9837_v0 }
  0xba   :  { %813 = vmatmul.mubr.bf16.vlgmr.msra.gmra.mxu0 %v635_v51 }
  0xbb   :  { %1064 = vmatprep.mubr.bf16.mxu0 %v9833_v1  ;;  %5504 = vmatmul.mubr.bf16.vlgmr.msra.gmra.mxu1 %v635_v51 }
  0xbc   :  { %5523 = vmatprep.mubr.msk.bf16.mxu1 %vm7318_vm0, %v9837_v0  ;;  %1033 = vmatpush1.bf16.msra.mxu0 %v6507_v53 }
  0xbd   :  { %5508 = vmatpush3.bf16.msra.mxu1 %v6508_v54  ;;  %1034 = vmatprep.subr.bf16.mxu0 %v6509_v55 }
  0xbe   :  { %5509 = vmatprep.subr.bf16.mxu1 %v9837_v0 }
  0xc0   :  { %1035 = vmatpush1.bf16.msra.mxu0 %v6511_v56 }
  0xc1   :  { %5510 = vmatpush3.bf16.msra.mxu1 %v6512_v57  ;;  %1036 = vmatprep.subr.bf16.mxu0 %v6513_v58  ;;  %v7629_v58 = vsub.s32 2, %v622_v27  ;;  %v7680_v27 = vld [vmem:[#allocation13 + $0x4c] ss:$12 sps:$4 sm:$0xff]  }
  0xc2   :  { %5511 = vmatprep.subr.bf16.mxu1 %v9837_v0 }
  0xc4   :  { %1037 = vmatpush1.bf16.msra.mxu0 %v6515_v59  ;;  %v7632_v59 = vrot.slane %v302_v33, %v7629_v58  ;;  %v7694_v33 = vld [vmem:[#allocation13 + $0x30] ss:$12 sps:$4 sm:$0xff]  }
  0xc5   :  { %5512 = vmatpush3.bf16.msra.mxu1 %v6516_v60  ;;  %1038 = vmatprep.subr.bf16.mxu0 %v6517_v61 }
  0xc6   :  { %5513 = vmatprep.subr.bf16.mxu1 %v9837_v0 }
  0xc8   :  { %1039 = vmatpush1.bf16.msra.mxu0 %v6519_v62 }
  0xc9   :  { %5514 = vmatpush3.bf16.msra.mxu1 %v6520_v63  ;;  %1040 = vmatprep.subr.bf16.mxu0 %v6521_v2 }
  0xca   :  { %5515 = vmatprep.subr.bf16.mxu1 %v9837_v0 }
  0xcc   :  { %1041 = vmatpush1.bf16.msra.mxu0 %v6523_v3 }
  0xcd   :  { %5516 = vmatpush3.bf16.msra.mxu1 %v6524_v4  ;;  %1042 = vmatprep.subr.bf16.mxu0 %v6525_v5 }
  0xce   :  { %5517 = vmatprep.subr.bf16.mxu1 %v9837_v0 }
  0xd0   :  { %1043 = vmatpush1.bf16.msra.mxu0 %v6527_v6 }
  0xd1   :  { %5518 = vmatpush3.bf16.msra.mxu1 %v6528_v7  ;;  %1044 = vmatprep.subr.bf16.mxu0 %v6529_v8 }
  0xd2   :  { %5519 = vmatprep.subr.bf16.mxu1 %v9837_v0 }
  0xd4   :  { %1045 = vmatpush1.bf16.msra.mxu0 %v6531_v9 }
  0xd5   :  { %5520 = vmatpush3.bf16.msra.mxu1 %v7592_v10  ;;  %1046 = vmatprep.subr.bf16.mxu0 %v7594_v11 }
  0xd6   :  { %5521 = vmatprep.subr.bf16.mxu1 %v9837_v0 }
  0xd8   :  { %1047 = vmatpush1.bf16.msra.mxu0 %v7597_v12 }
  0xd9   :  { %5522 = vmatpush3.bf16.msra.mxu1 %v7601_v13  ;;  %1258 = vmatprep.subr.bf16.mxu0 %v7603_v14 }
  0xda   :  { %5527 = vmatprep.subr.bf16.mxu1 %v9837_v0 }
 0x15a   :  { %v567_v15 = vpop.f32.mrf.mxu0  ;;  %v608_v17 = vpop.f32.mrf.mxu1 }
 0x15b   :  { %v631_v31 = vrot.slane %v608_v17, %v7610_v29  ;;  %v7640_v17 = vld [vmem:[#allocation13 + $0xb0] ss:$12 sps:$4 sm:$0xff]  }
 0x15c   :  { %v569_v16 = vpop.f32.mrf.mxu0  ;;  %v5485_v19 = vpop.f32.mrf.mxu1 }
 0x15d   :  { %v617_v28 = vcombine.low %v567_v15, %v569_v16  ;;  %v7638_v16 = vld [vmem:[#allocation13 + $0xa8] ss:$12 sps:$4 sm:$0xff]  }
 0x15e   :  { %v571_v18 = vpop.f32.mrf.mxu0  ;;  %v611_v21 = vpop.f32.mrf.mxu1  ;;  %v7646_v19 = vld [vmem:[#allocation13 + $0x94] ss:$12 sps:$4 sm:$0xff]  }
 0x15f   :  { %v624_v30 = vrot.slane %v617_v28, %v7610_v29  ;;  %v7657_v21 = vld [vmem:[#allocation13 + $0x7c] ss:$12 sps:$4 sm:$0xff]  }
 0x160   :  { %v572_v20 = vpop.f32.mrf.mxu0  ;;  %v5486_v22 = vpop.f32.mrf.mxu1  ;;  %v7684_v28 = vld [vmem:[#allocation13 + $0x48] ss:$12 sps:$4 sm:$0xff]  }
 0x161   :  { %v632_v34 = vcombine.low %v624_v30, %v631_v31  ;;  %v7651_v20 = vld [vmem:[#allocation13 + $0x90] ss:$12 sps:$4 sm:$0xff]   ;;  %v7664_v22 = vld [vmem:[#allocation13 + $0x78] ss:$12 sps:$4 sm:$0xff]   ;;  %v7690_v31 = vld [vmem:[#allocation13 + $0x34] ss:$12 sps:$4 sm:$0xff]  }
 0x162   :  { %v7687_v30 = vld [vmem:[#allocation13 + $0x50] ss:$12 sps:$4 sm:$0xff]  }
 0x163   :  { %v634_v39 = vadd.f32 %v632_v34, %v404_v37  ;;  %v7697_v34 = vld [vmem:[#allocation13 + $0x38] ss:$12 sps:$4 sm:$0xff]   ;;  %v7700_v37 = vld [vmem:[#allocation13 + $0x1c] ss:$12 sps:$4 sm:$0xff]  }
 0x165   :  { %v869_v52 = vrot.slane %v634_v39, 2  ;;  %v879_v3 = vrot.slane %v634_v39, 4 }
 0x17a   :  { %v814_v38 = vpop.f32.mrf.mxu0 }
 0x17b   :  { %v815_v40 = vadd.f32 %v814_v38, %v7620_v35  ;;  %v855_v43 = vpop.f32.mrf.mxu1  ;;  %v7704_v38 = vld [vmem:[#allocation13 + $0x18] ss:$12 sps:$4 sm:$0xff]  }
 0x17c   :  { %v816_v42 = vpop.f32.mrf.mxu0  ;;  %v856_v62 = vadd.f32 %v855_v43, %v7632_v59  ;;  %v7719_v43 = vld [vmem:[%s9814_s7 + $0x2] sm:$0x3] }
 0x17d   :  { %v861_v44 = vadd.f32 %v815_v40, %v634_v39  ;;  %v5505_v46 = vpop.f32.mrf.mxu1  ;;  %v817_v48 = vadd.f32 %v816_v42, %v7626_v41  ;;  %v7707_v39 = vld [vmem:[#allocation13 + $0x20] ss:$12 sps:$4 sm:$0xff]   ;;  %v7710_v40 = vld [vmem:[#allocation13 + $0x4] ss:$12 sps:$4 sm:$0xff]  }
 0x17e   :  { %v818_v45 = vpop.f32.mrf.mxu0  ;;  %v7714_v42 = vld [vmem:[#allocation13] ss:$12 sps:$4 sm:$0xff]   ;;  %v7739_v46 = vld [vmem:[%s10061_s25 + $0x38] sm:$0xff]  }
 0x17f   :  { %v4924_v47 = vmul.f32 -1.442695, %v861_v44  ;;  %v858_v51 = vpop.f32.mrf.mxu1  ;;  %v871_v54 = vadd.f32 %v869_v52, %v817_v48  ;;  %v7722_v44 = vld [vmem:[#allocation13 + $0x8] ss:$12 sps:$4 sm:$0xff]   ;;  %v1113_v45 = vpack.c.bf16 %v7719_v43, %v7719_v43 }
 0x180   :  { %v819_v50 = vpop.f32.mrf.mxu0  ;;  %v7753_v48 = vld [vmem:[%s10061_s25 + $0x30] sm:$0xff]   ;;  %v7767_v51 = vld [vmem:[%s10061_s25 + $0x28] sm:$0xff]  }
 0x181   :  { %6609 = vpow2.f32 %v4924_v47  ;;  %v5506_v53 = vpop.f32.mrf.mxu1  ;;  %v4925_v55 = vmul.f32 -1.442695, %v871_v54  ;;  %v7744_v47 = vld [vmem:[%s10062_s27 + $0x38] sm:$0xff]   ;;  %v7758_v50 = vld [vmem:[%s10062_s27 + $0x30] sm:$0xff]   ;;  %10063 = vst [vmem:[#allocation28_spill] sm:$0xff] %v7767_v51  ;;  %v7772_v52 = vld [vmem:[%s10062_s27 + $0x28] sm:$0xff]  }
 0x182   :  { %10064 = vst [vmem:[#allocation29_spill] sm:$0xff] %v7772_v52  ;;  %v7781_v53 = vld [vmem:[%s10061_s25 + $0x20] sm:$0xff]  }
 0x183   :  { %6611 = vpow2.f32 %v4925_v55  ;;  %10065 = vst [vmem:[#allocation30_spill] sm:$0xff] %v7781_v53  ;;  %v7786_v54 = vld [vmem:[%s10062_s27 + $0x20] sm:$0xff]   ;;  %v7793_v55 = vld [vmem:[%s10061_s25 + $0x18] sm:$0xff]  }
 0x184   :  { %10066 = vst [vmem:[#allocation31_spill] sm:$0xff] %v7786_v54  ;;  %10067 = vst [vmem:[#allocation32_spill] sm:$0xff] %v7793_v55 }
 0x18e   :  { %v6610_v56 = vpop.eup %6609 }
 0x18f   :  { %v865_v57 = vadd.f32 1.0, %v6610_v56  ;;  %v7798_v56 = vld [vmem:[%s10062_s27 + $0x18] sm:$0xff]  }
 0x190   :  { %v6612_v60 = vpop.eup %6611  ;;  %10068 = vst [vmem:[#allocation33_spill] sm:$0xff] %v7798_v56 }
 0x191   :  { %6613 = vrcp.f32 %v865_v57  ;;  %v875_v61 = vadd.f32 1.0, %v6612_v60  ;;  %v7807_v57 = vld [vmem:[%s10061_s25 + $0x10] sm:$0xff]  }
 0x192   :  { %10069 = vst [vmem:[#allocation34_spill] sm:$0xff] %v7807_v57  ;;  %v7812_v60 = vld [vmem:[%s10062_s27 + $0x10] sm:$0xff]  }
 0x193   :  { %6615 = vrcp.f32 %v875_v61  ;;  %10070 = vst [vmem:[#allocation35_spill] sm:$0xff] %v7812_v60  ;;  %v7821_v61 = vld [vmem:[%s10061_s25 + $0x8] sm:$0xff]  }
 0x194   :  { %10071 = vst [vmem:[#allocation36_spill] sm:$0xff] %v7821_v61 }
 0x19e   :  { %v6614_v63 = vpop.eup %6613 }
 0x19f   :  { %v878_v2 = vmul.f32 %v6614_v63, %v856_v62  ;;  %v7826_v62 = vld [vmem:[%s10062_s27 + $0x8] sm:$0xff]   ;;  %v7835_v63 = vld [vmem:[%s10061_s25] sm:$0xff]  }
 0x1a0   :  { %v6616_v5 = vpop.eup %6615  ;;  %10072 = vst [vmem:[#allocation37_spill] sm:$0xff] %v7826_v62  ;;  %10073 = vst [vmem:[#allocation38_spill] sm:$0xff] %v7835_v63 }
 0x1a1   :  { %v881_v4 = vadd.f32 %v879_v3, %v878_v2  ;;  %v883_v6 = vsub.f32 1.0, %v6616_v5  ;;  %v885_v9 = vmul.f32 %v6616_v5, %v7577_v49  ;;  %v7654_v49 = vld [vmem:[#allocation13 + $0x98] ss:$12 sps:$4 sm:$0xff]  }
 0x1a2   :  { %v7840_v2 = vld [vmem:[%s10062_s27] sm:$0xff]  }
 0x1a3   :  { %6617 = vtanh.f32 %v881_v4  ;;  %10074 = vst [vmem:[#allocation39_spill] sm:$0xff] %v7840_v2 }
 0x1b0   :  { %v6618_v7 = vpop.eup %6617 }
 0x1b1   :  { %v884_v8 = vmul.f32 %v6618_v7, %v883_v6 }
 0x1b3   :  { %v7636_v15 = vadd.f32 %v885_v9, %v884_v8 }
 0x1b5   :  { %v7644_v18 = vpack.c.bf16 %v7636_v15, %v7636_v15 }
 0x1b7   :  { %1065 = vmatmul.mubr.bf16.vlgmr.msra.gmra.mxu0 %v7644_v18  ;;  %5524 = vmatmul.mubr.bf16.vlgmr.msra.gmra.mxu1 %v7644_v18 }
 0x1b8   :  { %1259 = vmatpush1.bf16.msra.mxu0 %v7638_v16  ;;  %5528 = vmatpush3.bf16.msra.mxu1 %v7640_v17 }
 0x1b9   :  { %1260 = vmatprep.subr.bf16.mxu0 %v7646_v19  ;;  %1290 = vmatprep.mubr.bf16.mxu0 %v9833_v1  ;;  %v367_v1 = vld [vmem:[%s9820_s13] sm:$0x7] }
 0x1ba   :  { %5529 = vmatprep.subr.bf16.mxu1 %v9837_v0  ;;  %5543 = vmatprep.mubr.msk.bf16.mxu1 %vm7318_vm0, %v9837_v0 }
 0x1bc   :  { %1261 = vmatpush1.bf16.msra.mxu0 %v7651_v20  ;;  %5530 = vmatpush3.bf16.msra.mxu1 %v7654_v49 }
 0x1bd   :  { %1262 = vmatprep.subr.bf16.mxu0 %v7657_v21  ;;  %5531 = vmatprep.subr.bf16.mxu1 %v9837_v0 }
 0x1c0   :  { %1263 = vmatpush1.bf16.msra.mxu0 %v7664_v22  ;;  %5532 = vmatpush3.bf16.msra.mxu1 %v7667_v23 }
 0x1c1   :  { %1264 = vmatprep.subr.bf16.mxu0 %v7670_v24  ;;  %5533 = vmatprep.subr.bf16.mxu1 %v9837_v0 }
 0x1c4   :  { %1265 = vmatpush1.bf16.msra.mxu0 %v7674_v25  ;;  %5534 = vmatpush3.bf16.msra.mxu1 %v7677_v26 }
 0x1c5   :  { %1266 = vmatprep.subr.bf16.mxu0 %v7680_v27  ;;  %5535 = vmatprep.subr.bf16.mxu1 %v9837_v0 }
 0x1c8   :  { %1267 = vmatpush1.bf16.msra.mxu0 %v7684_v28  ;;  %5536 = vmatpush3.bf16.msra.mxu1 %v7687_v30 }
 0x1c9   :  { %1268 = vmatprep.subr.bf16.mxu0 %v7690_v31  ;;  %5537 = vmatprep.subr.bf16.mxu1 %v9837_v0 }
 0x1cc   :  { %1269 = vmatpush1.bf16.msra.mxu0 %v7694_v33  ;;  %5538 = vmatpush3.bf16.msra.mxu1 %v7697_v34 }
 0x1cd   :  { %1270 = vmatprep.subr.bf16.mxu0 %v7700_v37  ;;  %5539 = vmatprep.subr.bf16.mxu1 %v9837_v0 }
 0x1d0   :  { %1271 = vmatpush1.bf16.msra.mxu0 %v7704_v38  ;;  %5540 = vmatpush3.bf16.msra.mxu1 %v7707_v39 }
 0x1d1   :  { %1272 = vmatprep.subr.bf16.mxu0 %v7710_v40  ;;  %5541 = vmatprep.subr.bf16.mxu1 %v9837_v0 }
 0x1d4   :  { %1273 = vmatpush1.bf16.msra.mxu0 %v7714_v42  ;;  %5542 = vmatpush3.bf16.msra.mxu1 %v7722_v44 }
 0x1d5   :  { %5547 = vmatprep.subr.bf16.mxu0 %v9837_v0  ;;  %5567 = vmatprep.subr.bf16.mxu1 %v9837_v0 }
 0x1d7   :  { %1291 = vmatmul.mubr.bf16.vlgmr.msra.gmra.mxu0 %v1113_v45  ;;  %5544 = vmatmul.mubr.bf16.vlgmr.msra.gmra.mxu1 %v1113_v45 }
 0x1d8   :  { %5563 = vmatprep.mubr.msk.bf16.mxu0 %vm7318_vm0, %v9837_v0  ;;  %5583 = vmatprep.mubr.msk.bf16.mxu1 %vm7318_vm0, %v9837_v0 }
 0x1d9   :  { %5548 = vmatpush3.bf16.msra.mxu0 %v7739_v46  ;;  %5568 = vmatpush3.bf16.msra.mxu1 %v7744_v47 }
 0x1da   :  { %5549 = vmatprep.subr.bf16.mxu0 %v9837_v0  ;;  %5569 = vmatprep.subr.bf16.mxu1 %v9837_v0 }
 0x1dd   :  { %5550 = vmatpush3.bf16.msra.mxu0 %v7753_v48  ;;  %5570 = vmatpush3.bf16.msra.mxu1 %v7758_v50 }
 0x1de   :  { %5551 = vmatprep.subr.bf16.mxu0 %v9837_v0  ;;  %5571 = vmatprep.subr.bf16.mxu1 %v9837_v0 }
 0x1e1   :  { %5552 = vmatpush3.bf16.msra.mxu0 %v7767_v51  ;;  %5572 = vmatpush3.bf16.msra.mxu1 %v7772_v52 }
 0x1e2   :  { %5553 = vmatprep.subr.bf16.mxu0 %v9837_v0  ;;  %5573 = vmatprep.subr.bf16.mxu1 %v9837_v0 }
 0x1e5   :  { %5554 = vmatpush3.bf16.msra.mxu0 %v7781_v53  ;;  %5574 = vmatpush3.bf16.msra.mxu1 %v7786_v54 }
 0x1e6   :  { %5555 = vmatprep.subr.bf16.mxu0 %v9837_v0  ;;  %5575 = vmatprep.subr.bf16.mxu1 %v9837_v0 }
 0x1e9   :  { %5556 = vmatpush3.bf16.msra.mxu0 %v7793_v55  ;;  %5576 = vmatpush3.bf16.msra.mxu1 %v7798_v56 }
 0x1ea   :  { %5557 = vmatprep.subr.bf16.mxu0 %v9837_v0  ;;  %5577 = vmatprep.subr.bf16.mxu1 %v9837_v0 }
 0x1ed   :  { %5558 = vmatpush3.bf16.msra.mxu0 %v7807_v57  ;;  %5578 = vmatpush3.bf16.msra.mxu1 %v7812_v60  ;;  %v7866_v60 = vrot.slane %v367_v1, %v7622_v36 }
 0x1ee   :  { %5559 = vmatprep.subr.bf16.mxu0 %v9837_v0  ;;  %5579 = vmatprep.subr.bf16.mxu1 %v9837_v0 }
 0x1f1   :  { %5560 = vmatpush3.bf16.msra.mxu0 %v7821_v61  ;;  %5580 = vmatpush3.bf16.msra.mxu1 %v7826_v62 }
 0x1f2   :  { %5561 = vmatprep.subr.bf16.mxu0 %v9837_v0  ;;  %5581 = vmatprep.subr.bf16.mxu1 %v9837_v0 }
 0x1f5   :  { %5562 = vmatpush3.bf16.msra.mxu0 %v7835_v63  ;;  %5582 = vmatpush3.bf16.msra.mxu1 %v7840_v2  ;;  %v368_v2 = vld [vmem:[%s9821_s14] sm:$0x7]  ;;  %v7855_v63 = vrot.slane %v367_v1, %v7614_v32 }
 0x1f6   :  { %5587 = vmatprep.subr.bf16.mxu0 %v9837_v0  ;;  %5599 = vmatprep.subr.bf16.mxu1 %v9837_v0  ;;  %v7858_v0 = vrot.slane %v368_v2, %v7614_v32 }
 0x1f7   :  { %10075 = vst [vmem:[#allocation40_spill] sm:$0xff] %v7855_v63 }
 0x1f8   :  { %10076 = vst [vmem:[#allocation41_spill] sm:$0xff] %v7858_v0 }
 0x277   :  { %v1066_v3 = vpop.f32.mrf.mxu0  ;;  %v1107_v4 = vpop.f32.mrf.mxu1 }
 0x279   :  { %v1068_v5 = vpop.f32.mrf.mxu0  ;;  %v5525_v6 = vpop.f32.mrf.mxu1 }
 0x27b   :  { %v1070_v7 = vpop.f32.mrf.mxu0  ;;  %v1110_v8 = vpop.f32.mrf.mxu1 }
 0x27c   :  { %v1067_v7 = vadd.f32 %v1066_v3, %v7855_v63  ;;  %v1069_v3 = vadd.f32 %v1068_v5, %v7866_v60 }
 0x27d   :  { %v1071_v9 = vpop.f32.mrf.mxu0  ;;  %v5526_v45 = vpop.f32.mrf.mxu1 }
 0x27e   :  { %v7863_v9 = vrot.slane %v368_v2, %v7622_v36  ;;  %v7871_v36 = vrot.slane %v368_v2, %v7629_v58 }
 0x297   :  { %v1292_v62 = vpop.f32.mrf.mxu0  ;;  %v1333_v6 = vpop.f32.mrf.mxu1 }
 0x298   :  { %v1293_v8 = vadd.f32 %v1292_v62, %v7858_v0 }
 0x299   :  { %v1294_v45 = vpop.f32.mrf.mxu0  ;;  %v5545_v61 = vpop.f32.mrf.mxu1 }
 0x29a   :  { %v1339_v57 = vadd.f32 %v1293_v8, %v1067_v7  ;;  %v1295_v32 = vadd.f32 %v1294_v45, %v7863_v9 }
 0x29b   :  { %v1296_v56 = vpop.f32.mrf.mxu0  ;;  %v1336_v55 = vpop.f32.mrf.mxu1 }
 0x29c   :  { %v4974_v54 = vmul.f32 -1.442695, %v1339_v57  ;;  %v1346_v62 = vadd.f32 %v1295_v32, %v1069_v3  ;;  %v7874_v55 = vrot.slane %v367_v1, %v7629_v58  ;;  %v10077_v58 = vmov 0.0  }
 0x29d   :  { %v1297_v53 = vpop.f32.mrf.mxu0  ;;  %v5546_v52 = vpop.f32.mrf.mxu1 }
 0x29e   :  { %6619 = vpow2.f32 %v4974_v54  ;;  %v4975_v0 = vmul.f32 -1.442695, %v1346_v62  ;;  %v1334_v53 = vadd.f32 %v1333_v6, %v7871_v36  ;;  %v1108_v57 = vadd.f32 %v1107_v4, %v7874_v55  ;;  %v7896_v6 = vld [vmem:[#allocation7] sm:$0x3] }
 0x29f   :  { %10080 = vst [vmem:[#allocation43_spill] sm:$0xff] %v7896_v6 }
 0x2a0   :  { %6621 = vpow2.f32 %v4975_v0 }
 0x2ab   :  { %v6620_v63 = vpop.eup %6619 }
 0x2ac   :  { %v1343_v51 = vadd.f32 1.0, %v6620_v63 }
 0x2ad   :  { %v6622_v61 = vpop.eup %6621 }
 0x2ae   :  { %6623 = vrcp.f32 %v1343_v51  ;;  %v1350_v56 = vadd.f32 1.0, %v6622_v61 }
 0x2b0   :  { %6625 = vrcp.f32 %v1350_v56 }
 0x2bb   :  { %v6624_v52 = vpop.eup %6623 }
 0x2bc   :  { %v1353_v54 = vmul.f32 %v6624_v52, %v1334_v53 }
 0x2bd   :  { %v6626_v0 = vpop.eup %6625 }
 0x2be   :  { %v1354_v5 = vadd.f32 %v1353_v54, %v1108_v57  ;;  %v1356_v63 = vsub.f32 1.0, %v6626_v0  ;;  %v1358_v2 = vmul.f32 %v6626_v0, %v7719_v43  ;;  %v7894_v43 = vld [vmem:[%s10078_s22] sm:$0x3]  ;;  %v7905_v0 = vld [vmem:[%s9824_s17 + $0x18] sm:$0xff]  }
 0x2bf   :  { %10079 = vst [vmem:[#allocation42_spill] sm:$0xff] %v7894_v43 }
 0x2c0   :  { %6627 = vtanh.f32 %v1354_v5 }
 0x2cd   :  { %v6628_v51 = vpop.eup %6627 }
 0x2ce   :  { %v1357_v7 = vmul.f32 %v6628_v51, %v1356_v63  ;;  %v7912_v63 = vld [vmem:[%s9824_s17 + $0x10] sm:$0xff]   ;;  %v7918_v51 = vld [vmem:[%s9824_s17 + $0x8] sm:$0xff]  }
 0x2cf   :  { %10081 = vst [vmem:[#allocation44_spill] sm:$0xff] %v7918_v51 }
 0x2d0   :  { %v7879_v8 = vadd.f32 %v1358_v2, %v1357_v7  ;;  %v7925_v7 = vld [vmem:[%s9824_s17] sm:$0xff]  }
 0x2d1   :  { %10082 = vst [vmem:[#allocation45_spill] sm:$0xff] %v7925_v7 }
 0x2d2   :  { %v7883_v1 = vpack.c.bf16 %v7879_v8, %v7879_v8 }
 0x2d4   :  { %5564 = vmatmul.mubr.bf16.vlgmr.msra.gmra.mxu0 %v7883_v1  ;;  %5584 = vmatmul.mubr.bf16.vlgmr.msra.gmra.mxu1 %v7883_v1 }
 0x2d5   :  { %5595 = vmatprep.mubr.msk.bf16.mxu0 %vm7318_vm0, %v10077_v58  ;;  %5601 = vmatprep.mubr.msk.bf16.mxu1 %vm7318_vm0, %v10077_v58 }
 0x2d6   :  { %5588 = vmatpush3.bf16.msra.mxu0 %v7905_v0 }
 0x2d7   :  { %5589 = vmatprep.subr.bf16.mxu0 %v10077_v58 }
 0x2da   :  { %5590 = vmatpush3.bf16.msra.mxu0 %v7912_v63 }
 0x2db   :  { %5591 = vmatprep.subr.bf16.mxu0 %v10077_v58 }
 0x2de   :  { %5592 = vmatpush3.bf16.msra.mxu0 %v7918_v51 }
 0x2df   :  { %5593 = vmatprep.subr.bf16.mxu0 %v10077_v58 }
 0x2e2   :  { %5594 = vmatpush3.bf16.msra.mxu0 %v7925_v7 }
 0x2e3   :  { %5617 = vmatprep.subr.bf16.mxu0 %v10077_v58 }
 0x394   :  { %v1443_v4 = vpop.f32.mrf.mxu0  ;;  %v1531_v45 = vpop.f32.mrf.mxu1 }
 0x395   :  { %v1444_v32 = vadd.f32 %v1443_v4, %v7894_v43  ;;  %v1532_v61 = vadd.f32 %v1531_v45, %v7896_v6  ;;  %v8081_v6 = vld [vmem:[#allocation8] sm:$0x3] }
 0x396   :  { %v5565_v3 = vpop.f32.mrf.mxu0  ;;  %v5585_v62 = vpop.f32.mrf.mxu1  ;;  %10109 = vst [vmem:[#allocation71_spill] sm:$0xff] %v8081_v6 }
 0x397   :  { %v1550_v56 = vsel %vm1549_vm1, %v1444_v32, -inf  ;;  %v1538_v5 = vsel %vm1537_vm2, %v1532_v61, -inf }
 0x398   :  { %v1534_v53 = vpop.f32.mrf.mxu1  ;;  %1551 = vmax.xlane.f32.xlu0 %v1550_v56  ;;  %v1446_v52 = vpop.f32.mrf.mxu0 }
 0x399   :  { %v7932_v52 = vld [vmem:[#allocation16 + $0x38] sm:$0xff]  }
 0x39a   :  { %v5566_v57 = vpop.f32.mrf.mxu0  ;;  %v5586_v54 = vpop.f32.mrf.mxu1  ;;  %10083 = vst [vmem:[#allocation46_spill] sm:$0xff] %v7932_v52 }
 0x39c   :  { %1539 = vmax.xlane.f32.xlu0 %v1538_v5  ;;  %v7948_v5 = vld [vmem:[#allocation16 + $0x28] sm:$0xff]  }
 0x39d   :  { %10085 = vst [vmem:[#allocation48_spill] sm:$0xff] %v7948_v5 }
 0x421   :  { %v1552_v2 = vpop.xlane.xlu0 %1551 }
 0x422   :  { %v1553_v4 = vsub.f32 %v1444_v32, %v1552_v2  ;;  %v7940_v32 = vld [vmem:[#allocation16 + $0x30] sm:$0xff]   ;;  %v7952_v2 = vld [vmem:[#allocation16 + $0x20] sm:$0xff]  }
 0x423   :  { %10084 = vst [vmem:[#allocation47_spill] sm:$0xff] %v7940_v32  ;;  %10086 = vst [vmem:[#allocation49_spill] sm:$0xff] %v7952_v2 }
 0x424   :  { %v1554_v45 = vmul.f32 1.442695, %v1553_v4  ;;  %v7956_v4 = vld [vmem:[#allocation16 + $0x18] sm:$0xff]  }
 0x425   :  { %v1540_v3 = vpop.xlane.xlu0 %1539  ;;  %10087 = vst [vmem:[#allocation50_spill] sm:$0xff] %v7956_v4 }
 0x426   :  { %6629 = vpow2.f32 %v1554_v45  ;;  %v1541_v62 = vsub.f32 %v1532_v61, %v1540_v3  ;;  %v7960_v45 = vld [vmem:[#allocation16 + $0x10] sm:$0xff]   ;;  %v7964_v3 = vld [vmem:[#allocation16 + $0x8] sm:$0xff]  }
 0x427   :  { %10088 = vst [vmem:[#allocation51_spill] sm:$0xff] %v7960_v45  ;;  %10089 = vst [vmem:[#allocation52_spill] sm:$0xff] %v7964_v3 }
 0x428   :  { %v1542_v56 = vmul.f32 1.442695, %v1541_v62  ;;  %v7968_v62 = vld [vmem:[#allocation16] sm:$0xff]  }
 0x429   :  { %10090 = vst [vmem:[#allocation53_spill] sm:$0xff] %v7968_v62 }
 0x42a   :  { %6631 = vpow2.f32 %v1542_v56  ;;  %v7975_v56 = vld [vmem:[%s9815_s8 + $0xac] ss:$12 sps:$4 sm:$0xff]  }
 0x42b   :  { %10091 = vst [vmem:[#allocation54_spill] sm:$0xff] %v7975_v56 }
 0x433   :  { %v7930_v53 = vpop.eup %6629 }
 0x434   :  { %v1556_v57 = vpack.c.bf16 %v7930_v53, %v7930_v53 }
 0x436   :  { %5596 = vmatmul.mubr.msk.bf16.vlgmr.msra.gmra.mxu0 %vm1581_vm3, %v1556_v57  ;;  %v7982_v57 = vld [vmem:[%s9815_s8 + $0xa8] ss:$12 sps:$4 sm:$0xff]  }
 0x437   :  { %v7937_v54 = vpop.eup %6631  ;;  %5618 = vmatpush3.bf16.msra.mxu0 %v7932_v52  ;;  %5633 = vmatprep.mubr.msk.bf16.mxu0 %vm7318_vm0, %v10077_v58  ;;  %10092 = vst [vmem:[#allocation55_spill] sm:$0xff] %v7982_v57 }
 0x438   :  { %5619 = vmatprep.subr.bf16.mxu0 %v10077_v58  ;;  %v1544_v61 = vsel %vm1537_vm2, %v7937_v54, 0.0 }
 0x439   :  { %1545 = vadd.xlane.f32.xlu1 %v1544_v61  ;;  %v10093_v61 = vmov 0  }
 0x43b   :  { %5620 = vmatpush3.bf16.msra.mxu0 %v7940_v32 }
 0x43c   :  { %5621 = vmatprep.subr.bf16.mxu0 %v10077_v58 }
 0x43f   :  { %5622 = vmatpush3.bf16.msra.mxu0 %v7948_v5 }
 0x440   :  { %5623 = vmatprep.subr.bf16.mxu0 %v10077_v58 }
 0x443   :  { %5624 = vmatpush3.bf16.msra.mxu0 %v7952_v2 }
 0x444   :  { %5625 = vmatprep.subr.bf16.mxu0 %v10077_v58 }
 0x447   :  { %5626 = vmatpush3.bf16.msra.mxu0 %v7956_v4 }
 0x448   :  { %5627 = vmatprep.subr.bf16.mxu0 %v10077_v58 }
 0x44b   :  { %5628 = vmatpush3.bf16.msra.mxu0 %v7960_v45 }
 0x44c   :  { %5629 = vmatprep.subr.bf16.mxu0 %v10077_v58 }
 0x44f   :  { %5630 = vmatpush3.bf16.msra.mxu0 %v7964_v3  ;;  %v8007_v3 = vld [vmem:[%s9815_s8 + $0x78] ss:$12 sps:$4 sm:$0xff]  }
 0x450   :  { %5631 = vmatprep.subr.bf16.mxu0 %v10077_v58  ;;  %10097 = vst [vmem:[#allocation59_spill] sm:$0xff] %v8007_v3 }
 0x453   :  { %5632 = vmatpush3.bf16.msra.mxu0 %v7968_v62  ;;  %v7989_v62 = vld [vmem:[%s9815_s8 + $0x94] ss:$12 sps:$4 sm:$0xff]  }
 0x454   :  { %1935 = vmatprep.subr.bf16.mxu0 %v7975_v56  ;;  %10094 = vst [vmem:[#allocation56_spill] sm:$0xff] %v7989_v62  ;;  %v7995_v56 = vld [vmem:[%s9815_s8 + $0x90] ss:$12 sps:$4 sm:$0xff]  }
 0x455   :  { %10095 = vst [vmem:[#allocation57_spill] sm:$0xff] %v7995_v56 }
 0x456   :  { %5634 = vmatmul.mubr.bf16.vlgmr.msra.gmra.mxu0 %v7883_v1 }
 0x457   :  { %1936 = vmatpush1.bf16.msra.mxu0 %v7982_v57  ;;  %1967 = vmatprep.mubr.bf16.mxu0 %v10093_v61  ;;  %v8001_v57 = vld [vmem:[%s9815_s8 + $0x7c] ss:$12 sps:$4 sm:$0xff]  }
 0x458   :  { %1937 = vmatprep.subr.bf16.mxu0 %v7989_v62  ;;  %10096 = vst [vmem:[#allocation58_spill] sm:$0xff] %v8001_v57  ;;  %v8013_v62 = vld [vmem:[%s9815_s8 + $0x64] ss:$12 sps:$4 sm:$0xff]  }
 0x459   :  { %10098 = vst [vmem:[#allocation60_spill] sm:$0xff] %v8013_v62 }
 0x45b   :  { %1938 = vmatpush1.bf16.msra.mxu0 %v7995_v56  ;;  %v8019_v56 = vld [vmem:[%s9815_s8 + $0x60] ss:$12 sps:$4 sm:$0xff]  }
 0x45c   :  { %1939 = vmatprep.subr.bf16.mxu0 %v8001_v57  ;;  %10099 = vst [vmem:[#allocation61_spill] sm:$0xff] %v8019_v56  ;;  %v8025_v57 = vld [vmem:[%s9815_s8 + $0x4c] ss:$12 sps:$4 sm:$0xff]  }
 0x45d   :  { %10100 = vst [vmem:[#allocation62_spill] sm:$0xff] %v8025_v57 }
 0x45f   :  { %1940 = vmatpush1.bf16.msra.mxu0 %v8007_v3  ;;  %v8031_v3 = vld [vmem:[%s9815_s8 + $0x48] ss:$12 sps:$4 sm:$0xff]  }
 0x460   :  { %1941 = vmatprep.subr.bf16.mxu0 %v8013_v62  ;;  %10101 = vst [vmem:[#allocation63_spill] sm:$0xff] %v8031_v3  ;;  %v8037_v62 = vld [vmem:[%s9815_s8 + $0x34] ss:$12 sps:$4 sm:$0xff]  }
 0x461   :  { %10102 = vst [vmem:[#allocation64_spill] sm:$0xff] %v8037_v62 }
 0x463   :  { %1942 = vmatpush1.bf16.msra.mxu0 %v8019_v56  ;;  %v8043_v56 = vld [vmem:[%s9815_s8 + $0x30] ss:$12 sps:$4 sm:$0xff]  }
 0x464   :  { %1943 = vmatprep.subr.bf16.mxu0 %v8025_v57  ;;  %10103 = vst [vmem:[#allocation65_spill] sm:$0xff] %v8043_v56  ;;  %v8049_v57 = vld [vmem:[%s9815_s8 + $0x1c] ss:$12 sps:$4 sm:$0xff]  }
 0x465   :  { %10104 = vst [vmem:[#allocation66_spill] sm:$0xff] %v8049_v57 }
 0x467   :  { %1944 = vmatpush1.bf16.msra.mxu0 %v8031_v3  ;;  %v8055_v3 = vld [vmem:[%s9815_s8 + $0x18] ss:$12 sps:$4 sm:$0xff]  }
 0x468   :  { %1945 = vmatprep.subr.bf16.mxu0 %v8037_v62  ;;  %10105 = vst [vmem:[#allocation67_spill] sm:$0xff] %v8055_v3  ;;  %v8061_v62 = vld [vmem:[%s9815_s8 + $0x4] ss:$12 sps:$4 sm:$0xff]  }
 0x469   :  { %10106 = vst [vmem:[#allocation68_spill] sm:$0xff] %v8061_v62 }
 0x46b   :  { %1946 = vmatpush1.bf16.msra.mxu0 %v8043_v56  ;;  %v8067_v56 = vld [vmem:[%s9815_s8] ss:$12 sps:$4 sm:$0xff]  }
 0x46c   :  { %1947 = vmatprep.subr.bf16.mxu0 %v8049_v57  ;;  %10107 = vst [vmem:[#allocation69_spill] sm:$0xff] %v8067_v56  ;;  %v8070_v57 = vld [vmem:[#allocation10 + $0xac] ss:$12 sps:$4 sm:$0xff]  }
 0x46d   :  { %10108 = vst [vmem:[#allocation70_spill] sm:$0xff] %v8070_v57 }
 0x46f   :  { %1948 = vmatpush1.bf16.msra.mxu0 %v8055_v3  ;;  %v237_v3 = vld [vmem:[%s9825_s18] sm:$0xf] }
 0x470   :  { %1949 = vmatprep.subr.bf16.mxu0 %v8061_v62  ;;  %v8076_v45 = vsel %vm1634_vm4, %v237_v3, 0 }
 0x471   :  { %5600 = vmatpush3.bf16.msra.mxu1 %v8076_v45 }
 0x472   :  { %5605 = vmatprep.subr.bf16.mxu1 %v10077_v58 }
 0x473   :  { %1950 = vmatpush1.bf16.msra.mxu0 %v8067_v56 }
 0x474   :  { %2037 = vmatprep.subr.bf16.mxu0 %v8070_v57 }
 0x4c2   :  { %v1546_v62 = vpop.xlane.xlu1 %1545 }
 0x4c3   :  { %6633 = vrcp.f32 %v1546_v62 }
 0x4d0   :  { %v6634_v57 = vpop.eup %6633 }
 0x4d1   :  { %v1548_v52 = vmul.f32 %v6634_v57, %v7937_v54 }
 0x4d3   :  { %v1626_v3 = vmul.f32 %v1548_v52, %v8081_v6  ;;  %v8205_v6 = vld [vmem:[#allocation10 + $0xb0] ss:$12 sps:$4 sm:$0xff]  }
 0x4d4   :  { %10130 = vst [vmem:[#allocation92_spill] sm:$0xff] %v8205_v6 }
 0x4f6   :  { %v1619_v4 = vpop.f32.mrf.mxu0 }
 0x4f7   :  { %v1625_v2 = vmax.f32 %v1619_v4, 1e-30 }
 0x4f8   :  { %v5597_v56 = vpop.f32.mrf.mxu0 }
 0x4f9   :  { %6635 = vrcp.f32 %v1625_v2 }
 0x4fa   :  { %v1622_v5 = vpop.f32.mrf.mxu0 }
 0x4fc   :  { %v5598_v32 = vpop.f32.mrf.mxu0 }
 0x506   :  { %v6636_v43 = vpop.eup %6635 }
 0x507   :  { %v1628_v7 = vmul.f32 %v6636_v43, %v1626_v3  ;;  %v8098_v3 = vld [vmem:[#allocation5 + $0x8] sm:$0xff]  }
 0x508   :  { %10111 = vst [vmem:[#allocation73_spill] sm:$0xff] %v8098_v3 }
 0x509   :  { %v1629_v51 = vpack.c.bf16 %v1628_v7, %v1628_v7  ;;  %v8091_v7 = vld [vmem:[#allocation5 + $0x18] sm:$0xff]  }
 0x50b   :  { %5602 = vmatmul.mubr.msk.bf16.vlgmr.msra.gmra.mxu1 %vm1630_vm5, %v1629_v51  ;;  %v8094_v51 = vld [vmem:[#allocation5 + $0x10] sm:$0xff]  }
 0x50c   :  { %5613 = vmatprep.mubr.msk.bf16.mxu1 %vm7318_vm0, %v10077_v58  ;;  %5606 = vmatpush3.bf16.msra.mxu1 %v8091_v7  ;;  %10110 = vst [vmem:[#allocation72_spill] sm:$0xff] %v8094_v51 }
 0x50d   :  { %5607 = vmatprep.subr.bf16.mxu1 %v10077_v58 }
 0x510   :  { %5608 = vmatpush3.bf16.msra.mxu1 %v8094_v51 }
 0x511   :  { %5609 = vmatprep.subr.bf16.mxu1 %v10077_v58 }
 0x514   :  { %5610 = vmatpush3.bf16.msra.mxu1 %v8098_v3 }
 0x515   :  { %5611 = vmatprep.subr.bf16.mxu1 %v10077_v58 }
 0x516   :  { %v8087_v4 = vpop.f32.mrf.mxu0 }
 0x518   :  { %v5635_v5 = vpop.f32.mrf.mxu0 }
 0x51a   :  { %v1838_v32 = vpop.f32.mrf.mxu0 }
 0x51c   :  { %v5636_v2 = vpop.f32.mrf.mxu0 }
 0x5cb   :  { %v1672_v62 = vpop.f32.mrf.mxu1 }
 0x5cc   :  { %v1678_v54 = vmul.f32 %v7930_v53, %v1672_v62  ;;  %v8102_v53 = vld [vmem:[#allocation5] sm:$0xff]  }
 0x5cd   :  { %v5603_v56 = vpop.f32.mrf.mxu1  ;;  %10112 = vst [vmem:[#allocation74_spill] sm:$0xff] %v8102_v53  ;;  %5612 = vmatpush3.bf16.msra.mxu1 %v8102_v53  ;;  %v8107_v62 = vld [vmem:[#allocation14 + $0x38] sm:$0xff]  }
 0x5ce   :  { %v1679_v52 = vsel %vm1549_vm1, %v1678_v54, 0.0  ;;  %5637 = vmatprep.subr.bf16.mxu1 %v10077_v58  ;;  %10113 = vst [vmem:[#allocation75_spill] sm:$0xff] %v8107_v62 }
 0x5cf   :  { %1680 = vadd.xlane.f32.xlu1 %v1679_v52  ;;  %v1675_v43 = vpop.f32.mrf.mxu1  ;;  %v8112_v52 = vld [vmem:[#allocation14 + $0x30] sm:$0xff]  }
 0x5d0   :  { %10114 = vst [vmem:[#allocation76_spill] sm:$0xff] %v8112_v52  ;;  %v8118_v43 = vld [vmem:[#allocation14 + $0x28] sm:$0xff]  }
 0x5d1   :  { %v5604_v57 = vpop.f32.mrf.mxu1  ;;  %10115 = vst [vmem:[#allocation77_spill] sm:$0xff] %v8118_v43 }
 0x5d2   :  { %v8126_v57 = vld [vmem:[#allocation14 + $0x18] sm:$0xff]  }
 0x5d3   :  { %10117 = vst [vmem:[#allocation79_spill] sm:$0xff] %v8126_v57 }
 0x658   :  { %v1681_v5 = vpop.xlane.xlu1 %1680 }
 0x659   :  { %6637 = vrcp.f32 %v1681_v5  ;;  %v8130_v5 = vld [vmem:[#allocation14 + $0x10] sm:$0xff]  }
 0x65a   :  { %10118 = vst [vmem:[#allocation80_spill] sm:$0xff] %v8130_v5 }
 0x666   :  { %v6638_v32 = vpop.eup %6637 }
 0x667   :  { %v1683_v2 = vmul.f32 %v6638_v32, %v1678_v54  ;;  %v8122_v54 = vld [vmem:[#allocation14 + $0x20] sm:$0xff]   ;;  %v8134_v32 = vld [vmem:[#allocation14 + $0x8] sm:$0xff]  }
 0x668   :  { %10116 = vst [vmem:[#allocation78_spill] sm:$0xff] %v8122_v54  ;;  %10119 = vst [vmem:[#allocation81_spill] sm:$0xff] %v8134_v32 }
 0x669   :  { %v1684_v56 = vpack.c.bf16 %v1683_v2, %v1683_v2  ;;  %1931 = vst.msk [vmem:[#allocation18] sm:$0x3] %vm1549_vm1, %v1683_v2  ;;  %v8139_v2 = vld [vmem:[#allocation14] sm:$0xff]  }
 0x66a   :  { %10120 = vst [vmem:[#allocation82_spill] sm:$0xff] %v8139_v2 }
 0x66b   :  { %5614 = vmatmul.mubr.msk.bf16.vlgmr.msra.gmra.mxu1 %vm1581_vm3, %v1684_v56 }
 0x66c   :  { %5638 = vmatpush3.bf16.msra.mxu1 %v8107_v62  ;;  %5653 = vmatprep.mubr.msk.bf16.mxu1 %vm7318_vm0, %v10077_v58  ;;  %v8202_v62 = vld [vmem:[#allocation10 + $0xa8] ss:$12 sps:$4 sm:$0xff]  }
 0x66d   :  { %5639 = vmatprep.subr.bf16.mxu1 %v10077_v58  ;;  %10129 = vst [vmem:[#allocation91_spill] sm:$0xff] %v8202_v62 }
 0x670   :  { %5640 = vmatpush3.bf16.msra.mxu1 %v8112_v52 }
 0x671   :  { %5641 = vmatprep.subr.bf16.mxu1 %v10077_v58 }
 0x674   :  { %5642 = vmatpush3.bf16.msra.mxu1 %v8118_v43 }
 0x675   :  { %5643 = vmatprep.subr.bf16.mxu1 %v10077_v58 }
 0x678   :  { %5644 = vmatpush3.bf16.msra.mxu1 %v8122_v54 }
 0x679   :  { %5645 = vmatprep.subr.bf16.mxu1 %v10077_v58 }
 0x67c   :  { %5646 = vmatpush3.bf16.msra.mxu1 %v8126_v57 }
 0x67d   :  { %5647 = vmatprep.subr.bf16.mxu1 %v10077_v58 }
 0x680   :  { %5648 = vmatpush3.bf16.msra.mxu1 %v8130_v5  ;;  %v8146_v5 = vld [vmem:[%s9815_s8 + $0xb0] ss:$12 sps:$4 sm:$0xff]  }
 0x681   :  { %5649 = vmatprep.subr.bf16.mxu1 %v10077_v58  ;;  %10121 = vst [vmem:[#allocation83_spill] sm:$0xff] %v8146_v5 }
 0x684   :  { %5650 = vmatpush3.bf16.msra.mxu1 %v8134_v32 }
 0x685   :  { %5651 = vmatprep.subr.bf16.mxu1 %v10077_v58 }
 0x688   :  { %5652 = vmatpush3.bf16.msra.mxu1 %v8139_v2 }
 0x689   :  { %5657 = vmatprep.subr.bf16.mxu1 %v10077_v58 }
 0x72b   :  { %v1746_v56 = vpop.f32.mrf.mxu1 }
 0x72c   :  { %v1752_v57 = vpack.c.bf16 %v1746_v56, %v1746_v56  ;;  %v8155_v56 = vld [vmem:[%s9815_s8 + $0x98] ss:$12 sps:$4 sm:$0xff]  }
 0x72d   :  { %v5615_v54 = vpop.f32.mrf.mxu1  ;;  %10122 = vst [vmem:[#allocation84_spill] sm:$0xff] %v8155_v56 }
 0x72e   :  { %5654 = vmatmul.mubr.bf16.vlgmr.msra.gmra.mxu1 %v1752_v57  ;;  %v8169_v54 = vld [vmem:[%s9815_s8 + $0x68] ss:$12 sps:$4 sm:$0xff]   ;;  %v8176_v57 = vld [vmem:[%s9815_s8 + $0x50] ss:$12 sps:$4 sm:$0xff]  }
 0x72f   :  { %v1749_v43 = vpop.f32.mrf.mxu1  ;;  %5658 = vmatpush3.bf16.msra.mxu1 %v8146_v5  ;;  %5673 = vmatprep.mubr.msk.bf16.mxu1 %vm7318_vm0, %v10077_v58  ;;  %10124 = vst [vmem:[#allocation86_spill] sm:$0xff] %v8169_v54  ;;  %10125 = vst [vmem:[#allocation87_spill] sm:$0xff] %v8176_v57 }
 0x730   :  { %5659 = vmatprep.subr.bf16.mxu1 %v10077_v58  ;;  %v8162_v43 = vld [vmem:[%s9815_s8 + $0x80] ss:$12 sps:$4 sm:$0xff]  }
 0x731   :  { %v5616_v2 = vpop.f32.mrf.mxu1  ;;  %10123 = vst [vmem:[#allocation85_spill] sm:$0xff] %v8162_v43 }
 0x732   :  { %v8183_v2 = vld [vmem:[%s9815_s8 + $0x38] ss:$12 sps:$4 sm:$0xff]  }
 0x733   :  { %5660 = vmatpush3.bf16.msra.mxu1 %v8155_v56  ;;  %10126 = vst [vmem:[#allocation88_spill] sm:$0xff] %v8183_v2 }
 0x734   :  { %5661 = vmatprep.subr.bf16.mxu1 %v10077_v58 }
 0x737   :  { %5662 = vmatpush3.bf16.msra.mxu1 %v8162_v43 }
 0x738   :  { %5663 = vmatprep.subr.bf16.mxu1 %v10077_v58 }
 0x73b   :  { %5664 = vmatpush3.bf16.msra.mxu1 %v8169_v54  ;;  %v8190_v54 = vld [vmem:[%s9815_s8 + $0x20] ss:$12 sps:$4 sm:$0xff]  }
 0x73c   :  { %5665 = vmatprep.subr.bf16.mxu1 %v10077_v58  ;;  %10127 = vst [vmem:[#allocation89_spill] sm:$0xff] %v8190_v54 }
 0x73f   :  { %5666 = vmatpush3.bf16.msra.mxu1 %v8176_v57  ;;  %v8197_v57 = vld [vmem:[%s9815_s8 + $0x8] ss:$12 sps:$4 sm:$0xff]  }
 0x740   :  { %5667 = vmatprep.subr.bf16.mxu1 %v10077_v58  ;;  %10128 = vst [vmem:[#allocation90_spill] sm:$0xff] %v8197_v57 }
 0x743   :  { %5668 = vmatpush3.bf16.msra.mxu1 %v8183_v2 }
 0x744   :  { %5669 = vmatprep.subr.bf16.mxu1 %v10077_v58 }
 0x747   :  { %5670 = vmatpush3.bf16.msra.mxu1 %v8190_v54 }
 0x748   :  { %5671 = vmatprep.subr.bf16.mxu1 %v10077_v58 }
 0x74b   :  { %5672 = vmatpush3.bf16.msra.mxu1 %v8197_v57  ;;  %v8208_v57 = vld [vmem:[#allocation10 + $0x94] ss:$12 sps:$4 sm:$0xff]  }
 0x74c   :  { %5677 = vmatprep.subr.bf16.mxu1 %v10077_v58  ;;  %10131 = vst [vmem:[#allocation93_spill] sm:$0xff] %v8208_v57 }
 0x7ee   :  { %v1923_v2 = vpop.f32.mrf.mxu1 }
 0x7ef   :  { %v1924_v43 = vadd.f32 %v1923_v2, %v8087_v4  ;;  %v8215_v4 = vld [vmem:[#allocation10 + $0x90] ss:$12 sps:$4 sm:$0xff]   ;;  %v8238_v2 = vld [vmem:[#allocation10 + $0x68] ss:$12 sps:$4 sm:$0xff]  }
 0x7f0   :  { %v5655_v56 = vpop.f32.mrf.mxu1  ;;  %10132 = vst [vmem:[#allocation94_spill] sm:$0xff] %v8215_v4  ;;  %10139 = vst [vmem:[#allocation101_spill] sm:$0xff] %v8238_v2 }
 0x7f1   :  { %6639 = vtanh.f32 %v1924_v43  ;;  %v8228_v56 = vld [vmem:[#allocation10 + $0x80] ss:$12 sps:$4 sm:$0xff]   ;;  %v8231_v43 = vld [vmem:[#allocation10 + $0x64] ss:$12 sps:$4 sm:$0xff]  }
 0x7f2   :  { %v1926_v5 = vpop.f32.mrf.mxu1  ;;  %10136 = vst [vmem:[#allocation98_spill] sm:$0xff] %v8228_v56  ;;  %10137 = vst [vmem:[#allocation99_spill] sm:$0xff] %v8231_v43 }
 0x7f3   :  { %v8221_v5 = vld [vmem:[#allocation10 + $0x7c] ss:$12 sps:$4 sm:$0xff]  }
 0x7f4   :  { %v5656_v32 = vpop.f32.mrf.mxu1  ;;  %10134 = vst [vmem:[#allocation96_spill] sm:$0xff] %v8221_v5 }
 0x7f5   :  { %v8225_v32 = vld [vmem:[#allocation10 + $0x78] ss:$12 sps:$4 sm:$0xff]  }
 0x7f6   :  { %10135 = vst [vmem:[#allocation97_spill] sm:$0xff] %v8225_v32 }
 0x7fe   :  { %v6640_v52 = vpop.eup %6639 }
 0x7ff   :  { %1930 = vst [vmem:[#allocation17] sm:$0x3] %v6640_v52  ;;  %v1934_v54 = vpack.c.bf16 %v6640_v52, %v6640_v52  ;;  %v8218_v52 = vld [vmem:[#allocation10 + $0x98] ss:$12 sps:$4 sm:$0xff]  }
 0x800   :  { %10133 = vst [vmem:[#allocation95_spill] sm:$0xff] %v8218_v52 }
 0x801   :  { %1968 = vmatmul.mubr.bf16.vlgmr.msra.gmra.mxu0 %v1934_v54  ;;  %5674 = vmatmul.mubr.bf16.vlgmr.msra.gmra.mxu1 %v1934_v54  ;;  %v8235_v54 = vld [vmem:[#allocation10 + $0x60] ss:$12 sps:$4 sm:$0xff]  }
 0x802   :  { %2038 = vmatpush1.bf16.msra.mxu0 %v8202_v62  ;;  %5678 = vmatpush3.bf16.msra.mxu1 %v8205_v6  ;;  %10138 = vst [vmem:[#allocation100_spill] sm:$0xff] %v8235_v54 }
 0x803   :  { %2039 = vmatprep.subr.bf16.mxu0 %v8208_v57  ;;  %5679 = vmatprep.subr.bf16.mxu1 %v10077_v58  ;;  %v1933_v57 = vld [vmem:[#allocation2 + $0x6] sm:$0x3f] }
 0x804   :  { %2069 = vmatprep.mubr.bf16.mxu0 %v10093_v61  ;;  %5693 = vmatprep.mubr.msk.bf16.mxu1 %vm7318_vm0, %v10077_v58 }
 0x806   :  { %2040 = vmatpush1.bf16.msra.mxu0 %v8215_v4  ;;  %5680 = vmatpush3.bf16.msra.mxu1 %v8218_v52 }
 0x807   :  { %2041 = vmatprep.subr.bf16.mxu0 %v8221_v5  ;;  %5681 = vmatprep.subr.bf16.mxu1 %v10077_v58  ;;  %v8241_v5 = vld [vmem:[#allocation10 + $0x4c] ss:$12 sps:$4 sm:$0xff]  }
 0x808   :  { %10140 = vst [vmem:[#allocation102_spill] sm:$0xff] %v8241_v5 }
 0x80a   :  { %2042 = vmatpush1.bf16.msra.mxu0 %v8225_v32  ;;  %5682 = vmatpush3.bf16.msra.mxu1 %v8228_v56  ;;  %v8245_v56 = vld [vmem:[#allocation10 + $0x48] ss:$12 sps:$4 sm:$0xff]  }
 0x80b   :  { %2043 = vmatprep.subr.bf16.mxu0 %v8231_v43  ;;  %5683 = vmatprep.subr.bf16.mxu1 %v10077_v58  ;;  %10141 = vst [vmem:[#allocation103_spill] sm:$0xff] %v8245_v56  ;;  %v8248_v43 = vld [vmem:[#allocation10 + $0x50] ss:$12 sps:$4 sm:$0xff]   ;;  %v8251_v32 = vld [vmem:[#allocation10 + $0x34] ss:$12 sps:$4 sm:$0xff]  }
 0x80c   :  { %10142 = vst [vmem:[#allocation104_spill] sm:$0xff] %v8248_v43  ;;  %10143 = vst [vmem:[#allocation105_spill] sm:$0xff] %v8251_v32 }
 0x80e   :  { %2044 = vmatpush1.bf16.msra.mxu0 %v8235_v54  ;;  %5684 = vmatpush3.bf16.msra.mxu1 %v8238_v2  ;;  %v8255_v2 = vld [vmem:[#allocation10 + $0x30] ss:$12 sps:$4 sm:$0xff]  }
 0x80f   :  { %2045 = vmatprep.subr.bf16.mxu0 %v8241_v5  ;;  %5685 = vmatprep.subr.bf16.mxu1 %v10077_v58  ;;  %10144 = vst [vmem:[#allocation106_spill] sm:$0xff] %v8255_v2  ;;  %v8258_v5 = vld [vmem:[#allocation10 + $0x38] ss:$12 sps:$4 sm:$0xff]   ;;  %v8261_v54 = vld [vmem:[#allocation10 + $0x1c] ss:$12 sps:$4 sm:$0xff]  }
 0x810   :  { %10145 = vst [vmem:[#allocation107_spill] sm:$0xff] %v8258_v5  ;;  %10146 = vst [vmem:[#allocation108_spill] sm:$0xff] %v8261_v54 }
 0x812   :  { %2046 = vmatpush1.bf16.msra.mxu0 %v8245_v56  ;;  %5686 = vmatpush3.bf16.msra.mxu1 %v8248_v43  ;;  %v8265_v43 = vld [vmem:[#allocation10 + $0x18] ss:$12 sps:$4 sm:$0xff]  }
 0x813   :  { %2047 = vmatprep.subr.bf16.mxu0 %v8251_v32  ;;  %5687 = vmatprep.subr.bf16.mxu1 %v10077_v58  ;;  %10147 = vst [vmem:[#allocation109_spill] sm:$0xff] %v8265_v43  ;;  %v8268_v32 = vld [vmem:[#allocation10 + $0x20] ss:$12 sps:$4 sm:$0xff]   ;;  %v8271_v56 = vld [vmem:[#allocation10 + $0x4] ss:$12 sps:$4 sm:$0xff]  }
 0x814   :  { %10148 = vst [vmem:[#allocation110_spill] sm:$0xff] %v8268_v32  ;;  %10149 = vst [vmem:[#allocation111_spill] sm:$0xff] %v8271_v56 }
 0x816   :  { %2048 = vmatpush1.bf16.msra.mxu0 %v8255_v2  ;;  %5688 = vmatpush3.bf16.msra.mxu1 %v8258_v5  ;;  %v8275_v5 = vld [vmem:[#allocation10] ss:$12 sps:$4 sm:$0xff]  }
 0x817   :  { %2049 = vmatprep.subr.bf16.mxu0 %v8261_v54  ;;  %5689 = vmatprep.subr.bf16.mxu1 %v10077_v58  ;;  %10150 = vst [vmem:[#allocation112_spill] sm:$0xff] %v8275_v5  ;;  %v8278_v54 = vld [vmem:[#allocation10 + $0x8] ss:$12 sps:$4 sm:$0xff]   ;;  %v8281_v2 = vld [vmem:[#allocation11 + $0xac] ss:$12 sps:$4 sm:$0xff]  }
 0x818   :  { %10151 = vst [vmem:[#allocation113_spill] sm:$0xff] %v8278_v54  ;;  %10152 = vst [vmem:[#allocation114_spill] sm:$0xff] %v8281_v2 }
 0x81a   :  { %2050 = vmatpush1.bf16.msra.mxu0 %v8265_v43  ;;  %5690 = vmatpush3.bf16.msra.mxu1 %v8268_v32  ;;  %v8290_v32 = vld [vmem:[#allocation11 + $0xb0] ss:$12 sps:$4 sm:$0xff]  }
 0x81b   :  { %2051 = vmatprep.subr.bf16.mxu0 %v8271_v56  ;;  %5691 = vmatprep.subr.bf16.mxu1 %v10077_v58  ;;  %v8287_v56 = vld [vmem:[#allocation11 + $0xa8] ss:$12 sps:$4 sm:$0xff]   ;;  %10154 = vst [vmem:[#allocation116_spill] sm:$0xff] %v8290_v32 }
 0x81c   :  { %10153 = vst [vmem:[#allocation115_spill] sm:$0xff] %v8287_v56 }
 0x81e   :  { %2052 = vmatpush1.bf16.msra.mxu0 %v8275_v5  ;;  %5692 = vmatpush3.bf16.msra.mxu1 %v8278_v54  ;;  %v8293_v5 = vld [vmem:[#allocation11 + $0x94] ss:$12 sps:$4 sm:$0xff]   ;;  %v8316_v54 = vld [vmem:[#allocation11 + $0x64] ss:$12 sps:$4 sm:$0xff]  }
 0x81f   :  { %2145 = vmatprep.subr.bf16.mxu0 %v8281_v2  ;;  %5697 = vmatprep.subr.bf16.mxu1 %v10077_v58  ;;  %10155 = vst [vmem:[#allocation117_spill] sm:$0xff] %v8293_v5  ;;  %v8313_v2 = vld [vmem:[#allocation11 + $0x80] ss:$12 sps:$4 sm:$0xff]   ;;  %10161 = vst [vmem:[#allocation123_spill] sm:$0xff] %v8316_v54 }
 0x820   :  { %10160 = vst [vmem:[#allocation122_spill] sm:$0xff] %v8313_v2 }
 0x821   :  { %2070 = vmatmul.mubr.bf16.vlgmr.msra.gmra.mxu0 %v7644_v18  ;;  %5694 = vmatmul.mubr.bf16.vlgmr.msra.gmra.mxu1 %v7644_v18  ;;  %v8300_v18 = vld [vmem:[#allocation11 + $0x90] ss:$12 sps:$4 sm:$0xff]  }
 0x822   :  { %2146 = vmatpush1.bf16.msra.mxu0 %v8287_v56  ;;  %5698 = vmatpush3.bf16.msra.mxu1 %v8290_v32  ;;  %10156 = vst [vmem:[#allocation118_spill] sm:$0xff] %v8300_v18  ;;  %v8303_v56 = vld [vmem:[#allocation11 + $0x98] ss:$12 sps:$4 sm:$0xff]   ;;  %v8306_v32 = vld [vmem:[#allocation11 + $0x7c] ss:$12 sps:$4 sm:$0xff]  }
 0x823   :  { %2147 = vmatprep.subr.bf16.mxu0 %v8293_v5  ;;  %5699 = vmatprep.subr.bf16.mxu1 %v10077_v58  ;;  %10157 = vst [vmem:[#allocation119_spill] sm:$0xff] %v8303_v56  ;;  %10158 = vst [vmem:[#allocation120_spill] sm:$0xff] %v8306_v32  ;;  %v8310_v5 = vld [vmem:[#allocation11 + $0x78] ss:$12 sps:$4 sm:$0xff]  }
 0x824   :  { %2177 = vmatprep.mubr.bf16.mxu0 %v10093_v61  ;;  %5713 = vmatprep.mubr.msk.bf16.mxu1 %vm7318_vm0, %v10077_v58  ;;  %10159 = vst [vmem:[#allocation121_spill] sm:$0xff] %v8310_v5 }
 0x826   :  { %2148 = vmatpush1.bf16.msra.mxu0 %v8300_v18  ;;  %5700 = vmatpush3.bf16.msra.mxu1 %v8303_v56  ;;  %v8320_v56 = vld [vmem:[#allocation11 + $0x60] ss:$12 sps:$4 sm:$0xff]  }
 0x827   :  { %2149 = vmatprep.subr.bf16.mxu0 %v8306_v32  ;;  %5701 = vmatprep.subr.bf16.mxu1 %v10077_v58  ;;  %10162 = vst [vmem:[#allocation124_spill] sm:$0xff] %v8320_v56  ;;  %v8323_v32 = vld [vmem:[#allocation11 + $0x68] ss:$12 sps:$4 sm:$0xff]   ;;  %v8326_v18 = vld [vmem:[#allocation11 + $0x4c] ss:$12 sps:$4 sm:$0xff]  }
 0x828   :  { %10163 = vst [vmem:[#allocation125_spill] sm:$0xff] %v8323_v32  ;;  %10164 = vst [vmem:[#allocation126_spill] sm:$0xff] %v8326_v18 }
 0x82a   :  { %2150 = vmatpush1.bf16.msra.mxu0 %v8310_v5  ;;  %5702 = vmatpush3.bf16.msra.mxu1 %v8313_v2  ;;  %v8330_v2 = vld [vmem:[#allocation11 + $0x48] ss:$12 sps:$4 sm:$0xff]  }
 0x82b   :  { %2151 = vmatprep.subr.bf16.mxu0 %v8316_v54  ;;  %5703 = vmatprep.subr.bf16.mxu1 %v10077_v58  ;;  %10165 = vst [vmem:[#allocation127_spill] sm:$0xff] %v8330_v2  ;;  %v8333_v54 = vld [vmem:[#allocation11 + $0x50] ss:$12 sps:$4 sm:$0xff]   ;;  %v8336_v5 = vld [vmem:[#allocation11 + $0x34] ss:$12 sps:$4 sm:$0xff]  }
 0x82c   :  { %10166 = vst [vmem:[#allocation128_spill] sm:$0xff] %v8333_v54  ;;  %10167 = vst [vmem:[#allocation129_spill] sm:$0xff] %v8336_v5 }
 0x82e   :  { %2152 = vmatpush1.bf16.msra.mxu0 %v8320_v56  ;;  %5704 = vmatpush3.bf16.msra.mxu1 %v8323_v32  ;;  %v8340_v32 = vld [vmem:[#allocation11 + $0x30] ss:$12 sps:$4 sm:$0xff]  }
 0x82f   :  { %2153 = vmatprep.subr.bf16.mxu0 %v8326_v18  ;;  %5705 = vmatprep.subr.bf16.mxu1 %v10077_v58  ;;  %10168 = vst [vmem:[#allocation130_spill] sm:$0xff] %v8340_v32  ;;  %v8343_v18 = vld [vmem:[#allocation11 + $0x38] ss:$12 sps:$4 sm:$0xff]   ;;  %v8346_v56 = vld [vmem:[#allocation11 + $0x1c] ss:$12 sps:$4 sm:$0xff]  }
 0x830   :  { %10169 = vst [vmem:[#allocation131_spill] sm:$0xff] %v8343_v18  ;;  %10170 = vst [vmem:[#allocation132_spill] sm:$0xff] %v8346_v56 }
 0x832   :  { %2154 = vmatpush1.bf16.msra.mxu0 %v8330_v2  ;;  %5706 = vmatpush3.bf16.msra.mxu1 %v8333_v54  ;;  %v8350_v54 = vld [vmem:[#allocation11 + $0x18] ss:$12 sps:$4 sm:$0xff]  }
 0x833   :  { %2155 = vmatprep.subr.bf16.mxu0 %v8336_v5  ;;  %5707 = vmatprep.subr.bf16.mxu1 %v10077_v58  ;;  %10171 = vst [vmem:[#allocation133_spill] sm:$0xff] %v8350_v54 }
 0x836   :  { %2156 = vmatpush1.bf16.msra.mxu0 %v8340_v32  ;;  %5708 = vmatpush3.bf16.msra.mxu1 %v8343_v18 }
 0x837   :  { %2157 = vmatprep.subr.bf16.mxu0 %v8346_v56  ;;  %5709 = vmatprep.subr.bf16.mxu1 %v10077_v58 }
 0x83a   :  { %2158 = vmatpush1.bf16.msra.mxu0 %v8350_v54  ;;  %5710 = vmatpush3.bf16.msra.mxu1 %v7592_v10 }
 0x83b   :  { %2159 = vmatprep.subr.bf16.mxu0 %v7594_v11  ;;  %5711 = vmatprep.subr.bf16.mxu1 %v10077_v58 }
 0x83e   :  { %2160 = vmatpush1.bf16.msra.mxu0 %v7597_v12  ;;  %5712 = vmatpush3.bf16.msra.mxu1 %v7601_v13 }
 0x83f   :  { %2226 = vmatprep.subr.bf16.mxu0 %v7603_v14  ;;  %5717 = vmatprep.subr.bf16.mxu1 %v10077_v58 }
 0x8c1   :  { %v1969_v56 = vpop.f32.mrf.mxu0  ;;  %v2010_v18 = vpop.f32.mrf.mxu1 }
 0x8c2   :  { %v2033_v4 = vrot.slane %v2010_v18, %v7610_v29 }
 0x8c3   :  { %v1971_v32 = vpop.f32.mrf.mxu0  ;;  %v5675_v5 = vpop.f32.mrf.mxu1 }
 0x8c4   :  { %v2019_v52 = vcombine.low %v1969_v56, %v1971_v32 }
 0x8c5   :  { %v1973_v2 = vpop.f32.mrf.mxu0  ;;  %v2013_v54 = vpop.f32.mrf.mxu1 }
 0x8c6   :  { %v2026_v11 = vrot.slane %v2019_v52, %v7610_v29 }
 0x8c7   :  { %v1974_v43 = vpop.f32.mrf.mxu0  ;;  %v5676_v10 = vpop.f32.mrf.mxu1 }
 0x8c8   :  { %v2034_v12 = vcombine.low %v2026_v11, %v2033_v4 }
 0x8ca   :  { %v2036_v14 = vadd.f32 %v2034_v12, %v1933_v57 }
 0x8cc   :  { %v2126_v52 = vrot.slane %v2036_v14, 2 }
 0x8e1   :  { %v2071_v13 = vpop.f32.mrf.mxu0  ;;  %v2112_v6 = vpop.f32.mrf.mxu1 }
 0x8e2   :  { %v2072_v62 = vadd.f32 %v2071_v13, %v7620_v35 }
 0x8e3   :  { %v2073_v53 = vpop.f32.mrf.mxu0  ;;  %v5695_v3 = vpop.f32.mrf.mxu1 }
 0x8e4   :  { %v2118_v51 = vadd.f32 %v2072_v62, %v2036_v14  ;;  %v2074_v43 = vadd.f32 %v2073_v53, %v7626_v41  ;;  %v2113_v3 = vadd.f32 %v2112_v6, %v7632_v59 }
 0x8e5   :  { %v2075_v5 = vpop.f32.mrf.mxu0  ;;  %v2115_v2 = vpop.f32.mrf.mxu1 }
 0x8e6   :  { %v5019_v54 = vmul.f32 -1.442695, %v2118_v51  ;;  %v2128_v18 = vadd.f32 %v2126_v52, %v2074_v43  ;;  %v2136_v5 = vrot.slane %v2036_v14, 4 }
 0x8e7   :  { %v2076_v32 = vpop.f32.mrf.mxu0  ;;  %v5696_v56 = vpop.f32.mrf.mxu1 }
 0x8e8   :  { %6641 = vpow2.f32 %v5019_v54  ;;  %v5020_v4 = vmul.f32 -1.442695, %v2128_v18 }
 0x8ea   :  { %6643 = vpow2.f32 %v5020_v4 }
 0x8f5   :  { %v6642_v10 = vpop.eup %6641 }
 0x8f6   :  { %v2122_v11 = vadd.f32 1.0, %v6642_v10 }
 0x8f7   :  { %v6644_v57 = vpop.eup %6643 }
 0x8f8   :  { %6645 = vrcp.f32 %v2122_v11  ;;  %v2132_v12 = vadd.f32 1.0, %v6644_v57 }
 0x8fa   :  { %6647 = vrcp.f32 %v2132_v12 }
 0x905   :  { %v6646_v62 = vpop.eup %6645 }
 0x906   :  { %v2135_v13 = vmul.f32 %v6646_v62, %v2113_v3 }
 0x907   :  { %v6648_v53 = vpop.eup %6647 }
 0x908   :  { %v2138_v51 = vadd.f32 %v2136_v5, %v2135_v13  ;;  %v2140_v2 = vsub.f32 1.0, %v6648_v53  ;;  %v2142_v43 = vmul.f32 %v6648_v53, %v7636_v15  ;;  %v10172_v15 = vld [vmem:[#allocation28_spill] sm:$0xff] }
 0x90a   :  { %6649 = vtanh.f32 %v2138_v51 }
 0x917   :  { %v6650_v54 = vpop.eup %6649 }
 0x918   :  { %v2141_v32 = vmul.f32 %v6650_v54, %v2140_v2 }
 0x91a   :  { %v8366_v56 = vadd.f32 %v2142_v43, %v2141_v32 }
 0x91c   :  { %v8370_v52 = vpack.c.bf16 %v8366_v56, %v8366_v56 }
 0x91e   :  { %2178 = vmatmul.mubr.bf16.vlgmr.msra.gmra.mxu0 %v8370_v52  ;;  %5714 = vmatmul.mubr.bf16.vlgmr.msra.gmra.mxu1 %v8370_v52 }
 0x91f   :  { %2227 = vmatpush1.bf16.msra.mxu0 %v7638_v16  ;;  %5718 = vmatpush3.bf16.msra.mxu1 %v7640_v17  ;;  %v10173_v16 = vld [vmem:[#allocation29_spill] sm:$0xff]  ;;  %v10174_v17 = vld [vmem:[#allocation30_spill] sm:$0xff] }
 0x920   :  { %2228 = vmatprep.subr.bf16.mxu0 %v7646_v19  ;;  %5719 = vmatprep.subr.bf16.mxu1 %v10077_v58  ;;  %v10175_v19 = vld [vmem:[#allocation31_spill] sm:$0xff] }
 0x921   :  { %2258 = vmatprep.mubr.bf16.mxu0 %v10093_v61  ;;  %5733 = vmatprep.mubr.msk.bf16.mxu1 %vm7318_vm0, %v10077_v58 }
 0x923   :  { %2229 = vmatpush1.bf16.msra.mxu0 %v7651_v20  ;;  %5720 = vmatpush3.bf16.msra.mxu1 %v7654_v49  ;;  %v10176_v20 = vld [vmem:[#allocation32_spill] sm:$0xff]  ;;  %v10177_v49 = vld [vmem:[#allocation33_spill] sm:$0xff] }
 0x924   :  { %2230 = vmatprep.subr.bf16.mxu0 %v7657_v21  ;;  %5721 = vmatprep.subr.bf16.mxu1 %v10077_v58  ;;  %v10178_v21 = vld [vmem:[#allocation34_spill] sm:$0xff] }
 0x927   :  { %2231 = vmatpush1.bf16.msra.mxu0 %v7664_v22  ;;  %5722 = vmatpush3.bf16.msra.mxu1 %v7667_v23  ;;  %v10179_v22 = vld [vmem:[#allocation35_spill] sm:$0xff]  ;;  %v10180_v23 = vld [vmem:[#allocation36_spill] sm:$0xff] }
 0x928   :  { %2232 = vmatprep.subr.bf16.mxu0 %v7670_v24  ;;  %5723 = vmatprep.subr.bf16.mxu1 %v10077_v58  ;;  %v10181_v24 = vld [vmem:[#allocation37_spill] sm:$0xff] }
 0x92b   :  { %2233 = vmatpush1.bf16.msra.mxu0 %v7674_v25  ;;  %5724 = vmatpush3.bf16.msra.mxu1 %v7677_v26  ;;  %v10182_v25 = vld [vmem:[#allocation38_spill] sm:$0xff]  ;;  %v10183_v26 = vld [vmem:[#allocation39_spill] sm:$0xff] }
 0x92c   :  { %2234 = vmatprep.subr.bf16.mxu0 %v7680_v27  ;;  %5725 = vmatprep.subr.bf16.mxu1 %v10077_v58 }
 0x92f   :  { %2235 = vmatpush1.bf16.msra.mxu0 %v7684_v28  ;;  %5726 = vmatpush3.bf16.msra.mxu1 %v7687_v30 }
 0x930   :  { %2236 = vmatprep.subr.bf16.mxu0 %v7690_v31  ;;  %5727 = vmatprep.subr.bf16.mxu1 %v10077_v58 }
 0x933   :  { %2237 = vmatpush1.bf16.msra.mxu0 %v7694_v33  ;;  %5728 = vmatpush3.bf16.msra.mxu1 %v7697_v34 }
 0x934   :  { %2238 = vmatprep.subr.bf16.mxu0 %v7700_v37  ;;  %5729 = vmatprep.subr.bf16.mxu1 %v10077_v58 }
 0x937   :  { %2239 = vmatpush1.bf16.msra.mxu0 %v7704_v38  ;;  %5730 = vmatpush3.bf16.msra.mxu1 %v7707_v39 }
 0x938   :  { %2240 = vmatprep.subr.bf16.mxu0 %v7710_v40  ;;  %5731 = vmatprep.subr.bf16.mxu1 %v10077_v58 }
 0x93b   :  { %2241 = vmatpush1.bf16.msra.mxu0 %v7714_v42  ;;  %5732 = vmatpush3.bf16.msra.mxu1 %v7722_v44  ;;  %v10184_v42 = vld [vmem:[#allocation40_spill] sm:$0xff] }
 0x93c   :  { %5737 = vmatprep.subr.bf16.mxu0 %v10077_v58  ;;  %5757 = vmatprep.subr.bf16.mxu1 %v10077_v58 }
 0x93e   :  { %2259 = vmatmul.mubr.bf16.vlgmr.msra.gmra.mxu0 %v7883_v1  ;;  %5734 = vmatmul.mubr.bf16.vlgmr.msra.gmra.mxu1 %v7883_v1 }
 0x93f   :  { %5738 = vmatpush3.bf16.msra.mxu0 %v7739_v46  ;;  %5758 = vmatpush3.bf16.msra.mxu1 %v7744_v47  ;;  %v10185_v46 = vld [vmem:[#allocation41_spill] sm:$0xff] }
 0x940   :  { %5739 = vmatprep.subr.bf16.mxu0 %v10077_v58  ;;  %5759 = vmatprep.subr.bf16.mxu1 %v10077_v58 }
 0x941   :  { %5753 = vmatprep.mubr.msk.bf16.mxu0 %vm7318_vm0, %v10077_v58  ;;  %5773 = vmatprep.mubr.msk.bf16.mxu1 %vm7318_vm0, %v10077_v58 }
 0x943   :  { %5740 = vmatpush3.bf16.msra.mxu0 %v7753_v48  ;;  %5760 = vmatpush3.bf16.msra.mxu1 %v7758_v50 }
 0x944   :  { %5741 = vmatprep.subr.bf16.mxu0 %v10077_v58  ;;  %5761 = vmatprep.subr.bf16.mxu1 %v10077_v58 }
 0x947   :  { %5742 = vmatpush3.bf16.msra.mxu0 %v10172_v15  ;;  %5762 = vmatpush3.bf16.msra.mxu1 %v10173_v16 }
 0x948   :  { %5743 = vmatprep.subr.bf16.mxu0 %v10077_v58  ;;  %5763 = vmatprep.subr.bf16.mxu1 %v10077_v58 }
 0x94b   :  { %5744 = vmatpush3.bf16.msra.mxu0 %v10174_v17  ;;  %5764 = vmatpush3.bf16.msra.mxu1 %v10175_v19 }
 0x94c   :  { %5745 = vmatprep.subr.bf16.mxu0 %v10077_v58  ;;  %5765 = vmatprep.subr.bf16.mxu1 %v10077_v58 }
 0x94f   :  { %5746 = vmatpush3.bf16.msra.mxu0 %v10176_v20  ;;  %5766 = vmatpush3.bf16.msra.mxu1 %v10177_v49 }
 0x950   :  { %5747 = vmatprep.subr.bf16.mxu0 %v10077_v58  ;;  %5767 = vmatprep.subr.bf16.mxu1 %v10077_v58 }
 0x953   :  { %5748 = vmatpush3.bf16.msra.mxu0 %v10178_v21  ;;  %5768 = vmatpush3.bf16.msra.mxu1 %v10179_v22 }
 0x954   :  { %5749 = vmatprep.subr.bf16.mxu0 %v10077_v58  ;;  %5769 = vmatprep.subr.bf16.mxu1 %v10077_v58 }
 0x957   :  { %5750 = vmatpush3.bf16.msra.mxu0 %v10180_v23  ;;  %5770 = vmatpush3.bf16.msra.mxu1 %v10181_v24  ;;  %v10188_v24 = vld [vmem:[#allocation42_spill] sm:$0xff] }
 0x958   :  { %5751 = vmatprep.subr.bf16.mxu0 %v10077_v58  ;;  %5771 = vmatprep.subr.bf16.mxu1 %v10077_v58 }
 0x95b   :  { %5752 = vmatpush3.bf16.msra.mxu0 %v10182_v25  ;;  %5772 = vmatpush3.bf16.msra.mxu1 %v10183_v26  ;;  %v10189_v26 = vld [vmem:[#allocation43_spill] sm:$0xff] }
 0x95c   :  { %5777 = vmatprep.subr.bf16.mxu0 %v10077_v58  ;;  %5789 = vmatprep.subr.bf16.mxu1 %v10077_v58 }
 0x9de   :  { %v2179_v27 = vpop.f32.mrf.mxu0  ;;  %v2220_v28 = vpop.f32.mrf.mxu1 }
 0x9df   :  { %v2180_v44 = vadd.f32 %v2179_v27, %v10184_v42  ;;  %v2221_v54 = vadd.f32 %v2220_v28, %v7874_v55 }
 0x9e0   :  { %v2181_v30 = vpop.f32.mrf.mxu0  ;;  %v5715_v31 = vpop.f32.mrf.mxu1 }
 0x9e1   :  { %v2182_v57 = vadd.f32 %v2181_v30, %v7866_v60 }
 0x9e2   :  { %v2183_v33 = vpop.f32.mrf.mxu0  ;;  %v2223_v34 = vpop.f32.mrf.mxu1 }
 0x9e4   :  { %v2184_v37 = vpop.f32.mrf.mxu0  ;;  %v5716_v38 = vpop.f32.mrf.mxu1 }
 0x9fe   :  { %v2260_v39 = vpop.f32.mrf.mxu0  ;;  %v2301_v40 = vpop.f32.mrf.mxu1 }
 0x9ff   :  { %v2261_v47 = vadd.f32 %v2260_v39, %v10185_v46  ;;  %v2302_v53 = vadd.f32 %v2301_v40, %v7871_v36 }
 0xa00   :  { %v2262_v48 = vpop.f32.mrf.mxu0  ;;  %v5735_v50 = vpop.f32.mrf.mxu1 }
 0xa01   :  { %v2307_v1 = vadd.f32 %v2261_v47, %v2180_v44  ;;  %v2263_v4 = vadd.f32 %v2262_v48, %v7863_v9 }
 0xa02   :  { %v2264_v6 = vpop.f32.mrf.mxu0  ;;  %v2304_v14 = vpop.f32.mrf.mxu1 }
 0xa03   :  { %v5021_v18 = vmul.f32 -1.442695, %v2307_v1  ;;  %v2314_v12 = vadd.f32 %v2263_v4, %v2182_v57  ;;  %v10190_v4 = vld [vmem:[#allocation72_spill] sm:$0xff] }
 0xa04   :  { %v2265_v10 = vpop.f32.mrf.mxu0  ;;  %v5736_v11 = vpop.f32.mrf.mxu1 }
 0xa05   :  { %6651 = vpow2.f32 %v5021_v18  ;;  %v5022_v3 = vmul.f32 -1.442695, %v2314_v12  ;;  %v10191_v10 = vld [vmem:[#allocation73_spill] sm:$0xff]  ;;  %v10192_v11 = vld [vmem:[#allocation74_spill] sm:$0xff] }
 0xa07   :  { %6653 = vpow2.f32 %v5022_v3 }
 0xa12   :  { %v6652_v62 = vpop.eup %6651 }
 0xa13   :  { %v2311_v13 = vadd.f32 1.0, %v6652_v62 }
 0xa14   :  { %v6654_v5 = vpop.eup %6653 }
 0xa15   :  { %6655 = vrcp.f32 %v2311_v13  ;;  %v2318_v51 = vadd.f32 1.0, %v6654_v5 }
 0xa17   :  { %6657 = vrcp.f32 %v2318_v51 }
 0xa22   :  { %v6656_v2 = vpop.eup %6655 }
 0xa23   :  { %v2321_v32 = vmul.f32 %v6656_v2, %v2302_v53  ;;  %v10193_v53 = vld [vmem:[#allocation71_spill] sm:$0xff] }
 0xa24   :  { %v6658_v15 = vpop.eup %6657 }
 0xa25   :  { %v2322_v43 = vadd.f32 %v2321_v32, %v2221_v54  ;;  %v2324_v16 = vsub.f32 1.0, %v6658_v15  ;;  %v2326_v20 = vmul.f32 %v6658_v15, %v7879_v8  ;;  %v10186_v8 = vld [vmem:[#allocation44_spill] sm:$0xff]  ;;  %v10194_v15 = vld [vmem:[#allocation46_spill] sm:$0xff] }
 0xa27   :  { %6659 = vtanh.f32 %v2322_v43 }
 0xa34   :  { %v6660_v17 = vpop.eup %6659 }
 0xa35   :  { %v2325_v19 = vmul.f32 %v6660_v17, %v2324_v16  ;;  %v10195_v16 = vld [vmem:[#allocation47_spill] sm:$0xff]  ;;  %v10196_v17 = vld [vmem:[#allocation48_spill] sm:$0xff] }
 0xa37   :  { %v8454_v49 = vadd.f32 %v2326_v20, %v2325_v19  ;;  %v10197_v19 = vld [vmem:[#allocation49_spill] sm:$0xff]  ;;  %v10198_v20 = vld [vmem:[#allocation50_spill] sm:$0xff] }
 0xa39   :  { %v8458_v21 = vpack.c.bf16 %v8454_v49, %v8454_v49 }
 0xa3b   :  { %5754 = vmatmul.mubr.bf16.vlgmr.msra.gmra.mxu0 %v8458_v21  ;;  %5774 = vmatmul.mubr.bf16.vlgmr.msra.gmra.mxu1 %v8458_v21 }
 0xa3c   :  { %5778 = vmatpush3.bf16.msra.mxu0 %v7905_v0  ;;  %5785 = vmatprep.mubr.msk.bf16.mxu0 %vm7318_vm0, %v10077_v58  ;;  %v10187_v0 = vld [vmem:[#allocation45_spill] sm:$0xff] }
 0xa3d   :  { %5779 = vmatprep.subr.bf16.mxu0 %v10077_v58  ;;  %5790 = vmatpush3.bf16.msra.mxu1 %v8076_v45 }
 0xa3e   :  { %5791 = vmatprep.mubr.msk.bf16.mxu1 %vm7318_vm0, %v10077_v58  ;;  %5807 = vmatprep.subr.bf16.mxu1 %v10077_v58 }
 0xa40   :  { %5780 = vmatpush3.bf16.msra.mxu0 %v7912_v63 }
 0xa41   :  { %5781 = vmatprep.subr.bf16.mxu0 %v10077_v58 }
 0xa44   :  { %5782 = vmatpush3.bf16.msra.mxu0 %v10186_v8  ;;  %v10199_v8 = vld [vmem:[#allocation51_spill] sm:$0xff] }
 0xa45   :  { %5783 = vmatprep.subr.bf16.mxu0 %v10077_v58 }
 0xa48   :  { %5784 = vmatpush3.bf16.msra.mxu0 %v10187_v0  ;;  %v10200_v0 = vld [vmem:[#allocation52_spill] sm:$0xff] }
 0xa49   :  { %5795 = vmatprep.subr.bf16.mxu0 %v10077_v58 }
 0xafb   :  { %v2363_v22 = vpop.f32.mrf.mxu0  ;;  %v2403_v23 = vpop.f32.mrf.mxu1 }
 0xafc   :  { %v2364_v25 = vadd.f32 %v2363_v22, %v10188_v24  ;;  %v2404_v27 = vadd.f32 %v2403_v23, %v10189_v26  ;;  %v10201_v22 = vld [vmem:[#allocation53_spill] sm:$0xff]  ;;  %v10202_v23 = vld [vmem:[#allocation54_spill] sm:$0xff]  ;;  %v10203_v24 = vld [vmem:[#allocation55_spill] sm:$0xff] }
 0xafd   :  { %v5755_v28 = vpop.f32.mrf.mxu0  ;;  %v5775_v30 = vpop.f32.mrf.mxu1  ;;  %v10205_v26 = vld [vmem:[#allocation57_spill] sm:$0xff] }
 0xafe   :  { %v2409_v63 = vsel %vm1537_vm2, %v2404_v27, -inf  ;;  %v2420_v31 = vsel %vm1549_vm1, %v2364_v25, -inf  ;;  %v10207_v28 = vld [vmem:[#allocation59_spill] sm:$0xff]  ;;  %v10208_v30 = vld [vmem:[#allocation60_spill] sm:$0xff] }
 0xaff   :  { %2410 = vmax.xlane.f32.xlu1 %v2409_v63  ;;  %v2406_v33 = vpop.f32.mrf.mxu1  ;;  %2421 = vmax.xlane.f32.xlu0 %v2420_v31  ;;  %v2366_v34 = vpop.f32.mrf.mxu0  ;;  %v10209_v63 = vld [vmem:[#allocation61_spill] sm:$0xff]  ;;  %v10210_v31 = vld [vmem:[#allocation62_spill] sm:$0xff] }
 0xb00   :  { %v10211_v33 = vld [vmem:[#allocation63_spill] sm:$0xff]  ;;  %v10212_v34 = vld [vmem:[#allocation64_spill] sm:$0xff] }
 0xb01   :  { %v5756_v37 = vpop.f32.mrf.mxu0  ;;  %v5776_v38 = vpop.f32.mrf.mxu1 }
 0xb02   :  { %v10213_v37 = vld [vmem:[#allocation65_spill] sm:$0xff]  ;;  %v10214_v38 = vld [vmem:[#allocation66_spill] sm:$0xff] }
 0xb88   :  { %v2411_v39 = vpop.xlane.xlu1 %2410  ;;  %v2422_v40 = vpop.xlane.xlu0 %2421 }
 0xb89   :  { %v2412_v44 = vsub.f32 %v2404_v27, %v2411_v39  ;;  %v2423_v47 = vsub.f32 %v2364_v25, %v2422_v40  ;;  %v10204_v25 = vld [vmem:[#allocation56_spill] sm:$0xff]  ;;  %v10206_v27 = vld [vmem:[#allocation58_spill] sm:$0xff]  ;;  %v10215_v39 = vld [vmem:[#allocation67_spill] sm:$0xff] }
 0xb8a   :  { %v10216_v40 = vld [vmem:[#allocation68_spill] sm:$0xff] }
 0xb8b   :  { %v2413_v48 = vmul.f32 1.442695, %v2412_v44  ;;  %v2424_v50 = vmul.f32 1.442695, %v2423_v47  ;;  %v10217_v44 = vld [vmem:[#allocation69_spill] sm:$0xff]  ;;  %v10218_v47 = vld [vmem:[#allocation70_spill] sm:$0xff] }
 0xb8d   :  { %6661 = vpow2.f32 %v2413_v48 }
 0xb8e   :  { %6663 = vpow2.f32 %v2424_v50 }
 0xb9a   :  { %v6662_v1 = vpop.eup %6661 }
 0xb9b   :  { %v8480_v6 = vpop.eup %6663  ;;  %v2415_v14 = vsel %vm1537_vm2, %v6662_v1, 0.0 }
 0xb9c   :  { %2416 = vadd.xlane.f32.xlu0 %v2415_v14  ;;  %v2426_v18 = vpack.c.bf16 %v8480_v6, %v8480_v6 }
 0xb9e   :  { %5786 = vmatmul.mubr.msk.bf16.vlgmr.msra.gmra.mxu0 %vm1581_vm3, %v2426_v18 }
 0xb9f   :  { %5796 = vmatpush3.bf16.msra.mxu0 %v8091_v7  ;;  %5803 = vmatprep.mubr.msk.bf16.mxu0 %vm7318_vm0, %v10077_v58 }
 0xba0   :  { %5797 = vmatprep.subr.bf16.mxu0 %v10077_v58 }
 0xba3   :  { %5798 = vmatpush3.bf16.msra.mxu0 %v10190_v4 }
 0xba4   :  { %5799 = vmatprep.subr.bf16.mxu0 %v10077_v58 }
 0xba7   :  { %5800 = vmatpush3.bf16.msra.mxu0 %v10191_v10 }
 0xba8   :  { %5801 = vmatprep.subr.bf16.mxu0 %v10077_v58 }
 0xbab   :  { %5802 = vmatpush3.bf16.msra.mxu0 %v10192_v11 }
 0xbac   :  { %5827 = vmatprep.subr.bf16.mxu0 %v10077_v58 }
 0xc25   :  { %v2417_v57 = vpop.xlane.xlu0 %2416 }
 0xc26   :  { %6665 = vrcp.f32 %v2417_v57 }
 0xc33   :  { %v6666_v5 = vpop.eup %6665 }
 0xc34   :  { %v2419_v51 = vmul.f32 %v6666_v5, %v6662_v1  ;;  %v10220_v5 = vld [vmem:[#allocation76_spill] sm:$0xff] }
 0xc36   :  { %v2471_v2 = vmul.f32 %v2419_v51, %v10193_v53  ;;  %v10221_v51 = vld [vmem:[#allocation77_spill] sm:$0xff]  ;;  %v10222_v53 = vld [vmem:[#allocation78_spill] sm:$0xff] }
 0xc5e   :  { %v2464_v7 = vpop.f32.mrf.mxu0 }
 0xc5f   :  { %v2470_v12 = vmax.f32 %v2464_v7, 1e-30 }
 0xc60   :  { %v5787_v3 = vpop.f32.mrf.mxu0 }
 0xc61   :  { %6667 = vrcp.f32 %v2470_v12 }
 0xc62   :  { %v2467_v62 = vpop.f32.mrf.mxu0 }
 0xc64   :  { %v5788_v13 = vpop.f32.mrf.mxu0 }
 0xc6e   :  { %v6668_v54 = vpop.eup %6667 }
 0xc6f   :  { %v2473_v32 = vmul.f32 %v6668_v54, %v2471_v2  ;;  %v10223_v2 = vld [vmem:[#allocation79_spill] sm:$0xff]  ;;  %v10224_v54 = vld [vmem:[#allocation80_spill] sm:$0xff] }
 0xc71   :  { %v2474_v43 = vpack.c.bf16 %v2473_v32, %v2473_v32  ;;  %v10225_v32 = vld [vmem:[#allocation81_spill] sm:$0xff] }
 0xc73   :  { %5792 = vmatmul.mubr.msk.bf16.vlgmr.msra.gmra.mxu1 %vm1630_vm5, %v2474_v43  ;;  %v10226_v43 = vld [vmem:[#allocation82_spill] sm:$0xff] }
 0xc74   :  { %5808 = vmatpush3.bf16.msra.mxu1 %v10194_v15  ;;  %5823 = vmatprep.mubr.msk.bf16.mxu1 %vm7318_vm0, %v10077_v58 }
 0xc75   :  { %5809 = vmatprep.subr.bf16.mxu1 %v10077_v58 }
 0xc78   :  { %5810 = vmatpush3.bf16.msra.mxu1 %v10195_v16 }
 0xc79   :  { %5811 = vmatprep.subr.bf16.mxu1 %v10077_v58 }
 0xc7c   :  { %5812 = vmatpush3.bf16.msra.mxu1 %v10196_v17 }
 0xc7d   :  { %5813 = vmatprep.subr.bf16.mxu1 %v10077_v58 }
 0xc80   :  { %5814 = vmatpush3.bf16.msra.mxu1 %v10197_v19 }
 0xc81   :  { %5815 = vmatprep.subr.bf16.mxu1 %v10077_v58 }
 0xc84   :  { %5816 = vmatpush3.bf16.msra.mxu1 %v10198_v20  ;;  %v10227_v20 = vld [vmem:[#allocation83_spill] sm:$0xff] }
 0xc85   :  { %5817 = vmatprep.subr.bf16.mxu1 %v10077_v58 }
 0xc88   :  { %5818 = vmatpush3.bf16.msra.mxu1 %v10199_v8 }
 0xc89   :  { %5819 = vmatprep.subr.bf16.mxu1 %v10077_v58 }
 0xc8c   :  { %5820 = vmatpush3.bf16.msra.mxu1 %v10200_v0  ;;  %v10228_v0 = vld [vmem:[#allocation84_spill] sm:$0xff] }
 0xc8d   :  { %5821 = vmatprep.subr.bf16.mxu1 %v10077_v58 }
 0xc90   :  { %5822 = vmatpush3.bf16.msra.mxu1 %v10201_v22  ;;  %v10229_v22 = vld [vmem:[#allocation85_spill] sm:$0xff] }
 0xc91   :  { %2657 = vmatprep.subr.bf16.mxu1 %v10202_v23  ;;  %v10230_v23 = vld [vmem:[#allocation86_spill] sm:$0xff] }
 0xc93   :  { %5824 = vmatmul.mubr.bf16.vlgmr.msra.gmra.mxu1 %v8458_v21 }
 0xc94   :  { %2658 = vmatpush1.bf16.msra.mxu1 %v10203_v24  ;;  %2689 = vmatprep.mubr.bf16.mxu1 %v10093_v61  ;;  %v10231_v24 = vld [vmem:[#allocation87_spill] sm:$0xff] }
 0xc95   :  { %2659 = vmatprep.subr.bf16.mxu1 %v10204_v25  ;;  %v10232_v25 = vld [vmem:[#allocation88_spill] sm:$0xff] }
 0xc98   :  { %2660 = vmatpush1.bf16.msra.mxu1 %v10205_v26  ;;  %v10233_v26 = vld [vmem:[#allocation89_spill] sm:$0xff] }
 0xc99   :  { %2661 = vmatprep.subr.bf16.mxu1 %v10206_v27  ;;  %v10234_v27 = vld [vmem:[#allocation90_spill] sm:$0xff] }
 0xc9c   :  { %2662 = vmatpush1.bf16.msra.mxu1 %v10207_v28 }
 0xc9d   :  { %2663 = vmatprep.subr.bf16.mxu1 %v10208_v30 }
 0xca0   :  { %2664 = vmatpush1.bf16.msra.mxu1 %v10209_v63 }
 0xca1   :  { %2665 = vmatprep.subr.bf16.mxu1 %v10210_v31 }
 0xca4   :  { %2666 = vmatpush1.bf16.msra.mxu1 %v10211_v33 }
 0xca5   :  { %2667 = vmatprep.subr.bf16.mxu1 %v10212_v34 }
 0xca8   :  { %2668 = vmatpush1.bf16.msra.mxu1 %v10213_v37 }
 0xca9   :  { %2669 = vmatprep.subr.bf16.mxu1 %v10214_v38  ;;  %v10235_v38 = vld [vmem:[#allocation91_spill] sm:$0xff] }
 0xcac   :  { %2670 = vmatpush1.bf16.msra.mxu1 %v10215_v39  ;;  %v10236_v39 = vld [vmem:[#allocation92_spill] sm:$0xff] }
 0xcad   :  { %2671 = vmatprep.subr.bf16.mxu1 %v10216_v40  ;;  %v10237_v40 = vld [vmem:[#allocation93_spill] sm:$0xff] }
 0xcb0   :  { %2672 = vmatpush1.bf16.msra.mxu1 %v10217_v44  ;;  %v10238_v44 = vld [vmem:[#allocation94_spill] sm:$0xff] }
 0xcb1   :  { %2759 = vmatprep.subr.bf16.mxu1 %v10218_v47  ;;  %v10239_v47 = vld [vmem:[#allocation95_spill] sm:$0xff] }
 0xd33   :  { %v2512_v48 = vpop.f32.mrf.mxu1 }
 0xd34   :  { %v2518_v50 = vmul.f32 %v8480_v6, %v2512_v48  ;;  %v10219_v6 = vld [vmem:[#allocation75_spill] sm:$0xff]  ;;  %v10240_v48 = vld [vmem:[#allocation96_spill] sm:$0xff] }
 0xd35   :  { %v5793_v1 = vpop.f32.mrf.mxu1 }
 0xd36   :  { %v2519_v14 = vsel %vm1549_vm1, %v2518_v50, 0.0  ;;  %v10242_v1 = vld [vmem:[#allocation98_spill] sm:$0xff] }
 0xd37   :  { %2520 = vadd.xlane.f32.xlu1 %v2519_v14  ;;  %v2515_v18 = vpop.f32.mrf.mxu1  ;;  %v10243_v14 = vld [vmem:[#allocation99_spill] sm:$0xff] }
 0xd38   :  { %v10244_v18 = vld [vmem:[#allocation100_spill] sm:$0xff] }
 0xd39   :  { %v5794_v4 = vpop.f32.mrf.mxu1 }
 0xd3a   :  { %v10245_v4 = vld [vmem:[#allocation101_spill] sm:$0xff] }
 0xd53   :  { %v2603_v10 = vpop.f32.mrf.mxu1 }
 0xd55   :  { %v5825_v11 = vpop.f32.mrf.mxu1 }
 0xd56   :  { %v10247_v11 = vld [vmem:[#allocation103_spill] sm:$0xff] }
 0xd57   :  { %v2606_v57 = vpop.f32.mrf.mxu1 }
 0xd58   :  { %v10248_v57 = vld [vmem:[#allocation104_spill] sm:$0xff] }
 0xd59   :  { %v5826_v7 = vpop.f32.mrf.mxu1 }
 0xd5a   :  { %v10249_v7 = vld [vmem:[#allocation105_spill] sm:$0xff] }
 0xdc0   :  { %v2521_v12 = vpop.xlane.xlu1 %2520 }
 0xdc1   :  { %6669 = vrcp.f32 %v2521_v12  ;;  %v10250_v12 = vld [vmem:[#allocation106_spill] sm:$0xff] }
 0xdce   :  { %v6670_v3 = vpop.eup %6669 }
 0xdcf   :  { %v2523_v62 = vmul.f32 %v6670_v3, %v2518_v50  ;;  %v10241_v50 = vld [vmem:[#allocation97_spill] sm:$0xff]  ;;  %v10251_v3 = vld [vmem:[#allocation107_spill] sm:$0xff] }
 0xdd1   :  { %v2524_v13 = vpack.c.bf16 %v2523_v62, %v2523_v62  ;;  %2653 = vst.msk [vmem:[#allocation18 + $0x2] sm:$0x3] %vm1549_vm1, %v2523_v62  ;;  %v10252_v62 = vld [vmem:[#allocation108_spill] sm:$0xff] }
 0xdd3   :  { %5804 = vmatmul.mubr.msk.bf16.vlgmr.msra.gmra.mxu0 %vm1581_vm3, %v2524_v13  ;;  %v10253_v13 = vld [vmem:[#allocation109_spill] sm:$0xff] }
 0xdd4   :  { %5828 = vmatpush3.bf16.msra.mxu0 %v10219_v6  ;;  %5843 = vmatprep.mubr.msk.bf16.mxu0 %vm7318_vm0, %v10077_v58  ;;  %v10254_v6 = vld [vmem:[#allocation110_spill] sm:$0xff] }
 0xdd5   :  { %5829 = vmatprep.subr.bf16.mxu0 %v10077_v58 }
 0xdd8   :  { %5830 = vmatpush3.bf16.msra.mxu0 %v10220_v5  ;;  %v10255_v5 = vld [vmem:[#allocation111_spill] sm:$0xff] }
 0xdd9   :  { %5831 = vmatprep.subr.bf16.mxu0 %v10077_v58 }
 0xddc   :  { %5832 = vmatpush3.bf16.msra.mxu0 %v10221_v51  ;;  %v10256_v51 = vld [vmem:[#allocation112_spill] sm:$0xff] }
 0xddd   :  { %5833 = vmatprep.subr.bf16.mxu0 %v10077_v58 }
 0xde0   :  { %5834 = vmatpush3.bf16.msra.mxu0 %v10222_v53  ;;  %v10257_v53 = vld [vmem:[#allocation113_spill] sm:$0xff] }
 0xde1   :  { %5835 = vmatprep.subr.bf16.mxu0 %v10077_v58 }
 0xde4   :  { %5836 = vmatpush3.bf16.msra.mxu0 %v10223_v2  ;;  %v10258_v2 = vld [vmem:[#allocation114_spill] sm:$0xff] }
 0xde5   :  { %5837 = vmatprep.subr.bf16.mxu0 %v10077_v58 }
 0xde8   :  { %5838 = vmatpush3.bf16.msra.mxu0 %v10224_v54  ;;  %v10259_v54 = vld [vmem:[#allocation115_spill] sm:$0xff] }
 0xde9   :  { %5839 = vmatprep.subr.bf16.mxu0 %v10077_v58 }
 0xdec   :  { %5840 = vmatpush3.bf16.msra.mxu0 %v10225_v32  ;;  %v10260_v32 = vld [vmem:[#allocation116_spill] sm:$0xff] }
 0xded   :  { %5841 = vmatprep.subr.bf16.mxu0 %v10077_v58 }
 0xdf0   :  { %5842 = vmatpush3.bf16.msra.mxu0 %v10226_v43  ;;  %v10261_v43 = vld [vmem:[#allocation117_spill] sm:$0xff] }
 0xdf1   :  { %5847 = vmatprep.subr.bf16.mxu0 %v10077_v58 }
 0xe93   :  { %v2562_v15 = vpop.f32.mrf.mxu0 }
 0xe94   :  { %v2568_v16 = vpack.c.bf16 %v2562_v15, %v2562_v15  ;;  %v10262_v15 = vld [vmem:[#allocation118_spill] sm:$0xff] }
 0xe95   :  { %v5805_v17 = vpop.f32.mrf.mxu0 }
 0xe96   :  { %5844 = vmatmul.mubr.bf16.vlgmr.msra.gmra.mxu0 %v2568_v16  ;;  %v10263_v16 = vld [vmem:[#allocation119_spill] sm:$0xff]  ;;  %v10264_v17 = vld [vmem:[#allocation120_spill] sm:$0xff] }
 0xe97   :  { %v2565_v19 = vpop.f32.mrf.mxu0  ;;  %5848 = vmatpush3.bf16.msra.mxu0 %v10227_v20  ;;  %5863 = vmatprep.mubr.msk.bf16.mxu0 %vm7318_vm0, %v10077_v58  ;;  %v10267_v20 = vld [vmem:[#allocation123_spill] sm:$0xff] }
 0xe98   :  { %5849 = vmatprep.subr.bf16.mxu0 %v10077_v58  ;;  %v10266_v19 = vld [vmem:[#allocation122_spill] sm:$0xff] }
 0xe99   :  { %v5806_v8 = vpop.f32.mrf.mxu0 }
 0xe9a   :  { %v10268_v8 = vld [vmem:[#allocation124_spill] sm:$0xff] }
 0xe9b   :  { %5850 = vmatpush3.bf16.msra.mxu0 %v10228_v0  ;;  %v10269_v0 = vld [vmem:[#allocation125_spill] sm:$0xff] }
 0xe9c   :  { %5851 = vmatprep.subr.bf16.mxu0 %v10077_v58 }
 0xe9f   :  { %5852 = vmatpush3.bf16.msra.mxu0 %v10229_v22  ;;  %v10270_v22 = vld [vmem:[#allocation126_spill] sm:$0xff] }
 0xea0   :  { %5853 = vmatprep.subr.bf16.mxu0 %v10077_v58 }
 0xea3   :  { %5854 = vmatpush3.bf16.msra.mxu0 %v10230_v23  ;;  %v10271_v23 = vld [vmem:[#allocation127_spill] sm:$0xff] }
 0xea4   :  { %5855 = vmatprep.subr.bf16.mxu0 %v10077_v58 }
 0xea7   :  { %5856 = vmatpush3.bf16.msra.mxu0 %v10231_v24  ;;  %v10272_v24 = vld [vmem:[#allocation128_spill] sm:$0xff] }
 0xea8   :  { %5857 = vmatprep.subr.bf16.mxu0 %v10077_v58 }
 0xeab   :  { %5858 = vmatpush3.bf16.msra.mxu0 %v10232_v25  ;;  %v10273_v25 = vld [vmem:[#allocation129_spill] sm:$0xff] }
 0xeac   :  { %5859 = vmatprep.subr.bf16.mxu0 %v10077_v58 }
 0xeaf   :  { %5860 = vmatpush3.bf16.msra.mxu0 %v10233_v26  ;;  %v10274_v26 = vld [vmem:[#allocation130_spill] sm:$0xff] }
 0xeb0   :  { %5861 = vmatprep.subr.bf16.mxu0 %v10077_v58 }
 0xeb3   :  { %5862 = vmatpush3.bf16.msra.mxu0 %v10234_v27  ;;  %v10275_v27 = vld [vmem:[#allocation131_spill] sm:$0xff] }
 0xeb4   :  { %5867 = vmatprep.subr.bf16.mxu0 %v10077_v58 }
 0xf56   :  { %v2643_v28 = vpop.f32.mrf.mxu0 }
 0xf57   :  { %v2644_v30 = vadd.f32 %v2643_v28, %v2603_v10  ;;  %v10246_v10 = vld [vmem:[#allocation102_spill] sm:$0xff]  ;;  %v10276_v28 = vld [vmem:[#allocation132_spill] sm:$0xff] }
 0xf58   :  { %v5845_v63 = vpop.f32.mrf.mxu0 }
 0xf59   :  { %6671 = vtanh.f32 %v2644_v30  ;;  %v10277_v30 = vld [vmem:[#allocation133_spill] sm:$0xff] }
 0xf5a   :  { %v2646_v31 = vpop.f32.mrf.mxu0  ;;  %v8639_v63 = vld [vmem:[#allocation11 + $0x20] ss:$12 sps:$4 sm:$0xff]  }
 0xf5b   :  { %v8642_v31 = vld [vmem:[#allocation11 + $0x4] ss:$12 sps:$4 sm:$0xff]  }
 0xf5c   :  { %v5846_v33 = vpop.f32.mrf.mxu0 }
 0xf5d   :  { %v8646_v33 = vld [vmem:[#allocation11] ss:$12 sps:$4 sm:$0xff]  }
 0xf66   :  { %v6672_v34 = vpop.eup %6671 }
 0xf67   :  { %2651 = vst [vmem:[#allocation17 + $0x2] sm:$0x3] %v6672_v34  ;;  %v2656_v37 = vpack.c.bf16 %v6672_v34, %v6672_v34  ;;  %v8649_v34 = vld [vmem:[#allocation11 + $0x8] ss:$12 sps:$4 sm:$0xff]  }
 0xf69   :  { %2690 = vmatmul.mubr.bf16.vlgmr.msra.gmra.mxu1 %v2656_v37  ;;  %5864 = vmatmul.mubr.bf16.vlgmr.msra.gmra.mxu0 %v2656_v37  ;;  %v8652_v37 = vld [vmem:[#allocation13 + $0xac] ss:$12 sps:$4 sm:$0xff]  }
 0xf6a   :  { %2760 = vmatpush1.bf16.msra.mxu1 %v10235_v38  ;;  %5868 = vmatpush3.bf16.msra.mxu0 %v10236_v39 }
 0xf6b   :  { %2761 = vmatprep.subr.bf16.mxu1 %v10237_v40  ;;  %5869 = vmatprep.subr.bf16.mxu0 %v10077_v58 }
 0xf6c   :  { %2791 = vmatprep.mubr.bf16.mxu1 %v10093_v61  ;;  %5883 = vmatprep.mubr.msk.bf16.mxu0 %vm7318_vm0, %v10077_v58 }
 0xf6e   :  { %2762 = vmatpush1.bf16.msra.mxu1 %v10238_v44  ;;  %5870 = vmatpush3.bf16.msra.mxu0 %v10239_v47 }
 0xf6f   :  { %2763 = vmatprep.subr.bf16.mxu1 %v10240_v48  ;;  %5871 = vmatprep.subr.bf16.mxu0 %v10077_v58 }
 0xf72   :  { %2764 = vmatpush1.bf16.msra.mxu1 %v10241_v50  ;;  %5872 = vmatpush3.bf16.msra.mxu0 %v10242_v1 }
 0xf73   :  { %2765 = vmatprep.subr.bf16.mxu1 %v10243_v14  ;;  %5873 = vmatprep.subr.bf16.mxu0 %v10077_v58 }
 0xf76   :  { %2766 = vmatpush1.bf16.msra.mxu1 %v10244_v18  ;;  %5874 = vmatpush3.bf16.msra.mxu0 %v10245_v4 }
 0xf77   :  { %2767 = vmatprep.subr.bf16.mxu1 %v10246_v10  ;;  %5875 = vmatprep.subr.bf16.mxu0 %v10077_v58 }
 0xf7a   :  { %2768 = vmatpush1.bf16.msra.mxu1 %v10247_v11  ;;  %5876 = vmatpush3.bf16.msra.mxu0 %v10248_v57  ;;  %v2655_v11 = vld [vmem:[#allocation2 + $0xc] sm:$0x3f] }
 0xf7b   :  { %2769 = vmatprep.subr.bf16.mxu1 %v10249_v7  ;;  %5877 = vmatprep.subr.bf16.mxu0 %v10077_v58 }
 0xf7e   :  { %2770 = vmatpush1.bf16.msra.mxu1 %v10250_v12  ;;  %5878 = vmatpush3.bf16.msra.mxu0 %v10251_v3 }
 0xf7f   :  { %2771 = vmatprep.subr.bf16.mxu1 %v10252_v62  ;;  %5879 = vmatprep.subr.bf16.mxu0 %v10077_v58 }
 0xf82   :  { %2772 = vmatpush1.bf16.msra.mxu1 %v10253_v13  ;;  %5880 = vmatpush3.bf16.msra.mxu0 %v10254_v6 }
 0xf83   :  { %2773 = vmatprep.subr.bf16.mxu1 %v10255_v5  ;;  %5881 = vmatprep.subr.bf16.mxu0 %v10077_v58 }
 0xf86   :  { %2774 = vmatpush1.bf16.msra.mxu1 %v10256_v51  ;;  %5882 = vmatpush3.bf16.msra.mxu0 %v10257_v53 }
 0xf87   :  { %2867 = vmatprep.subr.bf16.mxu1 %v10258_v2  ;;  %5887 = vmatprep.subr.bf16.mxu0 %v10077_v58 }
 0xf89   :  { %2792 = vmatmul.mubr.bf16.vlgmr.msra.gmra.mxu1 %v8370_v52  ;;  %5884 = vmatmul.mubr.bf16.vlgmr.msra.gmra.mxu0 %v8370_v52  ;;  %v10265_v52 = vld [vmem:[#allocation121_spill] sm:$0xff] }
 0xf8a   :  { %2868 = vmatpush1.bf16.msra.mxu1 %v10259_v54  ;;  %5888 = vmatpush3.bf16.msra.mxu0 %v10260_v32 }
 0xf8b   :  { %2869 = vmatprep.subr.bf16.mxu1 %v10261_v43  ;;  %5889 = vmatprep.subr.bf16.mxu0 %v10077_v58 }
 0xf8c   :  { %2899 = vmatprep.mubr.bf16.mxu1 %v10093_v61  ;;  %5903 = vmatprep.mubr.msk.bf16.mxu0 %vm7318_vm0, %v10077_v58 }
 0xf8e   :  { %2870 = vmatpush1.bf16.msra.mxu1 %v10262_v15  ;;  %5890 = vmatpush3.bf16.msra.mxu0 %v10263_v16 }
 0xf8f   :  { %2871 = vmatprep.subr.bf16.mxu1 %v10264_v17  ;;  %5891 = vmatprep.subr.bf16.mxu0 %v10077_v58 }
 0xf92   :  { %2872 = vmatpush1.bf16.msra.mxu1 %v10265_v52  ;;  %5892 = vmatpush3.bf16.msra.mxu0 %v10266_v19 }
 0xf93   :  { %2873 = vmatprep.subr.bf16.mxu1 %v10267_v20  ;;  %5893 = vmatprep.subr.bf16.mxu0 %v10077_v58 }
 0xf96   :  { %2874 = vmatpush1.bf16.msra.mxu1 %v10268_v8  ;;  %5894 = vmatpush3.bf16.msra.mxu0 %v10269_v0 }
 0xf97   :  { %2875 = vmatprep.subr.bf16.mxu1 %v10270_v22  ;;  %5895 = vmatprep.subr.bf16.mxu0 %v10077_v58 }
 0xf9a   :  { %2876 = vmatpush1.bf16.msra.mxu1 %v10271_v23  ;;  %5896 = vmatpush3.bf16.msra.mxu0 %v10272_v24 }
 0xf9b   :  { %2877 = vmatprep.subr.bf16.mxu1 %v10273_v25  ;;  %5897 = vmatprep.subr.bf16.mxu0 %v10077_v58 }
 0xf9e   :  { %2878 = vmatpush1.bf16.msra.mxu1 %v10274_v26  ;;  %5898 = vmatpush3.bf16.msra.mxu0 %v10275_v27 }
 0xf9f   :  { %2879 = vmatprep.subr.bf16.mxu1 %v10276_v28  ;;  %5899 = vmatprep.subr.bf16.mxu0 %v10077_v58 }
 0xfa2   :  { %2880 = vmatpush1.bf16.msra.mxu1 %v10277_v30  ;;  %5900 = vmatpush3.bf16.msra.mxu0 %v8639_v63 }
 0xfa3   :  { %2881 = vmatprep.subr.bf16.mxu1 %v8642_v31  ;;  %5901 = vmatprep.subr.bf16.mxu0 %v10077_v58 }
 0xfa6   :  { %2882 = vmatpush1.bf16.msra.mxu1 %v8646_v33  ;;  %5902 = vmatpush3.bf16.msra.mxu0 %v8649_v34 }
 0xfa7   :  { %2948 = vmatprep.subr.bf16.mxu1 %v8652_v37  ;;  %5907 = vmatprep.subr.bf16.mxu0 %v10077_v58 }
0x1029   :  { %v2691_v38 = vpop.f32.mrf.mxu1  ;;  %v2732_v39 = vpop.f32.mrf.mxu0 }
0x102a   :  { %v2755_v4 = vrot.slane %v2732_v39, %v7610_v29 }
0x102b   :  { %v2693_v40 = vpop.f32.mrf.mxu1  ;;  %v5865_v44 = vpop.f32.mrf.mxu0 }
0x102c   :  { %v2741_v14 = vcombine.low %v2691_v38, %v2693_v40  ;;  %v8670_v40 = vld [vmem:[#allocation13 + $0xa8] ss:$12 sps:$4 sm:$0xff]   ;;  %v8673_v44 = vld [vmem:[#allocation13 + $0xb0] ss:$12 sps:$4 sm:$0xff]  }
0x102d   :  { %v2695_v47 = vpop.f32.mrf.mxu1  ;;  %v2735_v48 = vpop.f32.mrf.mxu0 }
0x102e   :  { %v2748_v18 = vrot.slane %v2741_v14, %v7610_v29  ;;  %v8676_v47 = vld [vmem:[#allocation13 + $0x94] ss:$12 sps:$4 sm:$0xff]   ;;  %v8686_v48 = vld [vmem:[#allocation13 + $0x98] ss:$12 sps:$4 sm:$0xff]  }
0x102f   :  { %v2696_v50 = vpop.f32.mrf.mxu1  ;;  %v5866_v1 = vpop.f32.mrf.mxu0  ;;  %v8696_v14 = vld [vmem:[#allocation13 + $0x80] ss:$12 sps:$4 sm:$0xff]  }
0x1030   :  { %v2756_v10 = vcombine.low %v2748_v18, %v2755_v4  ;;  %v8689_v50 = vld [vmem:[#allocation13 + $0x7c] ss:$12 sps:$4 sm:$0xff]   ;;  %v8693_v1 = vld [vmem:[#allocation13 + $0x78] ss:$12 sps:$4 sm:$0xff]   ;;  %v8703_v4 = vld [vmem:[#allocation13 + $0x60] ss:$12 sps:$4 sm:$0xff]  }
0x1031   :  { %v8699_v18 = vld [vmem:[#allocation13 + $0x64] ss:$12 sps:$4 sm:$0xff]  }
0x1032   :  { %v2758_v12 = vadd.f32 %v2756_v10, %v2655_v11  ;;  %v8706_v10 = vld [vmem:[#allocation13 + $0x68] ss:$12 sps:$4 sm:$0xff]   ;;  %v8709_v11 = vld [vmem:[#allocation13 + $0x4c] ss:$12 sps:$4 sm:$0xff]  }
0x1034   :  { %v2848_v43 = vrot.slane %v2758_v12, 2  ;;  %v2858_v23 = vrot.slane %v2758_v12, 4 }
0x1049   :  { %v2793_v57 = vpop.f32.mrf.mxu1  ;;  %v2834_v7 = vpop.f32.mrf.mxu0 }
0x104a   :  { %v2794_v3 = vadd.f32 %v2793_v57, %v7620_v35  ;;  %v2835_v8 = vadd.f32 %v2834_v7, %v7632_v59  ;;  %v8713_v57 = vld [vmem:[#allocation13 + $0x48] ss:$12 sps:$4 sm:$0xff]   ;;  %v8716_v7 = vld [vmem:[#allocation13 + $0x50] ss:$12 sps:$4 sm:$0xff]  }
0x104b   :  { %v2795_v62 = vpop.f32.mrf.mxu1  ;;  %v5885_v13 = vpop.f32.mrf.mxu0 }
0x104c   :  { %v2840_v6 = vadd.f32 %v2794_v3, %v2758_v12  ;;  %v2796_v2 = vadd.f32 %v2795_v62, %v7626_v41  ;;  %v8719_v12 = vld [vmem:[#allocation13 + $0x34] ss:$12 sps:$4 sm:$0xff]   ;;  %v8723_v3 = vld [vmem:[#allocation13 + $0x30] ss:$12 sps:$4 sm:$0xff]   ;;  %v8726_v62 = vld [vmem:[#allocation13 + $0x38] ss:$12 sps:$4 sm:$0xff]  }
0x104d   :  { %v2797_v5 = vpop.f32.mrf.mxu1  ;;  %v2837_v51 = vpop.f32.mrf.mxu0  ;;  %v8729_v13 = vld [vmem:[#allocation13 + $0x1c] ss:$12 sps:$4 sm:$0xff]  }
0x104e   :  { %v5026_v53 = vmul.f32 -1.442695, %v2840_v6  ;;  %v2850_v15 = vadd.f32 %v2848_v43, %v2796_v2  ;;  %v8733_v6 = vld [vmem:[#allocation13 + $0x18] ss:$12 sps:$4 sm:$0xff]   ;;  %v8736_v5 = vld [vmem:[#allocation13 + $0x20] ss:$12 sps:$4 sm:$0xff]  }
0x104f   :  { %v2798_v54 = vpop.f32.mrf.mxu1  ;;  %v5886_v32 = vpop.f32.mrf.mxu0  ;;  %v8739_v51 = vld [vmem:[#allocation13 + $0x4] ss:$12 sps:$4 sm:$0xff]   ;;  %v8746_v2 = vld [vmem:[#allocation13 + $0x8] ss:$12 sps:$4 sm:$0xff]  }
0x1050   :  { %6673 = vpow2.f32 %v5026_v53  ;;  %v5027_v16 = vmul.f32 -1.442695, %v2850_v15  ;;  %v8743_v53 = vld [vmem:[#allocation13] ss:$12 sps:$4 sm:$0xff]   ;;  %v8756_v54 = vld [vmem:[%s10061_s25 + $0x38] sm:$0xff]  }
0x1051   :  { %10278 = vst [vmem:[#allocation28_spill] sm:$0xff] %v8756_v54  ;;  %v8762_v32 = vld [vmem:[%s10062_s27 + $0x38] sm:$0xff]   ;;  %v8780_v43 = vld [vmem:[%s10062_s27 + $0x30] sm:$0xff]   ;;  %v8788_v15 = vld [vmem:[%s10061_s25 + $0x28] sm:$0xff]  }
0x1052   :  { %6675 = vpow2.f32 %v5027_v16  ;;  %10279 = vst [vmem:[#allocation29_spill] sm:$0xff] %v8762_v32  ;;  %10281 = vst [vmem:[#allocation31_spill] sm:$0xff] %v8780_v43  ;;  %v8794_v16 = vld [vmem:[%s10062_s27 + $0x28] sm:$0xff]  }
0x1053   :  { %10282 = vst [vmem:[#allocation32_spill] sm:$0xff] %v8788_v15  ;;  %10283 = vst [vmem:[#allocation33_spill] sm:$0xff] %v8794_v16 }
0x105d   :  { %v6674_v17 = vpop.eup %6673 }
0x105e   :  { %v2844_v52 = vadd.f32 1.0, %v6674_v17  ;;  %v8802_v17 = vld [vmem:[%s10061_s25 + $0x20] sm:$0xff]  }
0x105f   :  { %v6676_v19 = vpop.eup %6675  ;;  %10284 = vst [vmem:[#allocation34_spill] sm:$0xff] %v8802_v17 }
0x1060   :  { %6677 = vrcp.f32 %v2844_v52  ;;  %v2854_v20 = vadd.f32 1.0, %v6676_v19  ;;  %v8808_v52 = vld [vmem:[%s10062_s27 + $0x20] sm:$0xff]   ;;  %v8816_v19 = vld [vmem:[%s10061_s25 + $0x18] sm:$0xff]  }
0x1061   :  { %10285 = vst [vmem:[#allocation35_spill] sm:$0xff] %v8808_v52  ;;  %10286 = vst [vmem:[#allocation36_spill] sm:$0xff] %v8816_v19 }
0x1062   :  { %6679 = vrcp.f32 %v2854_v20  ;;  %v8822_v20 = vld [vmem:[%s10062_s27 + $0x18] sm:$0xff]  }
0x1063   :  { %10287 = vst [vmem:[#allocation37_spill] sm:$0xff] %v8822_v20 }
0x106d   :  { %v6678_v0 = vpop.eup %6677 }
0x106e   :  { %v2857_v22 = vmul.f32 %v6678_v0, %v2835_v8  ;;  %v8830_v8 = vld [vmem:[%s10061_s25 + $0x10] sm:$0xff]  }
0x106f   :  { %v6680_v25 = vpop.eup %6679  ;;  %10288 = vst [vmem:[#allocation38_spill] sm:$0xff] %v8830_v8  ;;  %v8836_v0 = vld [vmem:[%s10062_s27 + $0x10] sm:$0xff]  }
0x1070   :  { %v2860_v24 = vadd.f32 %v2858_v23, %v2857_v22  ;;  %v2862_v26 = vsub.f32 1.0, %v6680_v25  ;;  %v2864_v30 = vmul.f32 %v6680_v25, %v8366_v56  ;;  %v8683_v56 = vld [vmem:[#allocation13 + $0x90] ss:$12 sps:$4 sm:$0xff]   ;;  %10289 = vst [vmem:[#allocation39_spill] sm:$0xff] %v8836_v0  ;;  %v8844_v22 = vld [vmem:[%s10061_s25 + $0x8] sm:$0xff]  }
0x1071   :  { %10290 = vst [vmem:[#allocation40_spill] sm:$0xff] %v8844_v22  ;;  %v8850_v23 = vld [vmem:[%s10062_s27 + $0x8] sm:$0xff]   ;;  %v8864_v25 = vld [vmem:[%s10062_s27] sm:$0xff]  }
0x1072   :  { %6681 = vtanh.f32 %v2860_v24  ;;  %10291 = vst [vmem:[#allocation44_spill] sm:$0xff] %v8850_v23  ;;  %v8858_v24 = vld [vmem:[%s10061_s25] sm:$0xff]   ;;  %10293 = vst [vmem:[#allocation42_spill] sm:$0xff] %v8864_v25 }
0x1073   :  { %10292 = vst [vmem:[#allocation45_spill] sm:$0xff] %v8858_v24 }
0x107f   :  { %v6682_v27 = vpop.eup %6681 }
0x1080   :  { %v2863_v28 = vmul.f32 %v6682_v27, %v2862_v26 }
0x1082   :  { %v8662_v38 = vadd.f32 %v2864_v30, %v2863_v28 }
0x1084   :  { %v8666_v39 = vpack.c.bf16 %v8662_v38, %v8662_v38 }
0x1086   :  { %2900 = vmatmul.mubr.bf16.vlgmr.msra.gmra.mxu1 %v8666_v39  ;;  %5904 = vmatmul.mubr.bf16.vlgmr.msra.gmra.mxu0 %v8666_v39 }
0x1087   :  { %2949 = vmatpush1.bf16.msra.mxu1 %v8670_v40  ;;  %5908 = vmatpush3.bf16.msra.mxu0 %v8673_v44 }
0x1088   :  { %2950 = vmatprep.subr.bf16.mxu1 %v8676_v47  ;;  %5909 = vmatprep.subr.bf16.mxu0 %v10077_v58 }
0x1089   :  { %2980 = vmatprep.mubr.bf16.mxu1 %v10093_v61  ;;  %5923 = vmatprep.mubr.msk.bf16.mxu0 %vm7318_vm0, %v10077_v58 }
0x108b   :  { %2951 = vmatpush1.bf16.msra.mxu1 %v8683_v56  ;;  %5910 = vmatpush3.bf16.msra.mxu0 %v8686_v48 }
0x108c   :  { %2952 = vmatprep.subr.bf16.mxu1 %v8689_v50  ;;  %5911 = vmatprep.subr.bf16.mxu0 %v10077_v58 }
0x108f   :  { %2953 = vmatpush1.bf16.msra.mxu1 %v8693_v1  ;;  %5912 = vmatpush3.bf16.msra.mxu0 %v8696_v14 }
0x1090   :  { %2954 = vmatprep.subr.bf16.mxu1 %v8699_v18  ;;  %5913 = vmatprep.subr.bf16.mxu0 %v10077_v58 }
0x1093   :  { %2955 = vmatpush1.bf16.msra.mxu1 %v8703_v4  ;;  %5914 = vmatpush3.bf16.msra.mxu0 %v8706_v10 }
0x1094   :  { %2956 = vmatprep.subr.bf16.mxu1 %v8709_v11  ;;  %5915 = vmatprep.subr.bf16.mxu0 %v10077_v58 }
0x1097   :  { %2957 = vmatpush1.bf16.msra.mxu1 %v8713_v57  ;;  %5916 = vmatpush3.bf16.msra.mxu0 %v8716_v7 }
0x1098   :  { %2958 = vmatprep.subr.bf16.mxu1 %v8719_v12  ;;  %5917 = vmatprep.subr.bf16.mxu0 %v10077_v58 }
0x109b   :  { %2959 = vmatpush1.bf16.msra.mxu1 %v8723_v3  ;;  %5918 = vmatpush3.bf16.msra.mxu0 %v8726_v62 }
0x109c   :  { %2960 = vmatprep.subr.bf16.mxu1 %v8729_v13  ;;  %5919 = vmatprep.subr.bf16.mxu0 %v10077_v58 }
0x109f   :  { %2961 = vmatpush1.bf16.msra.mxu1 %v8733_v6  ;;  %5920 = vmatpush3.bf16.msra.mxu0 %v8736_v5 }
0x10a0   :  { %2962 = vmatprep.subr.bf16.mxu1 %v8739_v51  ;;  %5921 = vmatprep.subr.bf16.mxu0 %v10077_v58 }
0x10a3   :  { %2963 = vmatpush1.bf16.msra.mxu1 %v8743_v53  ;;  %5922 = vmatpush3.bf16.msra.mxu0 %v8746_v2 }
0x10a4   :  { %5927 = vmatprep.subr.bf16.mxu1 %v10077_v58  ;;  %5947 = vmatprep.subr.bf16.mxu0 %v10077_v58 }
0x10a6   :  { %2981 = vmatmul.mubr.bf16.vlgmr.msra.gmra.mxu1 %v8458_v21  ;;  %5924 = vmatmul.mubr.bf16.vlgmr.msra.gmra.mxu0 %v8458_v21  ;;  %v8774_v21 = vld [vmem:[%s10061_s25 + $0x30] sm:$0xff]  }
0x10a7   :  { %5928 = vmatpush3.bf16.msra.mxu1 %v8756_v54  ;;  %5948 = vmatpush3.bf16.msra.mxu0 %v8762_v32  ;;  %10280 = vst [vmem:[#allocation30_spill] sm:$0xff] %v8774_v21 }
0x10a8   :  { %5929 = vmatprep.subr.bf16.mxu1 %v10077_v58  ;;  %5949 = vmatprep.subr.bf16.mxu0 %v10077_v58 }
0x10a9   :  { %5943 = vmatprep.mubr.msk.bf16.mxu1 %vm7318_vm0, %v10077_v58  ;;  %5963 = vmatprep.mubr.msk.bf16.mxu0 %vm7318_vm0, %v10077_v58 }
0x10ab   :  { %5930 = vmatpush3.bf16.msra.mxu1 %v8774_v21  ;;  %5950 = vmatpush3.bf16.msra.mxu0 %v8780_v43 }
0x10ac   :  { %5931 = vmatprep.subr.bf16.mxu1 %v10077_v58  ;;  %5951 = vmatprep.subr.bf16.mxu0 %v10077_v58 }
0x10af   :  { %5932 = vmatpush3.bf16.msra.mxu1 %v8788_v15  ;;  %5952 = vmatpush3.bf16.msra.mxu0 %v8794_v16 }
0x10b0   :  { %5933 = vmatprep.subr.bf16.mxu1 %v10077_v58  ;;  %5953 = vmatprep.subr.bf16.mxu0 %v10077_v58 }
0x10b3   :  { %5934 = vmatpush3.bf16.msra.mxu1 %v8802_v17  ;;  %5954 = vmatpush3.bf16.msra.mxu0 %v8808_v52 }
0x10b4   :  { %5935 = vmatprep.subr.bf16.mxu1 %v10077_v58  ;;  %5955 = vmatprep.subr.bf16.mxu0 %v10077_v58 }
0x10b7   :  { %5936 = vmatpush3.bf16.msra.mxu1 %v8816_v19  ;;  %5956 = vmatpush3.bf16.msra.mxu0 %v8822_v20 }
0x10b8   :  { %5937 = vmatprep.subr.bf16.mxu1 %v10077_v58  ;;  %5957 = vmatprep.subr.bf16.mxu0 %v10077_v58 }
0x10bb   :  { %5938 = vmatpush3.bf16.msra.mxu1 %v8830_v8  ;;  %5958 = vmatpush3.bf16.msra.mxu0 %v8836_v0 }
0x10bc   :  { %5939 = vmatprep.subr.bf16.mxu1 %v10077_v58  ;;  %5959 = vmatprep.subr.bf16.mxu0 %v10077_v58 }
0x10bf   :  { %5940 = vmatpush3.bf16.msra.mxu1 %v8844_v22  ;;  %5960 = vmatpush3.bf16.msra.mxu0 %v8850_v23 }
0x10c0   :  { %5941 = vmatprep.subr.bf16.mxu1 %v10077_v58  ;;  %5961 = vmatprep.subr.bf16.mxu0 %v10077_v58 }
0x10c3   :  { %5942 = vmatpush3.bf16.msra.mxu1 %v8858_v24  ;;  %5962 = vmatpush3.bf16.msra.mxu0 %v8864_v25 }
0x10c4   :  { %5967 = vmatprep.subr.bf16.mxu1 %v10077_v58  ;;  %5979 = vmatprep.subr.bf16.mxu0 %v10077_v58 }
0x1146   :  { %v2901_v26 = vpop.f32.mrf.mxu1  ;;  %v2942_v27 = vpop.f32.mrf.mxu0 }
0x1147   :  { %v2902_v19 = vadd.f32 %v2901_v26, %v10184_v42 }
0x1148   :  { %v2903_v28 = vpop.f32.mrf.mxu1  ;;  %v5905_v30 = vpop.f32.mrf.mxu0 }
0x114a   :  { %v2905_v23 = vpop.f32.mrf.mxu1  ;;  %v2945_v22 = vpop.f32.mrf.mxu0 }
0x114b   :  { %v2904_v22 = vadd.f32 %v2903_v28, %v7866_v60 }
0x114c   :  { %v2906_v0 = vpop.f32.mrf.mxu1  ;;  %v5906_v8 = vpop.f32.mrf.mxu0 }
0x1166   :  { %v2982_v24 = vpop.f32.mrf.mxu1  ;;  %v3023_v20 = vpop.f32.mrf.mxu0 }
0x1167   :  { %v2983_v52 = vadd.f32 %v2982_v24, %v10185_v46 }
0x1168   :  { %v2984_v17 = vpop.f32.mrf.mxu1  ;;  %v5925_v25 = vpop.f32.mrf.mxu0 }
0x1169   :  { %v3029_v16 = vadd.f32 %v2983_v52, %v2902_v19  ;;  %v2985_v32 = vadd.f32 %v2984_v17, %v7863_v9  ;;  %v3024_v52 = vadd.f32 %v3023_v20, %v7871_v36  ;;  %v8907_v20 = vld [vmem:[%s9824_s17 + $0x8] sm:$0xff]  }
0x116a   :  { %v2986_v15 = vpop.f32.mrf.mxu1  ;;  %v3026_v43 = vpop.f32.mrf.mxu0  ;;  %10294 = vst [vmem:[#allocation43_spill] sm:$0xff] %v8907_v20 }
0x116b   :  { %v5028_v21 = vmul.f32 -1.442695, %v3029_v16  ;;  %v3036_v8 = vadd.f32 %v2985_v32, %v2904_v22  ;;  %v2943_v43 = vadd.f32 %v2942_v27, %v7874_v55  ;;  %v8914_v27 = vld [vmem:[%s9824_s17] sm:$0xff]  }
0x116c   :  { %v2987_v54 = vpop.f32.mrf.mxu1  ;;  %v5926_v30 = vpop.f32.mrf.mxu0  ;;  %10295 = vst [vmem:[#allocation72_spill] sm:$0xff] %v8914_v27 }
0x116d   :  { %6683 = vpow2.f32 %v5028_v21  ;;  %v5029_v0 = vmul.f32 -1.442695, %v3036_v8 }
0x116f   :  { %6685 = vpow2.f32 %v5029_v0  ;;  %v8921_v0 = vld [vmem:[%s10078_s22] sm:$0x3] }
0x1170   :  { %10296 = vst [vmem:[#allocation73_spill] sm:$0xff] %v8921_v0 }
0x117a   :  { %v6684_v23 = vpop.eup %6683 }
0x117b   :  { %v3033_v26 = vadd.f32 1.0, %v6684_v23 }
0x117c   :  { %v6686_v24 = vpop.eup %6685 }
0x117d   :  { %6687 = vrcp.f32 %v3033_v26  ;;  %v3040_v46 = vadd.f32 1.0, %v6686_v24  ;;  %v8924_v26 = vld [vmem:[#allocation7] sm:$0x3] }
0x117f   :  { %6689 = vrcp.f32 %v3040_v46  ;;  %v8887_v46 = vld [vmem:[%s9824_s17 + $0x18] sm:$0xff]  }
0x118a   :  { %v6688_v15 = vpop.eup %6687 }
0x118b   :  { %v3043_v16 = vmul.f32 %v6688_v15, %v3024_v52 }
0x118c   :  { %v6690_v17 = vpop.eup %6689 }
0x118d   :  { %v3044_v54 = vadd.f32 %v3043_v16, %v2943_v43  ;;  %v3046_v19 = vsub.f32 1.0, %v6690_v17  ;;  %v3048_v25 = vmul.f32 %v6690_v17, %v8454_v49  ;;  %v8900_v49 = vld [vmem:[%s9824_s17 + $0x10] sm:$0xff]  }
0x118f   :  { %6691 = vtanh.f32 %v3044_v54 }
0x119c   :  { %v6692_v21 = vpop.eup %6691 }
0x119d   :  { %v3047_v32 = vmul.f32 %v6692_v21, %v3046_v19 }
0x119f   :  { %v8876_v28 = vadd.f32 %v3048_v25, %v3047_v32 }
0x11a1   :  { %v8880_v30 = vpack.c.bf16 %v8876_v28, %v8876_v28 }
0x11a3   :  { %5944 = vmatmul.mubr.bf16.vlgmr.msra.gmra.mxu1 %v8880_v30  ;;  %5964 = vmatmul.mubr.bf16.vlgmr.msra.gmra.mxu0 %v8880_v30 }
0x11a4   :  { %5968 = vmatpush3.bf16.msra.mxu1 %v8887_v46  ;;  %5975 = vmatprep.mubr.msk.bf16.mxu1 %vm7318_vm0, %v10077_v58 }
0x11a5   :  { %5969 = vmatprep.subr.bf16.mxu1 %v10077_v58  ;;  %5980 = vmatpush3.bf16.msra.mxu0 %v8076_v45 }
0x11a6   :  { %5981 = vmatprep.mubr.msk.bf16.mxu0 %vm7318_vm0, %v10077_v58  ;;  %5997 = vmatprep.subr.bf16.mxu0 %v10077_v58 }
0x11a8   :  { %5970 = vmatpush3.bf16.msra.mxu1 %v8900_v49 }
0x11a9   :  { %5971 = vmatprep.subr.bf16.mxu1 %v10077_v58 }
0x11ac   :  { %5972 = vmatpush3.bf16.msra.mxu1 %v8907_v20 }
0x11ad   :  { %5973 = vmatprep.subr.bf16.mxu1 %v10077_v58 }
0x11b0   :  { %5974 = vmatpush3.bf16.msra.mxu1 %v8914_v27 }
0x11b1   :  { %5985 = vmatprep.subr.bf16.mxu1 %v10077_v58 }
0x1263   :  { %v3085_v22 = vpop.f32.mrf.mxu1  ;;  %v3125_v8 = vpop.f32.mrf.mxu0 }
0x1264   :  { %v3086_v23 = vadd.f32 %v8921_v0, %v3085_v22  ;;  %v3126_v24 = vadd.f32 %v8924_v26, %v3125_v8 }
0x1265   :  { %v5945_v52 = vpop.f32.mrf.mxu1  ;;  %v5965_v15 = vpop.f32.mrf.mxu0 }
0x1266   :  { %v3142_v43 = vsel %vm1549_vm1, %v3086_v23, -inf  ;;  %v3131_v16 = vsel %vm1537_vm2, %v3126_v24, -inf }
0x1267   :  { %3143 = vmax.xlane.f32.xlu0 %v3142_v43  ;;  %v3088_v54 = vpop.f32.mrf.mxu1  ;;  %3132 = vmax.xlane.f32.xlu1 %v3131_v16  ;;  %v3128_v17 = vpop.f32.mrf.mxu0  ;;  %v8935_v16 = vld [vmem:[#allocation5 + $0x18] sm:$0xff]  }
0x1269   :  { %v5946_v19 = vpop.f32.mrf.mxu1  ;;  %v5966_v21 = vpop.f32.mrf.mxu0 }
0x12f0   :  { %v3144_v32 = vpop.xlane.xlu0 %3143  ;;  %v3133_v25 = vpop.xlane.xlu1 %3132 }
0x12f1   :  { %v3145_v27 = vsub.f32 %v3086_v23, %v3144_v32  ;;  %v3134_v22 = vsub.f32 %v3126_v24, %v3133_v25 }
0x12f3   :  { %v3146_v0 = vmul.f32 1.442695, %v3145_v27  ;;  %v3135_v20 = vmul.f32 1.442695, %v3134_v22  ;;  %v8945_v27 = vld [vmem:[#allocation5 + $0x8] sm:$0xff]  }
0x12f4   :  { %10298 = vst [vmem:[#allocation71_spill] sm:$0xff] %v8945_v27  ;;  %v8953_v22 = vld [vmem:[#allocation8] sm:$0x3] }
0x12f5   :  { %6693 = vpow2.f32 %v3146_v0  ;;  %v8949_v0 = vld [vmem:[#allocation5] sm:$0xff]   ;;  %10300 = vst [vmem:[#allocation47_spill] sm:$0xff] %v8953_v22 }
0x12f6   :  { %6695 = vpow2.f32 %v3135_v20  ;;  %v8941_v20 = vld [vmem:[#allocation5 + $0x10] sm:$0xff]   ;;  %10299 = vst [vmem:[#allocation46_spill] sm:$0xff] %v8949_v0 }
0x12f7   :  { %10297 = vst [vmem:[#allocation74_spill] sm:$0xff] %v8941_v20 }
0x1302   :  { %v8929_v8 = vpop.eup %6693 }
0x1303   :  { %v6696_v52 = vpop.eup %6695  ;;  %v3148_v15 = vpack.c.bf16 %v8929_v8, %v8929_v8 }
0x1304   :  { %v3137_v43 = vsel %vm1537_vm2, %v6696_v52, 0.0 }
0x1305   :  { %3138 = vadd.xlane.f32.xlu0 %v3137_v43  ;;  %5976 = vmatmul.mubr.msk.bf16.vlgmr.msra.gmra.mxu1 %vm1581_vm3, %v3148_v15 }
0x1306   :  { %5986 = vmatpush3.bf16.msra.mxu1 %v8935_v16  ;;  %5993 = vmatprep.mubr.msk.bf16.mxu1 %vm7318_vm0, %v10077_v58 }
0x1307   :  { %5987 = vmatprep.subr.bf16.mxu1 %v10077_v58 }
0x130a   :  { %5988 = vmatpush3.bf16.msra.mxu1 %v8941_v20 }
0x130b   :  { %5989 = vmatprep.subr.bf16.mxu1 %v10077_v58 }
0x130e   :  { %5990 = vmatpush3.bf16.msra.mxu1 %v8945_v27 }
0x130f   :  { %5991 = vmatprep.subr.bf16.mxu1 %v10077_v58 }
0x1312   :  { %5992 = vmatpush3.bf16.msra.mxu1 %v8949_v0  ;;  %v8957_v0 = vld [vmem:[#allocation16 + $0x38] sm:$0xff]  }
0x1313   :  { %6017 = vmatprep.subr.bf16.mxu1 %v10077_v58  ;;  %10301 = vst [vmem:[#allocation48_spill] sm:$0xff] %v8957_v0 }
0x138e   :  { %v3139_v23 = vpop.xlane.xlu0 %3138 }
0x138f   :  { %6697 = vrcp.f32 %v3139_v23  ;;  %v8963_v23 = vld [vmem:[#allocation16 + $0x30] sm:$0xff]  }
0x1390   :  { %10302 = vst [vmem:[#allocation49_spill] sm:$0xff] %v8963_v23 }
0x139c   :  { %v6698_v32 = vpop.eup %6697 }
0x139d   :  { %v3141_v25 = vmul.f32 %v6698_v32, %v6696_v52  ;;  %v8967_v52 = vld [vmem:[#allocation16 + $0x28] sm:$0xff]   ;;  %v9007_v32 = vld [vmem:[%s9815_s8 + $0x94] ss:$12 sps:$4 sm:$0xff]  }
0x139e   :  { %10303 = vst [vmem:[#allocation50_spill] sm:$0xff] %v8967_v52  ;;  %10311 = vst [vmem:[#allocation58_spill] sm:$0xff] %v9007_v32 }
0x139f   :  { %v3193_v15 = vmul.f32 %v8953_v22, %v3141_v25  ;;  %v9013_v25 = vld [vmem:[%s9815_s8 + $0x90] ss:$12 sps:$4 sm:$0xff]  }
0x13a0   :  { %10312 = vst [vmem:[#allocation59_spill] sm:$0xff] %v9013_v25 }
0x13c5   :  { %v3186_v24 = vpop.f32.mrf.mxu1 }
0x13c6   :  { %v3192_v54 = vmax.f32 %v3186_v24, 1e-30  ;;  %v8979_v24 = vld [vmem:[#allocation16 + $0x10] sm:$0xff]  }
0x13c7   :  { %v5977_v17 = vpop.f32.mrf.mxu1  ;;  %10306 = vst [vmem:[#allocation53_spill] sm:$0xff] %v8979_v24 }
0x13c8   :  { %6699 = vrcp.f32 %v3192_v54  ;;  %v8983_v54 = vld [vmem:[#allocation16 + $0x8] sm:$0xff]   ;;  %v8987_v17 = vld [vmem:[#allocation16] sm:$0xff]  }
0x13c9   :  { %v3189_v19 = vpop.f32.mrf.mxu1  ;;  %10307 = vst [vmem:[#allocation54_spill] sm:$0xff] %v8983_v54  ;;  %10308 = vst [vmem:[#allocation55_spill] sm:$0xff] %v8987_v17 }
0x13ca   :  { %v8993_v19 = vld [vmem:[%s9815_s8 + $0xac] ss:$12 sps:$4 sm:$0xff]  }
0x13cb   :  { %v5978_v21 = vpop.f32.mrf.mxu1  ;;  %10309 = vst [vmem:[#allocation56_spill] sm:$0xff] %v8993_v19 }
0x13cc   :  { %v9000_v21 = vld [vmem:[%s9815_s8 + $0xa8] ss:$12 sps:$4 sm:$0xff]  }
0x13cd   :  { %10310 = vst [vmem:[#allocation57_spill] sm:$0xff] %v9000_v21 }
0x13d5   :  { %v6700_v43 = vpop.eup %6699 }
0x13d6   :  { %v3195_v27 = vmul.f32 %v6700_v43, %v3193_v15  ;;  %v9019_v15 = vld [vmem:[%s9815_s8 + $0x7c] ss:$12 sps:$4 sm:$0xff]   ;;  %v9025_v43 = vld [vmem:[%s9815_s8 + $0x78] ss:$12 sps:$4 sm:$0xff]  }
0x13d7   :  { %10313 = vst [vmem:[#allocation60_spill] sm:$0xff] %v9019_v15  ;;  %10314 = vst [vmem:[#allocation61_spill] sm:$0xff] %v9025_v43 }
0x13d8   :  { %v3196_v20 = vpack.c.bf16 %v3195_v27, %v3195_v27  ;;  %v8975_v27 = vld [vmem:[#allocation16 + $0x18] sm:$0xff]  }
0x13d9   :  { %10305 = vst [vmem:[#allocation52_spill] sm:$0xff] %v8975_v27 }
0x13da   :  { %5982 = vmatmul.mubr.msk.bf16.vlgmr.msra.gmra.mxu0 %vm1630_vm5, %v3196_v20  ;;  %v8971_v20 = vld [vmem:[#allocation16 + $0x20] sm:$0xff]  }
0x13db   :  { %5998 = vmatpush3.bf16.msra.mxu0 %v8957_v0  ;;  %6013 = vmatprep.mubr.msk.bf16.mxu0 %vm7318_vm0, %v10077_v58  ;;  %10304 = vst [vmem:[#allocation51_spill] sm:$0xff] %v8971_v20 }
0x13dc   :  { %5999 = vmatprep.subr.bf16.mxu0 %v10077_v58 }
0x13df   :  { %6000 = vmatpush3.bf16.msra.mxu0 %v8963_v23 }
0x13e0   :  { %6001 = vmatprep.subr.bf16.mxu0 %v10077_v58 }
0x13e3   :  { %6002 = vmatpush3.bf16.msra.mxu0 %v8967_v52 }
0x13e4   :  { %6003 = vmatprep.subr.bf16.mxu0 %v10077_v58 }
0x13e7   :  { %6004 = vmatpush3.bf16.msra.mxu0 %v8971_v20 }
0x13e8   :  { %6005 = vmatprep.subr.bf16.mxu0 %v10077_v58 }
0x13eb   :  { %6006 = vmatpush3.bf16.msra.mxu0 %v8975_v27 }
0x13ec   :  { %6007 = vmatprep.subr.bf16.mxu0 %v10077_v58 }
0x13ef   :  { %6008 = vmatpush3.bf16.msra.mxu0 %v8979_v24 }
0x13f0   :  { %6009 = vmatprep.subr.bf16.mxu0 %v10077_v58 }
0x13f3   :  { %6010 = vmatpush3.bf16.msra.mxu0 %v8983_v54 }
0x13f4   :  { %6011 = vmatprep.subr.bf16.mxu0 %v10077_v58 }
0x13f7   :  { %6012 = vmatpush3.bf16.msra.mxu0 %v8987_v17 }
0x13f8   :  { %3379 = vmatprep.subr.bf16.mxu0 %v8993_v19 }
0x13fa   :  { %6014 = vmatmul.mubr.bf16.vlgmr.msra.gmra.mxu0 %v8880_v30 }
0x13fb   :  { %3380 = vmatpush1.bf16.msra.mxu0 %v9000_v21  ;;  %3411 = vmatprep.mubr.bf16.mxu0 %v10093_v61 }
0x13fc   :  { %3381 = vmatprep.subr.bf16.mxu0 %v9007_v32  ;;  %v9031_v32 = vld [vmem:[%s9815_s8 + $0x64] ss:$12 sps:$4 sm:$0xff]  }
0x13fd   :  { %10315 = vst [vmem:[#allocation62_spill] sm:$0xff] %v9031_v32 }
0x13ff   :  { %3382 = vmatpush1.bf16.msra.mxu0 %v9013_v25  ;;  %v9037_v25 = vld [vmem:[%s9815_s8 + $0x60] ss:$12 sps:$4 sm:$0xff]  }
0x1400   :  { %3383 = vmatprep.subr.bf16.mxu0 %v9019_v15  ;;  %10316 = vst [vmem:[#allocation63_spill] sm:$0xff] %v9037_v25  ;;  %v9043_v15 = vld [vmem:[%s9815_s8 + $0x4c] ss:$12 sps:$4 sm:$0xff]  }
0x1401   :  { %10317 = vst [vmem:[#allocation64_spill] sm:$0xff] %v9043_v15 }
0x1403   :  { %3384 = vmatpush1.bf16.msra.mxu0 %v9025_v43  ;;  %v9049_v43 = vld [vmem:[%s9815_s8 + $0x48] ss:$12 sps:$4 sm:$0xff]  }
0x1404   :  { %3385 = vmatprep.subr.bf16.mxu0 %v9031_v32  ;;  %10318 = vst [vmem:[#allocation65_spill] sm:$0xff] %v9049_v43  ;;  %v9055_v32 = vld [vmem:[%s9815_s8 + $0x34] ss:$12 sps:$4 sm:$0xff]  }
0x1405   :  { %10319 = vst [vmem:[#allocation66_spill] sm:$0xff] %v9055_v32 }
0x1407   :  { %3386 = vmatpush1.bf16.msra.mxu0 %v9037_v25  ;;  %v9061_v25 = vld [vmem:[%s9815_s8 + $0x30] ss:$12 sps:$4 sm:$0xff]  }
0x1408   :  { %3387 = vmatprep.subr.bf16.mxu0 %v9043_v15  ;;  %10320 = vst [vmem:[#allocation67_spill] sm:$0xff] %v9061_v25  ;;  %v9067_v15 = vld [vmem:[%s9815_s8 + $0x1c] ss:$12 sps:$4 sm:$0xff]  }
0x1409   :  { %10321 = vst [vmem:[#allocation68_spill] sm:$0xff] %v9067_v15 }
0x140b   :  { %3388 = vmatpush1.bf16.msra.mxu0 %v9049_v43  ;;  %v9073_v43 = vld [vmem:[%s9815_s8 + $0x18] ss:$12 sps:$4 sm:$0xff]  }
0x140c   :  { %3389 = vmatprep.subr.bf16.mxu0 %v9055_v32  ;;  %10322 = vst [vmem:[#allocation69_spill] sm:$0xff] %v9073_v43  ;;  %v9079_v32 = vld [vmem:[%s9815_s8 + $0x4] ss:$12 sps:$4 sm:$0xff]  }
0x140d   :  { %10323 = vst [vmem:[#allocation70_spill] sm:$0xff] %v9079_v32 }
0x140f   :  { %3390 = vmatpush1.bf16.msra.mxu0 %v9061_v25  ;;  %v9085_v25 = vld [vmem:[%s9815_s8] ss:$12 sps:$4 sm:$0xff]  }
0x1410   :  { %3391 = vmatprep.subr.bf16.mxu0 %v9067_v15  ;;  %10324 = vst [vmem:[#allocation75_spill] sm:$0xff] %v9085_v25  ;;  %v9088_v15 = vld [vmem:[#allocation10 + $0xac] ss:$12 sps:$4 sm:$0xff]  }
0x1413   :  { %3392 = vmatpush1.bf16.msra.mxu0 %v9073_v43 }
0x1414   :  { %3393 = vmatprep.subr.bf16.mxu0 %v9079_v32 }
0x1417   :  { %3394 = vmatpush1.bf16.msra.mxu0 %v9085_v25 }
0x1418   :  { %3481 = vmatprep.subr.bf16.mxu0 %v9088_v15 }
0x149a   :  { %v3234_v21 = vpop.f32.mrf.mxu0 }
0x149b   :  { %v3240_v43 = vmul.f32 %v8929_v8, %v3234_v21  ;;  %v9097_v8 = vld [vmem:[#allocation14 + $0x38] sm:$0xff]  }
0x149c   :  { %v5983_v19 = vpop.f32.mrf.mxu0 }
0x149d   :  { %v3241_v17 = vsel %vm1549_vm1, %v3240_v43, 0.0 }
0x149e   :  { %3242 = vadd.xlane.f32.xlu1 %v3241_v17  ;;  %v3237_v54 = vpop.f32.mrf.mxu0 }
0x149f   :  { %v9127_v54 = vld [vmem:[#allocation14] sm:$0xff]  }
0x14a0   :  { %v5984_v32 = vpop.f32.mrf.mxu0  ;;  %10331 = vst [vmem:[#allocation82_spill] sm:$0xff] %v9127_v54 }
0x14ba   :  { %v9093_v24 = vpop.f32.mrf.mxu0 }
0x14bc   :  { %v6015_v27 = vpop.f32.mrf.mxu0 }
0x14bd   :  { %v9123_v27 = vld [vmem:[#allocation14 + $0x8] sm:$0xff]  }
0x14be   :  { %v3328_v20 = vpop.f32.mrf.mxu0  ;;  %10330 = vst [vmem:[#allocation81_spill] sm:$0xff] %v9123_v27 }
0x14bf   :  { %v9103_v20 = vld [vmem:[#allocation14 + $0x30] sm:$0xff]  }
0x14c0   :  { %v6016_v52 = vpop.f32.mrf.mxu0  ;;  %10325 = vst [vmem:[#allocation76_spill] sm:$0xff] %v9103_v20 }
0x14c1   :  { %v9119_v52 = vld [vmem:[#allocation14 + $0x10] sm:$0xff]  }
0x14c2   :  { %10329 = vst [vmem:[#allocation80_spill] sm:$0xff] %v9119_v52 }
0x1527   :  { %v3243_v23 = vpop.xlane.xlu1 %3242 }
0x1528   :  { %6701 = vrcp.f32 %v3243_v23  ;;  %v9107_v23 = vld [vmem:[#allocation14 + $0x28] sm:$0xff]  }
0x1529   :  { %10326 = vst [vmem:[#allocation77_spill] sm:$0xff] %v9107_v23 }
0x1535   :  { %v6702_v25 = vpop.eup %6701 }
0x1536   :  { %v3245_v0 = vmul.f32 %v6702_v25, %v3240_v43  ;;  %v9134_v25 = vld [vmem:[%s9815_s8 + $0xb0] ss:$12 sps:$4 sm:$0xff]  }
0x1537   :  { %10332 = vst [vmem:[#allocation83_spill] sm:$0xff] %v9134_v25 }
0x1538   :  { %v3246_v22 = vpack.c.bf16 %v3245_v0, %v3245_v0  ;;  %3375 = vst.msk [vmem:[#allocation18 + $0x4] sm:$0x3] %vm1549_vm1, %v3245_v0  ;;  %v9111_v0 = vld [vmem:[#allocation14 + $0x20] sm:$0xff]  }
0x1539   :  { %10327 = vst [vmem:[#allocation78_spill] sm:$0xff] %v9111_v0 }
0x153a   :  { %5994 = vmatmul.mubr.msk.bf16.vlgmr.msra.gmra.mxu1 %vm1581_vm3, %v3246_v22  ;;  %v9115_v22 = vld [vmem:[#allocation14 + $0x18] sm:$0xff]  }
0x153b   :  { %6018 = vmatpush3.bf16.msra.mxu1 %v9097_v8  ;;  %6033 = vmatprep.mubr.msk.bf16.mxu1 %vm7318_vm0, %v10077_v58  ;;  %10328 = vst [vmem:[#allocation79_spill] sm:$0xff] %v9115_v22 }
0x153c   :  { %6019 = vmatprep.subr.bf16.mxu1 %v10077_v58 }
0x153f   :  { %6020 = vmatpush3.bf16.msra.mxu1 %v9103_v20 }
0x1540   :  { %6021 = vmatprep.subr.bf16.mxu1 %v10077_v58 }
0x1543   :  { %6022 = vmatpush3.bf16.msra.mxu1 %v9107_v23 }
0x1544   :  { %6023 = vmatprep.subr.bf16.mxu1 %v10077_v58 }
0x1547   :  { %6024 = vmatpush3.bf16.msra.mxu1 %v9111_v0 }
0x1548   :  { %6025 = vmatprep.subr.bf16.mxu1 %v10077_v58 }
0x154b   :  { %6026 = vmatpush3.bf16.msra.mxu1 %v9115_v22  ;;  %v9193_v22 = vld [vmem:[#allocation10 + $0xb0] ss:$12 sps:$4 sm:$0xff]  }
0x154c   :  { %6027 = vmatprep.subr.bf16.mxu1 %v10077_v58  ;;  %10341 = vst [vmem:[#allocation92_spill] sm:$0xff] %v9193_v22 }
0x154f   :  { %6028 = vmatpush3.bf16.msra.mxu1 %v9119_v52  ;;  %v9190_v52 = vld [vmem:[#allocation10 + $0xa8] ss:$12 sps:$4 sm:$0xff]  }
0x1550   :  { %6029 = vmatprep.subr.bf16.mxu1 %v10077_v58  ;;  %10340 = vst [vmem:[#allocation91_spill] sm:$0xff] %v9190_v52 }
0x1553   :  { %6030 = vmatpush3.bf16.msra.mxu1 %v9123_v27 }
0x1554   :  { %6031 = vmatprep.subr.bf16.mxu1 %v10077_v58 }
0x1557   :  { %6032 = vmatpush3.bf16.msra.mxu1 %v9127_v54 }
0x1558   :  { %6037 = vmatprep.subr.bf16.mxu1 %v10077_v58 }
0x15fa   :  { %v3284_v17 = vpop.f32.mrf.mxu1 }
0x15fb   :  { %v3290_v19 = vpack.c.bf16 %v3284_v17, %v3284_v17  ;;  %v9143_v17 = vld [vmem:[%s9815_s8 + $0x98] ss:$12 sps:$4 sm:$0xff]  }
0x15fc   :  { %v5995_v21 = vpop.f32.mrf.mxu1  ;;  %10333 = vst [vmem:[#allocation84_spill] sm:$0xff] %v9143_v17 }
0x15fd   :  { %6034 = vmatmul.mubr.bf16.vlgmr.msra.gmra.mxu1 %v3290_v19  ;;  %v9150_v19 = vld [vmem:[%s9815_s8 + $0x80] ss:$12 sps:$4 sm:$0xff]   ;;  %v9157_v21 = vld [vmem:[%s9815_s8 + $0x68] ss:$12 sps:$4 sm:$0xff]  }
0x15fe   :  { %v3287_v32 = vpop.f32.mrf.mxu1  ;;  %6038 = vmatpush3.bf16.msra.mxu1 %v9134_v25  ;;  %6053 = vmatprep.mubr.msk.bf16.mxu1 %vm7318_vm0, %v10077_v58  ;;  %10334 = vst [vmem:[#allocation85_spill] sm:$0xff] %v9150_v19  ;;  %10335 = vst [vmem:[#allocation86_spill] sm:$0xff] %v9157_v21 }
0x15ff   :  { %6039 = vmatprep.subr.bf16.mxu1 %v10077_v58  ;;  %v9164_v32 = vld [vmem:[%s9815_s8 + $0x50] ss:$12 sps:$4 sm:$0xff]  }
0x1600   :  { %v5996_v43 = vpop.f32.mrf.mxu1  ;;  %10336 = vst [vmem:[#allocation87_spill] sm:$0xff] %v9164_v32 }
0x1601   :  { %v9171_v43 = vld [vmem:[%s9815_s8 + $0x38] ss:$12 sps:$4 sm:$0xff]  }
0x1602   :  { %6040 = vmatpush3.bf16.msra.mxu1 %v9143_v17  ;;  %10337 = vst [vmem:[#allocation88_spill] sm:$0xff] %v9171_v43 }
0x1603   :  { %6041 = vmatprep.subr.bf16.mxu1 %v10077_v58 }
0x1606   :  { %6042 = vmatpush3.bf16.msra.mxu1 %v9150_v19 }
0x1607   :  { %6043 = vmatprep.subr.bf16.mxu1 %v10077_v58 }
0x160a   :  { %6044 = vmatpush3.bf16.msra.mxu1 %v9157_v21  ;;  %v9178_v21 = vld [vmem:[%s9815_s8 + $0x20] ss:$12 sps:$4 sm:$0xff]  }
0x160b   :  { %6045 = vmatprep.subr.bf16.mxu1 %v10077_v58  ;;  %10338 = vst [vmem:[#allocation89_spill] sm:$0xff] %v9178_v21 }
0x160e   :  { %6046 = vmatpush3.bf16.msra.mxu1 %v9164_v32  ;;  %v9185_v32 = vld [vmem:[%s9815_s8 + $0x8] ss:$12 sps:$4 sm:$0xff]  }
0x160f   :  { %6047 = vmatprep.subr.bf16.mxu1 %v10077_v58  ;;  %10339 = vst [vmem:[#allocation90_spill] sm:$0xff] %v9185_v32 }
0x1612   :  { %6048 = vmatpush3.bf16.msra.mxu1 %v9171_v43 }
0x1613   :  { %6049 = vmatprep.subr.bf16.mxu1 %v10077_v58 }
0x1616   :  { %6050 = vmatpush3.bf16.msra.mxu1 %v9178_v21 }
0x1617   :  { %6051 = vmatprep.subr.bf16.mxu1 %v10077_v58 }
0x161a   :  { %6052 = vmatpush3.bf16.msra.mxu1 %v9185_v32  ;;  %v9196_v32 = vld [vmem:[#allocation10 + $0x94] ss:$12 sps:$4 sm:$0xff]  }
0x161b   :  { %6057 = vmatprep.subr.bf16.mxu1 %v10077_v58  ;;  %10342 = vst [vmem:[#allocation93_spill] sm:$0xff] %v9196_v32 }
0x16bd   :  { %v3365_v43 = vpop.f32.mrf.mxu1 }
0x16be   :  { %v3366_v19 = vadd.f32 %v3365_v43, %v9093_v24  ;;  %v9203_v24 = vld [vmem:[#allocation10 + $0x90] ss:$12 sps:$4 sm:$0xff]   ;;  %v9226_v43 = vld [vmem:[#allocation10 + $0x68] ss:$12 sps:$4 sm:$0xff]  }
0x16bf   :  { %v6035_v17 = vpop.f32.mrf.mxu1  ;;  %10343 = vst [vmem:[#allocation94_spill] sm:$0xff] %v9203_v24  ;;  %10350 = vst [vmem:[#allocation101_spill] sm:$0xff] %v9226_v43 }
0x16c0   :  { %6703 = vtanh.f32 %v3366_v19  ;;  %v9216_v17 = vld [vmem:[#allocation10 + $0x80] ss:$12 sps:$4 sm:$0xff]   ;;  %v9219_v19 = vld [vmem:[#allocation10 + $0x64] ss:$12 sps:$4 sm:$0xff]  }
0x16c1   :  { %v3368_v25 = vpop.f32.mrf.mxu1  ;;  %10347 = vst [vmem:[#allocation98_spill] sm:$0xff] %v9216_v17  ;;  %10348 = vst [vmem:[#allocation99_spill] sm:$0xff] %v9219_v19 }
0x16c2   :  { %v9213_v25 = vld [vmem:[#allocation10 + $0x78] ss:$12 sps:$4 sm:$0xff]  }
0x16c3   :  { %v6036_v54 = vpop.f32.mrf.mxu1  ;;  %10346 = vst [vmem:[#allocation97_spill] sm:$0xff] %v9213_v25 }
0x16c4   :  { %v9209_v54 = vld [vmem:[#allocation10 + $0x7c] ss:$12 sps:$4 sm:$0xff]  }
0x16c5   :  { %10345 = vst [vmem:[#allocation96_spill] sm:$0xff] %v9209_v54 }
0x16cd   :  { %v6704_v27 = vpop.eup %6703 }
0x16ce   :  { %3373 = vst [vmem:[#allocation17 + $0x4] sm:$0x3] %v6704_v27  ;;  %v3378_v21 = vpack.c.bf16 %v6704_v27, %v6704_v27  ;;  %v9206_v27 = vld [vmem:[#allocation10 + $0x98] ss:$12 sps:$4 sm:$0xff]  }
0x16cf   :  { %10344 = vst [vmem:[#allocation95_spill] sm:$0xff] %v9206_v27 }
0x16d0   :  { %3412 = vmatmul.mubr.bf16.vlgmr.msra.gmra.mxu0 %v3378_v21  ;;  %6054 = vmatmul.mubr.bf16.vlgmr.msra.gmra.mxu1 %v3378_v21  ;;  %v9223_v21 = vld [vmem:[#allocation10 + $0x60] ss:$12 sps:$4 sm:$0xff]  }
0x16d1   :  { %3482 = vmatpush1.bf16.msra.mxu0 %v9190_v52  ;;  %6058 = vmatpush3.bf16.msra.mxu1 %v9193_v22  ;;  %10349 = vst [vmem:[#allocation100_spill] sm:$0xff] %v9223_v21 }
0x16d2   :  { %3483 = vmatprep.subr.bf16.mxu0 %v9196_v32  ;;  %6059 = vmatprep.subr.bf16.mxu1 %v10077_v58  ;;  %v3377_v32 = vld [vmem:[#allocation2 + $0x12] sm:$0x3f] }
0x16d3   :  { %3513 = vmatprep.mubr.bf16.mxu0 %v10093_v61  ;;  %6073 = vmatprep.mubr.msk.bf16.mxu1 %vm7318_vm0, %v10077_v58 }
0x16d5   :  { %3484 = vmatpush1.bf16.msra.mxu0 %v9203_v24  ;;  %6060 = vmatpush3.bf16.msra.mxu1 %v9206_v27 }
0x16d6   :  { %3485 = vmatprep.subr.bf16.mxu0 %v9209_v54  ;;  %6061 = vmatprep.subr.bf16.mxu1 %v10077_v58  ;;  %v9229_v54 = vld [vmem:[#allocation10 + $0x4c] ss:$12 sps:$4 sm:$0xff]  }
0x16d7   :  { %10351 = vst [vmem:[#allocation102_spill] sm:$0xff] %v9229_v54 }
0x16d9   :  { %3486 = vmatpush1.bf16.msra.mxu0 %v9213_v25  ;;  %6062 = vmatpush3.bf16.msra.mxu1 %v9216_v17  ;;  %v9233_v17 = vld [vmem:[#allocation10 + $0x48] ss:$12 sps:$4 sm:$0xff]  }
0x16da   :  { %3487 = vmatprep.subr.bf16.mxu0 %v9219_v19  ;;  %6063 = vmatprep.subr.bf16.mxu1 %v10077_v58  ;;  %10352 = vst [vmem:[#allocation103_spill] sm:$0xff] %v9233_v17  ;;  %v9236_v19 = vld [vmem:[#allocation10 + $0x50] ss:$12 sps:$4 sm:$0xff]   ;;  %v9239_v25 = vld [vmem:[#allocation10 + $0x34] ss:$12 sps:$4 sm:$0xff]  }
0x16db   :  { %10353 = vst [vmem:[#allocation104_spill] sm:$0xff] %v9236_v19  ;;  %10354 = vst [vmem:[#allocation105_spill] sm:$0xff] %v9239_v25 }
0x16dd   :  { %3488 = vmatpush1.bf16.msra.mxu0 %v9223_v21  ;;  %6064 = vmatpush3.bf16.msra.mxu1 %v9226_v43  ;;  %v9243_v43 = vld [vmem:[#allocation10 + $0x30] ss:$12 sps:$4 sm:$0xff]  }
0x16de   :  { %3489 = vmatprep.subr.bf16.mxu0 %v9229_v54  ;;  %6065 = vmatprep.subr.bf16.mxu1 %v10077_v58  ;;  %10355 = vst [vmem:[#allocation106_spill] sm:$0xff] %v9243_v43  ;;  %v9246_v54 = vld [vmem:[#allocation10 + $0x38] ss:$12 sps:$4 sm:$0xff]   ;;  %v9249_v21 = vld [vmem:[#allocation10 + $0x1c] ss:$12 sps:$4 sm:$0xff]  }
0x16df   :  { %10356 = vst [vmem:[#allocation107_spill] sm:$0xff] %v9246_v54  ;;  %10357 = vst [vmem:[#allocation108_spill] sm:$0xff] %v9249_v21 }
0x16e1   :  { %3490 = vmatpush1.bf16.msra.mxu0 %v9233_v17  ;;  %6066 = vmatpush3.bf16.msra.mxu1 %v9236_v19  ;;  %v9253_v19 = vld [vmem:[#allocation10 + $0x18] ss:$12 sps:$4 sm:$0xff]  }
0x16e2   :  { %3491 = vmatprep.subr.bf16.mxu0 %v9239_v25  ;;  %6067 = vmatprep.subr.bf16.mxu1 %v10077_v58  ;;  %10358 = vst [vmem:[#allocation109_spill] sm:$0xff] %v9253_v19  ;;  %v9256_v25 = vld [vmem:[#allocation10 + $0x20] ss:$12 sps:$4 sm:$0xff]   ;;  %v9259_v17 = vld [vmem:[#allocation10 + $0x4] ss:$12 sps:$4 sm:$0xff]  }
0x16e3   :  { %10359 = vst [vmem:[#allocation110_spill] sm:$0xff] %v9256_v25  ;;  %10360 = vst [vmem:[#allocation111_spill] sm:$0xff] %v9259_v17 }
0x16e5   :  { %3492 = vmatpush1.bf16.msra.mxu0 %v9243_v43  ;;  %6068 = vmatpush3.bf16.msra.mxu1 %v9246_v54  ;;  %v9263_v54 = vld [vmem:[#allocation10] ss:$12 sps:$4 sm:$0xff]  }
0x16e6   :  { %3493 = vmatprep.subr.bf16.mxu0 %v9249_v21  ;;  %6069 = vmatprep.subr.bf16.mxu1 %v10077_v58  ;;  %10361 = vst [vmem:[#allocation112_spill] sm:$0xff] %v9263_v54  ;;  %v9266_v21 = vld [vmem:[#allocation10 + $0x8] ss:$12 sps:$4 sm:$0xff]   ;;  %v9269_v43 = vld [vmem:[#allocation11 + $0xac] ss:$12 sps:$4 sm:$0xff]  }
0x16e7   :  { %10362 = vst [vmem:[#allocation113_spill] sm:$0xff] %v9266_v21  ;;  %10363 = vst [vmem:[#allocation114_spill] sm:$0xff] %v9269_v43 }
0x16e9   :  { %3494 = vmatpush1.bf16.msra.mxu0 %v9253_v19  ;;  %6070 = vmatpush3.bf16.msra.mxu1 %v9256_v25  ;;  %v9278_v25 = vld [vmem:[#allocation11 + $0xb0] ss:$12 sps:$4 sm:$0xff]  }
0x16ea   :  { %3495 = vmatprep.subr.bf16.mxu0 %v9259_v17  ;;  %6071 = vmatprep.subr.bf16.mxu1 %v10077_v58  ;;  %v9275_v17 = vld [vmem:[#allocation11 + $0xa8] ss:$12 sps:$4 sm:$0xff]   ;;  %10365 = vst [vmem:[#allocation116_spill] sm:$0xff] %v9278_v25 }
0x16eb   :  { %10364 = vst [vmem:[#allocation115_spill] sm:$0xff] %v9275_v17 }
0x16ed   :  { %3496 = vmatpush1.bf16.msra.mxu0 %v9263_v54  ;;  %6072 = vmatpush3.bf16.msra.mxu1 %v9266_v21  ;;  %v9281_v54 = vld [vmem:[#allocation11 + $0x94] ss:$12 sps:$4 sm:$0xff]   ;;  %v9304_v21 = vld [vmem:[#allocation11 + $0x64] ss:$12 sps:$4 sm:$0xff]  }
0x16ee   :  { %3589 = vmatprep.subr.bf16.mxu0 %v9269_v43  ;;  %6077 = vmatprep.subr.bf16.mxu1 %v10077_v58  ;;  %10366 = vst [vmem:[#allocation117_spill] sm:$0xff] %v9281_v54  ;;  %v9301_v43 = vld [vmem:[#allocation11 + $0x80] ss:$12 sps:$4 sm:$0xff]   ;;  %10372 = vst [vmem:[#allocation123_spill] sm:$0xff] %v9304_v21 }
0x16ef   :  { %10371 = vst [vmem:[#allocation122_spill] sm:$0xff] %v9301_v43 }
0x16f0   :  { %3514 = vmatmul.mubr.bf16.vlgmr.msra.gmra.mxu0 %v8666_v39  ;;  %6074 = vmatmul.mubr.bf16.vlgmr.msra.gmra.mxu1 %v8666_v39  ;;  %v9288_v39 = vld [vmem:[#allocation11 + $0x90] ss:$12 sps:$4 sm:$0xff]  }
0x16f1   :  { %3590 = vmatpush1.bf16.msra.mxu0 %v9275_v17  ;;  %6078 = vmatpush3.bf16.msra.mxu1 %v9278_v25  ;;  %10367 = vst [vmem:[#allocation118_spill] sm:$0xff] %v9288_v39  ;;  %v9291_v17 = vld [vmem:[#allocation11 + $0x98] ss:$12 sps:$4 sm:$0xff]   ;;  %v9294_v25 = vld [vmem:[#allocation11 + $0x7c] ss:$12 sps:$4 sm:$0xff]  }
0x16f2   :  { %3591 = vmatprep.subr.bf16.mxu0 %v9281_v54  ;;  %6079 = vmatprep.subr.bf16.mxu1 %v10077_v58  ;;  %10368 = vst [vmem:[#allocation119_spill] sm:$0xff] %v9291_v17  ;;  %10369 = vst [vmem:[#allocation120_spill] sm:$0xff] %v9294_v25  ;;  %v9298_v54 = vld [vmem:[#allocation11 + $0x78] ss:$12 sps:$4 sm:$0xff]  }
0x16f3   :  { %3621 = vmatprep.mubr.bf16.mxu0 %v10093_v61  ;;  %6093 = vmatprep.mubr.msk.bf16.mxu1 %vm7318_vm0, %v10077_v58  ;;  %10370 = vst [vmem:[#allocation121_spill] sm:$0xff] %v9298_v54 }
0x16f5   :  { %3592 = vmatpush1.bf16.msra.mxu0 %v9288_v39  ;;  %6080 = vmatpush3.bf16.msra.mxu1 %v9291_v17  ;;  %v9308_v17 = vld [vmem:[#allocation11 + $0x60] ss:$12 sps:$4 sm:$0xff]  }
0x16f6   :  { %3593 = vmatprep.subr.bf16.mxu0 %v9294_v25  ;;  %6081 = vmatprep.subr.bf16.mxu1 %v10077_v58  ;;  %10373 = vst [vmem:[#allocation124_spill] sm:$0xff] %v9308_v17  ;;  %v9311_v25 = vld [vmem:[#allocation11 + $0x68] ss:$12 sps:$4 sm:$0xff]   ;;  %v9314_v39 = vld [vmem:[#allocation11 + $0x4c] ss:$12 sps:$4 sm:$0xff]  }
0x16f7   :  { %10374 = vst [vmem:[#allocation125_spill] sm:$0xff] %v9311_v25  ;;  %10375 = vst [vmem:[#allocation126_spill] sm:$0xff] %v9314_v39 }
0x16f9   :  { %3594 = vmatpush1.bf16.msra.mxu0 %v9298_v54  ;;  %6082 = vmatpush3.bf16.msra.mxu1 %v9301_v43  ;;  %v9318_v43 = vld [vmem:[#allocation11 + $0x48] ss:$12 sps:$4 sm:$0xff]  }
0x16fa   :  { %3595 = vmatprep.subr.bf16.mxu0 %v9304_v21  ;;  %6083 = vmatprep.subr.bf16.mxu1 %v10077_v58  ;;  %10376 = vst [vmem:[#allocation127_spill] sm:$0xff] %v9318_v43  ;;  %v9321_v21 = vld [vmem:[#allocation11 + $0x50] ss:$12 sps:$4 sm:$0xff]   ;;  %v9324_v54 = vld [vmem:[#allocation11 + $0x34] ss:$12 sps:$4 sm:$0xff]  }
0x16fb   :  { %10377 = vst [vmem:[#allocation128_spill] sm:$0xff] %v9321_v21  ;;  %10378 = vst [vmem:[#allocation129_spill] sm:$0xff] %v9324_v54 }
0x16fd   :  { %3596 = vmatpush1.bf16.msra.mxu0 %v9308_v17  ;;  %6084 = vmatpush3.bf16.msra.mxu1 %v9311_v25  ;;  %v9328_v25 = vld [vmem:[#allocation11 + $0x30] ss:$12 sps:$4 sm:$0xff]  }
0x16fe   :  { %3597 = vmatprep.subr.bf16.mxu0 %v9314_v39  ;;  %6085 = vmatprep.subr.bf16.mxu1 %v10077_v58  ;;  %10379 = vst [vmem:[#allocation130_spill] sm:$0xff] %v9328_v25  ;;  %v9331_v39 = vld [vmem:[#allocation11 + $0x38] ss:$12 sps:$4 sm:$0xff]   ;;  %v9334_v17 = vld [vmem:[#allocation11 + $0x1c] ss:$12 sps:$4 sm:$0xff]  }
0x16ff   :  { %10380 = vst [vmem:[#allocation131_spill] sm:$0xff] %v9331_v39  ;;  %10381 = vst [vmem:[#allocation132_spill] sm:$0xff] %v9334_v17 }
0x1701   :  { %3598 = vmatpush1.bf16.msra.mxu0 %v9318_v43  ;;  %6086 = vmatpush3.bf16.msra.mxu1 %v9321_v21  ;;  %v9338_v21 = vld [vmem:[#allocation11 + $0x18] ss:$12 sps:$4 sm:$0xff]  }
0x1702   :  { %3599 = vmatprep.subr.bf16.mxu0 %v9324_v54  ;;  %6087 = vmatprep.subr.bf16.mxu1 %v10077_v58  ;;  %10382 = vst [vmem:[#allocation133_spill] sm:$0xff] %v9338_v21 }
0x1705   :  { %3600 = vmatpush1.bf16.msra.mxu0 %v9328_v25  ;;  %6088 = vmatpush3.bf16.msra.mxu1 %v9331_v39 }
0x1706   :  { %3601 = vmatprep.subr.bf16.mxu0 %v9334_v17  ;;  %6089 = vmatprep.subr.bf16.mxu1 %v10077_v58 }
0x1709   :  { %3602 = vmatpush1.bf16.msra.mxu0 %v9338_v21  ;;  %6090 = vmatpush3.bf16.msra.mxu1 %v8639_v63 }
0x170a   :  { %3603 = vmatprep.subr.bf16.mxu0 %v8642_v31  ;;  %6091 = vmatprep.subr.bf16.mxu1 %v10077_v58 }
0x170d   :  { %3604 = vmatpush1.bf16.msra.mxu0 %v8646_v33  ;;  %6092 = vmatpush3.bf16.msra.mxu1 %v8649_v34 }
0x170e   :  { %3670 = vmatprep.subr.bf16.mxu0 %v8652_v37  ;;  %6097 = vmatprep.subr.bf16.mxu1 %v10077_v58 }
0x1790   :  { %v3413_v17 = vpop.f32.mrf.mxu0  ;;  %v3454_v39 = vpop.f32.mrf.mxu1 }
0x1791   :  { %v3477_v24 = vrot.slane %v3454_v39, %v7610_v29 }
0x1792   :  { %v3415_v25 = vpop.f32.mrf.mxu0  ;;  %v6055_v54 = vpop.f32.mrf.mxu1 }
0x1793   :  { %v3463_v27 = vcombine.low %v3413_v17, %v3415_v25 }
0x1794   :  { %v3417_v43 = vpop.f32.mrf.mxu0  ;;  %v3457_v21 = vpop.f32.mrf.mxu1 }
0x1795   :  { %v3470_v31 = vrot.slane %v3463_v27, %v7610_v29 }
0x1796   :  { %v3418_v19 = vpop.f32.mrf.mxu0  ;;  %v6056_v63 = vpop.f32.mrf.mxu1 }
0x1797   :  { %v3478_v33 = vcombine.low %v3470_v31, %v3477_v24 }
0x1799   :  { %v3480_v37 = vadd.f32 %v3478_v33, %v3377_v32 }
0x179b   :  { %v3570_v27 = vrot.slane %v3480_v37, 2 }
0x17b0   :  { %v3515_v34 = vpop.f32.mrf.mxu0  ;;  %v3556_v22 = vpop.f32.mrf.mxu1 }
0x17b1   :  { %v3516_v52 = vadd.f32 %v3515_v34, %v7620_v35 }
0x17b2   :  { %v3517_v0 = vpop.f32.mrf.mxu0  ;;  %v6075_v23 = vpop.f32.mrf.mxu1 }
0x17b3   :  { %v3562_v20 = vadd.f32 %v3516_v52, %v3480_v37  ;;  %v3518_v19 = vadd.f32 %v3517_v0, %v7626_v41  ;;  %v3557_v23 = vadd.f32 %v3556_v22, %v7632_v59 }
0x17b4   :  { %v3519_v54 = vpop.f32.mrf.mxu0  ;;  %v3559_v43 = vpop.f32.mrf.mxu1 }
0x17b5   :  { %v5033_v21 = vmul.f32 -1.442695, %v3562_v20  ;;  %v3572_v39 = vadd.f32 %v3570_v27, %v3518_v19  ;;  %v3580_v54 = vrot.slane %v3480_v37, 4 }
0x17b6   :  { %v3520_v25 = vpop.f32.mrf.mxu0  ;;  %v6076_v17 = vpop.f32.mrf.mxu1 }
0x17b7   :  { %6705 = vpow2.f32 %v5033_v21  ;;  %v5034_v24 = vmul.f32 -1.442695, %v3572_v39  ;;  %v10399_v39 = vld [vmem:[#allocation41_spill] sm:$0xff] }
0x17b9   :  { %6707 = vpow2.f32 %v5034_v24 }
0x17c4   :  { %v6706_v63 = vpop.eup %6705 }
0x17c5   :  { %v3566_v31 = vadd.f32 1.0, %v6706_v63 }
0x17c6   :  { %v6708_v32 = vpop.eup %6707 }
0x17c7   :  { %6709 = vrcp.f32 %v3566_v31  ;;  %v3576_v33 = vadd.f32 1.0, %v6708_v32 }
0x17c9   :  { %6711 = vrcp.f32 %v3576_v33 }
0x17d4   :  { %v6710_v52 = vpop.eup %6709 }
0x17d5   :  { %v3579_v34 = vmul.f32 %v6710_v52, %v3557_v23 }
0x17d6   :  { %v6712_v0 = vpop.eup %6711 }
0x17d7   :  { %v3582_v20 = vadd.f32 %v3580_v54, %v3579_v34  ;;  %v3584_v43 = vsub.f32 1.0, %v6712_v0  ;;  %v3586_v19 = vmul.f32 %v6712_v0, %v8662_v38  ;;  %v10383_v38 = vld [vmem:[#allocation28_spill] sm:$0xff] }
0x17d9   :  { %6713 = vtanh.f32 %v3582_v20 }
0x17e6   :  { %v6714_v21 = vpop.eup %6713 }
0x17e7   :  { %v3585_v25 = vmul.f32 %v6714_v21, %v3584_v43 }
0x17e9   :  { %v9354_v17 = vadd.f32 %v3586_v19, %v3585_v25 }
0x17eb   :  { %v9358_v27 = vpack.c.bf16 %v9354_v17, %v9354_v17 }
0x17ed   :  { %3622 = vmatmul.mubr.bf16.vlgmr.msra.gmra.mxu0 %v9358_v27  ;;  %6094 = vmatmul.mubr.bf16.vlgmr.msra.gmra.mxu1 %v9358_v27 }
0x17ee   :  { %3671 = vmatpush1.bf16.msra.mxu0 %v8670_v40  ;;  %6098 = vmatpush3.bf16.msra.mxu1 %v8673_v44  ;;  %v10384_v40 = vld [vmem:[#allocation29_spill] sm:$0xff]  ;;  %v10385_v44 = vld [vmem:[#allocation30_spill] sm:$0xff] }
0x17ef   :  { %3672 = vmatprep.subr.bf16.mxu0 %v8676_v47  ;;  %6099 = vmatprep.subr.bf16.mxu1 %v10077_v58  ;;  %v10386_v47 = vld [vmem:[#allocation31_spill] sm:$0xff] }
0x17f0   :  { %3702 = vmatprep.mubr.bf16.mxu0 %v10093_v61  ;;  %6113 = vmatprep.mubr.msk.bf16.mxu1 %vm7318_vm0, %v10077_v58 }
0x17f2   :  { %3673 = vmatpush1.bf16.msra.mxu0 %v8683_v56  ;;  %6100 = vmatpush3.bf16.msra.mxu1 %v8686_v48  ;;  %v10387_v56 = vld [vmem:[#allocation32_spill] sm:$0xff]  ;;  %v10388_v48 = vld [vmem:[#allocation33_spill] sm:$0xff] }
0x17f3   :  { %3674 = vmatprep.subr.bf16.mxu0 %v8689_v50  ;;  %6101 = vmatprep.subr.bf16.mxu1 %v10077_v58  ;;  %v10389_v50 = vld [vmem:[#allocation34_spill] sm:$0xff] }
0x17f6   :  { %3675 = vmatpush1.bf16.msra.mxu0 %v8693_v1  ;;  %6102 = vmatpush3.bf16.msra.mxu1 %v8696_v14  ;;  %v10390_v1 = vld [vmem:[#allocation35_spill] sm:$0xff]  ;;  %v10391_v14 = vld [vmem:[#allocation36_spill] sm:$0xff] }
0x17f7   :  { %3676 = vmatprep.subr.bf16.mxu0 %v8699_v18  ;;  %6103 = vmatprep.subr.bf16.mxu1 %v10077_v58  ;;  %v10392_v18 = vld [vmem:[#allocation37_spill] sm:$0xff] }
0x17fa   :  { %3677 = vmatpush1.bf16.msra.mxu0 %v8703_v4  ;;  %6104 = vmatpush3.bf16.msra.mxu1 %v8706_v10  ;;  %v10393_v4 = vld [vmem:[#allocation38_spill] sm:$0xff]  ;;  %v10394_v10 = vld [vmem:[#allocation39_spill] sm:$0xff] }
0x17fb   :  { %3678 = vmatprep.subr.bf16.mxu0 %v8709_v11  ;;  %6105 = vmatprep.subr.bf16.mxu1 %v10077_v58  ;;  %v10395_v11 = vld [vmem:[#allocation40_spill] sm:$0xff] }
0x17fe   :  { %3679 = vmatpush1.bf16.msra.mxu0 %v8713_v57  ;;  %6106 = vmatpush3.bf16.msra.mxu1 %v8716_v7  ;;  %v10396_v57 = vld [vmem:[#allocation44_spill] sm:$0xff]  ;;  %v10397_v7 = vld [vmem:[#allocation45_spill] sm:$0xff] }
0x17ff   :  { %3680 = vmatprep.subr.bf16.mxu0 %v8719_v12  ;;  %6107 = vmatprep.subr.bf16.mxu1 %v10077_v58  ;;  %v10398_v12 = vld [vmem:[#allocation42_spill] sm:$0xff] }
0x1802   :  { %3681 = vmatpush1.bf16.msra.mxu0 %v8723_v3  ;;  %6108 = vmatpush3.bf16.msra.mxu1 %v8726_v62 }
0x1803   :  { %3682 = vmatprep.subr.bf16.mxu0 %v8729_v13  ;;  %6109 = vmatprep.subr.bf16.mxu1 %v10077_v58 }
0x1806   :  { %3683 = vmatpush1.bf16.msra.mxu0 %v8733_v6  ;;  %6110 = vmatpush3.bf16.msra.mxu1 %v8736_v5 }
0x1807   :  { %3684 = vmatprep.subr.bf16.mxu0 %v8739_v51  ;;  %6111 = vmatprep.subr.bf16.mxu1 %v10077_v58 }
0x180a   :  { %3685 = vmatpush1.bf16.msra.mxu0 %v8743_v53  ;;  %6112 = vmatpush3.bf16.msra.mxu1 %v8746_v2 }
0x180b   :  { %6117 = vmatprep.subr.bf16.mxu0 %v10077_v58  ;;  %6137 = vmatprep.subr.bf16.mxu1 %v10077_v58 }
0x180d   :  { %3703 = vmatmul.mubr.bf16.vlgmr.msra.gmra.mxu0 %v8880_v30  ;;  %6114 = vmatmul.mubr.bf16.vlgmr.msra.gmra.mxu1 %v8880_v30 }
0x180e   :  { %6118 = vmatpush3.bf16.msra.mxu0 %v10383_v38  ;;  %6138 = vmatpush3.bf16.msra.mxu1 %v10384_v40 }
0x180f   :  { %6119 = vmatprep.subr.bf16.mxu0 %v10077_v58  ;;  %6139 = vmatprep.subr.bf16.mxu1 %v10077_v58 }
0x1810   :  { %6133 = vmatprep.mubr.msk.bf16.mxu0 %vm7318_vm0, %v10077_v58  ;;  %6153 = vmatprep.mubr.msk.bf16.mxu1 %vm7318_vm0, %v10077_v58 }
0x1812   :  { %6120 = vmatpush3.bf16.msra.mxu0 %v10385_v44  ;;  %6140 = vmatpush3.bf16.msra.mxu1 %v10386_v47 }
0x1813   :  { %6121 = vmatprep.subr.bf16.mxu0 %v10077_v58  ;;  %6141 = vmatprep.subr.bf16.mxu1 %v10077_v58 }
0x1816   :  { %6122 = vmatpush3.bf16.msra.mxu0 %v10387_v56  ;;  %6142 = vmatpush3.bf16.msra.mxu1 %v10388_v48 }
0x1817   :  { %6123 = vmatprep.subr.bf16.mxu0 %v10077_v58  ;;  %6143 = vmatprep.subr.bf16.mxu1 %v10077_v58 }
0x181a   :  { %6124 = vmatpush3.bf16.msra.mxu0 %v10389_v50  ;;  %6144 = vmatpush3.bf16.msra.mxu1 %v10390_v1 }
0x181b   :  { %6125 = vmatprep.subr.bf16.mxu0 %v10077_v58  ;;  %6145 = vmatprep.subr.bf16.mxu1 %v10077_v58 }
0x181e   :  { %6126 = vmatpush3.bf16.msra.mxu0 %v10391_v14  ;;  %6146 = vmatpush3.bf16.msra.mxu1 %v10392_v18 }
0x181f   :  { %6127 = vmatprep.subr.bf16.mxu0 %v10077_v58  ;;  %6147 = vmatprep.subr.bf16.mxu1 %v10077_v58 }
0x1822   :  { %6128 = vmatpush3.bf16.msra.mxu0 %v10393_v4  ;;  %6148 = vmatpush3.bf16.msra.mxu1 %v10394_v10 }
0x1823   :  { %6129 = vmatprep.subr.bf16.mxu0 %v10077_v58  ;;  %6149 = vmatprep.subr.bf16.mxu1 %v10077_v58 }
0x1826   :  { %6130 = vmatpush3.bf16.msra.mxu0 %v10395_v11  ;;  %6150 = vmatpush3.bf16.msra.mxu1 %v10396_v57 }
0x1827   :  { %6131 = vmatprep.subr.bf16.mxu0 %v10077_v58  ;;  %6151 = vmatprep.subr.bf16.mxu1 %v10077_v58 }
0x182a   :  { %6132 = vmatpush3.bf16.msra.mxu0 %v10397_v7  ;;  %6152 = vmatpush3.bf16.msra.mxu1 %v10398_v12 }
0x182b   :  { %6157 = vmatprep.subr.bf16.mxu0 %v10077_v58  ;;  %6169 = vmatprep.subr.bf16.mxu1 %v10077_v58 }
0x18ad   :  { %v3623_v3 = vpop.f32.mrf.mxu0  ;;  %v3664_v62 = vpop.f32.mrf.mxu1 }
0x18ae   :  { %v3624_v37 = vadd.f32 %v3623_v3, %v10184_v42  ;;  %v3665_v56 = vadd.f32 %v3664_v62, %v7874_v55  ;;  %v10402_v3 = vld [vmem:[#allocation73_spill] sm:$0xff] }
0x18af   :  { %v3625_v13 = vpop.f32.mrf.mxu0  ;;  %v6095_v6 = vpop.f32.mrf.mxu1 }
0x18b0   :  { %v3626_v0 = vadd.f32 %v3625_v13, %v7866_v60 }
0x18b1   :  { %v3627_v5 = vpop.f32.mrf.mxu0  ;;  %v3667_v51 = vpop.f32.mrf.mxu1 }
0x18b3   :  { %v3628_v53 = vpop.f32.mrf.mxu0  ;;  %v6096_v2 = vpop.f32.mrf.mxu1 }
0x18cd   :  { %v3704_v30 = vpop.f32.mrf.mxu0  ;;  %v3745_v22 = vpop.f32.mrf.mxu1 }
0x18ce   :  { %v3705_v24 = vadd.f32 %v3704_v30, %v10399_v39  ;;  %v3746_v44 = vadd.f32 %v3745_v22, %v7871_v36 }
0x18cf   :  { %v3706_v63 = vpop.f32.mrf.mxu0  ;;  %v6115_v31 = vpop.f32.mrf.mxu1 }
0x18d0   :  { %v3751_v32 = vadd.f32 %v3705_v24, %v3624_v37  ;;  %v3707_v34 = vadd.f32 %v3706_v63, %v7863_v9 }
0x18d1   :  { %v3708_v33 = vpop.f32.mrf.mxu0  ;;  %v3748_v23 = vpop.f32.mrf.mxu1 }
0x18d2   :  { %v5035_v52 = vmul.f32 -1.442695, %v3751_v32  ;;  %v3758_v43 = vadd.f32 %v3707_v34, %v3626_v0  ;;  %v10405_v0 = vld [vmem:[#allocation46_spill] sm:$0xff] }
0x18d3   :  { %v3709_v54 = vpop.f32.mrf.mxu0  ;;  %v6116_v20 = vpop.f32.mrf.mxu1 }
0x18d4   :  { %6715 = vpow2.f32 %v5035_v52  ;;  %v5036_v21 = vmul.f32 -1.442695, %v3758_v43  ;;  %v10403_v54 = vld [vmem:[#allocation74_spill] sm:$0xff]  ;;  %v10404_v20 = vld [vmem:[#allocation71_spill] sm:$0xff] }
0x18d6   :  { %6717 = vpow2.f32 %v5036_v21 }
0x18e1   :  { %v6716_v25 = vpop.eup %6715 }
0x18e2   :  { %v3755_v19 = vadd.f32 1.0, %v6716_v25 }
0x18e3   :  { %v6718_v38 = vpop.eup %6717 }
0x18e4   :  { %6719 = vrcp.f32 %v3755_v19  ;;  %v3762_v40 = vadd.f32 1.0, %v6718_v38 }
0x18e6   :  { %6721 = vrcp.f32 %v3762_v40 }
0x18f1   :  { %v6720_v47 = vpop.eup %6719 }
0x18f2   :  { %v3765_v48 = vmul.f32 %v6720_v47, %v3746_v44  ;;  %v10406_v47 = vld [vmem:[#allocation47_spill] sm:$0xff] }
0x18f3   :  { %v6722_v1 = vpop.eup %6721 }
0x18f4   :  { %v3766_v50 = vadd.f32 %v3765_v48, %v3665_v56  ;;  %v3768_v14 = vsub.f32 1.0, %v6722_v1  ;;  %v3770_v10 = vmul.f32 %v6722_v1, %v8876_v28  ;;  %v10400_v28 = vld [vmem:[#allocation43_spill] sm:$0xff] }
0x18f6   :  { %6723 = vtanh.f32 %v3766_v50 }
0x1903   :  { %v6724_v18 = vpop.eup %6723 }
0x1904   :  { %v3769_v4 = vmul.f32 %v6724_v18, %v3768_v14  ;;  %v10407_v14 = vld [vmem:[#allocation48_spill] sm:$0xff]  ;;  %v10408_v18 = vld [vmem:[#allocation49_spill] sm:$0xff] }
0x1906   :  { %v9442_v11 = vadd.f32 %v3770_v10, %v3769_v4  ;;  %v10409_v4 = vld [vmem:[#allocation50_spill] sm:$0xff]  ;;  %v10410_v10 = vld [vmem:[#allocation51_spill] sm:$0xff] }
0x1908   :  { %v9446_v57 = vpack.c.bf16 %v9442_v11, %v9442_v11 }
0x190a   :  { %6134 = vmatmul.mubr.bf16.vlgmr.msra.gmra.mxu0 %v9446_v57  ;;  %6154 = vmatmul.mubr.bf16.vlgmr.msra.gmra.mxu1 %v9446_v57 }
0x190b   :  { %6158 = vmatpush3.bf16.msra.mxu0 %v8887_v46  ;;  %6165 = vmatprep.mubr.msk.bf16.mxu0 %vm7318_vm0, %v10077_v58  ;;  %v10401_v46 = vld [vmem:[#allocation72_spill] sm:$0xff] }
0x190c   :  { %6159 = vmatprep.subr.bf16.mxu0 %v10077_v58  ;;  %6170 = vmatpush3.bf16.msra.mxu1 %v8076_v45 }
0x190d   :  { %6171 = vmatprep.mubr.msk.bf16.mxu1 %vm7318_vm0, %v10077_v58  ;;  %6187 = vmatprep.subr.bf16.mxu1 %v10077_v58 }
0x190f   :  { %6160 = vmatpush3.bf16.msra.mxu0 %v8900_v49 }
0x1910   :  { %6161 = vmatprep.subr.bf16.mxu0 %v10077_v58 }
0x1913   :  { %6162 = vmatpush3.bf16.msra.mxu0 %v10400_v28  ;;  %v10411_v28 = vld [vmem:[#allocation52_spill] sm:$0xff] }
0x1914   :  { %6163 = vmatprep.subr.bf16.mxu0 %v10077_v58 }
0x1917   :  { %6164 = vmatpush3.bf16.msra.mxu0 %v10401_v46  ;;  %v10412_v46 = vld [vmem:[#allocation53_spill] sm:$0xff] }
0x1918   :  { %6175 = vmatprep.subr.bf16.mxu0 %v10077_v58 }
0x19ca   :  { %v3807_v7 = vpop.f32.mrf.mxu0  ;;  %v3847_v12 = vpop.f32.mrf.mxu1 }
0x19cb   :  { %v3808_v62 = vadd.f32 %v10402_v3, %v3807_v7  ;;  %v3848_v13 = vadd.f32 %v8924_v26, %v3847_v12  ;;  %v10413_v7 = vld [vmem:[#allocation54_spill] sm:$0xff]  ;;  %v10414_v12 = vld [vmem:[#allocation55_spill] sm:$0xff]  ;;  %v10415_v3 = vld [vmem:[#allocation56_spill] sm:$0xff] }
0x19cc   :  { %v6135_v6 = vpop.f32.mrf.mxu0  ;;  %v6155_v5 = vpop.f32.mrf.mxu1 }
0x19cd   :  { %v3853_v49 = vsel %vm1537_vm2, %v3848_v13, -inf  ;;  %v3864_v51 = vsel %vm1549_vm1, %v3808_v62, -inf  ;;  %v10418_v6 = vld [vmem:[#allocation59_spill] sm:$0xff]  ;;  %v10419_v5 = vld [vmem:[#allocation60_spill] sm:$0xff] }
0x19ce   :  { %3854 = vmax.xlane.f32.xlu1 %v3853_v49  ;;  %v3850_v53 = vpop.f32.mrf.mxu1  ;;  %3865 = vmax.xlane.f32.xlu0 %v3864_v51  ;;  %v3810_v2 = vpop.f32.mrf.mxu0  ;;  %v10420_v49 = vld [vmem:[#allocation61_spill] sm:$0xff]  ;;  %v10421_v51 = vld [vmem:[#allocation62_spill] sm:$0xff] }
0x19cf   :  { %v10422_v53 = vld [vmem:[#allocation63_spill] sm:$0xff]  ;;  %v10423_v2 = vld [vmem:[#allocation64_spill] sm:$0xff] }
0x19d0   :  { %v6136_v30 = vpop.f32.mrf.mxu0  ;;  %v6156_v22 = vpop.f32.mrf.mxu1 }
0x19d1   :  { %v10424_v30 = vld [vmem:[#allocation65_spill] sm:$0xff]  ;;  %v10425_v22 = vld [vmem:[#allocation66_spill] sm:$0xff] }
0x1a57   :  { %v3855_v37 = vpop.xlane.xlu1 %3854  ;;  %v3866_v24 = vpop.xlane.xlu0 %3865 }
0x1a58   :  { %v3856_v63 = vsub.f32 %v3848_v13, %v3855_v37  ;;  %v3867_v31 = vsub.f32 %v3808_v62, %v3866_v24  ;;  %v10416_v62 = vld [vmem:[#allocation57_spill] sm:$0xff]  ;;  %v10417_v13 = vld [vmem:[#allocation58_spill] sm:$0xff]  ;;  %v10426_v37 = vld [vmem:[#allocation67_spill] sm:$0xff] }
0x1a59   :  { %v10427_v24 = vld [vmem:[#allocation68_spill] sm:$0xff] }
0x1a5a   :  { %v3857_v32 = vmul.f32 1.442695, %v3856_v63  ;;  %v3868_v33 = vmul.f32 1.442695, %v3867_v31  ;;  %v10428_v63 = vld [vmem:[#allocation69_spill] sm:$0xff]  ;;  %v10429_v31 = vld [vmem:[#allocation70_spill] sm:$0xff] }
0x1a5c   :  { %6725 = vpow2.f32 %v3857_v32  ;;  %v10430_v32 = vld [vmem:[#allocation75_spill] sm:$0xff] }
0x1a5d   :  { %6727 = vpow2.f32 %v3868_v33 }
0x1a69   :  { %v6726_v26 = vpop.eup %6725 }
0x1a6a   :  { %v9468_v23 = vpop.eup %6727  ;;  %v3859_v52 = vsel %vm1537_vm2, %v6726_v26, 0.0 }
0x1a6b   :  { %3860 = vadd.xlane.f32.xlu0 %v3859_v52  ;;  %v3870_v34 = vpack.c.bf16 %v9468_v23, %v9468_v23 }
0x1a6d   :  { %6166 = vmatmul.mubr.msk.bf16.vlgmr.msra.gmra.mxu0 %vm1581_vm3, %v3870_v34 }
0x1a6e   :  { %6176 = vmatpush3.bf16.msra.mxu0 %v8935_v16  ;;  %6183 = vmatprep.mubr.msk.bf16.mxu0 %vm7318_vm0, %v10077_v58 }
0x1a6f   :  { %6177 = vmatprep.subr.bf16.mxu0 %v10077_v58 }
0x1a72   :  { %6178 = vmatpush3.bf16.msra.mxu0 %v10403_v54 }
0x1a73   :  { %6179 = vmatprep.subr.bf16.mxu0 %v10077_v58 }
0x1a76   :  { %6180 = vmatpush3.bf16.msra.mxu0 %v10404_v20 }
0x1a77   :  { %6181 = vmatprep.subr.bf16.mxu0 %v10077_v58 }
0x1a7a   :  { %6182 = vmatpush3.bf16.msra.mxu0 %v10405_v0 }
0x1a7b   :  { %6207 = vmatprep.subr.bf16.mxu0 %v10077_v58 }
0x1af4   :  { %v3861_v43 = vpop.xlane.xlu0 %3860 }
0x1af5   :  { %6729 = vrcp.f32 %v3861_v43 }
0x1b02   :  { %v6730_v40 = vpop.eup %6729 }
0x1b03   :  { %v3863_v44 = vmul.f32 %v6730_v40, %v6726_v26 }
0x1b05   :  { %v3915_v56 = vmul.f32 %v10406_v47, %v3863_v44  ;;  %v10433_v44 = vld [vmem:[#allocation78_spill] sm:$0xff]  ;;  %v10434_v47 = vld [vmem:[#allocation79_spill] sm:$0xff] }
0x1b2d   :  { %v3908_v16 = vpop.f32.mrf.mxu0 }
0x1b2e   :  { %v3914_v21 = vmax.f32 %v3908_v16, 1e-30 }
0x1b2f   :  { %v6167_v25 = vpop.f32.mrf.mxu0 }
0x1b30   :  { %6731 = vrcp.f32 %v3914_v21 }
0x1b31   :  { %v3911_v19 = vpop.f32.mrf.mxu0 }
0x1b33   :  { %v6168_v38 = vpop.f32.mrf.mxu0 }
0x1b3d   :  { %v6732_v48 = vpop.eup %6731 }
0x1b3e   :  { %v3917_v50 = vmul.f32 %v6732_v48, %v3915_v56  ;;  %v10436_v56 = vld [vmem:[#allocation81_spill] sm:$0xff]  ;;  %v10437_v48 = vld [vmem:[#allocation82_spill] sm:$0xff] }
0x1b40   :  { %v3918_v1 = vpack.c.bf16 %v3917_v50, %v3917_v50 }
0x1b42   :  { %6172 = vmatmul.mubr.msk.bf16.vlgmr.msra.gmra.mxu1 %vm1630_vm5, %v3918_v1 }
0x1b43   :  { %6188 = vmatpush3.bf16.msra.mxu1 %v10407_v14  ;;  %6203 = vmatprep.mubr.msk.bf16.mxu1 %vm7318_vm0, %v10077_v58 }
0x1b44   :  { %6189 = vmatprep.subr.bf16.mxu1 %v10077_v58 }
0x1b47   :  { %6190 = vmatpush3.bf16.msra.mxu1 %v10408_v18 }
0x1b48   :  { %6191 = vmatprep.subr.bf16.mxu1 %v10077_v58 }
0x1b4b   :  { %6192 = vmatpush3.bf16.msra.mxu1 %v10409_v4  ;;  %v10438_v4 = vld [vmem:[#allocation83_spill] sm:$0xff] }
0x1b4c   :  { %6193 = vmatprep.subr.bf16.mxu1 %v10077_v58 }
0x1b4f   :  { %6194 = vmatpush3.bf16.msra.mxu1 %v10410_v10 }
0x1b50   :  { %6195 = vmatprep.subr.bf16.mxu1 %v10077_v58 }
0x1b53   :  { %6196 = vmatpush3.bf16.msra.mxu1 %v10411_v28  ;;  %v10439_v28 = vld [vmem:[#allocation84_spill] sm:$0xff] }
0x1b54   :  { %6197 = vmatprep.subr.bf16.mxu1 %v10077_v58 }
0x1b57   :  { %6198 = vmatpush3.bf16.msra.mxu1 %v10412_v46  ;;  %v10440_v46 = vld [vmem:[#allocation85_spill] sm:$0xff] }
0x1b58   :  { %6199 = vmatprep.subr.bf16.mxu1 %v10077_v58 }
0x1b5b   :  { %6200 = vmatpush3.bf16.msra.mxu1 %v10413_v7  ;;  %v10441_v7 = vld [vmem:[#allocation86_spill] sm:$0xff] }
0x1b5c   :  { %6201 = vmatprep.subr.bf16.mxu1 %v10077_v58 }
0x1b5f   :  { %6202 = vmatpush3.bf16.msra.mxu1 %v10414_v12  ;;  %v10442_v12 = vld [vmem:[#allocation87_spill] sm:$0xff] }
0x1b60   :  { %4101 = vmatprep.subr.bf16.mxu1 %v10415_v3  ;;  %v10443_v3 = vld [vmem:[#allocation88_spill] sm:$0xff] }
0x1b62   :  { %6204 = vmatmul.mubr.bf16.vlgmr.msra.gmra.mxu1 %v9446_v57 }
0x1b63   :  { %4102 = vmatpush1.bf16.msra.mxu1 %v10416_v62  ;;  %4133 = vmatprep.mubr.bf16.mxu1 %v10093_v61  ;;  %v10444_v62 = vld [vmem:[#allocation89_spill] sm:$0xff] }
0x1b64   :  { %4103 = vmatprep.subr.bf16.mxu1 %v10417_v13  ;;  %v10445_v13 = vld [vmem:[#allocation90_spill] sm:$0xff] }
0x1b67   :  { %4104 = vmatpush1.bf16.msra.mxu1 %v10418_v6 }
0x1b68   :  { %4105 = vmatprep.subr.bf16.mxu1 %v10419_v5 }
0x1b6b   :  { %4106 = vmatpush1.bf16.msra.mxu1 %v10420_v49 }
0x1b6c   :  { %4107 = vmatprep.subr.bf16.mxu1 %v10421_v51 }
0x1b6f   :  { %4108 = vmatpush1.bf16.msra.mxu1 %v10422_v53 }
0x1b70   :  { %4109 = vmatprep.subr.bf16.mxu1 %v10423_v2 }
0x1b73   :  { %4110 = vmatpush1.bf16.msra.mxu1 %v10424_v30 }
0x1b74   :  { %4111 = vmatprep.subr.bf16.mxu1 %v10425_v22  ;;  %v10446_v22 = vld [vmem:[#allocation91_spill] sm:$0xff] }
0x1b77   :  { %4112 = vmatpush1.bf16.msra.mxu1 %v10426_v37  ;;  %v10447_v37 = vld [vmem:[#allocation92_spill] sm:$0xff] }
0x1b78   :  { %4113 = vmatprep.subr.bf16.mxu1 %v10427_v24  ;;  %v10448_v24 = vld [vmem:[#allocation93_spill] sm:$0xff] }
0x1b7b   :  { %4114 = vmatpush1.bf16.msra.mxu1 %v10428_v63  ;;  %v10449_v63 = vld [vmem:[#allocation94_spill] sm:$0xff] }
0x1b7c   :  { %4115 = vmatprep.subr.bf16.mxu1 %v10429_v31  ;;  %v10450_v31 = vld [vmem:[#allocation95_spill] sm:$0xff] }
0x1b7f   :  { %4116 = vmatpush1.bf16.msra.mxu1 %v10430_v32  ;;  %v10451_v32 = vld [vmem:[#allocation96_spill] sm:$0xff] }
0x1b80   :  { %4203 = vmatprep.subr.bf16.mxu1 %v9088_v15  ;;  %v10431_v15 = vld [vmem:[#allocation76_spill] sm:$0xff] }
0x1c02   :  { %v3956_v33 = vpop.f32.mrf.mxu1 }
0x1c03   :  { %v3962_v26 = vmul.f32 %v9468_v23, %v3956_v33  ;;  %v10432_v23 = vld [vmem:[#allocation77_spill] sm:$0xff] }
0x1c04   :  { %v6173_v52 = vpop.f32.mrf.mxu1  ;;  %v10452_v33 = vld [vmem:[#allocation97_spill] sm:$0xff] }
0x1c05   :  { %v3963_v34 = vsel %vm1549_vm1, %v3962_v26, 0.0  ;;  %v10454_v52 = vld [vmem:[#allocation99_spill] sm:$0xff] }
0x1c06   :  { %3964 = vadd.xlane.f32.xlu1 %v3963_v34  ;;  %v3959_v54 = vpop.f32.mrf.mxu1  ;;  %v10455_v34 = vld [vmem:[#allocation100_spill] sm:$0xff] }
0x1c07   :  { %v10456_v54 = vld [vmem:[#allocation101_spill] sm:$0xff] }
0x1c08   :  { %v6174_v20 = vpop.f32.mrf.mxu1 }
0x1c09   :  { %v10457_v20 = vld [vmem:[#allocation102_spill] sm:$0xff] }
0x1c22   :  { %v4047_v0 = vpop.f32.mrf.mxu1 }
0x1c24   :  { %v6205_v43 = vpop.f32.mrf.mxu1 }
0x1c25   :  { %v10459_v43 = vld [vmem:[#allocation104_spill] sm:$0xff] }
0x1c26   :  { %v4050_v16 = vpop.f32.mrf.mxu1 }
0x1c27   :  { %v10460_v16 = vld [vmem:[#allocation105_spill] sm:$0xff] }
0x1c28   :  { %v6206_v21 = vpop.f32.mrf.mxu1 }
0x1c29   :  { %v10461_v21 = vld [vmem:[#allocation106_spill] sm:$0xff] }
0x1c8f   :  { %v3965_v25 = vpop.xlane.xlu1 %3964 }
0x1c90   :  { %6733 = vrcp.f32 %v3965_v25  ;;  %v10462_v25 = vld [vmem:[#allocation107_spill] sm:$0xff] }
0x1c9d   :  { %v6734_v19 = vpop.eup %6733 }
0x1c9e   :  { %v3967_v38 = vmul.f32 %v6734_v19, %v3962_v26  ;;  %v10453_v26 = vld [vmem:[#allocation98_spill] sm:$0xff]  ;;  %v10463_v19 = vld [vmem:[#allocation108_spill] sm:$0xff] }
0x1ca0   :  { %v3968_v40 = vpack.c.bf16 %v3967_v38, %v3967_v38  ;;  %4097 = vst.msk [vmem:[#allocation18 + $0x6] sm:$0x3] %vm1549_vm1, %v3967_v38  ;;  %v10464_v38 = vld [vmem:[#allocation109_spill] sm:$0xff] }
0x1ca2   :  { %6184 = vmatmul.mubr.msk.bf16.vlgmr.msra.gmra.mxu0 %vm1581_vm3, %v3968_v40  ;;  %v10465_v40 = vld [vmem:[#allocation110_spill] sm:$0xff] }
0x1ca3   :  { %6208 = vmatpush3.bf16.msra.mxu0 %v9097_v8  ;;  %6223 = vmatprep.mubr.msk.bf16.mxu0 %vm7318_vm0, %v10077_v58  ;;  %v10435_v8 = vld [vmem:[#allocation80_spill] sm:$0xff] }
0x1ca4   :  { %6209 = vmatprep.subr.bf16.mxu0 %v10077_v58 }
0x1ca7   :  { %6210 = vmatpush3.bf16.msra.mxu0 %v10431_v15  ;;  %v10466_v15 = vld [vmem:[#allocation111_spill] sm:$0xff] }
0x1ca8   :  { %6211 = vmatprep.subr.bf16.mxu0 %v10077_v58 }
0x1cab   :  { %6212 = vmatpush3.bf16.msra.mxu0 %v10432_v23  ;;  %v10467_v23 = vld [vmem:[#allocation112_spill] sm:$0xff] }
0x1cac   :  { %6213 = vmatprep.subr.bf16.mxu0 %v10077_v58 }
0x1caf   :  { %6214 = vmatpush3.bf16.msra.mxu0 %v10433_v44  ;;  %v10468_v44 = vld [vmem:[#allocation113_spill] sm:$0xff] }
0x1cb0   :  { %6215 = vmatprep.subr.bf16.mxu0 %v10077_v58 }
0x1cb3   :  { %6216 = vmatpush3.bf16.msra.mxu0 %v10434_v47  ;;  %v10469_v47 = vld [vmem:[#allocation114_spill] sm:$0xff] }
0x1cb4   :  { %6217 = vmatprep.subr.bf16.mxu0 %v10077_v58 }
0x1cb7   :  { %6218 = vmatpush3.bf16.msra.mxu0 %v10435_v8  ;;  %v10470_v8 = vld [vmem:[#allocation115_spill] sm:$0xff] }
0x1cb8   :  { %6219 = vmatprep.subr.bf16.mxu0 %v10077_v58 }
0x1cbb   :  { %6220 = vmatpush3.bf16.msra.mxu0 %v10436_v56  ;;  %v10471_v56 = vld [vmem:[#allocation116_spill] sm:$0xff] }
0x1cbc   :  { %6221 = vmatprep.subr.bf16.mxu0 %v10077_v58 }
0x1cbf   :  { %6222 = vmatpush3.bf16.msra.mxu0 %v10437_v48  ;;  %v10472_v48 = vld [vmem:[#allocation117_spill] sm:$0xff] }
0x1cc0   :  { %6227 = vmatprep.subr.bf16.mxu0 %v10077_v58 }
0x1d62   :  { %v4006_v50 = vpop.f32.mrf.mxu0 }
0x1d63   :  { %v4012_v1 = vpack.c.bf16 %v4006_v50, %v4006_v50  ;;  %v10473_v50 = vld [vmem:[#allocation118_spill] sm:$0xff] }
0x1d64   :  { %v6185_v14 = vpop.f32.mrf.mxu0 }
0x1d65   :  { %6224 = vmatmul.mubr.bf16.vlgmr.msra.gmra.mxu0 %v4012_v1  ;;  %v10474_v1 = vld [vmem:[#allocation119_spill] sm:$0xff]  ;;  %v10475_v14 = vld [vmem:[#allocation120_spill] sm:$0xff] }
0x1d66   :  { %v4009_v18 = vpop.f32.mrf.mxu0  ;;  %6228 = vmatpush3.bf16.msra.mxu0 %v10438_v4  ;;  %6243 = vmatprep.mubr.msk.bf16.mxu0 %vm7318_vm0, %v10077_v58  ;;  %v10478_v4 = vld [vmem:[#allocation123_spill] sm:$0xff] }
0x1d67   :  { %6229 = vmatprep.subr.bf16.mxu0 %v10077_v58  ;;  %v10477_v18 = vld [vmem:[#allocation122_spill] sm:$0xff] }
0x1d68   :  { %v6186_v10 = vpop.f32.mrf.mxu0 }
0x1d69   :  { %v10479_v10 = vld [vmem:[#allocation124_spill] sm:$0xff] }
0x1d6a   :  { %6230 = vmatpush3.bf16.msra.mxu0 %v10439_v28  ;;  %v10480_v28 = vld [vmem:[#allocation125_spill] sm:$0xff] }
0x1d6b   :  { %6231 = vmatprep.subr.bf16.mxu0 %v10077_v58 }
0x1d6e   :  { %6232 = vmatpush3.bf16.msra.mxu0 %v10440_v46  ;;  %v10481_v46 = vld [vmem:[#allocation126_spill] sm:$0xff] }
0x1d6f   :  { %6233 = vmatprep.subr.bf16.mxu0 %v10077_v58 }
0x1d72   :  { %6234 = vmatpush3.bf16.msra.mxu0 %v10441_v7  ;;  %v10482_v7 = vld [vmem:[#allocation127_spill] sm:$0xff] }
0x1d73   :  { %6235 = vmatprep.subr.bf16.mxu0 %v10077_v58 }
0x1d76   :  { %6236 = vmatpush3.bf16.msra.mxu0 %v10442_v12  ;;  %v10483_v12 = vld [vmem:[#allocation128_spill] sm:$0xff] }
0x1d77   :  { %6237 = vmatprep.subr.bf16.mxu0 %v10077_v58 }
0x1d7a   :  { %6238 = vmatpush3.bf16.msra.mxu0 %v10443_v3  ;;  %v10484_v3 = vld [vmem:[#allocation129_spill] sm:$0xff] }
0x1d7b   :  { %6239 = vmatprep.subr.bf16.mxu0 %v10077_v58 }
0x1d7e   :  { %6240 = vmatpush3.bf16.msra.mxu0 %v10444_v62  ;;  %v10485_v62 = vld [vmem:[#allocation130_spill] sm:$0xff] }
0x1d7f   :  { %6241 = vmatprep.subr.bf16.mxu0 %v10077_v58 }
0x1d82   :  { %6242 = vmatpush3.bf16.msra.mxu0 %v10445_v13  ;;  %v10486_v13 = vld [vmem:[#allocation131_spill] sm:$0xff] }
0x1d83   :  { %6247 = vmatprep.subr.bf16.mxu0 %v10077_v58 }
0x1e25   :  { %v4087_v6 = vpop.f32.mrf.mxu0 }
0x1e26   :  { %v4088_v5 = vadd.f32 %v4087_v6, %v4047_v0  ;;  %v10458_v0 = vld [vmem:[#allocation103_spill] sm:$0xff]  ;;  %v10487_v6 = vld [vmem:[#allocation132_spill] sm:$0xff] }
0x1e27   :  { %v6225_v49 = vpop.f32.mrf.mxu0 }
0x1e28   :  { %6735 = vtanh.f32 %v4088_v5  ;;  %v10488_v5 = vld [vmem:[#allocation133_spill] sm:$0xff] }
0x1e29   :  { %v4090_v51 = vpop.f32.mrf.mxu0  ;;  %v6976_v49 = vld [vmem:[#allocation11 + $0x20] ss:$12 sps:$4 sm:$0xff]  }
0x1e2a   :  { %v6977_v51 = vld [vmem:[#allocation11 + $0x4] ss:$12 sps:$4 sm:$0xff]  }
0x1e2b   :  { %v6226_v53 = vpop.f32.mrf.mxu0 }
0x1e2c   :  { %v6978_v53 = vld [vmem:[#allocation11] ss:$12 sps:$4 sm:$0xff]  }
0x1e35   :  { %v6736_v2 = vpop.eup %6735 }
0x1e36   :  { %4095 = vst [vmem:[#allocation17 + $0x6] sm:$0x3] %v6736_v2  ;;  %v4100_v30 = vpack.c.bf16 %v6736_v2, %v6736_v2  ;;  %v6979_v2 = vld [vmem:[#allocation11 + $0x8] ss:$12 sps:$4 sm:$0xff]  }
0x1e38   :  { %4134 = vmatmul.mubr.bf16.vlgmr.msra.gmra.mxu1 %v4100_v30  ;;  %6244 = vmatmul.mubr.bf16.vlgmr.msra.gmra.mxu0 %v4100_v30  ;;  %v6980_v30 = vld [vmem:[#allocation13 + $0xac] ss:$12 sps:$4 sm:$0xff]  }
0x1e39   :  { %4204 = vmatpush1.bf16.msra.mxu1 %v10446_v22  ;;  %6248 = vmatpush3.bf16.msra.mxu0 %v10447_v37 }
0x1e3a   :  { %4205 = vmatprep.subr.bf16.mxu1 %v10448_v24  ;;  %6249 = vmatprep.subr.bf16.mxu0 %v10077_v58 }
0x1e3b   :  { %4235 = vmatprep.mubr.bf16.mxu1 %v10093_v61  ;;  %6263 = vmatprep.mubr.msk.bf16.mxu0 %vm7318_vm0, %v10077_v58 }
0x1e3d   :  { %4206 = vmatpush1.bf16.msra.mxu1 %v10449_v63  ;;  %6250 = vmatpush3.bf16.msra.mxu0 %v10450_v31 }
0x1e3e   :  { %4207 = vmatprep.subr.bf16.mxu1 %v10451_v32  ;;  %6251 = vmatprep.subr.bf16.mxu0 %v10077_v58 }
0x1e41   :  { %4208 = vmatpush1.bf16.msra.mxu1 %v10452_v33  ;;  %6252 = vmatpush3.bf16.msra.mxu0 %v10453_v26 }
0x1e42   :  { %4209 = vmatprep.subr.bf16.mxu1 %v10454_v52  ;;  %6253 = vmatprep.subr.bf16.mxu0 %v10077_v58 }
0x1e45   :  { %4210 = vmatpush1.bf16.msra.mxu1 %v10455_v34  ;;  %6254 = vmatpush3.bf16.msra.mxu0 %v10456_v54 }
0x1e46   :  { %4211 = vmatprep.subr.bf16.mxu1 %v10457_v20  ;;  %6255 = vmatprep.subr.bf16.mxu0 %v10077_v58 }
0x1e49   :  { %4212 = vmatpush1.bf16.msra.mxu1 %v10458_v0  ;;  %6256 = vmatpush3.bf16.msra.mxu0 %v10459_v43  ;;  %v4099_v0 = vld [vmem:[#allocation2 + $0x18] sm:$0x3f] }
0x1e4a   :  { %4213 = vmatprep.subr.bf16.mxu1 %v10460_v16  ;;  %6257 = vmatprep.subr.bf16.mxu0 %v10077_v58 }
0x1e4d   :  { %4214 = vmatpush1.bf16.msra.mxu1 %v10461_v21  ;;  %6258 = vmatpush3.bf16.msra.mxu0 %v10462_v25 }
0x1e4e   :  { %4215 = vmatprep.subr.bf16.mxu1 %v10463_v19  ;;  %6259 = vmatprep.subr.bf16.mxu0 %v10077_v58 }
0x1e51   :  { %4216 = vmatpush1.bf16.msra.mxu1 %v10464_v38  ;;  %6260 = vmatpush3.bf16.msra.mxu0 %v10465_v40 }
0x1e52   :  { %4217 = vmatprep.subr.bf16.mxu1 %v10466_v15  ;;  %6261 = vmatprep.subr.bf16.mxu0 %v10077_v58 }
0x1e55   :  { %4218 = vmatpush1.bf16.msra.mxu1 %v10467_v23  ;;  %6262 = vmatpush3.bf16.msra.mxu0 %v10468_v44 }
0x1e56   :  { %4311 = vmatprep.subr.bf16.mxu1 %v10469_v47  ;;  %6267 = vmatprep.subr.bf16.mxu0 %v10077_v58 }
0x1e58   :  { %4236 = vmatmul.mubr.bf16.vlgmr.msra.gmra.mxu1 %v9358_v27  ;;  %6264 = vmatmul.mubr.bf16.vlgmr.msra.gmra.mxu0 %v9358_v27  ;;  %v10476_v27 = vld [vmem:[#allocation121_spill] sm:$0xff] }
0x1e59   :  { %4312 = vmatpush1.bf16.msra.mxu1 %v10470_v8  ;;  %6268 = vmatpush3.bf16.msra.mxu0 %v10471_v56 }
0x1e5a   :  { %4313 = vmatprep.subr.bf16.mxu1 %v10472_v48  ;;  %6269 = vmatprep.subr.bf16.mxu0 %v10077_v58 }
0x1e5b   :  { %4343 = vmatprep.mubr.bf16.mxu1 %v10093_v61  ;;  %6283 = vmatprep.mubr.msk.bf16.mxu0 %vm7318_vm0, %v10077_v58 }
0x1e5d   :  { %4314 = vmatpush1.bf16.msra.mxu1 %v10473_v50  ;;  %6270 = vmatpush3.bf16.msra.mxu0 %v10474_v1 }
0x1e5e   :  { %4315 = vmatprep.subr.bf16.mxu1 %v10475_v14  ;;  %6271 = vmatprep.subr.bf16.mxu0 %v10077_v58 }
0x1e61   :  { %4316 = vmatpush1.bf16.msra.mxu1 %v10476_v27  ;;  %6272 = vmatpush3.bf16.msra.mxu0 %v10477_v18 }
0x1e62   :  { %4317 = vmatprep.subr.bf16.mxu1 %v10478_v4  ;;  %6273 = vmatprep.subr.bf16.mxu0 %v10077_v58 }
0x1e65   :  { %4318 = vmatpush1.bf16.msra.mxu1 %v10479_v10  ;;  %6274 = vmatpush3.bf16.msra.mxu0 %v10480_v28 }
0x1e66   :  { %4319 = vmatprep.subr.bf16.mxu1 %v10481_v46  ;;  %6275 = vmatprep.subr.bf16.mxu0 %v10077_v58 }
0x1e69   :  { %4320 = vmatpush1.bf16.msra.mxu1 %v10482_v7  ;;  %6276 = vmatpush3.bf16.msra.mxu0 %v10483_v12 }
0x1e6a   :  { %4321 = vmatprep.subr.bf16.mxu1 %v10484_v3  ;;  %6277 = vmatprep.subr.bf16.mxu0 %v10077_v58 }
0x1e6d   :  { %4322 = vmatpush1.bf16.msra.mxu1 %v10485_v62  ;;  %6278 = vmatpush3.bf16.msra.mxu0 %v10486_v13 }
0x1e6e   :  { %4323 = vmatprep.subr.bf16.mxu1 %v10487_v6  ;;  %6279 = vmatprep.subr.bf16.mxu0 %v10077_v58 }
0x1e71   :  { %4324 = vmatpush1.bf16.msra.mxu1 %v10488_v5  ;;  %6280 = vmatpush3.bf16.msra.mxu0 %v6976_v49  ;;  %v6981_v5 = vld [vmem:[#allocation13 + $0xa8] ss:$12 sps:$4 sm:$0xff]  }
0x1e72   :  { %4325 = vmatprep.subr.bf16.mxu1 %v6977_v51  ;;  %6281 = vmatprep.subr.bf16.mxu0 %v10077_v58  ;;  %v6983_v49 = vld [vmem:[#allocation13 + $0x94] ss:$12 sps:$4 sm:$0xff]   ;;  %v6984_v51 = vld [vmem:[#allocation13 + $0x90] ss:$12 sps:$4 sm:$0xff]  }
0x1e75   :  { %4326 = vmatpush1.bf16.msra.mxu1 %v6978_v53  ;;  %6282 = vmatpush3.bf16.msra.mxu0 %v6979_v2  ;;  %v6986_v53 = vld [vmem:[#allocation13 + $0x7c] ss:$12 sps:$4 sm:$0xff]   ;;  %v6987_v2 = vld [vmem:[#allocation13 + $0x78] ss:$12 sps:$4 sm:$0xff]  }
0x1e76   :  { %4392 = vmatprep.subr.bf16.mxu1 %v6980_v30  ;;  %6287 = vmatprep.subr.bf16.mxu0 %v10077_v58  ;;  %v6988_v30 = vld [vmem:[#allocation13 + $0x80] ss:$12 sps:$4 sm:$0xff]  }
0x1ef8   :  { %v4135_v22 = vpop.f32.mrf.mxu1  ;;  %v4176_v37 = vpop.f32.mrf.mxu0 }
0x1ef9   :  { %v4199_v54 = vrot.slane %v4176_v37, %v7610_v29  ;;  %v6991_v37 = vld [vmem:[#allocation13 + $0x68] ss:$12 sps:$4 sm:$0xff]  }
0x1efa   :  { %v4137_v24 = vpop.f32.mrf.mxu1  ;;  %v6245_v63 = vpop.f32.mrf.mxu0 }
0x1efb   :  { %v4185_v52 = vcombine.low %v4135_v22, %v4137_v24  ;;  %v6989_v22 = vld [vmem:[#allocation13 + $0x64] ss:$12 sps:$4 sm:$0xff]   ;;  %v6992_v24 = vld [vmem:[#allocation13 + $0x4c] ss:$12 sps:$4 sm:$0xff]   ;;  %v6993_v63 = vld [vmem:[#allocation13 + $0x48] ss:$12 sps:$4 sm:$0xff]  }
0x1efc   :  { %v4139_v31 = vpop.f32.mrf.mxu1  ;;  %v4179_v32 = vpop.f32.mrf.mxu0 }
0x1efd   :  { %v4192_v34 = vrot.slane %v4185_v52, %v7610_v29  ;;  %v6994_v31 = vld [vmem:[#allocation13 + $0x50] ss:$12 sps:$4 sm:$0xff]   ;;  %v6995_v32 = vld [vmem:[#allocation13 + $0x34] ss:$12 sps:$4 sm:$0xff]  }
0x1efe   :  { %v4140_v33 = vpop.f32.mrf.mxu1  ;;  %v6246_v26 = vpop.f32.mrf.mxu0  ;;  %v6998_v52 = vld [vmem:[#allocation13 + $0x1c] ss:$12 sps:$4 sm:$0xff]  }
0x1eff   :  { %v4200_v20 = vcombine.low %v4192_v34, %v4199_v54  ;;  %v6996_v33 = vld [vmem:[#allocation13 + $0x30] ss:$12 sps:$4 sm:$0xff]   ;;  %v6997_v26 = vld [vmem:[#allocation13 + $0x38] ss:$12 sps:$4 sm:$0xff]   ;;  %v7000_v54 = vld [vmem:[#allocation13 + $0x20] ss:$12 sps:$4 sm:$0xff]  }
0x1f00   :  { %v6999_v34 = vld [vmem:[#allocation13 + $0x18] ss:$12 sps:$4 sm:$0xff]  }
0x1f01   :  { %v4202_v21 = vadd.f32 %v4200_v20, %v4099_v0  ;;  %v7001_v20 = vld [vmem:[#allocation13 + $0x4] ss:$12 sps:$4 sm:$0xff]   ;;  %v7002_v0 = vld [vmem:[#allocation13] ss:$12 sps:$4 sm:$0xff]  }
0x1f03   :  { %v4292_v48 = vrot.slane %v4202_v21, 2  ;;  %v4302_v28 = vrot.slane %v4202_v21, 4 }
0x1f18   :  { %v4237_v43 = vpop.f32.mrf.mxu1  ;;  %v4278_v16 = vpop.f32.mrf.mxu0 }
0x1f19   :  { %v4238_v25 = vadd.f32 %v4237_v43, %v7620_v35  ;;  %v4279_v18 = vadd.f32 %v4278_v16, %v7632_v59  ;;  %v6982_v59 = vld [vmem:[#allocation13 + $0xb0] ss:$12 sps:$4 sm:$0xff]   ;;  %v7003_v43 = vld [vmem:[#allocation13 + $0x8] ss:$12 sps:$4 sm:$0xff]  }
0x1f1a   :  { %v4239_v19 = vpop.f32.mrf.mxu1  ;;  %v6265_v38 = vpop.f32.mrf.mxu0  ;;  %v7004_v16 = vld [vmem:[%s10061_s25 + $0x38] sm:$0xff]  }
0x1f1b   :  { %v4284_v40 = vadd.f32 %v4238_v25, %v4202_v21  ;;  %v4240_v47 = vadd.f32 %v4239_v19, %v7626_v41  ;;  %v7005_v21 = vld [vmem:[%s10062_s27 + $0x38] sm:$0xff]   ;;  %v7007_v25 = vld [vmem:[%s10062_s27 + $0x30] sm:$0xff]   ;;  %v7008_v19 = vld [vmem:[%s10061_s25 + $0x28] sm:$0xff]  }
0x1f1c   :  { %v4241_v15 = vpop.f32.mrf.mxu1  ;;  %v4281_v23 = vpop.f32.mrf.mxu0  ;;  %v7009_v38 = vld [vmem:[%s10062_s27 + $0x28] sm:$0xff]  }
0x1f1d   :  { %v5040_v44 = vmul.f32 -1.442695, %v4284_v40  ;;  %v4294_v29 = vadd.f32 %v4292_v48, %v4240_v47  ;;  %v7010_v40 = vld [vmem:[%s10061_s25 + $0x20] sm:$0xff]   ;;  %v7012_v23 = vld [vmem:[%s10061_s25 + $0x18] sm:$0xff]   ;;  %v7014_v47 = vld [vmem:[%s10061_s25 + $0x10] sm:$0xff]  }
0x1f1e   :  { %v4242_v8 = vpop.f32.mrf.mxu1  ;;  %v6266_v56 = vpop.f32.mrf.mxu0  ;;  %v7011_v15 = vld [vmem:[%s10062_s27 + $0x20] sm:$0xff]   ;;  %v7017_v48 = vld [vmem:[%s10062_s27 + $0x8] sm:$0xff]  }
0x1f1f   :  { %6737 = vpow2.f32 %v5040_v44  ;;  %v5041_v50 = vmul.f32 -1.442695, %v4294_v29  ;;  %v7013_v44 = vld [vmem:[%s10062_s27 + $0x18] sm:$0xff]   ;;  %v7015_v8 = vld [vmem:[%s10062_s27 + $0x10] sm:$0xff]   ;;  %v7016_v56 = vld [vmem:[%s10061_s25 + $0x8] sm:$0xff]  }
0x1f20   :  { %v7018_v29 = vld [vmem:[%s10061_s25] sm:$0xff]  }
0x1f21   :  { %6739 = vpow2.f32 %v5041_v50  ;;  %v7019_v50 = vld [vmem:[%s10062_s27] sm:$0xff]  }
0x1f2c   :  { %v6738_v1 = vpop.eup %6737 }
0x1f2d   :  { %v4288_v14 = vadd.f32 1.0, %v6738_v1 }
0x1f2e   :  { %v6740_v27 = vpop.eup %6739 }
0x1f2f   :  { %6741 = vrcp.f32 %v4288_v14  ;;  %v4298_v35 = vadd.f32 1.0, %v6740_v27 }
0x1f31   :  { %6743 = vrcp.f32 %v4298_v35 }
0x1f3c   :  { %v6742_v4 = vpop.eup %6741 }
0x1f3d   :  { %v4301_v10 = vmul.f32 %v6742_v4, %v4279_v18 }
0x1f3e   :  { %v6744_v41 = vpop.eup %6743 }
0x1f3f   :  { %v4304_v46 = vadd.f32 %v4302_v28, %v4301_v10  ;;  %v4306_v7 = vsub.f32 1.0, %v6744_v41  ;;  %v4308_v62 = vmul.f32 %v6744_v41, %v9354_v17  ;;  %v6985_v17 = vld [vmem:[#allocation13 + $0x98] ss:$12 sps:$4 sm:$0xff]  }
0x1f41   :  { %6745 = vtanh.f32 %v4304_v46 }
0x1f4e   :  { %v6746_v12 = vpop.eup %6745 }
0x1f4f   :  { %v4307_v3 = vmul.f32 %v6746_v12, %v4306_v7 }
0x1f51   :  { %v4309_v13 = vadd.f32 %v4308_v62, %v4307_v3 }
0x1f53   :  { %v4310_v6 = vpack.c.bf16 %v4309_v13, %v4309_v13  ;;  %4820 = vst [vmem:[#allocation20] sm:$0x3] %v4309_v13 }
0x1f55   :  { %4344 = vmatmul.mubr.bf16.vlgmr.msra.gmra.mxu1 %v4310_v6  ;;  %6284 = vmatmul.mubr.bf16.vlgmr.msra.gmra.mxu0 %v4310_v6 }
0x1f56   :  { %4393 = vmatpush1.bf16.msra.mxu1 %v6981_v5  ;;  %6288 = vmatpush3.bf16.msra.mxu0 %v6982_v59 }
0x1f57   :  { %4394 = vmatprep.subr.bf16.mxu1 %v6983_v49  ;;  %6289 = vmatprep.subr.bf16.mxu0 %v10077_v58 }
0x1f58   :  { %4424 = vmatprep.mubr.bf16.mxu1 %v10093_v61  ;;  %6303 = vmatprep.mubr.msk.bf16.mxu0 %vm7318_vm0, %v10077_v58  ;;  %v6990_v61 = vld [vmem:[#allocation13 + $0x60] ss:$12 sps:$4 sm:$0xff]  }
0x1f5a   :  { %4395 = vmatpush1.bf16.msra.mxu1 %v6984_v51  ;;  %6290 = vmatpush3.bf16.msra.mxu0 %v6985_v17 }
0x1f5b   :  { %4396 = vmatprep.subr.bf16.mxu1 %v6986_v53  ;;  %6291 = vmatprep.subr.bf16.mxu0 %v10077_v58 }
0x1f5e   :  { %4397 = vmatpush1.bf16.msra.mxu1 %v6987_v2  ;;  %6292 = vmatpush3.bf16.msra.mxu0 %v6988_v30 }
0x1f5f   :  { %4398 = vmatprep.subr.bf16.mxu1 %v6989_v22  ;;  %6293 = vmatprep.subr.bf16.mxu0 %v10077_v58 }
0x1f62   :  { %4399 = vmatpush1.bf16.msra.mxu1 %v6990_v61  ;;  %6294 = vmatpush3.bf16.msra.mxu0 %v6991_v37 }
0x1f63   :  { %4400 = vmatprep.subr.bf16.mxu1 %v6992_v24  ;;  %6295 = vmatprep.subr.bf16.mxu0 %v10077_v58 }
0x1f66   :  { %4401 = vmatpush1.bf16.msra.mxu1 %v6993_v63  ;;  %6296 = vmatpush3.bf16.msra.mxu0 %v6994_v31 }
0x1f67   :  { %4402 = vmatprep.subr.bf16.mxu1 %v6995_v32  ;;  %6297 = vmatprep.subr.bf16.mxu0 %v10077_v58 }
0x1f6a   :  { %4403 = vmatpush1.bf16.msra.mxu1 %v6996_v33  ;;  %6298 = vmatpush3.bf16.msra.mxu0 %v6997_v26 }
0x1f6b   :  { %4404 = vmatprep.subr.bf16.mxu1 %v6998_v52  ;;  %6299 = vmatprep.subr.bf16.mxu0 %v10077_v58 }
0x1f6e   :  { %4405 = vmatpush1.bf16.msra.mxu1 %v6999_v34  ;;  %6300 = vmatpush3.bf16.msra.mxu0 %v7000_v54 }
0x1f6f   :  { %4406 = vmatprep.subr.bf16.mxu1 %v7001_v20  ;;  %6301 = vmatprep.subr.bf16.mxu0 %v10077_v58 }
0x1f72   :  { %4407 = vmatpush1.bf16.msra.mxu1 %v7002_v0  ;;  %6302 = vmatpush3.bf16.msra.mxu0 %v7003_v43  ;;  %v7024_v43 = vld [vmem:[%s10078_s22] sm:$0x3] }
0x1f73   :  { %6307 = vmatprep.subr.bf16.mxu1 %v10077_v58  ;;  %6327 = vmatprep.subr.bf16.mxu0 %v10077_v58 }
0x1f75   :  { %4425 = vmatmul.mubr.bf16.vlgmr.msra.gmra.mxu1 %v9446_v57  ;;  %6304 = vmatmul.mubr.bf16.vlgmr.msra.gmra.mxu0 %v9446_v57  ;;  %v7006_v57 = vld [vmem:[%s10061_s25 + $0x30] sm:$0xff]  }
0x1f76   :  { %6308 = vmatpush3.bf16.msra.mxu1 %v7004_v16  ;;  %6328 = vmatpush3.bf16.msra.mxu0 %v7005_v21  ;;  %v7025_v21 = vld [vmem:[#allocation7] sm:$0x3] }
0x1f77   :  { %6309 = vmatprep.subr.bf16.mxu1 %v10077_v58  ;;  %6329 = vmatprep.subr.bf16.mxu0 %v10077_v58 }
0x1f78   :  { %6323 = vmatprep.mubr.msk.bf16.mxu1 %vm7318_vm0, %v10077_v58  ;;  %6343 = vmatprep.mubr.msk.bf16.mxu0 %vm7318_vm0, %v10077_v58 }
0x1f7a   :  { %6310 = vmatpush3.bf16.msra.mxu1 %v7006_v57  ;;  %6330 = vmatpush3.bf16.msra.mxu0 %v7007_v25 }
0x1f7b   :  { %6311 = vmatprep.subr.bf16.mxu1 %v10077_v58  ;;  %6331 = vmatprep.subr.bf16.mxu0 %v10077_v58 }
0x1f7e   :  { %6312 = vmatpush3.bf16.msra.mxu1 %v7008_v19  ;;  %6332 = vmatpush3.bf16.msra.mxu0 %v7009_v38 }
0x1f7f   :  { %6313 = vmatprep.subr.bf16.mxu1 %v10077_v58  ;;  %6333 = vmatprep.subr.bf16.mxu0 %v10077_v58 }
0x1f82   :  { %6314 = vmatpush3.bf16.msra.mxu1 %v7010_v40  ;;  %6334 = vmatpush3.bf16.msra.mxu0 %v7011_v15 }
0x1f83   :  { %6315 = vmatprep.subr.bf16.mxu1 %v10077_v58  ;;  %6335 = vmatprep.subr.bf16.mxu0 %v10077_v58 }
0x1f86   :  { %6316 = vmatpush3.bf16.msra.mxu1 %v7012_v23  ;;  %6336 = vmatpush3.bf16.msra.mxu0 %v7013_v44 }
0x1f87   :  { %6317 = vmatprep.subr.bf16.mxu1 %v10077_v58  ;;  %6337 = vmatprep.subr.bf16.mxu0 %v10077_v58 }
0x1f8a   :  { %6318 = vmatpush3.bf16.msra.mxu1 %v7014_v47  ;;  %6338 = vmatpush3.bf16.msra.mxu0 %v7015_v8 }
0x1f8b   :  { %6319 = vmatprep.subr.bf16.mxu1 %v10077_v58  ;;  %6339 = vmatprep.subr.bf16.mxu0 %v10077_v58 }
0x1f8e   :  { %6320 = vmatpush3.bf16.msra.mxu1 %v7016_v56  ;;  %6340 = vmatpush3.bf16.msra.mxu0 %v7017_v48 }
0x1f8f   :  { %6321 = vmatprep.subr.bf16.mxu1 %v10077_v58  ;;  %6341 = vmatprep.subr.bf16.mxu0 %v10077_v58 }
0x1f92   :  { %6322 = vmatpush3.bf16.msra.mxu1 %v7018_v29  ;;  %6342 = vmatpush3.bf16.msra.mxu0 %v7019_v50 }
0x1f93   :  { %6347 = vmatprep.subr.bf16.mxu1 %v10077_v58  ;;  %6359 = vmatprep.subr.bf16.mxu0 %v10077_v58 }
0x2015   :  { %v4345_v1 = vpop.f32.mrf.mxu1  ;;  %v4386_v14 = vpop.f32.mrf.mxu0 }
0x2016   :  { %v4346_v7 = vadd.f32 %v4345_v1, %v10184_v42  ;;  %v4387_v63 = vadd.f32 %v4386_v14, %v7874_v55  ;;  %v7021_v55 = vld [vmem:[%s9824_s17 + $0x10] sm:$0xff]  }
0x2017   :  { %v4347_v27 = vpop.f32.mrf.mxu1  ;;  %v6285_v35 = vpop.f32.mrf.mxu0 }
0x2018   :  { %v4348_v53 = vadd.f32 %v4347_v27, %v7866_v60 }
0x2019   :  { %v4349_v18 = vpop.f32.mrf.mxu1  ;;  %v4389_v4 = vpop.f32.mrf.mxu0 }
0x201a   :  { %v7026_v4 = vld [vmem:[#allocation5 + $0x18] sm:$0xff]  }
0x201b   :  { %v4350_v10 = vpop.f32.mrf.mxu1  ;;  %v6286_v28 = vpop.f32.mrf.mxu0 }
0x201c   :  { %v7027_v10 = vld [vmem:[#allocation5 + $0x10] sm:$0xff]   ;;  %v7028_v28 = vld [vmem:[#allocation5 + $0x8] sm:$0xff]  }
0x2035   :  { %v4426_v46 = vpop.f32.mrf.mxu1  ;;  %v4467_v41 = vpop.f32.mrf.mxu0 }
0x2036   :  { %v4427_v12 = vadd.f32 %v4426_v46, %v10399_v39  ;;  %v4468_v37 = vadd.f32 %v4467_v41, %v7871_v36  ;;  %v7020_v36 = vld [vmem:[%s9824_s17 + $0x18] sm:$0xff]  }
0x2037   :  { %v4428_v3 = vpop.f32.mrf.mxu1  ;;  %v6305_v62 = vpop.f32.mrf.mxu0  ;;  %v7029_v46 = vld [vmem:[#allocation5] sm:$0xff]  }
0x2038   :  { %v4473_v13 = vadd.f32 %v4427_v12, %v4346_v7  ;;  %v4429_v49 = vadd.f32 %v4428_v3, %v7863_v9 }
0x2039   :  { %v4430_v6 = vpop.f32.mrf.mxu1  ;;  %v4470_v5 = vpop.f32.mrf.mxu0 }
0x203a   :  { %v5042_v59 = vmul.f32 -1.442695, %v4473_v13  ;;  %v4480_v2 = vadd.f32 %v4429_v49, %v4348_v53 }
0x203b   :  { %v4431_v51 = vpop.f32.mrf.mxu1  ;;  %v6306_v17 = vpop.f32.mrf.mxu0 }
0x203c   :  { %6747 = vpow2.f32 %v5042_v59  ;;  %v5043_v30 = vmul.f32 -1.442695, %v4480_v2  ;;  %v7030_v59 = vld [vmem:[#allocation8] sm:$0x3] }
0x203d   :  { %v7031_v2 = vld [vmem:[#allocation16 + $0x38] sm:$0xff]  }
0x203e   :  { %6749 = vpow2.f32 %v5043_v30  ;;  %v7032_v30 = vld [vmem:[#allocation16 + $0x30] sm:$0xff]  }
0x2049   :  { %v6748_v22 = vpop.eup %6747 }
0x204a   :  { %v4477_v42 = vadd.f32 1.0, %v6748_v22  ;;  %v7033_v22 = vld [vmem:[#allocation16 + $0x28] sm:$0xff]  }
0x204b   :  { %v6750_v39 = vpop.eup %6749 }
0x204c   :  { %6751 = vrcp.f32 %v4477_v42  ;;  %v4484_v61 = vadd.f32 1.0, %v6750_v39  ;;  %v7034_v42 = vld [vmem:[#allocation16 + $0x20] sm:$0xff]   ;;  %v7035_v39 = vld [vmem:[#allocation16 + $0x18] sm:$0xff]  }
0x204e   :  { %6753 = vrcp.f32 %v4484_v61  ;;  %v7036_v61 = vld [vmem:[#allocation16 + $0x10] sm:$0xff]  }
0x2059   :  { %v6752_v24 = vpop.eup %6751 }
0x205a   :  { %v4487_v31 = vmul.f32 %v6752_v24, %v4468_v37  ;;  %v7037_v37 = vld [vmem:[#allocation16 + $0x8] sm:$0xff]   ;;  %v7038_v24 = vld [vmem:[#allocation16] sm:$0xff]  }
0x205b   :  { %v6754_v32 = vpop.eup %6753 }
0x205c   :  { %v4488_v9 = vadd.f32 %v4487_v31, %v4387_v63  ;;  %v4490_v60 = vsub.f32 1.0, %v6754_v32  ;;  %v4492_v52 = vmul.f32 %v6754_v32, %v9442_v11  ;;  %v7022_v11 = vld [vmem:[%s9824_s17 + $0x8] sm:$0xff]  }
0x205e   :  { %6755 = vtanh.f32 %v4488_v9 }
0x206b   :  { %v6756_v33 = vpop.eup %6755 }
0x206c   :  { %v4491_v26 = vmul.f32 %v6756_v33, %v4490_v60 }
0x206e   :  { %v4493_v34 = vadd.f32 %v4492_v52, %v4491_v26 }
0x2070   :  { %v9724_v54 = vpack.c.bf16 %v4493_v34, %v4493_v34  ;;  %4822 = vst [vmem:[#allocation20 + $0x2] sm:$0x3] %v4493_v34 }
0x2072   :  { %6324 = vmatmul.mubr.bf16.vlgmr.msra.gmra.mxu1 %v9724_v54  ;;  %6344 = vmatmul.mubr.bf16.vlgmr.msra.gmra.mxu0 %v9724_v54 }
0x2073   :  { %6348 = vmatpush3.bf16.msra.mxu1 %v7020_v36  ;;  %6355 = vmatprep.mubr.msk.bf16.mxu1 %vm7318_vm0, %v10077_v58 }
0x2074   :  { %6349 = vmatprep.subr.bf16.mxu1 %v10077_v58  ;;  %6360 = vmatpush3.bf16.msra.mxu0 %v8076_v45  ;;  %v7023_v45 = vld [vmem:[%s9824_s17] sm:$0xff]   ;;  %s7320_s17 = smov [#allocation18]  }
0x2075   :  { %6361 = vmatprep.mubr.msk.bf16.mxu0 %vm7318_vm0, %v10077_v58  ;;  %6377 = vmatprep.subr.bf16.mxu0 %v10077_v58  ;;  %s4840_s22 = sshll.u32 %s7320_s17, 4  ;;  %s4841_s22 = int_to_ptr.vmem [resolvable:$true] %s4840_s22 }
0x2076   :  { %s7227_s10 = scalar_lea.vmem %s4841_s22, 160  ;;  %p7232_p4 = scmp.lt.s32.totalorder %s4841_s22, %s4841_s22 }
0x2077   :  { %6350 = vmatpush3.bf16.msra.mxu1 %v7021_v55  ;;  %p7228_p3 = scmp.ne.s32.totalorder %s4841_s22, %s7227_s10  ;;  %p7233_p5 = scmp.lt.s32.totalorder %s7227_s10, %s7227_s10 }
0x2078   :  { %6351 = vmatprep.subr.bf16.mxu1 %v10077_v58 }
0x2079   :  { %p7234_p6 = por %p7233_p5, %p7232_p4 }
0x207b   :  { %6352 = vmatpush3.bf16.msra.mxu1 %v7022_v11  ;;  %p7235_p7 = pnand %p7234_p6, %p7228_p3 }
0x207c   :  { %6353 = vmatprep.subr.bf16.mxu1 %v10077_v58 }
0x207f   :  { %6354 = vmatpush3.bf16.msra.mxu1 %v7023_v45 }
0x2080   :  { %6365 = vmatprep.subr.bf16.mxu1 %v10077_v58 }
0x2132   :  { %v4529_v20 = vpop.f32.mrf.mxu1  ;;  %v4569_v0 = vpop.f32.mrf.mxu0 }
0x2133   :  { %v4530_v16 = vadd.f32 %v7024_v43, %v4529_v20  ;;  %v4570_v57 = vadd.f32 %v7025_v21, %v4569_v0  ;;  %v7040_v0 = vld [vmem:[#allocation14 + $0x30] sm:$0xff]   ;;  %v7041_v43 = vld [vmem:[#allocation14 + $0x28] sm:$0xff]   ;;  %v7043_v21 = vld [vmem:[#allocation14 + $0x18] sm:$0xff]  }
0x2134   :  { %v6325_v25 = vpop.f32.mrf.mxu1  ;;  %v6345_v19 = vpop.f32.mrf.mxu0 }
0x2135   :  { %v4586_v38 = vsel %vm1549_vm1, %v4530_v16, -inf  ;;  %v4575_v40 = vsel %vm1537_vm2, %v4570_v57, -inf  ;;  %v7045_v25 = vld [vmem:[#allocation14 + $0x8] sm:$0xff]   ;;  %v7046_v19 = vld [vmem:[#allocation14] sm:$0xff]  }
0x2136   :  { %4587 = vmax.xlane.f32.xlu0 %v4586_v38  ;;  %v4532_v15 = vpop.f32.mrf.mxu1  ;;  %4576 = vmax.xlane.f32.xlu1 %v4575_v40  ;;  %v4572_v23 = vpop.f32.mrf.mxu0 }
0x2138   :  { %v6326_v44 = vpop.f32.mrf.mxu1  ;;  %v6346_v47 = vpop.f32.mrf.mxu0 }
0x21bf   :  { %v4588_v8 = vpop.xlane.xlu0 %4587  ;;  %v4577_v56 = vpop.xlane.xlu1 %4576 }
0x21c0   :  { %v4589_v48 = vsub.f32 %v4530_v16, %v4588_v8  ;;  %v4578_v29 = vsub.f32 %v4570_v57, %v4577_v56  ;;  %v7042_v16 = vld [vmem:[#allocation14 + $0x20] sm:$0xff]   ;;  %v7044_v57 = vld [vmem:[#allocation14 + $0x10] sm:$0xff]  }
0x21c2   :  { %v4590_v50 = vmul.f32 1.442695, %v4589_v48  ;;  %v4579_v1 = vmul.f32 1.442695, %v4578_v29 }
0x21c4   :  { %6757 = vpow2.f32 %v4590_v50 }
0x21c5   :  { %6759 = vpow2.f32 %v4579_v1 }
0x21d1   :  { %v6758_v14 = vpop.eup %6757 }
0x21d2   :  { %v6760_v27 = vpop.eup %6759  ;;  %v4592_v35 = vpack.c.bf16 %v6758_v14, %v6758_v14 }
0x21d3   :  { %v4581_v18 = vsel %vm1537_vm2, %v6760_v27, 0.0 }
0x21d4   :  { %4582 = vadd.xlane.f32.xlu0 %v4581_v18  ;;  %6356 = vmatmul.mubr.msk.bf16.vlgmr.msra.gmra.mxu1 %vm1581_vm3, %v4592_v35 }
0x21d5   :  { %6366 = vmatpush3.bf16.msra.mxu1 %v7026_v4  ;;  %6373 = vmatprep.mubr.msk.bf16.mxu1 %vm7318_vm0, %v10077_v58 }
0x21d6   :  { %6367 = vmatprep.subr.bf16.mxu1 %v10077_v58 }
0x21d9   :  { %6368 = vmatpush3.bf16.msra.mxu1 %v7027_v10 }
0x21da   :  { %6369 = vmatprep.subr.bf16.mxu1 %v10077_v58 }
0x21dd   :  { %6370 = vmatpush3.bf16.msra.mxu1 %v7028_v28 }
0x21de   :  { %6371 = vmatprep.subr.bf16.mxu1 %v10077_v58 }
0x21e1   :  { %6372 = vmatpush3.bf16.msra.mxu1 %v7029_v46 }
0x21e2   :  { %6397 = vmatprep.subr.bf16.mxu1 %v10077_v58 }
0x225d   :  { %v4583_v41 = vpop.xlane.xlu0 %4582 }
0x225e   :  { %6761 = vrcp.f32 %v4583_v41 }
0x226b   :  { %v6762_v6 = vpop.eup %6761 }
0x226c   :  { %v4585_v5 = vmul.f32 %v6762_v6, %v6760_v27 }
0x226e   :  { %v4637_v49 = vmul.f32 %v7030_v59, %v4585_v5 }
0x2294   :  { %v4630_v7 = vpop.f32.mrf.mxu1 }
0x2295   :  { %v4636_v12 = vmax.f32 %v4630_v7, 1e-30 }
0x2296   :  { %v6357_v3 = vpop.f32.mrf.mxu1 }
0x2297   :  { %6763 = vrcp.f32 %v4636_v12 }
0x2298   :  { %v4633_v62 = vpop.f32.mrf.mxu1 }
0x229a   :  { %v6358_v13 = vpop.f32.mrf.mxu1 }
0x22a4   :  { %v6764_v51 = vpop.eup %6763 }
0x22a5   :  { %v4639_v17 = vmul.f32 %v6764_v51, %v4637_v49 }
0x22a7   :  { %v4640_v53 = vpack.c.bf16 %v4639_v17, %v4639_v17 }
0x22a9   :  { %6362 = vmatmul.mubr.msk.bf16.vlgmr.msra.gmra.mxu0 %vm1630_vm5, %v4640_v53 }
0x22aa   :  { %6378 = vmatpush3.bf16.msra.mxu0 %v7031_v2  ;;  %6393 = vmatprep.mubr.msk.bf16.mxu0 %vm7318_vm0, %v10077_v58 }
0x22ab   :  { %6379 = vmatprep.subr.bf16.mxu0 %v10077_v58 }
0x22ae   :  { %6380 = vmatpush3.bf16.msra.mxu0 %v7032_v30 }
0x22af   :  { %6381 = vmatprep.subr.bf16.mxu0 %v10077_v58 }
0x22b2   :  { %6382 = vmatpush3.bf16.msra.mxu0 %v7033_v22 }
0x22b3   :  { %6383 = vmatprep.subr.bf16.mxu0 %v10077_v58 }
0x22b6   :  { %6384 = vmatpush3.bf16.msra.mxu0 %v7034_v42 }
0x22b7   :  { %6385 = vmatprep.subr.bf16.mxu0 %v10077_v58 }
0x22ba   :  { %6386 = vmatpush3.bf16.msra.mxu0 %v7035_v39 }
0x22bb   :  { %6387 = vmatprep.subr.bf16.mxu0 %v10077_v58 }
0x22be   :  { %6388 = vmatpush3.bf16.msra.mxu0 %v7036_v61 }
0x22bf   :  { %6389 = vmatprep.subr.bf16.mxu0 %v10077_v58 }
0x22c2   :  { %6390 = vmatpush3.bf16.msra.mxu0 %v7037_v37 }
0x22c3   :  { %6391 = vmatprep.subr.bf16.mxu0 %v10077_v58 }
0x22c6   :  { %6392 = vmatpush3.bf16.msra.mxu0 %v7038_v24 }
0x22c9   :  { %6394 = vmatmul.mubr.bf16.vlgmr.msra.gmra.mxu0 %v9724_v54  ;;  %v7039_v54 = vld [vmem:[#allocation14 + $0x38] sm:$0xff]  }
0x2369   :  { %v4678_v63 = vpop.f32.mrf.mxu0 }
0x236a   :  { %v4684_v31 = vmul.f32 %v6758_v14, %v4678_v63 }
0x236b   :  { %v6363_v9 = vpop.f32.mrf.mxu0 }
0x236c   :  { %v4685_v32 = vsel %vm1549_vm1, %v4684_v31, 0.0 }
0x236d   :  { %4686 = vadd.xlane.f32.xlu1 %v4685_v32  ;;  %v4681_v60 = vpop.f32.mrf.mxu0 }
0x236f   :  { %v6364_v33 = vpop.f32.mrf.mxu0 }
0x2389   :  { %v9775_v26 = vpop.f32.mrf.mxu0 }
0x238b   :  { %v6395_v52 = vpop.f32.mrf.mxu0 }
0x238d   :  { %v4772_v34 = vpop.f32.mrf.mxu0 }
0x238f   :  { %v6396_v36 = vpop.f32.mrf.mxu0 }
0x23f6   :  { %v4687_v55 = vpop.xlane.xlu1 %4686 }
0x23f7   :  { %6765 = vrcp.f32 %v4687_v55 }
0x2404   :  { %v6766_v11 = vpop.eup %6765 }
0x2405   :  { %v4689_v45 = vmul.f32 %v6766_v11, %v4684_v31 }
0x2407   :  { %v4690_v20 = vpack.c.bf16 %v4689_v45, %v4689_v45  ;;  %4819 = vst.msk [vmem:[#allocation18 + $0x8] sm:$0x3] %vm1549_vm1, %v4689_v45 }
0x2409   :  { %6374 = vmatmul.mubr.msk.bf16.vlgmr.msra.gmra.mxu1 %vm1581_vm3, %v4690_v20 }
0x240a   :  { %6398 = vmatpush3.bf16.msra.mxu1 %v7039_v54  ;;  %6413 = vmatprep.mubr.msk.bf16.mxu1 %vm7318_vm0, %v10077_v58 }
0x240b   :  { %6399 = vmatprep.subr.bf16.mxu1 %v10077_v58 }
0x240e   :  { %6400 = vmatpush3.bf16.msra.mxu1 %v7040_v0 }
0x240f   :  { %6401 = vmatprep.subr.bf16.mxu1 %v10077_v58 }
0x2412   :  { %6402 = vmatpush3.bf16.msra.mxu1 %v7041_v43 }
0x2413   :  { %6403 = vmatprep.subr.bf16.mxu1 %v10077_v58 }
0x2416   :  { %6404 = vmatpush3.bf16.msra.mxu1 %v7042_v16 }
0x2417   :  { %6405 = vmatprep.subr.bf16.mxu1 %v10077_v58 }
0x241a   :  { %6406 = vmatpush3.bf16.msra.mxu1 %v7043_v21 }
0x241b   :  { %6407 = vmatprep.subr.bf16.mxu1 %v10077_v58 }
0x241e   :  { %6408 = vmatpush3.bf16.msra.mxu1 %v7044_v57 }
0x241f   :  { %6409 = vmatprep.subr.bf16.mxu1 %v10077_v58 }
0x2422   :  { %6410 = vmatpush3.bf16.msra.mxu1 %v7045_v25 }
0x2423   :  { %6411 = vmatprep.subr.bf16.mxu1 %v10077_v58 }
0x2426   :  { %6412 = vmatpush3.bf16.msra.mxu1 %v7046_v19 }
0x24c9   :  { %v4728_v38 = vpop.f32.mrf.mxu1 }
0x24ca   :  { %v4734_v40 = vpack.c.bf16 %v4728_v38, %v4728_v38 }
0x24cb   :  { %v6375_v15 = vpop.f32.mrf.mxu1 }
0x24cc   :  { %6414 = vmatmul.mubr.bf16.vlgmr.msra.gmra.mxu1 %v4734_v40 }
0x24cd   :  { %v4731_v23 = vpop.f32.mrf.mxu1 }
0x24cf   :  { %v6376_v44 = vpop.f32.mrf.mxu1 }
0x24d0   :  { %7238 = shalt.err (!%p7235_p7)
}
0x24d1   :  { %s7321_s24 = smov 32   ;;  %s7322_s7 = smov 2  }
0x24d2   :  { %4846 = dma.vmem_to_hbm [thread:$0]  %s4841_s22, 160, %s9827_s20, [#allocation19], %s7321_s24, %s7321_s24, %s7322_s7  }
0x24d3   :  { %s7323_s6 = smov [#allocation20]  }
0x24d4   :  { %s4852_s4 = sshll.u32 %s7323_s6, 4  ;;  %s4853_s4 = int_to_ptr.vmem [resolvable:$true] %s4852_s4 }
0x24d5   :  { %s7247_s9 = scalar_lea.vmem %s4853_s4, 64  ;;  %p7252_p9 = scmp.lt.s32.totalorder %s4853_s4, %s4853_s4 }
0x24d6   :  { %p7248_p8 = scmp.ne.s32.totalorder %s4853_s4, %s7247_s9  ;;  %p7253_p10 = scmp.lt.s32.totalorder %s7247_s9, %s7247_s9 }
0x24d8   :  { %p7254_p11 = por %p7253_p10, %p7252_p9 }
0x24da   :  { %p7255_p12 = pnand %p7254_p11, %p7248_p8 }
0x24dc   :  { %7258 = shalt.err (!%p7255_p12)
}
0x24dd   :  { %4858 = dma.vmem_to_hbm [thread:$0]  %s4853_s4, 64, %s9828_s21, [#allocation19], %s7321_s24, %s7321_s24, %s7322_s7  }
0x24de   :  { %s7324_s20 = smov [#allocation17]  }
0x24df   :  { %s4828_s26 = sshll.u32 %s7324_s20, 4  ;;  %s4829_s26 = int_to_ptr.vmem [resolvable:$true] %s4828_s26 }
0x24e0   :  { %s7267_s30 = scalar_lea.vmem %s4829_s26, 160  ;;  %p7272_p0 = scmp.lt.s32.totalorder %s4829_s26, %s4829_s26 }
0x24e1   :  { %p7268_p13 = scmp.ne.s32.totalorder %s4829_s26, %s7267_s30  ;;  %p7273_p1 = scmp.lt.s32.totalorder %s7267_s30, %s7267_s30 }
0x24e3   :  { %p7274_p2 = por %p7273_p1, %p7272_p0 }
0x24e5   :  { %p7275_p3 = pnand %p7274_p2, %p7268_p13 }
0x258c   :  { %v4809_v58 = vpop.f32.mrf.mxu1 }
0x258d   :  { %v4810_v47 = vadd.f32 %v4809_v58, %v9775_v26 }
0x258e   :  { %v6415_v8 = vpop.f32.mrf.mxu1 }
0x258f   :  { %6767 = vtanh.f32 %v4810_v47 }
0x2590   :  { %v4812_v56 = vpop.f32.mrf.mxu1 }
0x2592   :  { %v6416_v48 = vpop.f32.mrf.mxu1 }
0x259c   :  { %v6768_v29 = vpop.eup %6767 }
0x259d   :  { %4817 = vst [vmem:[#allocation17 + $0x8] sm:$0x3] %v6768_v29 }
0x259e   :  { %7278 = shalt.err (!%p7275_p3)
}
0x259f   :  { %4834 = dma.vmem_to_hbm [thread:$0]  %s4829_s26, 160, %s9826_s19, [#allocation4], %s7321_s24, %s7321_s24, %s7322_s7  }
0x25a0   :  { %7297 = dma.done.wait [#allocation4], 160  }
0x25a1   :  { %7298 = vsyncadd [#allocation4], 4294967136 }
0x25a2   :  { %7299 = dma.done.wait [#allocation19], 224  }
0x25a3   :  { %7300 = vsyncadd [#allocation19], 4294967072 }
0x25a4   :  { %4868 = vsyncpa [#allocation3], 1 }
0x25a5   :  { %4869 = vsyncpa [#allocation6], 1 }
0x25a6   :  { %4870 = vsyncpa [#allocation9], 1 }
0x25a7   :  { %4871 = vsyncpa [#allocation12], 1 }
0x25a8   :  { %4872 = vsyncpa [#allocation15], 1 }
0x25a9   :  { %4873 = vsyncpa [#allocation4], 1 }
0x25aa   :  { %4874 = vsyncpa [#allocation19], 1 }

</bundles_post_ra>
